<compile_context>
chip_gen: v5e
topology: v5e:2x2
jax: 0.10.0
libtpu: 0.0.40
codegen_flags: <defaults>
</compile_context>

<pallas_src>
import functools

import jax
import jax.numpy as jnp
from jax import lax
from jax.experimental import pallas as pl
from jax.experimental.pallas import tpu as pltpu

COMMITMENT_COST = 0.25


def _largest_tile(total, target, multiple):
    """Largest divisor of `total` that is <= target and a multiple of `multiple`."""
    t = min(target, total)
    t -= t % multiple
    while t >= multiple and total % t != 0:
        t -= multiple
    if t < multiple or total % t != 0:
        return total
    return t


# ----------------------------------------------------------------------------
# Fused encoder -> vector-quantizer -> decoder kernel (tiled over rows).
#   x      : (M, C)     flattened NHWC input rows
#   enc_w  : (C, D)     1x1-conv stand-in
#   eT     : (D, K)     codebook, pre-transposed for the distance matmul
#   e      : (K, D)     codebook (for the onehot @ e lookup)
#   e_norm : (1, K)     precomputed |e_k|^2 (grid-invariant, hoisted)
#   dec_w  : (D, C)     1x1-conv stand-in
# outputs per tile i:
#   q      : (tm, D) bf16   quantized latents (straight-through forward value)
#   recon  : (tm, C) f32    decoder output rows
#   err_p  : (1, 1, 1)      sum_{m,d} (q - z)^2 over this tile
#   cnt_p  : (1, 1, K)      codebook usage counts over this tile
# ----------------------------------------------------------------------------
def _fused_enc_vq_dec_kernel(x_ref, enc_w_ref, enc_b_ref, eT_ref, e_ref,
                             en_ref, dec_w_ref, dec_b_ref,
                             q_ref, recon_ref, err_ref, cnt_ref, *, c_in):
    # --- encoder: tiny contraction (c_in ~ 3-4) -> VPU broadcast mul-adds ----
    x = x_ref[...]                                        # (tm, C) fp32
    z = enc_b_ref[...]                                    # (1, D) -> broadcasts
    for c in range(c_in):                                 # static unroll, tiny
        z = z + x[:, c:c + 1] * enc_w_ref[c:c + 1, :]     # (tm,1)*(1,D)
    # z: (tm, D) fp32

    # --- vector quantizer ----------------------------------------------------
    # squared-L2 argmin: |z|^2 term is constant per row -> dropped.
    # distance matmul uses the pre-transposed codebook (no in-kernel transpose)
    d = en_ref[...] - 2.0 * jnp.dot(z, eT_ref[...],
                                    preferred_element_type=jnp.float32)  # (tm,K)

    num_codes = d.shape[1]
    iota_k = lax.broadcasted_iota(jnp.int32, d.shape, 1)
    dmin = jnp.min(d, axis=1, keepdims=True)
    # first index achieving the minimum (matches torch.argmin tie-breaking)
    idx = jnp.min(jnp.where(d <= dmin, iota_k, num_codes), axis=1, keepdims=True)
    onehot = (iota_k == idx).astype(jnp.float32)          # (tm, K)

    q = jnp.dot(onehot, e_ref[...], preferred_element_type=jnp.float32)  # (tm, D)
    q_ref[...] = q.astype(q_ref.dtype)                    # bf16 for classifier

    # per-tile reductions on the (mostly idle) MXU instead of the 2 XLUs
    ones_row = jnp.ones((1, q.shape[0]), jnp.float32)     # (1, tm)
    diff = q - z
    err_row = jnp.dot(ones_row, diff * diff,
                      preferred_element_type=jnp.float32)            # (1, D)
    err_ref[0] = jnp.sum(err_row, axis=1, keepdims=True)             # (1, 1)
    cnt_ref[0] = jnp.dot(ones_row, onehot,
                         preferred_element_type=jnp.float32)         # (1, K)

    # --- decoder (1x1-conv stand-in) -----------------------------------------
    recon = jnp.dot(q, dec_w_ref[...], preferred_element_type=jnp.float32)
    recon_ref[...] = (recon + dec_b_ref[...]).astype(recon_ref.dtype)


def fused_encode_quantize_decode(x_flat, enc_w, enc_b, codebook_t, codebook,
                                 e_norms, dec_w, dec_b, *, tm=256):
    M, C = x_flat.shape
    K, d_emb = codebook.shape
    tm = _largest_tile(M, tm, 8)
    grid = M // tm

    q, recon, err_p, cnt_p = pl.pallas_call(
        functools.partial(_fused_enc_vq_dec_kernel, c_in=C),
        out_shape=(
            jax.ShapeDtypeStruct((M, d_emb), jnp.bfloat16),
            jax.ShapeDtypeStruct((M, C), jnp.float32),
            jax.ShapeDtypeStruct((grid, 1, 1), jnp.float32),
            jax.ShapeDtypeStruct((grid, 1, K), jnp.float32),
        ),
        grid_spec=pltpu.PrefetchScalarGridSpec(
            num_scalar_prefetch=0,
            grid=(grid,),
            in_specs=[
                pl.BlockSpec((tm, C), lambda i: (i, 0)),
                pl.BlockSpec((C, d_emb), lambda i: (0, 0)),
                pl.BlockSpec((1, d_emb), lambda i: (0, 0)),
                pl.BlockSpec((d_emb, K), lambda i: (0, 0)),
                pl.BlockSpec((K, d_emb), lambda i: (0, 0)),
                pl.BlockSpec((1, K), lambda i: (0, 0)),
                pl.BlockSpec((d_emb, C), lambda i: (0, 0)),
                pl.BlockSpec((1, C), lambda i: (0, 0)),
            ],
            out_specs=(
                pl.BlockSpec((tm, d_emb), lambda i: (i, 0)),
                pl.BlockSpec((tm, C), lambda i: (i, 0)),
                pl.BlockSpec((1, 1, 1), lambda i: (i, 0, 0)),
                pl.BlockSpec((1, 1, K), lambda i: (i, 0, 0)),
            ),
        ),
        compiler_params=pltpu.CompilerParams(
            dimension_semantics=("parallel",),
            vmem_limit_bytes=32 * 1024 * 1024,
        ),
    )(x_flat, enc_w, enc_b, codebook_t, codebook, e_norms, dec_w, dec_b)

    err_sum = jnp.sum(err_p)
    counts = jnp.sum(cnt_p, axis=(0, 1))                  # (K,)
    return q, recon, err_sum, counts


# ----------------------------------------------------------------------------
# Classifier: Linear -> ReLU -> [Dropout=id] -> Linear -> ReLU -> [Dropout=id]
#             -> Linear -> Sigmoid
# Weights are bf16 (fp32 MXU accumulation).  The first (large) matmul is
# K-tiled over the contraction dim with a VMEM fp32 accumulator; with the
# de-padded F and default tk the grid collapses to 1 step, so w1 streams from
# HBM exactly once.  Layers 2/3 + sigmoid are fused into the final grid step.
# Dropout(0.5) is the identity in inference mode.
# ----------------------------------------------------------------------------
def _classifier_kernel(x_ref, w1_ref, b1_ref, w2_ref, b2_ref, w3_ref, b3_ref,
                       o_ref, acc_ref):
    k = pl.program_id(0)

    @pl.when(k == 0)
    def _():
        acc_ref[...] = jnp.zeros_like(acc_ref)

    acc_ref[...] += jnp.dot(x_ref[...], w1_ref[...],
                            preferred_element_type=jnp.float32)

    @pl.when(k == pl.num_programs(0) - 1)
    def _():
        h = jnp.maximum(acc_ref[...] + b1_ref[...], 0.0)
        h = jnp.dot(h.astype(jnp.bfloat16), w2_ref[...],
                    preferred_element_type=jnp.float32)
        h = jnp.maximum(h + b2_ref[...], 0.0)
        logits = jnp.dot(h.astype(jnp.bfloat16), w3_ref[...],
                         preferred_element_type=jnp.float32)
        logits = logits + b3_ref[...]
        # numerically stable sigmoid via tanh (EUP slot)
        o_ref[...] = (0.5 * (jnp.tanh(0.5 * logits) + 1.0)).astype(o_ref.dtype)


def classifier_forward(x, w1, b1, w2, b2, w3, b3, *, tk=16384):
    B, F = x.shape
    H1 = w1.shape[1]
    H2 = w2.shape[1]
    C = w3.shape[1]
    # Keep double-buffered bf16 w1 blocks well inside v7x's 32 MiB scoped VMEM.
    tk = _largest_tile(F, tk, 128)
    grid = F // tk
    const = lambda k: (0, 0)
    return pl.pallas_call(
        _classifier_kernel,
        out_shape=jax.ShapeDtypeStruct((B, C), jnp.float32),
        grid_spec=pltpu.PrefetchScalarGridSpec(
            num_scalar_prefetch=0,
            grid=(grid,),
            in_specs=[
                pl.BlockSpec((B, tk), lambda k: (0, k)),
                pl.BlockSpec((tk, H1), lambda k: (k, 0)),
                pl.BlockSpec((1, H1), const),
                pl.BlockSpec((H1, H2), const),
                pl.BlockSpec((1, H2), const),
                pl.BlockSpec((H2, C), const),
                pl.BlockSpec((1, C), const),
            ],
            out_specs=pl.BlockSpec((B, C), const),
            scratch_shapes=[pltpu.VMEM((B, H1), jnp.float32)],
        ),
        compiler_params=pltpu.CompilerParams(
            dimension_semantics=("arbitrary",),
            vmem_limit_bytes=32 * 1024 * 1024,
        ),
    )(x, w1, b1, w2, b2, w3, b3)


# ----------------------------------------------------------------------------
# Parameter init (weights permuted / cast once here so the kernels see
# transpose-free layouts and bf16 classifier weights).
# ----------------------------------------------------------------------------
def init_params(key, *, c_in, embed_dim, num_embeddings, h, w, hidden,
                num_classes):
    ks = jax.random.split(key, 6)
    feat = embed_dim * h * w

    enc_w = jax.random.normal(ks[0], (c_in, embed_dim), jnp.float32) * 0.1

    # PyTorch VQ codebook init: uniform(-1/K, 1/K).
    codebook = jax.random.uniform(
        ks[1], (num_embeddings, embed_dim), jnp.float32,
        -1.0 / num_embeddings, 1.0 / num_embeddings)
    codebook_t = jnp.transpose(codebook)                       # (D, K), hoisted
    e_norms = jnp.sum(codebook * codebook, axis=1)[None, :]    # (1, K), hoisted

    dec_w = jax.random.normal(ks[2], (embed_dim, c_in), jnp.float32) * 0.1

    # Classifier w1 is conceptually defined for torch's quantized.view(B, -1)
    # (NCHW flattening).  Permute its rows once so the kernel consumes q in the
    # NHWC layout directly (no per-forward transpose of quantized), and store
    # it in bf16 (fp32 accumulation in the kernel).
    w1_nchw = jax.random.normal(ks[3], (feat, hidden), jnp.float32) * 0.02
    w1 = w1_nchw.reshape(embed_dim, h, w, hidden)
    w1 = jnp.transpose(w1, (1, 2, 0, 3)).reshape(h * w * embed_dim, hidden)
    w1 = w1.astype(jnp.bfloat16)

    w2 = (jax.random.normal(ks[4], (hidden, hidden // 2), jnp.float32)
          * 0.05).astype(jnp.bfloat16)
    w3 = (jax.random.normal(ks[5], (hidden // 2, num_classes), jnp.float32)
          * 0.1).astype(jnp.bfloat16)

    return {
        "enc_w": enc_w,
        "enc_b": jnp.zeros((1, embed_dim), jnp.float32),
        "codebook": codebook,
        "codebook_t": codebook_t,
        "e_norms": e_norms,
        "dec_w": dec_w,
        "dec_b": jnp.zeros((1, c_in), jnp.float32),
        "cls_w1": w1,
        "cls_b1": jnp.zeros((1, hidden), jnp.float32),
        "cls_w2": w2,
        "cls_b2": jnp.zeros((1, hidden // 2), jnp.float32),
        "cls_w3": w3,
        "cls_b3": jnp.zeros((1, num_classes), jnp.float32),
    }


# ----------------------------------------------------------------------------
# ExtendedModel forward
# ----------------------------------------------------------------------------
def extended_model_forward(params, x_nchw, *, embed_dim, tm=256, cls_tk=16384):
    B, C, H, W = x_nchw.shape
    M = B * H * W

    # NCHW -> NHWC -> (M, C) rows
    x_flat = jnp.transpose(x_nchw, (0, 2, 3, 1)).reshape(M, C)

    q_flat, recon_flat, err_sum, counts = fused_encode_quantize_decode(
        x_flat, params["enc_w"], params["enc_b"], params["codebook_t"],
        params["codebook"], params["e_norms"], params["dec_w"],
        params["dec_b"], tm=tm)

    # VQ loss forward value: q_latent_loss + commitment_cost * e_latent_loss
    mse = err_sum / (M * embed_dim)
    loss = (1.0 + COMMITMENT_COST) * mse
    avg_probs = counts / M
    perplexity = jnp.exp(-jnp.sum(avg_probs * jnp.log(avg_probs + 1e-10)))

    # classifier on quantized (w1 rows permuted at init -> consume q's NHWC
    # layout directly; q already emitted in bf16 by the fused kernel)
    cls_in = q_flat.reshape(B, H * W * embed_dim)
    classifier_output = classifier_forward(
        cls_in, params["cls_w1"], params["cls_b1"], params["cls_w2"],
        params["cls_b2"], params["cls_w3"], params["cls_b3"], tk=cls_tk)

    # decoder output rows -> NCHW reconstruction
    x_recon = jnp.transpose(recon_flat.reshape(B, H, W, C), (0, 3, 1, 2))

    return loss, x_recon, perplexity, classifier_output


if __name__ == "__main__":
    # Small shapes consistent with the module:
    #   original: quantized is (B, 512, 14, 14) -> classifier in_dim 512*14*14
    #   here:     quantized is (B, 64, 16, 16)  -> classifier in_dim 64*16*16
    B, C_IN, H, W = 2, 4, 16, 16
    EMBED_DIM = 64
    NUM_EMBED = 128
    HIDDEN, NUM_CLASSES = 128, 1

    key = jax.random.PRNGKey(0)
    pkey, xkey = jax.random.split(key)
    params = init_params(pkey, c_in=C_IN, embed_dim=EMBED_DIM,
                         num_embeddings=NUM_EMBED, h=H, w=W, hidden=HIDDEN,
                         num_classes=NUM_CLASSES)
    x = jax.random.normal(xkey, (B, C_IN, H, W), jnp.float32)

    fwd = jax.jit(functools.partial(extended_model_forward,
                                    embed_dim=EMBED_DIM, tm=256, cls_tk=16384))
    loss, x_recon, perplexity, cls_out = fwd(params, x)
    jax.block_until_ready((loss, x_recon, perplexity, cls_out))

    assert x_recon.shape == (B, C_IN, H, W)
    assert cls_out.shape == (B, NUM_CLASSES)
    assert loss.shape == () and perplexity.shape == ()
    assert bool(jnp.isfinite(loss)) and bool(jnp.isfinite(perplexity))
    assert bool(jnp.all(jnp.isfinite(x_recon)))
    assert bool(jnp.all((cls_out >= 0.0) & (cls_out <= 1.0)))
    print("KERNEL_OK")
</pallas_src>

<mosaic_0001>
module attributes {stable_mosaic.version = 11 : i64} {
  func.func @_fused_enc_vq_dec_kernel(%arg0: i32, %arg1: memref<256x4xf32, #tpu.memory_space<vmem>>, %arg2: memref<4x64xf32, #tpu.memory_space<vmem>>, %arg3: memref<1x64xf32, #tpu.memory_space<vmem>>, %arg4: memref<64x128xf32, #tpu.memory_space<vmem>>, %arg5: memref<128x64xf32, #tpu.memory_space<vmem>>, %arg6: memref<1x128xf32, #tpu.memory_space<vmem>>, %arg7: memref<64x4xf32, #tpu.memory_space<vmem>>, %arg8: memref<1x4xf32, #tpu.memory_space<vmem>>, %arg9: memref<256x64xbf16, #tpu.memory_space<vmem>>, %arg10: memref<256x4xf32, #tpu.memory_space<vmem>>, %arg11: memref<1x1x1xf32, #tpu.memory_space<vmem>>, %arg12: memref<1x1x128xf32, #tpu.memory_space<vmem>>) attributes {dimension_semantics = [#tpu.dimension_semantics<parallel>], iteration_bounds = array<i64: 2>, scalar_prefetch = 0 : i64, scratch_operands = 0 : i64, tpu.core_type = #tpu.core_type<tc>, window_params = [{transform_indices = @transform_0, window_bounds = array<i64: 256, 4>}, {pipeline_mode = #tpu.pipeline_mode<synchronous>, transform_indices = @transform_1, window_bounds = array<i64: 4, 64>}, {pipeline_mode = #tpu.pipeline_mode<synchronous>, transform_indices = @transform_2, window_bounds = array<i64: 1, 64>}, {pipeline_mode = #tpu.pipeline_mode<synchronous>, transform_indices = @transform_3, window_bounds = array<i64: 64, 128>}, {pipeline_mode = #tpu.pipeline_mode<synchronous>, transform_indices = @transform_4, window_bounds = array<i64: 128, 64>}, {pipeline_mode = #tpu.pipeline_mode<synchronous>, transform_indices = @transform_5, window_bounds = array<i64: 1, 128>}, {pipeline_mode = #tpu.pipeline_mode<synchronous>, transform_indices = @transform_6, window_bounds = array<i64: 64, 4>}, {pipeline_mode = #tpu.pipeline_mode<synchronous>, transform_indices = @transform_7, window_bounds = array<i64: 1, 4>}, {transform_indices = @transform_8, window_bounds = array<i64: 256, 64>}, {transform_indices = @transform_9, window_bounds = array<i64: 256, 4>}, {transform_indices = @transform_10, window_bounds = array<i64: 1, 1, 1>}, {transform_indices = @transform_11, window_bounds = array<i64: 1, 1, 128>}]} {
    %c0 = arith.constant 0 : index
    %c0_0 = arith.constant 0 : index
    %0 = vector.load %arg1[%c0, %c0_0] : memref<256x4xf32, #tpu.memory_space<vmem>>, vector<256x4xf32>
    %c0_1 = arith.constant 0 : index
    %c0_2 = arith.constant 0 : index
    %1 = vector.load %arg3[%c0_1, %c0_2] : memref<1x64xf32, #tpu.memory_space<vmem>>, vector<1x64xf32>
    %2 = vector.extract_strided_slice %0 {offsets = [0, 0], sizes = [256, 1], strides = [1, 1]} : vector<256x4xf32> to vector<256x1xf32>
    %c0_3 = arith.constant 0 : index
    %c0_4 = arith.constant 0 : index
    %3 = vector.load %arg2[%c0_3, %c0_4] : memref<4x64xf32, #tpu.memory_space<vmem>>, vector<1x64xf32>
    %4 = vector.broadcast %2 : vector<256x1xf32> to vector<256x64xf32>
    %5 = vector.broadcast %3 : vector<1x64xf32> to vector<256x64xf32>
    %6 = arith.mulf %4, %5 : vector<256x64xf32>
    %7 = vector.broadcast %1 : vector<1x64xf32> to vector<256x64xf32>
    %8 = arith.addf %7, %6 : vector<256x64xf32>
    %9 = vector.extract_strided_slice %0 {offsets = [0, 1], sizes = [256, 1], strides = [1, 1]} : vector<256x4xf32> to vector<256x1xf32>
    %c1 = arith.constant 1 : index
    %c0_5 = arith.constant 0 : index
    %10 = vector.load %arg2[%c1, %c0_5] : memref<4x64xf32, #tpu.memory_space<vmem>>, vector<1x64xf32>
    %11 = vector.broadcast %9 : vector<256x1xf32> to vector<256x64xf32>
    %12 = vector.broadcast %10 : vector<1x64xf32> to vector<256x64xf32>
    %13 = arith.mulf %11, %12 : vector<256x64xf32>
    %14 = arith.addf %8, %13 : vector<256x64xf32>
    %15 = vector.extract_strided_slice %0 {offsets = [0, 2], sizes = [256, 1], strides = [1, 1]} : vector<256x4xf32> to vector<256x1xf32>
    %c2 = arith.constant 2 : index
    %c0_6 = arith.constant 0 : index
    %16 = vector.load %arg2[%c2, %c0_6] : memref<4x64xf32, #tpu.memory_space<vmem>>, vector<1x64xf32>
    %17 = vector.broadcast %15 : vector<256x1xf32> to vector<256x64xf32>
    %18 = vector.broadcast %16 : vector<1x64xf32> to vector<256x64xf32>
    %19 = arith.mulf %17, %18 : vector<256x64xf32>
    %20 = arith.addf %14, %19 : vector<256x64xf32>
    %21 = vector.extract_strided_slice %0 {offsets = [0, 3], sizes = [256, 1], strides = [1, 1]} : vector<256x4xf32> to vector<256x1xf32>
    %c3 = arith.constant 3 : index
    %c0_7 = arith.constant 0 : index
    %22 = vector.load %arg2[%c3, %c0_7] : memref<4x64xf32, #tpu.memory_space<vmem>>, vector<1x64xf32>
    %23 = vector.broadcast %21 : vector<256x1xf32> to vector<256x64xf32>
    %24 = vector.broadcast %22 : vector<1x64xf32> to vector<256x64xf32>
    %25 = arith.mulf %23, %24 : vector<256x64xf32>
    %26 = arith.addf %20, %25 : vector<256x64xf32>
    %c0_8 = arith.constant 0 : index
    %c0_9 = arith.constant 0 : index
    %27 = vector.load %arg6[%c0_8, %c0_9] : memref<1x128xf32, #tpu.memory_space<vmem>>, vector<1x128xf32>
    %c0_10 = arith.constant 0 : index
    %c0_11 = arith.constant 0 : index
    %28 = vector.load %arg4[%c0_10, %c0_11] : memref<64x128xf32, #tpu.memory_space<vmem>>, vector<64x128xf32>
    %cst = arith.constant dense<0.000000e+00> : vector<256x128xf32>
    %29 = tpu.matmul %26, %28, %cst {dimension_numbers = #tpu.dot_dimension_numbers<[1], [0], [0], [1], [0, 0, 1, 1], [], []>} : vector<256x64xf32>, vector<64x128xf32>, vector<256x128xf32> -> vector<256x128xf32>
    %cst_12 = arith.constant 2.000000e+00 : f32
    %30 = vector.broadcast %cst_12 : f32 to vector<256x128xf32>
    %31 = arith.mulf %30, %29 : vector<256x128xf32>
    %32 = vector.broadcast %27 : vector<1x128xf32> to vector<256x128xf32>
    %33 = arith.subf %32, %31 : vector<256x128xf32>
    %34 = tpu.iota {dimensions = array<i32: 1>} : vector<256x128xi32>
    %cst_13 = arith.constant dense<0x7F800000> : vector<256xf32>
    %35 = vector.multi_reduction <minimumf>, %33, %cst_13 [1] : vector<256x128xf32> to vector<256xf32>
    %36 = vector.shape_cast %35 : vector<256xf32> to vector<256x1xf32>
    %37 = vector.broadcast %36 : vector<256x1xf32> to vector<256x128xf32>
    %38 = arith.cmpf ole, %33, %37 : vector<256x128xf32>
    %c128_i32 = arith.constant 128 : i32
    %39 = vector.broadcast %c128_i32 : i32 to vector<256x128xi32>
    %40 = arith.select %38, %34, %39 : vector<256x128xi1>, vector<256x128xi32>
    %cst_14 = arith.constant dense<2147483647> : vector<256xi32>
    %41 = vector.multi_reduction <minsi>, %40, %cst_14 [1] : vector<256x128xi32> to vector<256xi32>
    %42 = vector.shape_cast %41 : vector<256xi32> to vector<256x1xi32>
    %43 = vector.broadcast %42 : vector<256x1xi32> to vector<256x128xi32>
    %44 = arith.cmpi eq, %34, %43 : vector<256x128xi32>
    %45 = arith.extui %44 : vector<256x128xi1> to vector<256x128xi32>
    %46 = arith.sitofp %45 : vector<256x128xi32> to vector<256x128xf32>
    %c0_15 = arith.constant 0 : index
    %c0_16 = arith.constant 0 : index
    %47 = vector.load %arg5[%c0_15, %c0_16] : memref<128x64xf32, #tpu.memory_space<vmem>>, vector<128x64xf32>
    %cst_17 = arith.constant dense<0.000000e+00> : vector<256x64xf32>
    %48 = tpu.matmul %46, %47, %cst_17 {dimension_numbers = #tpu.dot_dimension_numbers<[1], [0], [0], [1], [0, 0, 1, 1], [], []>} : vector<256x128xf32>, vector<128x64xf32>, vector<256x64xf32> -> vector<256x64xf32>
    %49 = arith.truncf %48 : vector<256x64xf32> to vector<256x64xbf16>
    %c0_18 = arith.constant 0 : index
    %c0_19 = arith.constant 0 : index
    %50 = vector.load %arg9[%c0_18, %c0_19] : memref<256x64xbf16, #tpu.memory_space<vmem>>, vector<256x64xbf16>
    tpu.vector_store %arg9[%c0_18, %c0_19], %49 {strides = array<i32>} : memref<256x64xbf16, #tpu.memory_space<vmem>>, vector<256x64xbf16>,
    %cst_20 = arith.constant 1.000000e+00 : f32
    %51 = vector.broadcast %cst_20 : f32 to vector<1x256xf32>
    %52 = arith.subf %48, %26 : vector<256x64xf32>
    %53 = arith.mulf %52, %52 : vector<256x64xf32>
    %cst_21 = arith.constant dense<0.000000e+00> : vector<1x64xf32>
    %54 = tpu.matmul %51, %53, %cst_21 {dimension_numbers = #tpu.dot_dimension_numbers<[1], [0], [0], [1], [0, 0, 1, 1], [], []>} : vector<1x256xf32>, vector<256x64xf32>, vector<1x64xf32> -> vector<1x64xf32>
    %cst_22 = arith.constant dense<0.000000e+00> : vector<1xf32>
    %55 = vector.multi_reduction <add>, %54, %cst_22 [1] : vector<1x64xf32> to vector<1xf32>
    %56 = vector.shape_cast %55 : vector<1xf32> to vector<1x1xf32>
    %c0_23 = arith.constant 0 : index
    %c0_24 = arith.constant 0 : index
    %c0_25 = arith.constant 0 : index
    %57 = vector.load %arg11[%c0_23, %c0_24, %c0_25] : memref<1x1x1xf32, #tpu.memory_space<vmem>>, vector<1x1x1xf32>
    %58 = vector.shape_cast %57 : vector<1x1x1xf32> to vector<1x1xf32>
    %59 = vector.shape_cast %56 : vector<1x1xf32> to vector<1x1x1xf32>
    tpu.vector_store %arg11[%c0_23, %c0_24, %c0_25], %59 {strides = array<i32>} : memref<1x1x1xf32, #tpu.memory_space<vmem>>, vector<1x1x1xf32>,
    %cst_26 = arith.constant dense<0.000000e+00> : vector<1x128xf32>
    %60 = tpu.matmul %51, %46, %cst_26 {dimension_numbers = #tpu.dot_dimension_numbers<[1], [0], [0], [1], [0, 0, 1, 1], [], []>} : vector<1x256xf32>, vector<256x128xf32>, vector<1x128xf32> -> vector<1x128xf32>
    %c0_27 = arith.constant 0 : index
    %c0_28 = arith.constant 0 : index
    %c0_29 = arith.constant 0 : index
    %61 = vector.load %arg12[%c0_27, %c0_28, %c0_29] : memref<1x1x128xf32, #tpu.memory_space<vmem>>, vector<1x1x128xf32>
    %62 = vector.shape_cast %61 : vector<1x1x128xf32> to vector<1x128xf32>
    %63 = vector.shape_cast %60 : vector<1x128xf32> to vector<1x1x128xf32>
    tpu.vector_store %arg12[%c0_27, %c0_28, %c0_29], %63 {strides = array<i32>} : memref<1x1x128xf32, #tpu.memory_space<vmem>>, vector<1x1x128xf32>,
    %c0_30 = arith.constant 0 : index
    %c0_31 = arith.constant 0 : index
    %64 = vector.load %arg7[%c0_30, %c0_31] : memref<64x4xf32, #tpu.memory_space<vmem>>, vector<64x4xf32>
    %cst_32 = arith.constant dense<0.000000e+00> : vector<256x4xf32>
    %65 = tpu.matmul %48, %64, %cst_32 {dimension_numbers = #tpu.dot_dimension_numbers<[1], [0], [0], [1], [0, 0, 1, 1], [], []>} : vector<256x64xf32>, vector<64x4xf32>, vector<256x4xf32> -> vector<256x4xf32>
    %c0_33 = arith.constant 0 : index
    %c0_34 = arith.constant 0 : index
    %66 = vector.load %arg8[%c0_33, %c0_34] : memref<1x4xf32, #tpu.memory_space<vmem>>, vector<1x4xf32>
    %67 = vector.broadcast %66 : vector<1x4xf32> to vector<256x4xf32>
    %68 = arith.addf %65, %67 : vector<256x4xf32>
    %c0_35 = arith.constant 0 : index
    %c0_36 = arith.constant 0 : index
    %69 = vector.load %arg10[%c0_35, %c0_36] : memref<256x4xf32, #tpu.memory_space<vmem>>, vector<256x4xf32>
    tpu.vector_store %arg10[%c0_35, %c0_36], %68 {strides = array<i32>} : memref<256x4xf32, #tpu.memory_space<vmem>>, vector<256x4xf32>,
    return
  }
  func.func @transform_0(%arg0: i32) -> (i32, i32) {
    %c0_i32 = arith.constant 0 : i32
    %c0_i32_0 = arith.constant 0 : i32
    return %arg0, %c0_i32 : i32, i32
  }
  func.func @transform_1(%arg0: i32) -> (i32, i32) {
    %c0_i32 = arith.constant 0 : i32
    %c0_i32_0 = arith.constant 0 : i32
    %c0_i32_1 = arith.constant 0 : i32
    return %c0_i32, %c0_i32_0 : i32, i32
  }
  func.func @transform_2(%arg0: i32) -> (i32, i32) {
    %c0_i32 = arith.constant 0 : i32
    %c0_i32_0 = arith.constant 0 : i32
    %c0_i32_1 = arith.constant 0 : i32
    return %c0_i32, %c0_i32_0 : i32, i32
  }
  func.func @transform_3(%arg0: i32) -> (i32, i32) {
    %c0_i32 = arith.constant 0 : i32
    %c0_i32_0 = arith.constant 0 : i32
    %c0_i32_1 = arith.constant 0 : i32
    return %c0_i32, %c0_i32_0 : i32, i32
  }
  func.func @transform_4(%arg0: i32) -> (i32, i32) {
    %c0_i32 = arith.constant 0 : i32
    %c0_i32_0 = arith.constant 0 : i32
    %c0_i32_1 = arith.constant 0 : i32
    return %c0_i32, %c0_i32_0 : i32, i32
  }
  func.func @transform_5(%arg0: i32) -> (i32, i32) {
    %c0_i32 = arith.constant 0 : i32
    %c0_i32_0 = arith.constant 0 : i32
    %c0_i32_1 = arith.constant 0 : i32
    return %c0_i32, %c0_i32_0 : i32, i32
  }
  func.func @transform_6(%arg0: i32) -> (i32, i32) {
    %c0_i32 = arith.constant 0 : i32
    %c0_i32_0 = arith.constant 0 : i32
    %c0_i32_1 = arith.constant 0 : i32
    return %c0_i32, %c0_i32_0 : i32, i32
  }
  func.func @transform_7(%arg0: i32) -> (i32, i32) {
    %c0_i32 = arith.constant 0 : i32
    %c0_i32_0 = arith.constant 0 : i32
    %c0_i32_1 = arith.constant 0 : i32
    return %c0_i32, %c0_i32_0 : i32, i32
  }
  func.func @transform_8(%arg0: i32) -> (i32, i32) {
    %c0_i32 = arith.constant 0 : i32
    %c0_i32_0 = arith.constant 0 : i32
    return %arg0, %c0_i32 : i32, i32
  }
  func.func @transform_9(%arg0: i32) -> (i32, i32) {
    %c0_i32 = arith.constant 0 : i32
    %c0_i32_0 = arith.constant 0 : i32
    return %arg0, %c0_i32 : i32, i32
  }
  func.func @transform_10(%arg0: i32) -> (i32, i32, i32) {
    %c0_i32 = arith.constant 0 : i32
    %c0_i32_0 = arith.constant 0 : i32
    %c0_i32_1 = arith.constant 0 : i32
    return %arg0, %c0_i32, %c0_i32_0 : i32, i32, i32
  }
  func.func @transform_11(%arg0: i32) -> (i32, i32, i32) {
    %c0_i32 = arith.constant 0 : i32
    %c0_i32_0 = arith.constant 0 : i32
    %c0_i32_1 = arith.constant 0 : i32
    return %arg0, %c0_i32, %c0_i32_0 : i32, i32, i32
  }
}

module attributes {stable_mosaic.version = 11 : i64} {
  func.func @_classifier_kernel(%arg0: i32, %arg1: memref<2x16384xbf16, #tpu.memory_space<vmem>>, %arg2: memref<16384x128xbf16, #tpu.memory_space<vmem>>, %arg3: memref<1x128xf32, #tpu.memory_space<vmem>>, %arg4: memref<128x64xbf16, #tpu.memory_space<vmem>>, %arg5: memref<1x64xf32, #tpu.memory_space<vmem>>, %arg6: memref<64x1xbf16, #tpu.memory_space<vmem>>, %arg7: memref<1x1xf32, #tpu.memory_space<vmem>>, %arg8: memref<2x1xf32, #tpu.memory_space<vmem>>, %arg9: memref<2x128xf32, #tpu.memory_space<vmem>>) attributes {dimension_semantics = [#tpu.dimension_semantics<arbitrary>], iteration_bounds = array<i64: 1>, scalar_prefetch = 0 : i64, scratch_operands = 1 : i64, tpu.core_type = #tpu.core_type<tc>, window_params = [{transform_indices = @transform_0, window_bounds = array<i64: 2, 16384>}, {transform_indices = @transform_1, window_bounds = array<i64: 16384, 128>}, {pipeline_mode = #tpu.pipeline_mode<synchronous>, transform_indices = @transform_2, window_bounds = array<i64: 1, 128>}, {pipeline_mode = #tpu.pipeline_mode<synchronous>, transform_indices = @transform_3, window_bounds = array<i64: 128, 64>}, {pipeline_mode = #tpu.pipeline_mode<synchronous>, transform_indices = @transform_4, window_bounds = array<i64: 1, 64>}, {pipeline_mode = #tpu.pipeline_mode<synchronous>, transform_indices = @transform_5, window_bounds = array<i64: 64, 1>}, {pipeline_mode = #tpu.pipeline_mode<synchronous>, transform_indices = @transform_6, window_bounds = array<i64: 1, 1>}, {pipeline_mode = #tpu.pipeline_mode<synchronous>, transform_indices = @transform_7, window_bounds = array<i64: 2, 1>}]} {
    %c0_i32 = arith.constant 0 : i32
    %0 = arith.cmpi eq, %arg0, %c0_i32 : i32
    %1 = arith.extui %0 : i1 to i32
    %c0_i32_0 = arith.constant 0 : i32
    %2 = arith.cmpi ne, %1, %c0_i32_0 : i32
    scf.if %2 {
      %cst_10 = arith.constant 0.000000e+00 : f32
      %12 = vector.broadcast %cst_10 : f32 to vector<2x128xf32>
      %c0_11 = arith.constant 0 : index
      %c0_12 = arith.constant 0 : index
      %13 = vector.load %arg9[%c0_11, %c0_12] : memref<2x128xf32, #tpu.memory_space<vmem>>, vector<2x128xf32>
      tpu.vector_store %arg9[%c0_11, %c0_12], %12 {strides = array<i32>} : memref<2x128xf32, #tpu.memory_space<vmem>>, vector<2x128xf32>,
    } else {
    }
    %c0 = arith.constant 0 : index
    %c0_1 = arith.constant 0 : index
    %3 = vector.load %arg9[%c0, %c0_1] : memref<2x128xf32, #tpu.memory_space<vmem>>, vector<2x128xf32>
    %c0_2 = arith.constant 0 : index
    %c0_3 = arith.constant 0 : index
    %4 = vector.load %arg1[%c0_2, %c0_3] : memref<2x16384xbf16, #tpu.memory_space<vmem>>, vector<2x16384xbf16>
    %c0_4 = arith.constant 0 : index
    %c0_5 = arith.constant 0 : index
    %5 = vector.load %arg2[%c0_4, %c0_5] : memref<16384x128xbf16, #tpu.memory_space<vmem>>, vector<16384x128xbf16>
    %cst = arith.constant dense<0.000000e+00> : vector<2x128xf32>
    %6 = tpu.matmul %4, %5, %cst {dimension_numbers = #tpu.dot_dimension_numbers<[1], [0], [0], [1], [0, 0, 1, 1], [], []>} : vector<2x16384xbf16>, vector<16384x128xbf16>, vector<2x128xf32> -> vector<2x128xf32>
    %7 = arith.addf %3, %6 : vector<2x128xf32>
    %c0_6 = arith.constant 0 : index
    %c0_7 = arith.constant 0 : index
    %8 = vector.load %arg9[%c0_6, %c0_7] : memref<2x128xf32, #tpu.memory_space<vmem>>, vector<2x128xf32>
    tpu.vector_store %arg9[%c0_6, %c0_7], %7 {strides = array<i32>} : memref<2x128xf32, #tpu.memory_space<vmem>>, vector<2x128xf32>,
    %c0_i32_8 = arith.constant 0 : i32
    %9 = arith.cmpi eq, %arg0, %c0_i32_8 : i32
    %10 = arith.extui %9 : i1 to i32
    %c0_i32_9 = arith.constant 0 : i32
    %11 = arith.cmpi ne, %10, %c0_i32_9 : i32
    scf.if %11 {
      %c0_10 = arith.constant 0 : index
      %c0_11 = arith.constant 0 : index
      %12 = vector.load %arg9[%c0_10, %c0_11] : memref<2x128xf32, #tpu.memory_space<vmem>>, vector<2x128xf32>
      %c0_12 = arith.constant 0 : index
      %c0_13 = arith.constant 0 : index
      %13 = vector.load %arg3[%c0_12, %c0_13] : memref<1x128xf32, #tpu.memory_space<vmem>>, vector<1x128xf32>
      %14 = vector.broadcast %13 : vector<1x128xf32> to vector<2x128xf32>
      %15 = arith.addf %12, %14 : vector<2x128xf32>
      %cst_14 = arith.constant 0.000000e+00 : f32
      %16 = vector.broadcast %cst_14 : f32 to vector<2x128xf32>
      %17 = arith.maximumf %15, %16 : vector<2x128xf32>
      %18 = arith.truncf %17 : vector<2x128xf32> to vector<2x128xbf16>
      %c0_15 = arith.constant 0 : index
      %c0_16 = arith.constant 0 : index
      %19 = vector.load %arg4[%c0_15, %c0_16] : memref<128x64xbf16, #tpu.memory_space<vmem>>, vector<128x64xbf16>
      %cst_17 = arith.constant dense<0.000000e+00> : vector<2x64xf32>
      %20 = tpu.matmul %18, %19, %cst_17 {dimension_numbers = #tpu.dot_dimension_numbers<[1], [0], [0], [1], [0, 0, 1, 1], [], []>} : vector<2x128xbf16>, vector<128x64xbf16>, vector<2x64xf32> -> vector<2x64xf32>
      %c0_18 = arith.constant 0 : index
      %c0_19 = arith.constant 0 : index
      %21 = vector.load %arg5[%c0_18, %c0_19] : memref<1x64xf32, #tpu.memory_space<vmem>>, vector<1x64xf32>
      %22 = vector.broadcast %21 : vector<1x64xf32> to vector<2x64xf32>
      %23 = arith.addf %20, %22 : vector<2x64xf32>
      %cst_20 = arith.constant 0.000000e+00 : f32
      %24 = vector.broadcast %cst_20 : f32 to vector<2x64xf32>
      %25 = arith.maximumf %23, %24 : vector<2x64xf32>
      %26 = arith.truncf %25 : vector<2x64xf32> to vector<2x64xbf16>
      %c0_21 = arith.constant 0 : index
      %c0_22 = arith.constant 0 : index
      %27 = vector.load %arg6[%c0_21, %c0_22] : memref<64x1xbf16, #tpu.memory_space<vmem>>, vector<64x1xbf16>
      %cst_23 = arith.constant dense<0.000000e+00> : vector<2x1xf32>
      %28 = tpu.matmul %26, %27, %cst_23 {dimension_numbers = #tpu.dot_dimension_numbers<[1], [0], [0], [1], [0, 0, 1, 1], [], []>} : vector<2x64xbf16>, vector<64x1xbf16>, vector<2x1xf32> -> vector<2x1xf32>
      %c0_24 = arith.constant 0 : index
      %c0_25 = arith.constant 0 : index
      %29 = vector.load %arg7[%c0_24, %c0_25] : memref<1x1xf32, #tpu.memory_space<vmem>>, vector<1x1xf32>
      %30 = vector.broadcast %29 : vector<1x1xf32> to vector<2x1xf32>
      %31 = arith.addf %28, %30 : vector<2x1xf32>
      %cst_26 = arith.constant 5.000000e-01 : f32
      %32 = vector.broadcast %cst_26 : f32 to vector<2x1xf32>
      %33 = arith.mulf %32, %31 : vector<2x1xf32>
      %34 = math.tanh %33 : vector<2x1xf32>
      %cst_27 = arith.constant 1.000000e+00 : f32
      %35 = vector.broadcast %cst_27 : f32 to vector<2x1xf32>
      %36 = arith.addf %34, %35 : vector<2x1xf32>
      %cst_28 = arith.constant 5.000000e-01 : f32
      %37 = vector.broadcast %cst_28 : f32 to vector<2x1xf32>
      %38 = arith.mulf %37, %36 : vector<2x1xf32>
      %c0_29 = arith.constant 0 : index
      %c0_30 = arith.constant 0 : index
      %39 = vector.load %arg8[%c0_29, %c0_30] : memref<2x1xf32, #tpu.memory_space<vmem>>, vector<2x1xf32>
      tpu.vector_store %arg8[%c0_29, %c0_30], %38 {strides = array<i32>} : memref<2x1xf32, #tpu.memory_space<vmem>>, vector<2x1xf32>,
    } else {
    }
    return
  }
  func.func @transform_0(%arg0: i32) -> (i32, i32) {
    %c0_i32 = arith.constant 0 : i32
    %c0_i32_0 = arith.constant 0 : i32
    return %c0_i32, %arg0 : i32, i32
  }
  func.func @transform_1(%arg0: i32) -> (i32, i32) {
    %c0_i32 = arith.constant 0 : i32
    %c0_i32_0 = arith.constant 0 : i32
    return %arg0, %c0_i32 : i32, i32
  }
  func.func @transform_2(%arg0: i32) -> (i32, i32) {
    %c0_i32 = arith.constant 0 : i32
    %c0_i32_0 = arith.constant 0 : i32
    %c0_i32_1 = arith.constant 0 : i32
    return %c0_i32, %c0_i32_0 : i32, i32
  }
  func.func @transform_3(%arg0: i32) -> (i32, i32) {
    %c0_i32 = arith.constant 0 : i32
    %c0_i32_0 = arith.constant 0 : i32
    %c0_i32_1 = arith.constant 0 : i32
    return %c0_i32, %c0_i32_0 : i32, i32
  }
  func.func @transform_4(%arg0: i32) -> (i32, i32) {
    %c0_i32 = arith.constant 0 : i32
    %c0_i32_0 = arith.constant 0 : i32
    %c0_i32_1 = arith.constant 0 : i32
    return %c0_i32, %c0_i32_0 : i32, i32
  }
  func.func @transform_5(%arg0: i32) -> (i32, i32) {
    %c0_i32 = arith.constant 0 : i32
    %c0_i32_0 = arith.constant 0 : i32
    %c0_i32_1 = arith.constant 0 : i32
    return %c0_i32, %c0_i32_0 : i32, i32
  }
  func.func @transform_6(%arg0: i32) -> (i32, i32) {
    %c0_i32 = arith.constant 0 : i32
    %c0_i32_0 = arith.constant 0 : i32
    %c0_i32_1 = arith.constant 0 : i32
    return %c0_i32, %c0_i32_0 : i32, i32
  }
  func.func @transform_7(%arg0: i32) -> (i32, i32) {
    %c0_i32 = arith.constant 0 : i32
    %c0_i32_0 = arith.constant 0 : i32
    %c0_i32_1 = arith.constant 0 : i32
    return %c0_i32, %c0_i32_0 : i32, i32
  }
}

</mosaic_0001>

<bundles_post_ra>
// kernel: extended_model_forward.2
= control target key start
LH: loop header
LB: loop body
LE: loop exit
PB: predicated region body
PF: predicated region fallthrough
CT: control target
= control target key end

     0   :  { %17 = vsyncpa [#allocation3], 0  ;;  %s6003_s0 = inlined_call_operand.vmem [shape: f32[512,4], index: 0, kind: input, shape index: {}]   ;;  %s6004_s1 = inlined_call_operand.hbm [shape: f32[4,64], index: 1, kind: input, shape index: {}]   ;;  %s6005_s2 = inlined_call_operand.hbm [shape: f32[1,64], index: 2, kind: input, shape index: {}]   ;;  %s6006_s3 = inlined_call_operand.hbm [shape: f32[64,128], index: 3, kind: input, shape index: {}]   ;;  %s6007_s4 = inlined_call_operand.vmem [shape: f32[128,64], index: 4, kind: input, shape index: {}]   ;;  %s6008_s5 = inlined_call_operand.hbm [shape: f32[1,128], index: 5, kind: input, shape index: {}]   ;;  %s6009_s6 = inlined_call_operand.vmem [shape: f32[64,4], index: 6, kind: input, shape index: {}]   ;;  %s6010_s7 = inlined_call_operand.hbm [shape: f32[1,4], index: 7, kind: input, shape index: {}]   ;;  %s6011_s8 = inlined_call_operand.vmem [shape: bf16[512,64], index: 8, kind: output, shape index: {0}]   ;;  %s6012_s9 = inlined_call_operand.vmem [shape: f32[512,4], index: 9, kind: output, shape index: {1}]   ;;  %s6013_s10 = inlined_call_operand.vmem [shape: f32[2,1,1], index: 10, kind: output, shape index: {2}]   ;;  %s6014_s11 = inlined_call_operand.vmem [shape: f32[2,1,128], index: 11, kind: output, shape index: {3}]  }
   0x1   :  { %18 = vsyncpa [#allocation5], 0 }
   0x2   :  { %19 = vsyncpa [#allocation8], 0  ;;  %s3695_s17 = smov 0  }
   0x3 LB: > { %s331_s20 = sshll.u32 %s6005_s2, 4  ;;  %s3704_s21 = sadd.s32 4294967295, %s3621_s17   ;;  %s3621_s17 = sphi %s3695_s17, %s25_s17   ;;  %s332_s20 = int_to_ptr.hbm [resolvable:$true] %s331_s20 }
   0x4   : > { %p3090_p0 = scmp.ge.s32.totalorder %s3621_s17, 1  ;;  %p307_p1 = scmp.lt.s32.totalorder %s3621_s17, 3 }
   0x5   : > { %p3339_p2 = scmp.eq.s32.totalorder %s3704_s21, 0  ;;  %s3623_s23 = smov [#allocation4]  }
   0x6   : > { %p3709_p3 = pnand %p3090_p0, %p307_p1  ;;  %s333_s24 = sshll.u32 %s3623_s23, 4  ;;  %s334_s24 = int_to_ptr.vmem [resolvable:$true] %s333_s24 }
   0x7   : > { %s360_s27 = sshll.u32 %s6008_s5, 4  ;;  %s319_s30 = sshll.u32 %s6004_s1, 4  ;;  %s361_s27 = int_to_ptr.hbm [resolvable:$true] %s360_s27  ;;  %s320_s30 = int_to_ptr.hbm [resolvable:$true] %s319_s30 }
   0x8   : > { %p3323_p4 = pneg %p3709_p3  ;;  %s3624_s13 = smov [#allocation7]  }
   0x9   : > { %s362_s14 = sshll.u32 %s3624_s13, 4  ;;  %s3625_s15 = smov [#allocation2]   ;;  %s363_s14 = int_to_ptr.vmem [resolvable:$true] %s362_s14 }
   0xa   : > { %p3723_p5 = pnand %p3339_p2, %p3323_p4  ;;  %s321_s16 = sshll.u32 %s3625_s15, 4  ;;  %s322_s16 = int_to_ptr.vmem [resolvable:$true] %s321_s16 }
   0xb   : > { %s342_s23 = sshll.u32 %s6006_s3, 4  ;;  %s3626_s25 = smov [#allocation6]   ;;  %s343_s23 = int_to_ptr.hbm [resolvable:$true] %s342_s23 }
   0xc   : > { %3329 = dma.hbm_to_vmem [thread:$0]  (!%p3723_p5), %s332_s20, 16, %s334_s24, [#allocation5]  }
   0xd   : > { %3335 = dma.hbm_to_vmem [thread:$0]  (!%p3723_p5), %s361_s27, 16, %s363_s14, [#allocation8]  }
   0xe   : > { %3326 = dma.hbm_to_vmem [thread:$0]  (!%p3723_p5), %s320_s30, 64, %s322_s16, [#allocation3]  }
   0xf   : > { %s344_s26 = sshll.u32 %s3626_s25, 4  ;;  %s375_s20 = sshll.u32 %s6010_s7, 4  ;;  %s345_s26 = int_to_ptr.vmem [resolvable:$true] %s344_s26  ;;  %s376_s20 = int_to_ptr.hbm [resolvable:$true] %s375_s20 }
  0x10   : > { %s3627_s24 = smov 128   ;;  %s3628_s27 = smov 8  }
  0x11   : > { %3332 = dma.hbm_to_vmem [thread:$0]  (!%p3723_p5), %s343_s23, 1024, %s345_s26, [#allocation5], %s3627_s24, %s3627_s24, %s3628_s27  }
  0x12   : > { %s3629_s13 = smov [#allocation9]   ;;  %399 = sbr.rel (%p3709_p3) target bundleno = 1791 (0x6ff), region = 52 }
  0x13   : > { %s377_s14 = sshll.u32 %s3629_s13, 4  ;;  %s378_s14 = int_to_ptr.vmem [resolvable:$true] %s377_s14 }
  0x14   : > { %3338 = dma.hbm_to_vmem [thread:$0]  (!%p3723_p5), %s376_s20, 16, %s378_s14, [#allocation8]  }
  0x17   : > { %3608 = dma.done.wait (%p3339_p2), [#allocation3], 64  }
  0x18   : > { %3610 = vsyncadd (%p3339_p2), [#allocation3], 4294967232 }
  0x19   : > { %3612 = dma.done.wait (%p3339_p2), [#allocation5], 1040  }
  0x1a   : > { %3614 = vsyncadd (%p3339_p2), [#allocation5], 4294966256 }
  0x1b   : > { %3616 = dma.done.wait (%p3339_p2), [#allocation8], 32  }
  0x1c   : > { %3618 = vsyncadd (%p3339_p2), [#allocation8], 4294967264  ;;  %s3103_s22 = sshll.u32 %s3704_s21, 5  ;;  %v3630_v0 = vmov 0   ;;  %v3631_v21 = vmov 1   ;;  %v3632_v22 = vmov 3  }
  0x1d   : > { %3371 = vset.pattern.permute.xlu2 %v3630_v0  ;;  %3370 = vset.pattern.permute.xlu1 %v3630_v0  ;;  %p472_p6 = scmp.lt.s32.totalorder %s3103_s22, 63  ;;  %v3633_v23 = vmov 2   ;;  %v1347_v40 = vld [vmem:[#allocation6 + $0x38] sm:$0xff]  ;;  %v1346_v41 = vld [vmem:[#allocation6 + $0x30] sm:$0xff]  ;;  %v1345_v42 = vld [vmem:[#allocation6 + $0x28] sm:$0xff]  ;;  %vm6042_vm0 = vcmask 523264  }
  0x1e   : > { %3369 = vset.pattern.permute.xlu0 %v3630_v0  ;;  %1453 = vmatpush.msra.mxu0 %v1347_v40  ;;  %v1344_v46 = vld [vmem:[#allocation6 + $0x20] sm:$0xff]  ;;  %v1343_v47 = vld [vmem:[#allocation6 + $0x18] sm:$0xff]  ;;  %v1342_v48 = vld [vmem:[#allocation6 + $0x10] sm:$0xff]  ;;  %p489_p7 = scmp.lt.s32.totalorder %s3704_s21, 1 }
  0x1f   : > { %s6171_s22 = smov (!%p472_p6, %s3103_s22), 63  ;;  %3271 = vmatpush.msra.mxu3 %v1347_v40  ;;  %v1341_v50 = vld [vmem:[#allocation6 + $0x8] sm:$0xff]  ;;  %v1340_v53 = vld [vmem:[#allocation6] sm:$0xff]  ;;  %v3939_v60 = vld [vmem:[#allocation2] ss:$0 sm:$0xff] }
  0x20   : > { %s3104_s30 = sshll.u32 %s6171_s22, 3  ;;  %1454 = vmatpush.msra.mxu0 %v1346_v41  ;;  %v3943_v62 = vld [vmem:[#allocation2 + $0x1] ss:$0 sm:$0xff]  ;;  %s3106_s23 = sshll.u32 %s6171_s22, 2 }
  0x21   : > { %s3769_s16 = scalar_lea.vmem %s6003_s0, %s3104_s30  ;;  %3272 = vmatpush.msra.mxu3 %v1346_v41  ;;  %s4919_s28 = scalar_lea.vmem %s6011_s8, %s3106_s23 }
  0x22   : > { %v3772_v1 = vld [vmem:[%s3769_s16 + $0x20] sm:$0xff]  ;;  %v497_v2 = vld [vmem:[%s3769_s16 + $0x10] sm:$0xff]  ;;  %v3778_v4 = vld [vmem:[%s3769_s16 + $0x28] sm:$0xff]  ;;  %1455 = vmatpush.msra.mxu0 %v1345_v42  ;;  %s5756_s13 = scalar_lea.vmem %s6012_s9, %s3104_s30  ;;  %s6173_s21 = smov (!%p489_p7, %s3704_s21), 1 }
  0x23   : > { %v495_v3 = vld [vmem:[%s3769_s16] sm:$0xff]  ;;  %551 = vperm.xlu2 %3371, %v3772_v1   ;;  %541 = vperm.xlu1 %3370, %v497_v2   ;;  %v498_v5 = vld [vmem:[%s3769_s16 + $0x18] sm:$0xff]  ;;  %v496_v6 = vld [vmem:[%s3769_s16 + $0x8] sm:$0xff]  ;;  %s491_s15 = scalar_lea.vmem %s6013_s10, %s6173_s21 }
  0x24   : > { %531 = vperm.xlu0 %3369, %v495_v3   ;;  %v3784_v7 = vld [vmem:[%s3769_s16 + $0x40] sm:$0xff]  ;;  %v3787_v8 = vld [vmem:[%s3769_s16 + $0x38] sm:$0xff]  ;;  %v3790_v9 = vld [vmem:[%s3769_s16 + $0x30] sm:$0xff]  ;;  %1456 = vmatpush.msra.mxu0 %v1344_v46 }
  0x25   : > { %v3796_v10 = vld [vmem:[%s3769_s16 + $0x58] sm:$0xff]  ;;  %v3799_v11 = vld [vmem:[%s3769_s16 + $0x50] sm:$0xff]  ;;  %v3802_v12 = vld [vmem:[%s3769_s16 + $0x48] sm:$0xff]  ;;  %3273 = vmatpush.msra.mxu3 %v1345_v42 }
  0x26   : > { %v3808_v13 = vld [vmem:[%s3769_s16 + $0x70] sm:$0xff]  ;;  %v3811_v14 = vld [vmem:[%s3769_s16 + $0x68] sm:$0xff]  ;;  %v3814_v15 = vld [vmem:[%s3769_s16 + $0x60] sm:$0xff]  ;;  %1457 = vmatpush.msra.mxu0 %v1343_v47 }
  0x27   : > { %v3820_v16 = vld [vmem:[%s3769_s16 + $0x88] sm:$0xff]  ;;  %v3823_v17 = vld [vmem:[%s3769_s16 + $0x80] sm:$0xff]  ;;  %v3826_v18 = vld [vmem:[%s3769_s16 + $0x78] sm:$0xff]  ;;  %3274 = vmatpush.msra.mxu3 %v1344_v46 }
  0x28   : > { %v3832_v19 = vld [vmem:[%s3769_s16 + $0x98] sm:$0xff]  ;;  %v3835_v20 = vld [vmem:[%s3769_s16 + $0x90] sm:$0xff]  ;;  %v3895_v36 = vld [vmem:[%s3769_s16 + $0xa8] sm:$0xff]  ;;  %1458 = vmatpush.msra.mxu0 %v1342_v48 }
  0x29   : > { %3275 = vmatpush.msra.mxu3 %v1343_v47  ;;  %v3924_v54 = vld [vmem:[%s3769_s16 + $0xb0] sm:$0xff] }
  0x2a   : > { %1459 = vmatpush.msra.mxu0 %v1341_v50 }
  0x2b   : > { %556 = vperm.xlu2 %3371, %v3778_v4   ;;  %546 = vperm.xlu1 %3370, %v498_v5  }
  0x2c   : > { %536 = vperm.xlu0 %3369, %v496_v6   ;;  %1460 = vmatpush.msra.mxu0 %v1340_v53 }
  0x2d   : > { %3276 = vmatpush.msra.mxu3 %v1342_v48 }
  0x2f   : > { %3277 = vmatpush.msra.mxu3 %v1341_v50 }
  0x31   : > { %3278 = vmatpush.msra.mxu3 %v1340_v53 }
  0x33   : > { %571 = vperm.xlu2 %3371, %v3784_v7   ;;  %566 = vperm.xlu1 %3370, %v3787_v8  }
  0x34   : > { %561 = vperm.xlu0 %3369, %v3790_v9  }
  0x3b   : > { %586 = vperm.xlu2 %3371, %v3796_v10   ;;  %581 = vperm.xlu1 %3370, %v3799_v11  }
  0x3c   : > { %576 = vperm.xlu0 %3369, %v3802_v12  }
  0x43   : > { %601 = vperm.xlu2 %3371, %v3808_v13   ;;  %596 = vperm.xlu1 %3370, %v3811_v14  }
  0x44   : > { %591 = vperm.xlu0 %3369, %v3814_v15  }
  0x4b   : > { %616 = vperm.xlu2 %3371, %v3820_v16   ;;  %611 = vperm.xlu1 %3370, %v3823_v17  }
  0x4c   : > { %606 = vperm.xlu0 %3369, %v3826_v18  }
  0x53   : > { %3372 = vset.pattern.permute.xlu2 %v3631_v21  ;;  %626 = vperm.xlu1 %3370, %v3832_v19  }
  0x54   : > { %621 = vperm.xlu0 %3369, %v3835_v20   ;;  %759 = vperm.xlu2 %3372, %v495_v3  }
  0x5b   : > { %3373 = vset.pattern.permute.xlu1 %v3632_v22 }
  0x5c   : > { %3376 = vset.pattern.permute.xlu0 %v3631_v21  ;;  %1147 = vperm.xlu1 %3373, %v495_v3  }
  0x5d   : > { %763 = vperm.xlu2 %3372, %v496_v6   ;;  %767 = vperm.xlu0 %3376, %v497_v2  }
  0x64   : > { %3374 = vset.pattern.permute.xlu1 %v3633_v23 }
  0x65   : > { %3375 = vset.pattern.permute.xlu2 %v3632_v22  ;;  %3377 = vset.pattern.permute.xlu0 %v3633_v23 }
  0x66   : > { %957 = vperm.xlu1 %3374, %v496_v6   ;;  %1151 = vperm.xlu2 %3375, %v496_v6  }
  0x67   : > { %953 = vperm.xlu0 %3377, %v495_v3  }
  0x6e   : > { %961 = vperm.xlu1 %3374, %v497_v2   ;;  %1155 = vperm.xlu2 %3375, %v497_v2  }
  0x6f   : > { %973 = vperm.xlu0 %3377, %v3778_v4  }
  0x76   : > { %3378 = vset.pattern.permute.xlu1 %v3631_v21  ;;  %3379 = vset.pattern.permute.xlu2 %v3633_v23 }
  0x77   : > { %3382 = vset.pattern.permute.xlu0 %v3632_v22  ;;  %771 = vperm.xlu1 %3378, %v498_v5  }
  0x78   : > { %965 = vperm.xlu2 %3379, %v498_v5   ;;  %1159 = vperm.xlu0 %3382, %v498_v5   ;;  %v3953_v5 = vld [vmem:[#allocation2 + $0x3] ss:$0 sm:$0xff] }
  0x7d   : > { %v3849_v24 = vpop.permute.xlu2 %551 }
  0x7f   : > { %775 = vperm.xlu1 %3378, %v3772_v1  }
  0x80   : > { %969 = vperm.xlu2 %3379, %v3772_v1   ;;  %1179 = vperm.xlu0 %3382, %v3784_v7  }
  0x85   : > { %v3854_v25 = vpop.permute.xlu2 %556 }
  0x87   : > { %3380 = vset.pattern.permute.xlu1 %v3632_v22 }
  0x88   : > { %3381 = vset.pattern.permute.xlu2 %v3631_v21  ;;  %3387 = vset.pattern.permute.xlu0 %v3631_v21 }
  0x89   : > { %1163 = vperm.xlu1 %3380, %v3772_v1   ;;  %779 = vperm.xlu2 %3381, %v3778_v4   ;;  %v3945_v1 = vld [vmem:[#allocation4] ss:$0 sm:$0xff] }
  0x8a   : > { %787 = vperm.xlu0 %3387, %v3787_v8  }
  0x8d   : > { %v3862_v26 = vpop.permute.xlu2 %571 }
  0x91   : > { %1167 = vperm.xlu1 %3380, %v3778_v4   ;;  %783 = vperm.xlu2 %3381, %v3790_v9   ;;  %v3949_v4 = vld [vmem:[#allocation2 + $0x2] ss:$0 sm:$0xff] }
  0x92   : > { %807 = vperm.xlu0 %3387, %v3814_v15  }
  0x95   : > { %v3867_v27 = vpop.permute.xlu2 %586  ;;  %v3869_v28 = vpop.permute.xlu1 %541 }
  0x96   : > { %v3871_v29 = vpop.permute.xlu0 %531  ;;  %v692_v48 = vmul.f32 %v3939_v60, %v3869_v28 }
  0x97   : > { %v690_v61 = vmul.f32 %v3939_v60, %v3871_v29 }
  0x99   : > { %3383 = vset.pattern.permute.xlu1 %v3633_v23  ;;  %3384 = vset.pattern.permute.xlu2 %v3632_v22  ;;  %v725_v2 = vadd.f32 %v3945_v1, %v690_v61 }
  0x9a   : > { %3392 = vset.pattern.permute.xlu0 %v3633_v23  ;;  %977 = vperm.xlu1 %3383, %v3790_v9  }
  0x9b   : > { %1171 = vperm.xlu2 %3384, %v3790_v9   ;;  %993 = vperm.xlu0 %3392, %v3799_v11  }
  0x9d   : > { %v3879_v30 = vpop.permute.xlu2 %601  ;;  %v3881_v31 = vpop.permute.xlu1 %546 }
  0x9e   : > { %v3883_v32 = vpop.permute.xlu0 %536  ;;  %v693_v28 = vmul.f32 %v3939_v60, %v3881_v31 }
  0xa2   : > { %981 = vperm.xlu1 %3383, %v3787_v8  }
  0xa3   : > { %1175 = vperm.xlu2 %3384, %v3787_v8   ;;  %1013 = vperm.xlu0 %3392, %v3826_v18  }
  0xa5   : > { %v3888_v33 = vpop.permute.xlu1 %566  ;;  %v3890_v34 = vpop.permute.xlu2 %616 }
  0xa6   : > { %v3892_v35 = vpop.permute.xlu0 %561 }
  0xaa   : > { %3385 = vset.pattern.permute.xlu1 %v3631_v21 }
  0xab   : > { %3386 = vset.pattern.permute.xlu2 %v3633_v23  ;;  %1037 = vperm.xlu0 %3392, %v3895_v36  }
  0xac   : > { %791 = vperm.xlu1 %3385, %v3784_v7   ;;  %985 = vperm.xlu2 %3386, %v3784_v7   ;;  %v691_v7 = vmul.f32 %v3939_v60, %v3883_v32 }
  0xad   : > { %v3902_v37 = vpop.permute.xlu1 %581 }
  0xae   : > { %v3904_v38 = vpop.permute.xlu0 %576  ;;  %v760_v39 = vpop.permute.xlu2 %759 }
  0xaf   : > { %v887_v3 = vmul.f32 %v3943_v62, %v760_v39  ;;  %v726_v39 = vadd.f32 %v3945_v1, %v691_v7  ;;  %v728_v7 = vadd.f32 %v3945_v1, %v693_v28 }
  0xb1   : > { %v919_v9 = vadd.f32 %v887_v3, %v725_v2 }
  0xb3   : > { %3407 = vset.pattern.permute.xlu0 %v3632_v22 }
  0xb4   : > { %795 = vperm.xlu1 %3385, %v3802_v12   ;;  %989 = vperm.xlu2 %3386, %v3802_v12  }
  0xb5   : > { %1199 = vperm.xlu0 %3407, %v3811_v14   ;;  %v3910_v43 = vpop.permute.xlu1 %596 }
  0xb6   : > { %v3912_v44 = vpop.permute.xlu0 %591 }
  0xb7   : > { %v764_v45 = vpop.permute.xlu2 %763 }
  0xb8   : > { %v888_v40 = vmul.f32 %v3943_v62, %v764_v45 }
  0xba   : > { %v920_v42 = vadd.f32 %v888_v40, %v726_v39 }
  0xbc   : > { %3388 = vset.pattern.permute.xlu1 %v3632_v22  ;;  %3389 = vset.pattern.permute.xlu2 %v3631_v21 }
  0xbd   : > { %1219 = vperm.xlu0 %3407, %v3835_v20   ;;  %1183 = vperm.xlu1 %3388, %v3802_v12   ;;  %v3918_v49 = vpop.permute.xlu1 %611 }
  0xbe   : > { %799 = vperm.xlu2 %3389, %v3799_v11   ;;  %v3921_v51 = vpop.permute.xlu0 %606 }
  0xc0   : > { %v1152_v52 = vpop.permute.xlu2 %1151 }
  0xc1   : > { %v1276_v45 = vmul.f32 %v3953_v5, %v1152_v52 }
  0xc5   : > { %1235 = vperm.xlu0 %3407, %v3924_v54   ;;  %1187 = vperm.xlu1 %3388, %v3799_v11   ;;  %v3928_v55 = vpop.permute.xlu1 %626 }
  0xc6   : > { %803 = vperm.xlu2 %3389, %v3796_v10   ;;  %v3931_v56 = vpop.permute.xlu0 %621 }
  0xc8   : > { %v1156_v57 = vpop.permute.xlu2 %1155 }
  0xcd   : > { %3412 = vset.pattern.permute.xlu0 %v3631_v21  ;;  %3390 = vset.pattern.permute.xlu1 %v3633_v23 }
  0xce   : > { %3391 = vset.pattern.permute.xlu2 %v3632_v22  ;;  %827 = vperm.xlu0 %3412, %v3820_v16   ;;  %v1148_v58 = vpop.permute.xlu1 %1147 }
  0xcf   : > { %997 = vperm.xlu1 %3390, %v3796_v10   ;;  %1191 = vperm.xlu2 %3391, %v3796_v10   ;;  %v768_v59 = vpop.permute.xlu0 %767  ;;  %v1275_v12 = vmul.f32 %v3953_v5, %v1148_v58  ;;  %v727_v58 = vadd.f32 %v3945_v1, %v692_v48 }
  0xd0   : > { %v889_v50 = vmul.f32 %v3943_v62, %v768_v59 }
  0xd2   : > { %v966_v63 = vpop.permute.xlu2 %965  ;;  %v921_v59 = vadd.f32 %v889_v50, %v727_v58 }
  0xd7   : > { %1001 = vperm.xlu1 %3390, %v3814_v15   ;;  %1195 = vperm.xlu2 %3391, %v3814_v15  }
  0xd8   : > { %v958_v6 = vpop.permute.xlu1 %957 }
  0xd9   : > { %v954_v8 = vpop.permute.xlu0 %953  ;;  %v1082_v15 = vmul.f32 %v3949_v4, %v958_v6 }
  0xda   : > { %v1081_v10 = vmul.f32 %v3949_v4, %v954_v8  ;;  %v970_v11 = vpop.permute.xlu2 %969  ;;  %v1277_v8 = vmul.f32 %v3953_v5, %v1156_v57  ;;  %v694_v57 = vmul.f32 %v3939_v60, %v3849_v24  ;;  %v695_v24 = vmul.f32 %v3939_v60, %v3854_v25 }
  0xdb   : > { %v1114_v46 = vadd.f32 %v1082_v15, %v920_v42  ;;  %v4006_v42 = vld [vmem:[%s3769_s16 + $0xc8] sm:$0xff]  ;;  %v1085_v48 = vmul.f32 %v3949_v4, %v970_v11 }
  0xdc   : > { %v1113_v29 = vadd.f32 %v1081_v10, %v919_v9  ;;  %v3988_v9 = vld [vmem:[%s3769_s16 + $0xa0] sm:$0xff]  ;;  %v1084_v10 = vmul.f32 %v3949_v4, %v966_v63 }
  0xdd   : > { %v3974_v53 = vadd.f32 %v1276_v45, %v1114_v46  ;;  %839 = vperm.xlu0 %3412, %v3988_v9  }
  0xde   : > { %v3961_v41 = vadd.f32 %v1275_v12, %v1113_v29 }
  0xdf   : > { %3393 = vset.pattern.permute.xlu1 %v3631_v21  ;;  %3394 = vset.pattern.permute.xlu2 %v3633_v23 }
  0xe0   : > { %811 = vperm.xlu1 %3393, %v3811_v14   ;;  %1005 = vperm.xlu2 %3394, %v3811_v14   ;;  %v962_v32 = vpop.permute.xlu1 %961 }
  0xe1   : > { %3109 = vmatmul.msk.f32.vlgmr.msra.gmra.mxu0 %vm6042_vm0, %v3961_v41  ;;  %v1083_v14 = vmul.f32 %v3949_v4, %v962_v32  ;;  %v974_v61 = vpop.permute.xlu0 %973 }
  0xe3   : > { %v780_v47 = vpop.permute.xlu2 %779  ;;  %v1115_v3 = vadd.f32 %v1083_v14, %v921_v59 }
  0xe4   : > { %v892_v14 = vmul.f32 %v3943_v62, %v780_v47 }
  0xe5   : > { %v3993_v31 = vadd.f32 %v1277_v8, %v1115_v3  ;;  %859 = vperm.xlu0 %3412, %v4006_v42   ;;  %v4024_v3 = vld [vmem:[%s3769_s16 + $0xe0] sm:$0xff] }
  0xe8   : > { %815 = vperm.xlu1 %3393, %v3808_v13   ;;  %1009 = vperm.xlu2 %3394, %v3808_v13  }
  0xe9   : > { %3110 = vmatmul.msk.f32.gmra.mxu0 %vm6042_vm0, %v3974_v53  ;;  %v772_v52 = vpop.permute.xlu1 %771 }
  0xea   : > { %v890_v6 = vmul.f32 %v3943_v62, %v772_v52  ;;  %v1160_v63 = vpop.permute.xlu0 %1159 }
  0xeb   : > { %v784_v2 = vpop.permute.xlu2 %783  ;;  %v1278_v40 = vmul.f32 %v3953_v5, %v1160_v63 }
  0xec   : > { %v922_v12 = vadd.f32 %v890_v6, %v728_v7  ;;  %v1086_v7 = vmul.f32 %v3949_v4, %v974_v61  ;;  %v696_v61 = vmul.f32 %v3939_v60, %v3892_v35 }
  0xed   : > { %871 = vperm.xlu0 %3412, %v4024_v3  }
  0xee   : > { %v1116_v39 = vadd.f32 %v1084_v10, %v922_v12  ;;  %v731_v12 = vadd.f32 %v3945_v1, %v696_v61 }
  0xf0   : > { %3395 = vset.pattern.permute.xlu1 %v3632_v22  ;;  %3396 = vset.pattern.permute.xlu2 %v3631_v21  ;;  %v4008_v45 = vadd.f32 %v1278_v40, %v1116_v39 }
  0xf1   : > { %1203 = vperm.xlu1 %3395, %v3808_v13   ;;  %819 = vperm.xlu2 %3396, %v3826_v18   ;;  %v776_v29 = vpop.permute.xlu1 %775  ;;  %v729_v13 = vadd.f32 %v3945_v1, %v694_v57  ;;  %v4042_v57 = vld [vmem:[%s3769_s16 + $0xc0] sm:$0xff] }
  0xf2   : > { %3111 = vmatmul.msk.f32.gmra.mxu0 %vm6042_vm0, %v3993_v31  ;;  %v891_v15 = vmul.f32 %v3943_v62, %v776_v29  ;;  %v1180_v11 = vpop.permute.xlu0 %1179  ;;  %v893_v29 = vmul.f32 %v3943_v62, %v784_v2 }
  0xf4   : > { %v923_v46 = vadd.f32 %v891_v15, %v729_v13  ;;  %v925_v63 = vadd.f32 %v893_v29, %v731_v12  ;;  %v697_v15 = vmul.f32 %v3939_v60, %v3888_v33  ;;  %v4087_v12 = vld [vmem:[%s3769_s16 + $0xf8] sm:$0xff] }
  0xf5   : > { %v1172_v32 = vpop.permute.xlu2 %1171  ;;  %3427 = vset.pattern.permute.xlu0 %v3630_v0 }
  0xf6   : > { %v1117_v52 = vadd.f32 %v1085_v48, %v923_v46  ;;  %651 = vperm.xlu0 %3427, %v4042_v57   ;;  %v1281_v39 = vmul.f32 %v3953_v5, %v1172_v32  ;;  %v732_v32 = vadd.f32 %v3945_v1, %v697_v15  ;;  %v4105_v15 = vld [vmem:[%s3769_s16 + $0xd0] sm:$0xff] }
  0xf9   : > { %1207 = vperm.xlu1 %3395, %v3826_v18   ;;  %823 = vperm.xlu2 %3396, %v3823_v17   ;;  %v730_v18 = vadd.f32 %v3945_v1, %v695_v24  ;;  %v4058_v24 = vld [vmem:[%s3769_s16 + $0xe8] sm:$0xff] }
  0xfa   : > { %3112 = vmatmul.msk.f32.gmra.mxu0 %vm6042_vm0, %v4008_v45 }
  0xfb   : > { %v1164_v50 = vpop.permute.xlu1 %1163  ;;  %v924_v6 = vadd.f32 %v892_v14, %v730_v18 }
  0xfc   : > { %v1279_v58 = vmul.f32 %v3953_v5, %v1164_v50  ;;  %v788_v40 = vpop.permute.xlu0 %787 }
  0xfd   : > { %v1176_v59 = vpop.permute.xlu2 %1175  ;;  %v1118_v8 = vadd.f32 %v1086_v7, %v924_v6  ;;  %v4073_v6 = vld [vmem:[%s3769_s16 + $0xf0] sm:$0xff] }
  0xfe   : > { %v4021_v28 = vadd.f32 %v1279_v58, %v1117_v52  ;;  %676 = vperm.xlu0 %3427, %v4058_v24   ;;  %v1282_v14 = vmul.f32 %v3953_v5, %v1176_v59 }
 0x101   : > { %3397 = vset.pattern.permute.xlu1 %v3633_v23  ;;  %3398 = vset.pattern.permute.xlu2 %v3632_v22 }
 0x102   : > { %1017 = vperm.xlu1 %3397, %v3823_v17   ;;  %1211 = vperm.xlu2 %3398, %v3823_v17  }
 0x103   : > { %3113 = vmatmul.msk.f32.gmra.mxu0 %vm6042_vm0, %v4021_v28  ;;  %v1168_v25 = vpop.permute.xlu1 %1167 }
 0x104   : > { %v1280_v47 = vmul.f32 %v3953_v5, %v1168_v25 }
 0x106   : > { %v4037_v10 = vadd.f32 %v1280_v47, %v1118_v8  ;;  %v986_v17 = vpop.permute.xlu2 %985  ;;  %681 = vperm.xlu0 %3427, %v4073_v6   ;;  %v1283_v8 = vmul.f32 %v3953_v5, %v1180_v11  ;;  %v699_v11 = vmul.f32 %v3939_v60, %v3904_v38  ;;  %v700_v38 = vmul.f32 %v3939_v60, %v3902_v37 }
 0x107   : > { %v1089_v47 = vmul.f32 %v3949_v4, %v986_v17 }
 0x10a   : > { %1021 = vperm.xlu1 %3397, %v3820_v16   ;;  %1215 = vperm.xlu2 %3398, %v3820_v16   ;;  %v894_v16 = vmul.f32 %v3943_v62, %v788_v40  ;;  %v734_v40 = vadd.f32 %v3945_v1, %v699_v11  ;;  %v702_v11 = vmul.f32 %v3939_v60, %v3912_v44 }
 0x10b   : > { %3114 = vmatmul.msk.f32.gmra.mxu0 %vm6042_vm0, %v4037_v10 }
 0x10c   : > { %v978_v35 = vpop.permute.xlu1 %977  ;;  %v926_v50 = vadd.f32 %v894_v16, %v732_v32 }
 0x10d   : > { %v1087_v2 = vmul.f32 %v3949_v4, %v978_v35 }
 0x10e   : > { %v990_v48 = vpop.permute.xlu2 %989  ;;  %686 = vperm.xlu0 %3427, %v4087_v12  }
 0x10f   : > { %v1119_v13 = vadd.f32 %v1087_v2, %v925_v63  ;;  %v808_v2 = vpop.permute.xlu0 %807 }
 0x111   : > { %v4055_v46 = vadd.f32 %v1281_v39, %v1119_v13  ;;  %v1090_v13 = vmul.f32 %v3949_v4, %v990_v48 }
 0x112   : > { %3399 = vset.pattern.permute.xlu1 %v3631_v21  ;;  %3400 = vset.pattern.permute.xlu2 %v3633_v23 }
 0x113   : > { %831 = vperm.xlu1 %3399, %v3835_v20   ;;  %1025 = vperm.xlu2 %3400, %v3835_v20   ;;  %v698_v20 = vmul.f32 %v3939_v60, %v3862_v26 }
 0x114   : > { %3115 = vmatmul.msk.f32.gmra.mxu0 %vm6042_vm0, %v4055_v46  ;;  %v982_v33 = vpop.permute.xlu1 %981 }
 0x115   : > { %v1088_v58 = vmul.f32 %v3949_v4, %v982_v33  ;;  %v733_v25 = vadd.f32 %v3945_v1, %v698_v20 }
 0x116   : > { %3438 = vset.pattern.permute.xlu0 %v3633_v23 }
 0x117   : > { %v1120_v52 = vadd.f32 %v1088_v58, %v926_v50  ;;  %1057 = vperm.xlu0 %3438, %v4105_v15  }
 0x118   : > { %v800_v7 = vpop.permute.xlu2 %799 }
 0x119   : > { %v4070_v18 = vadd.f32 %v1282_v14, %v1120_v52  ;;  %v897_v33 = vmul.f32 %v3943_v62, %v800_v7  ;;  %v735_v14 = vadd.f32 %v3945_v1, %v700_v38  ;;  %v899_v38 = vmul.f32 %v3943_v62, %v808_v2 }
 0x11b   : > { %835 = vperm.xlu1 %3399, %v3832_v19   ;;  %1029 = vperm.xlu2 %3400, %v3832_v19   ;;  %v929_v20 = vadd.f32 %v897_v33, %v735_v14 }
 0x11c   : > { %3116 = vmatmul.msk.f32.gmra.mxu0 %vm6042_vm0, %v4070_v18 }
 0x11e   : > { %v792_v59 = vpop.permute.xlu1 %791 }
 0x11f   : > { %v895_v61 = vmul.f32 %v3943_v62, %v792_v59  ;;  %1073 = vperm.xlu0 %3438, %v4073_v6  }
 0x120   : > { %v804_v63 = vpop.permute.xlu2 %803 }
 0x121   : > { %v927_v26 = vadd.f32 %v895_v61, %v733_v25  ;;  %v701_v61 = vmul.f32 %v3939_v60, %v3867_v27 }
 0x123   : > { %v1121_v29 = vadd.f32 %v1089_v47, %v927_v26  ;;  %3401 = vset.pattern.permute.xlu1 %v3632_v22  ;;  %3402 = vset.pattern.permute.xlu2 %v3630_v0  ;;  %v736_v26 = vadd.f32 %v3945_v1, %v701_v61 }
 0x124   : > { %1223 = vperm.xlu1 %3401, %v3832_v19   ;;  %631 = vperm.xlu2 %3402, %v3988_v9  }
 0x125   : > { %v4093_v35 = vadd.f32 %v1283_v8, %v1121_v29  ;;  %v898_v8 = vmul.f32 %v3943_v62, %v804_v63 }
 0x126   : > { %v796_v17 = vpop.permute.xlu1 %795 }
 0x127   : > { %3117 = vmatmul.msk.f32.gmra.mxu0 %vm6042_vm0, %v4093_v35  ;;  %v896_v39 = vmul.f32 %v3943_v62, %v796_v17  ;;  %1077 = vperm.xlu0 %3438, %v4087_v12   ;;  %v930_v17 = vadd.f32 %v898_v8, %v736_v26 }
 0x129   : > { %v928_v19 = vadd.f32 %v896_v39, %v734_v40  ;;  %v1192_v16 = vpop.permute.xlu2 %1191 }
 0x12a   : > { %v1286_v63 = vmul.f32 %v3953_v5, %v1192_v16 }
 0x12b   : > { %v1122_v50 = vadd.f32 %v1090_v13, %v928_v19 }
 0x12c   : > { %3403 = vset.pattern.permute.xlu1 %v3633_v23  ;;  %3404 = vset.pattern.permute.xlu2 %v3632_v22 }
 0x12d   : > { %1033 = vperm.xlu1 %3403, %v3988_v9   ;;  %1227 = vperm.xlu2 %3404, %v3988_v9   ;;  %v994_v9 = vpop.permute.xlu0 %993 }
 0x12e   : > { %v1091_v37 = vmul.f32 %v3949_v4, %v994_v9  ;;  %v703_v9 = vmul.f32 %v3939_v60, %v3910_v43 }
 0x12f   : > { %v1184_v32 = vpop.permute.xlu1 %1183  ;;  %3439 = vset.pattern.permute.xlu0 %v3632_v22 }
 0x130   : > { %v1284_v58 = vmul.f32 %v3953_v5, %v1184_v32  ;;  %v1123_v7 = vadd.f32 %v1091_v37, %v929_v20  ;;  %1271 = vperm.xlu0 %3439, %v4087_v12   ;;  %v738_v20 = vadd.f32 %v3945_v1, %v703_v9 }
 0x131   : > { %v1196_v25 = vpop.permute.xlu2 %1195 }
 0x132   : > { %v4117_v52 = vadd.f32 %v1284_v58, %v1122_v50  ;;  %v1287_v33 = vmul.f32 %v3953_v5, %v1196_v25 }
 0x134   : > { %3118 = vmatmul.msk.f32.gmra.mxu0 %vm6042_vm0, %v4117_v52 }
 0x135   : > { %3405 = vset.pattern.permute.xlu1 %v3630_v0  ;;  %3406 = vset.pattern.permute.xlu2 %v3631_v21  ;;  %v4140_v29 = vpop.permute.xlu0 %1013 }
 0x136   : > { %636 = vperm.xlu1 %3405, %v3895_v36   ;;  %843 = vperm.xlu2 %3406, %v3895_v36  }
 0x137   : > { %v1188_v48 = vpop.permute.xlu1 %1187 }
 0x138   : > { %v1285_v59 = vmul.f32 %v3953_v5, %v1188_v48 }
 0x13a   : > { %v4128_v47 = vadd.f32 %v1285_v59, %v1123_v7  ;;  %v1006_v40 = vpop.permute.xlu2 %1005 }
 0x13b   : > { %v1094_v48 = vmul.f32 %v3949_v4, %v1006_v40 }
 0x13c   : > { %3119 = vmatmul.msk.f32.gmra.mxu0 %vm6042_vm0, %v4128_v47 }
 0x13d   : > { %v4158_v32 = vpop.permute.xlu0 %1037 }
 0x13e   : > { %3408 = vset.pattern.permute.xlu1 %v3632_v22  ;;  %3409 = vset.pattern.permute.xlu2 %v3630_v0 }
 0x13f   : > { %1231 = vperm.xlu1 %3408, %v3895_v36   ;;  %641 = vperm.xlu2 %3409, %v3924_v54   ;;  %v737_v36 = vadd.f32 %v3945_v1, %v702_v11 }
 0x141   : > { %v998_v27 = vpop.permute.xlu1 %997  ;;  %v931_v16 = vadd.f32 %v899_v38, %v737_v36  ;;  %v705_v36 = vmul.f32 %v3939_v60, %v3921_v51 }
 0x142   : > { %v1092_v39 = vmul.f32 %v3949_v4, %v998_v27  ;;  %v1010_v58 = vpop.permute.xlu2 %1009  ;;  %v704_v27 = vmul.f32 %v3939_v60, %v3879_v30 }
 0x143   : > { %v1095_v38 = vmul.f32 %v3949_v4, %v1010_v58  ;;  %v740_v51 = vadd.f32 %v3945_v1, %v705_v36  ;;  %v1096_v58 = vmul.f32 %v3949_v4, %v4140_v29 }
 0x144   : > { %v1124_v19 = vadd.f32 %v1092_v39, %v930_v17 }
 0x145   : > { %v1200_v59 = vpop.permute.xlu0 %1199 }
 0x146   : > { %v4149_v13 = vadd.f32 %v1286_v63, %v1124_v19  ;;  %v1288_v25 = vmul.f32 %v3953_v5, %v1200_v59  ;;  %v739_v63 = vadd.f32 %v3945_v1, %v704_v27 }
 0x147   : > { %3410 = vset.pattern.permute.xlu1 %v3631_v21  ;;  %3411 = vset.pattern.permute.xlu2 %v3633_v23 }
 0x148   : > { %847 = vperm.xlu1 %3410, %v3924_v54   ;;  %1041 = vperm.xlu2 %3411, %v3924_v54   ;;  %v518_v54 = vld [vmem:[%s3769_s16 + $0xb8] sm:$0xff] }
 0x149   : > { %3120 = vmatmul.msk.f32.gmra.mxu0 %vm6042_vm0, %v4149_v13  ;;  %v1002_v44 = vpop.permute.xlu1 %1001 }
 0x14a   : > { %v1093_v2 = vmul.f32 %v3949_v4, %v1002_v44 }
 0x14b   : > { %v820_v61 = vpop.permute.xlu2 %819 }
 0x14c   : > { %v1125_v50 = vadd.f32 %v1093_v2, %v931_v16  ;;  %v902_v16 = vmul.f32 %v3943_v62, %v820_v61 }
 0x14d   : > { %v4190_v30 = vpop.permute.xlu0 %1219 }
 0x14e   : > { %v4163_v14 = vadd.f32 %v1287_v33, %v1125_v50  ;;  %v934_v9 = vadd.f32 %v902_v16, %v740_v51 }
 0x150   : > { %3413 = vset.pattern.permute.xlu1 %v3630_v0  ;;  %3414 = vset.pattern.permute.xlu2 %v3631_v21 }
 0x151   : > { %3121 = vmatmul.msk.f32.gmra.mxu0 %vm6042_vm0, %v4163_v14  ;;  %646 = vperm.xlu1 %3413, %v518_v54  }
 0x152   : > { %851 = vperm.xlu2 %3414, %v518_v54   ;;  %v812_v37 = vpop.permute.xlu1 %811 }
 0x153   : > { %v900_v7 = vmul.f32 %v3943_v62, %v812_v37  ;;  %v824_v19 = vpop.permute.xlu2 %823 }
 0x154   : > { %v903_v61 = vmul.f32 %v3943_v62, %v824_v19 }
 0x155   : > { %v932_v43 = vadd.f32 %v900_v7, %v738_v20  ;;  %v1128_v7 = vadd.f32 %v1096_v58, %v934_v9 }
 0x157   : > { %v1126_v8 = vadd.f32 %v1094_v48, %v932_v43  ;;  %v4209_v48 = vpop.permute.xlu0 %1235 }
 0x159   : > { %3415 = vset.pattern.permute.xlu1 %v3633_v23  ;;  %v4177_v26 = vadd.f32 %v1288_v25, %v1126_v8  ;;  %v706_v25 = vmul.f32 %v3939_v60, %v3918_v49 }
 0x15a   : > { %3416 = vset.pattern.permute.xlu2 %v3632_v22  ;;  %1045 = vperm.xlu1 %3415, %v518_v54   ;;  %v816_v11 = vpop.permute.xlu1 %815 }
 0x15b   : > { %1239 = vperm.xlu2 %3416, %v518_v54   ;;  %3122 = vmatmul.msk.f32.gmra.mxu0 %vm6042_vm0, %v4177_v26  ;;  %v901_v17 = vmul.f32 %v3943_v62, %v816_v11  ;;  %v741_v8 = vadd.f32 %v3945_v1, %v706_v25 }
 0x15c   : > { %v1212_v37 = vpop.permute.xlu2 %1211 }
 0x15d   : > { %v933_v40 = vadd.f32 %v901_v17, %v739_v63  ;;  %v935_v11 = vadd.f32 %v903_v61, %v741_v8  ;;  %v1291_v17 = vmul.f32 %v3953_v5, %v1212_v37 }
 0x15e   : > { %v4186_v39 = vpop.f32.mrf.mxu0 }
 0x15f   : > { %v1127_v2 = vadd.f32 %v1095_v38, %v933_v40  ;;  %v828_v49 = vpop.permute.xlu0 %827  ;;  %v707_v40 = vmul.f32 %v3939_v60, %v3890_v34 }
 0x160   : > { %v904_v38 = vmul.f32 %v3943_v62, %v828_v49 }
 0x161   : > { %v742_v16 = vadd.f32 %v3945_v1, %v707_v40 }
 0x162   : > { %3417 = vset.pattern.permute.xlu1 %v3631_v21 }
 0x163   : > { %3418 = vset.pattern.permute.xlu2 %v3633_v23  ;;  %855 = vperm.xlu1 %3417, %v4042_v57   ;;  %v1204_v44 = vpop.permute.xlu1 %1203  ;;  %v936_v51 = vadd.f32 %v904_v38, %v742_v16  ;;  %v709_v38 = vmul.f32 %v3939_v60, %v3928_v55 }
 0x164   : > { %v1289_v33 = vmul.f32 %v3953_v5, %v1204_v44  ;;  %1049 = vperm.xlu2 %3418, %v4042_v57   ;;  %v1216_v27 = vpop.permute.xlu2 %1215 }
 0x165   : > { %v1292_v58 = vmul.f32 %v3953_v5, %v1216_v27 }
 0x166   : > { %v4200_v50 = vadd.f32 %v1289_v33, %v1127_v2  ;;  %v4202_v54 = vpop.f32.mrf.mxu0  ;;  %v4242_v33 = vld [vmem:[%s3769_s16 + $0xd8] sm:$0xff] }
 0x168   : > { %3123 = vmatmul.msk.f32.gmra.mxu0 %vm6042_vm0, %v4200_v50 }
 0x16b   : > { %3419 = vset.pattern.permute.xlu1 %v3632_v22  ;;  %v1208_v20 = vpop.permute.xlu1 %1207 }
 0x16c   : > { %v1290_v59 = vmul.f32 %v3953_v5, %v1208_v20  ;;  %3420 = vset.pattern.permute.xlu2 %v3630_v0  ;;  %1243 = vperm.xlu1 %3419, %v4042_v57  }
 0x16d   : > { %656 = vperm.xlu2 %3420, %v4006_v42   ;;  %v1026_v34 = vpop.permute.xlu2 %1025 }
 0x16e   : > { %v4215_v29 = vadd.f32 %v1290_v59, %v1128_v7  ;;  %v708_v7 = vmul.f32 %v3939_v60, %v3931_v56  ;;  %v1099_v61 = vmul.f32 %v3949_v4, %v1026_v34  ;;  %v1293_v56 = vmul.f32 %v3953_v5, %v4190_v30 }
 0x16f   : > { %v4219_v43 = vpop.f32.mrf.mxu0 }
 0x170   : > { %3124 = vmatmul.msk.f32.gmra.mxu0 %vm6042_vm0, %v4215_v29  ;;  %v743_v25 = vadd.f32 %v3945_v1, %v708_v7 }
 0x174   : > { %3421 = vset.pattern.permute.xlu1 %v3633_v23  ;;  %v1018_v57 = vpop.permute.xlu1 %1017 }
 0x175   : > { %v1097_v63 = vmul.f32 %v3949_v4, %v1018_v57  ;;  %3422 = vset.pattern.permute.xlu2 %v3632_v22  ;;  %1053 = vperm.xlu1 %3421, %v4006_v42   ;;  %v1030_v27 = vpop.permute.xlu2 %1029 }
 0x176   : > { %1247 = vperm.xlu2 %3422, %v4006_v42   ;;  %v1100_v34 = vmul.f32 %v3949_v4, %v1030_v27 }
 0x177   : > { %v1129_v19 = vadd.f32 %v1097_v63, %v935_v11  ;;  %v4233_v36 = vpop.f32.mrf.mxu0 }
 0x179   : > { %v4236_v44 = vadd.f32 %v1291_v17, %v1129_v19  ;;  %v4267_v17 = vld [vmem:[#allocation7] ss:$0 sm:$0xff] }
 0x17b   : > { %6064 = vst [vmem:[#allocation13_spill] sm:$0xff] %v4236_v44  ;;  %3125 = vmatmul.msk.f32.gmra.mxu0 %vm6042_vm0, %v4236_v44 }
 0x17c   : > { %v1022_v2 = vpop.permute.xlu1 %1021 }
 0x17d   : > { %v1098_v42 = vmul.f32 %v3949_v4, %v1022_v2  ;;  %3423 = vset.pattern.permute.xlu1 %v3630_v0 }
 0x17e   : > { %3425 = vset.pattern.permute.xlu2 %v3630_v0  ;;  %661 = vperm.xlu1 %3423, %v4105_v15   ;;  %v632_v2 = vpop.permute.xlu2 %631 }
 0x17f   : > { %v1130_v9 = vadd.f32 %v1098_v42, %v936_v51  ;;  %666 = vperm.xlu2 %3425, %v4242_v33   ;;  %v744_v51 = vadd.f32 %v3945_v1, %v709_v38  ;;  %v840_v42 = vpop.permute.xlu0 %839 }
 0x180   : > { %v4250_v37 = vpop.f32.mrf.mxu0 }
 0x181   : > { %v4252_v20 = vadd.f32 %v1292_v58, %v1130_v9  ;;  %v710_v9 = vmul.f32 %v3939_v60, %v632_v2 }
 0x183   : > { %6065 = vst [vmem:[#allocation14_spill] sm:$0xff] %v4252_v20  ;;  %3126 = vmatmul.msk.f32.gmra.mxu0 %vm6042_vm0, %v4252_v20 }
 0x185   : > { %v832_v59 = vpop.permute.xlu1 %831 }
 0x186   : > { %v905_v8 = vmul.f32 %v3943_v62, %v832_v59  ;;  %3424 = vset.pattern.permute.xlu1 %v3632_v22 }
 0x187   : > { %3429 = vset.pattern.permute.xlu2 %v3633_v23  ;;  %1251 = vperm.xlu1 %3424, %v4105_v15   ;;  %v4300_v27 = vpop.permute.xlu0 %859 }
 0x188   : > { %v937_v57 = vadd.f32 %v905_v8, %v743_v25  ;;  %1065 = vperm.xlu2 %3429, %v4024_v3   ;;  %v1477_v11 = vpop.f32.mrf.mxu0  ;;  %v907_v8 = vmul.f32 %v3943_v62, %v840_v42 }
 0x189   : > { %v1563_v63 = vmul.f32 2.0, %v1477_v11 }
 0x18a   : > { %v1131_v49 = vadd.f32 %v1099_v61, %v937_v57  ;;  %v745_v61 = vadd.f32 %v3945_v1, %v710_v9  ;;  %v1102_v9 = vmul.f32 %v3949_v4, %v4158_v32 }
 0x18b   : > { %v4270_v40 = vsub.f32 %v4267_v17, %v1563_v63 }
 0x18c   : > { %v4272_v19 = vadd.f32 %v1293_v56, %v1131_v49  ;;  %v939_v56 = vadd.f32 %v907_v8, %v745_v61 }
 0x18d   : > { %1637 = vmin.xlane.f32.xlu0 %v4270_v40  ;;  %v836_v16 = vpop.permute.xlu1 %835 }
 0x18e   : > { %6066 = vst [vmem:[#allocation15_spill] sm:$0xff] %v4272_v19  ;;  %3127 = vmatmul.msk.f32.gmra.mxu0 %vm6042_vm0, %v4272_v19  ;;  %v906_v30 = vmul.f32 %v3943_v62, %v836_v16 }
 0x18f   : > { %3426 = vset.pattern.permute.xlu1 %v3630_v0 }
 0x190   : > { %3431 = vset.pattern.permute.xlu2 %v3632_v22  ;;  %671 = vperm.xlu1 %3426, %v4024_v3   ;;  %v938_v55 = vadd.f32 %v906_v30, %v744_v51  ;;  %v4313_v30 = vpop.permute.xlu0 %871 }
 0x191   : > { %1259 = vperm.xlu2 %3431, %v4024_v3   ;;  %v4287_v7 = vpop.f32.mrf.mxu0  ;;  %v1228_v3 = vpop.permute.xlu2 %1227 }
 0x192   : > { %v1132_v59 = vadd.f32 %v1100_v34, %v938_v55 }
 0x196   : > { %v1224_v58 = vpop.permute.xlu1 %1223 }
 0x197   : > { %v1294_v0 = vmul.f32 %v3953_v5, %v1224_v58 }
 0x198   : > { %3428 = vset.pattern.permute.xlu1 %v3633_v23 }
 0x199   : > { %v4291_v25 = vadd.f32 %v1294_v0, %v1132_v59  ;;  %3433 = vset.pattern.permute.xlu2 %v3633_v23  ;;  %1061 = vperm.xlu1 %3428, %v4242_v33   ;;  %v1295_v23 = vmul.f32 %v3953_v5, %v1228_v3  ;;  %v4304_v63 = vpop.f32.mrf.mxu0  ;;  %v844_v38 = vpop.permute.xlu2 %843 }
 0x19a   : > { %1069 = vperm.xlu2 %3433, %v4058_v24   ;;  %v908_v42 = vmul.f32 %v3943_v62, %v844_v38  ;;  %v652_v0 = vpop.permute.xlu0 %651 }
 0x19b   : > { %6067 = vst [vmem:[#allocation16_spill] sm:$0xff] %v4291_v25  ;;  %3128 = vmatmul.msk.f32.gmra.mxu0 %vm6042_vm0, %v4291_v25 }
 0x19f   : > { %v1034_v57 = vpop.permute.xlu1 %1033 }
 0x1a0   : > { %v1101_v11 = vmul.f32 %v3949_v4, %v1034_v57 }
 0x1a1   : > { %3430 = vset.pattern.permute.xlu1 %v3632_v22  ;;  %v642_v58 = vpop.permute.xlu2 %641 }
 0x1a2   : > { %v1133_v49 = vadd.f32 %v1101_v11, %v939_v56  ;;  %1255 = vperm.xlu1 %3430, %v4242_v33   ;;  %3435 = vset.pattern.permute.xlu2 %v3631_v21 }
 0x1a4   : > { %v4309_v16 = vadd.f32 %v1295_v23, %v1133_v49  ;;  %v4315_v51 = vpop.f32.mrf.mxu0  ;;  %v712_v49 = vmul.f32 %v3939_v60, %v642_v58  ;;  %v1558_v58 = vmul.f32 2.0, %v4186_v39 }
 0x1a6   : > { %6068 = vst [vmem:[#allocation17_spill] sm:$0xff] %v4309_v16  ;;  %3129 = vmatmul.msk.f32.gmra.mxu0 %vm6042_vm0, %v4309_v16  ;;  %v747_v38 = vadd.f32 %v3945_v1, %v712_v49  ;;  %v3447_v16 = vld [vmem:[#allocation2] ss:$0 sm:$0xff] }
 0x1a8   : > { %v637_v2 = vpop.permute.xlu1 %636 }
 0x1a9   : > { %v711_v55 = vmul.f32 %v3939_v60, %v637_v2  ;;  %v1042_v32 = vpop.permute.xlu2 %1041 }
 0x1aa   : > { %3432 = vset.pattern.permute.xlu1 %v3631_v21 }
 0x1ab   : > { %v746_v34 = vadd.f32 %v3945_v1, %v711_v55  ;;  %875 = vperm.xlu1 %3432, %v4058_v24   ;;  %v4337_v55 = vpop.permute.xlu0 %676 }
 0x1ad   : > { %v940_v59 = vadd.f32 %v908_v42, %v746_v34  ;;  %v1297_v34 = vmul.f32 %v3953_v5, %v4209_v48 }
 0x1af   : > { %v1134_v8 = vadd.f32 %v1102_v9, %v940_v59 }
 0x1b1   : > { %v1232_v3 = vpop.permute.xlu1 %1231  ;;  %v1489_v61 = vpop.f32.mrf.mxu0 }
 0x1b2   : > { %v1296_v56 = vmul.f32 %v3953_v5, %v1232_v3  ;;  %v1567_v57 = vmul.f32 2.0, %v1489_v61  ;;  %v852_v3 = vpop.permute.xlu2 %851  ;;  %v4347_v61 = vsub.f32 %v4267_v17, %v1558_v58 }
 0x1b3   : > { %3434 = vset.pattern.permute.xlu1 %v3632_v22 }
 0x1b4   : > { %v4326_v11 = vadd.f32 %v1296_v56, %v1134_v8  ;;  %1263 = vperm.xlu1 %3434, %v4058_v24   ;;  %v4330_v23 = vsub.f32 %v4267_v17, %v1567_v57  ;;  %v1103_v24 = vmul.f32 %v3949_v4, %v1042_v32  ;;  %v910_v57 = vmul.f32 %v3943_v62, %v852_v3 }
 0x1b6   : > { %6069 = vst [vmem:[#allocation18_spill] sm:$0xff] %v4326_v11  ;;  %3130 = vmatmul.msk.f32.gmra.mxu0 %vm6042_vm0, %v4326_v11  ;;  %1645 = vmin.xlane.f32.xlu0 %v4330_v23 }
 0x1ba   : > { %v848_v2 = vpop.permute.xlu1 %847  ;;  %v1240_v49 = vpop.permute.xlu2 %1239 }
 0x1bb   : > { %v909_v42 = vmul.f32 %v3943_v62, %v848_v2 }
 0x1bc   : > { %3436 = vset.pattern.permute.xlu1 %v3631_v21  ;;  %v4354_v21 = vpop.permute.xlu0 %681 }
 0x1bd   : > { %v941_v9 = vadd.f32 %v909_v42, %v747_v38  ;;  %879 = vperm.xlu1 %3436, %v4073_v6   ;;  %v1298_v42 = vmul.f32 %v3953_v5, %v1240_v49  ;;  %v720_v11 = vmul.f32 %v3447_v16, %v4354_v21 }
 0x1bf   : > { %v1135_v59 = vadd.f32 %v1103_v24, %v941_v9 }
 0x1c1   : > { %v4349_v8 = vadd.f32 %v1297_v34, %v1135_v59 }
 0x1c3   : > { %6070 = vst [vmem:[#allocation19_spill] sm:$0xff] %v4349_v8  ;;  %1627 = vmin.xlane.f32.xlu2 %v4347_v61  ;;  %v647_v56 = vpop.permute.xlu1 %646  ;;  %3131 = vmatmul.msk.f32.gmra.mxu0 %vm6042_vm0, %v4349_v8 }
 0x1c4   : > { %v713_v39 = vmul.f32 %v3939_v60, %v647_v56  ;;  %v4363_v24 = vpop.permute.xlu0 %686 }
 0x1c5   : > { %3437 = vset.pattern.permute.xlu1 %v3632_v22  ;;  %v714_v22 = vmul.f32 %v3939_v60, %v652_v0 }
 0x1c6   : > { %1267 = vperm.xlu1 %3437, %v4073_v6   ;;  %v748_v48 = vadd.f32 %v3945_v1, %v713_v39  ;;  %v1050_v6 = vpop.permute.xlu2 %1049 }
 0x1c7   : > { %v749_v59 = vadd.f32 %v3945_v1, %v714_v22 }
 0x1c8   : > { %v942_v38 = vadd.f32 %v910_v57, %v748_v48  ;;  %v1105_v48 = vmul.f32 %v3949_v4, %v1050_v6 }
 0x1cc   : > { %v1046_v32 = vpop.permute.xlu1 %1045  ;;  %v4372_v56 = vpop.permute.xlu0 %1057 }
 0x1cd   : > { %v1104_v2 = vmul.f32 %v3949_v4, %v1046_v32 }
 0x1ce   : > { %v657_v57 = vpop.permute.xlu2 %656 }
 0x1cf   : > { %v1136_v34 = vadd.f32 %v1104_v2, %v942_v38  ;;  %v715_v0 = vmul.f32 %v3939_v60, %v657_v57 }
 0x1d1   : > { %v4365_v58 = vadd.f32 %v1298_v42, %v1136_v34  ;;  %v912_v42 = vmul.f32 %v3943_v62, %v4300_v27  ;;  %v750_v34 = vadd.f32 %v3945_v1, %v715_v0 }
 0x1d3   : > { %6071 = vst [vmem:[#allocation20_spill] sm:$0xff] %v4365_v58  ;;  %3132 = vmatmul.msk.f32.gmra.mxu0 %vm6042_vm0, %v4365_v58  ;;  %v944_v6 = vadd.f32 %v912_v42, %v750_v34  ;;  %v1562_v42 = vmul.f32 2.0, %v4250_v37 }
 0x1d4   : > { %v4383_v22 = vpop.permute.xlu0 %1073 }
 0x1d5   : > { %v856_v9 = vpop.permute.xlu1 %855 }
 0x1d6   : > { %v911_v3 = vmul.f32 %v3943_v62, %v856_v9 }
 0x1d8   : > { %v943_v39 = vadd.f32 %v911_v3, %v749_v59 }
 0x1da   : > { %v1137_v32 = vadd.f32 %v1105_v48, %v943_v39  ;;  %v1559_v39 = vmul.f32 2.0, %v4202_v54  ;;  %v1561_v54 = vmul.f32 2.0, %v4233_v36 }
 0x1db   : > { %863 = vperm.xlu2 %3435, %v4105_v15   ;;  %v1248_v15 = vpop.permute.xlu2 %1247 }
 0x1dc   : > { %v1300_v3 = vmul.f32 %v3953_v5, %v1248_v15  ;;  %v4394_v57 = vpop.permute.xlu0 %1077  ;;  %v1625_v15 = vlaneseq }
 0x1de   : > { %v1244_v49 = vpop.permute.xlu1 %1243 }
 0x1df   : > { %v1299_v38 = vmul.f32 %v3953_v5, %v1244_v49 }
 0x1e1   : > { %v4378_v2 = vadd.f32 %v1299_v38, %v1137_v32 }
 0x1e3   : > { %6072 = vst [vmem:[#allocation21_spill] sm:$0xff] %v4378_v2  ;;  %867 = vperm.xlu2 %3435, %v4242_v33   ;;  %3133 = vmatmul.msk.f32.gmra.mxu0 %vm6042_vm0, %v4378_v2  ;;  %v4397_v33 = vsub.f32 %v4267_v17, %v1559_v39  ;;  %v4404_v0 = vpop.permute.xlu2 %666  ;;  %v915_v39 = vmul.f32 %v3943_v62, %v4313_v30 }
 0x1e4   : > { %v4410_v32 = vpop.permute.xlu0 %1271 }
 0x1e7   : > { %v1054_v9 = vpop.permute.xlu1 %1053 }
 0x1e8   : > { %v1106_v59 = vmul.f32 %v3949_v4, %v1054_v9  ;;  %v4419_v9 = vand.u32 127, %v1625_v15 }
 0x1ea   : > { %v1138_v48 = vadd.f32 %v1106_v59, %v944_v6  ;;  %v4417_v6 = vsub.f32 %v4267_v17, %v1562_v42 }
 0x1eb   : > { %883 = vperm.xlu2 %3435, %v4087_v12   ;;  %v4408_v12 = vsub.f32 %v4267_v17, %v1561_v54  ;;  %v1066_v34 = vpop.permute.xlu2 %1065 }
 0x1ec   : > { %v4392_v27 = vadd.f32 %v1300_v3, %v1138_v48  ;;  %v1109_v44 = vmul.f32 %v3949_v4, %v1066_v34 }
 0x1ee   : > { %6073 = vst [vmem:[#allocation22_spill] sm:$0xff] %v4392_v27  ;;  %3134 = vmatmul.msk.f32.gmra.mxu0 %vm6042_vm0, %v4392_v27 }
 0x1f0   : > { %v4401_v49 = vpop.permute.xlu1 %661  ;;  %1629 = vmin.xlane.f32.xlu1 %v4397_v33 }
 0x1f3   : > { %v1260_v54 = vpop.permute.xlu2 %1259 }
 0x1f8   : > { %1633 = vmin.xlane.f32.xlu1 %v4408_v12 }
 0x1f9   : > { %v4413_v38 = vpop.permute.xlu1 %1251 }
 0x200   : > { %v1638_v59 = vpop.xlane.xlu0 %1637  ;;  %1635 = vmin.xlane.f32.xlu1 %v4417_v6 }
 0x201   : > { %vm1696_vm1 = vcmp.le.f32.partialorder %v4270_v40, %v1638_v59  ;;  %v1303_v40 = vmul.f32 %v3953_v5, %v1260_v54  ;;  %v1070_v54 = vpop.permute.xlu2 %1069 }
 0x202   : > { %v4424_v36 = vsel %vm1696_vm1, %v4419_v9, 128  ;;  %v672_v3 = vpop.permute.xlu1 %671 }
 0x203   : > { %v718_v37 = vmul.f32 %v3939_v60, %v672_v3  ;;  %v1826_v48 = vshra.s32 %v4424_v36, 16  ;;  %v1560_v3 = vmul.f32 2.0, %v4219_v43 }
 0x205   : > { %v753_v42 = vadd.f32 %v3945_v1, %v718_v37  ;;  %v4431_v15 = vcvt.s32.f32 %v1826_v48  ;;  %v4442_v37 = vsub.f32 %v4267_v17, %v1560_v3 }
 0x207   : > { %v947_v20 = vadd.f32 %v915_v39, %v753_v42  ;;  %1829 = vmin.xlane.f32.xlu0 %v4431_v15  ;;  %v719_v39 = vmul.f32 %v3939_v60, %v4337_v55  ;;  %v3448_v60 = vld [vmem:[#allocation4] ss:$0 sm:$0xff] }
 0x209   : > { %v1141_v59 = vadd.f32 %v1109_v44, %v947_v20  ;;  %v754_v44 = vadd.f32 %v3945_v1, %v719_v39  ;;  %v755_v1 = vadd.f32 %v3448_v60, %v720_v11  ;;  %v3449_v39 = vld [vmem:[#allocation2 + $0x1] ss:$0 sm:$0xff]  ;;  %v716_v11 = vmul.f32 %v3447_v16, %v4401_v49 }
 0x20b   : > { %v4436_v19 = vadd.f32 %v1303_v40, %v1141_v59  ;;  %v1062_v30 = vpop.permute.xlu1 %1061  ;;  %v1110_v40 = vmul.f32 %v3949_v4, %v1070_v54 }
 0x20d   : > { %6074 = vst [vmem:[#allocation23_spill] sm:$0xff] %v4436_v19  ;;  %3137 = vmatmul.msk.f32.vlgmr.msra.gmra.mxu3 %vm6042_vm0, %v4436_v19 }
 0x214   : > { %1631 = vmin.xlane.f32.xlu2 %v4442_v37  ;;  %v1256_v34 = vpop.permute.xlu1 %1255 }
 0x21d   : > { %v876_v48 = vpop.permute.xlu1 %875 }
 0x21e   : > { %v916_v20 = vmul.f32 %v3943_v62, %v876_v48  ;;  %v1111_v62 = vmul.f32 %v3949_v4, %v4383_v22  ;;  %v1564_v22 = vmul.f32 2.0, %v4287_v7 }
 0x220   : > { %v948_v42 = vadd.f32 %v916_v20, %v754_v44  ;;  %v4474_v49 = vsub.f32 %v4267_v17, %v1564_v22 }
 0x222   : > { %v1142_v43 = vadd.f32 %v1110_v40, %v948_v42  ;;  %v3450_v40 = vld [vmem:[#allocation2 + $0x3] ss:$0 sm:$0xff] }
 0x223   : > { %v1302_v22 = vmul.f32 %v3450_v40, %v1256_v34  ;;  %v1565_v34 = vmul.f32 2.0, %v4304_v63 }
 0x226   : > { %v1264_v59 = vpop.permute.xlu1 %1263 }
 0x227   : > { %v1304_v3 = vmul.f32 %v3953_v5, %v1264_v59 }
 0x229   : > { %v4451_v25 = vadd.f32 %v1304_v3, %v1142_v43  ;;  %v3451_v3 = vld [vmem:[#allocation2 + $0x2] ss:$0 sm:$0xff] }
 0x22b   : > { %6075 = vst [vmem:[#allocation24_spill] sm:$0xff] %v4451_v25  ;;  %3138 = vmatmul.msk.f32.gmra.mxu3 %vm6042_vm0, %v4451_v25 }
 0x22f   : > { %v880_v55 = vpop.permute.xlu1 %879 }
 0x230   : > { %v917_v48 = vmul.f32 %v3449_v39, %v880_v55  ;;  %v751_v55 = vadd.f32 %v3448_v60, %v716_v11  ;;  %v1108_v11 = vmul.f32 %v3451_v3, %v1062_v30 }
 0x232   : > { %v949_v44 = vadd.f32 %v917_v48, %v755_v1  ;;  %v1107_v1 = vmul.f32 %v3451_v3, %v4372_v56  ;;  %v721_v56 = vmul.f32 %v3447_v16, %v4363_v24 }
 0x234   : > { %v1143_v20 = vadd.f32 %v1111_v62, %v949_v44  ;;  %v717_v44 = vmul.f32 %v3447_v16, %v4404_v0  ;;  %v756_v0 = vadd.f32 %v3448_v60, %v721_v56 }
 0x236   : > { %v1628_v54 = vpop.xlane.xlu2 %1627  ;;  %v752_v7 = vadd.f32 %v3448_v60, %v717_v44  ;;  %v1306_v44 = vmul.f32 %v3450_v40, %v4410_v32  ;;  %v4504_v60 = vsub.f32 %v4267_v17, %v1565_v34 }
 0x237   : > { %vm1691_vm2 = vcmp.le.f32.partialorder %v4347_v61, %v1628_v54 }
 0x238   : > { %v4460_v5 = vsel %vm1691_vm2, %v4419_v9, 128  ;;  %v1268_v21 = vpop.permute.xlu1 %1267 }
 0x239   : > { %v1756_v42 = vshra.s32 %v4460_v5, 16  ;;  %v1305_v59 = vmul.f32 %v3450_v40, %v1268_v21 }
 0x23b   : > { %v4464_v43 = vcvt.s32.f32 %v1756_v42  ;;  %v4466_v4 = vadd.f32 %v1305_v59, %v1143_v20  ;;  %v1301_v20 = vmul.f32 %v3450_v40, %v4413_v38  ;;  %v1492_v40 = vpop.f32.mrf.mxu0 }
 0x23d   : > { %6076 = vst [vmem:[#allocation25_spill] sm:$0xff] %v4466_v4  ;;  %1759 = vmin.xlane.f32.xlu1 %v4464_v43  ;;  %3139 = vmatmul.msk.f32.gmra.mxu3 %vm6042_vm0, %v4466_v4 }
 0x23e   : > { %v864_v61 = vpop.permute.xlu2 %863 }
 0x23f   : > { %v913_v62 = vmul.f32 %v3449_v39, %v864_v61 }
 0x241   : > { %v945_v48 = vadd.f32 %v913_v62, %v751_v55 }
 0x243   : > { %v1139_v54 = vadd.f32 %v1107_v1, %v945_v48  ;;  %v1112_v1 = vmul.f32 %v3451_v3, %v4394_v57 }
 0x245   : > { %v4478_v21 = vadd.f32 %v1301_v20, %v1139_v54  ;;  %1639 = vmin.xlane.f32.xlu1 %v4474_v49 }
 0x246   : > { %v868_v42 = vpop.permute.xlu2 %867 }
 0x247   : > { %6077 = vst [vmem:[#allocation26_spill] sm:$0xff] %v4478_v21  ;;  %v914_v59 = vmul.f32 %v3449_v39, %v868_v42  ;;  %3135 = vmatmul.msk.f32.gmra.mxu0 %vm6042_vm0, %v4478_v21 }
 0x249   : > { %v946_v61 = vadd.f32 %v914_v59, %v752_v7  ;;  %v1495_v59 = vpop.f32.mrf.mxu0 }
 0x24b   : > { %v1140_v55 = vadd.f32 %v1108_v11, %v946_v61  ;;  %v1569_v11 = vmul.f32 2.0, %v1495_v59 }
 0x24d   : > { %v4484_v62 = vadd.f32 %v1302_v22, %v1140_v55 }
 0x24e   : > { %v884_v38 = vpop.permute.xlu2 %883 }
 0x24f   : > { %6078 = vst [vmem:[#allocation27_spill] sm:$0xff] %v4484_v62  ;;  %3136 = vmatmul.msk.f32.gmra.mxu0 %vm6042_vm0, %v4484_v62  ;;  %v918_v48 = vmul.f32 %v3449_v39, %v884_v38 }
 0x251   : > { %v950_v20 = vadd.f32 %v918_v48, %v756_v0 }
 0x253   : > { %v1144_v54 = vadd.f32 %v1112_v1, %v950_v20 }
 0x255   : > { %v4490_v42 = vadd.f32 %v1306_v44, %v1144_v54 }
 0x257   : > { %6079 = vst [vmem:[#allocation28_spill] sm:$0xff] %v4490_v42  ;;  %3140 = vmatmul.msk.f32.gmra.mxu3 %vm6042_vm0, %v4490_v42 }
 0x263   : > { %v1630_v16 = vpop.xlane.xlu1 %1629 }
 0x264   : > { %vm1692_vm3 = vcmp.le.f32.partialorder %v4397_v33, %v1630_v16  ;;  %v1566_v33 = vmul.f32 2.0, %v4315_v51  ;;  %v1498_v51 = vpop.f32.mrf.mxu0  ;;  %v1568_v16 = vmul.f32 2.0, %v1492_v40 }
 0x265   : > { %v4496_v24 = vsel %vm1692_vm3, %v4419_v9, 128  ;;  %v1570_v0 = vmul.f32 2.0, %v1498_v51 }
 0x266   : > { %v1770_v57 = vshra.s32 %v4496_v24, 16  ;;  %v4510_v3 = vsub.f32 %v4267_v17, %v1566_v33 }
 0x268   : > { %v4499_v30 = vcvt.s32.f32 %v1770_v57 }
 0x26a   : > { %1773 = vmin.xlane.f32.xlu1 %v4499_v30 }
 0x26b   : > { %v1634_v32 = vpop.xlane.xlu1 %1633 }
 0x26c   : > { %vm1694_vm6 = vcmp.le.f32.partialorder %v4408_v12, %v1634_v32  ;;  %v1501_v48 = vpop.f32.mrf.mxu0  ;;  %v4549_v32 = vsub.f32 %v4267_v17, %v1568_v16  ;;  %v1769_v16 = vand.u32 65535, %v4496_v24 }
 0x26d   : > { %v4533_v1 = vsel %vm1694_vm6, %v4419_v9, 128  ;;  %v1571_v12 = vmul.f32 2.0, %v1501_v48 }
 0x26e   : > { %v1798_v44 = vshra.s32 %v4533_v1, 16 }
 0x26f   : > { %v4545_v57 = vsub.f32 %v4267_v17, %v1571_v12 }
 0x270   : > { %v4541_v20 = vcvt.s32.f32 %v1798_v44 }
 0x272   : > { %1641 = vmin.xlane.f32.xlu1 %v4504_v60 }
 0x273   : > { %v1636_v39 = vpop.xlane.xlu1 %1635 }
 0x274   : > { %vm1695_vm4 = vcmp.le.f32.partialorder %v4417_v6, %v1636_v39  ;;  %v4521_v6 = vsub.f32 %v4267_v17, %v1569_v11  ;;  %v1504_v54 = vpop.f32.mrf.mxu0  ;;  %v1825_v11 = vand.u32 65535, %v4424_v36 }
 0x275   : > { %v4513_v7 = vsel %vm1695_vm4, %v4419_v9, 128  ;;  %v1572_v34 = vmul.f32 2.0, %v1504_v54 }
 0x276   : > { %v1812_v63 = vshra.s32 %v4513_v7, 16 }
 0x277   : > { %v4553_v39 = vsub.f32 %v4267_v17, %v1572_v34 }
 0x278   : > { %v4517_v56 = vcvt.s32.f32 %v1812_v63  ;;  %v1646_v63 = vpop.xlane.xlu0 %1645 }
 0x279   : > { %vm1700_vm13 = vcmp.le.f32.partialorder %v4330_v23, %v1646_v63  ;;  %v2310_v23 = vld [vmem:[%s6007_s4 + $0x58] sm:$0xff] }
 0x27a   : > { %1643 = vmin.xlane.f32.xlu1 %v4510_v3 }
 0x27c   : > { %v1507_v33 = vpop.f32.mrf.mxu0 }
 0x27d   : > { %v1573_v59 = vmul.f32 2.0, %v1507_v33 }
 0x27f   : > { %v4557_v40 = vsub.f32 %v4267_v17, %v1573_v59 }
 0x280   : > { %v4561_v51 = vpop.xlane.xlu0 %1829 }
 0x281   : > { %vm1831_vm7 = vcmp.eq.f32.partialorder %v4431_v15, %v4561_v51 }
 0x282   : > { %1815 = vmin.xlane.f32.xlu1 %v4517_v56 }
 0x284   : > { %v4579_v34 = vpop.f32.mrf.mxu0 }
 0x287   : > { %v1632_v61 = vpop.xlane.xlu2 %1631 }
 0x288   : > { %vm1693_vm5 = vcmp.le.f32.partialorder %v4442_v37, %v1632_v61  ;;  %v4537_v37 = vsub.f32 %v4267_v17, %v1570_v0  ;;  %v1755_v61 = vand.u32 65535, %v4460_v5 }
 0x289   : > { %v4525_v22 = vsel %vm1693_vm5, %v4419_v9, 128 }
 0x28a   : > { %v1784_v55 = vshra.s32 %v4525_v22, 16  ;;  %1649 = vmin.xlane.f32.xlu1 %v4521_v6  ;;  %v1757_v0 = vcvt.s32.f32 %v1755_v61 }
 0x28c   : > { %v4530_v38 = vcvt.s32.f32 %v1784_v55  ;;  %v1827_v55 = vcvt.s32.f32 %v1825_v11  ;;  %v4585_v59 = vpop.f32.mrf.mxu0 }
 0x28e   : > { %1787 = vmin.xlane.f32.xlu2 %v4530_v38  ;;  %v1832_v44 = vsel %vm1831_vm7, %v1827_v55, inf }
 0x292   : > { %1651 = vmin.xlane.f32.xlu1 %v4537_v37 }
 0x296   : > { %1801 = vmin.xlane.f32.xlu2 %v4541_v20 }
 0x29a   : > { %1653 = vmin.xlane.f32.xlu1 %v4545_v57 }
 0x29e   : > { %1647 = vmin.xlane.f32.xlu2 %v4549_v32 }
 0x2a2   : > { %1655 = vmin.xlane.f32.xlu1 %v4553_v39 }
 0x2aa   : > { %1657 = vmin.xlane.f32.xlu1 %v4557_v40 }
 0x2b0   : > { %v4566_v48 = vpop.xlane.xlu1 %1759 }
 0x2b1   : > { %vm1761_vm8 = vcmp.eq.f32.partialorder %v4464_v43, %v4566_v48  ;;  %v1771_v43 = vcvt.s32.f32 %v1769_v16  ;;  %v2311_v16 = vld [vmem:[%s6007_s4 + $0x60] sm:$0xff] }
 0x2b2   : > { %v1762_v12 = vsel %vm1761_vm8, %v1757_v0, inf  ;;  %1833 = vmin.xlane.f32.xlu1 %v1832_v44  ;;  %v4598_v0 = vpop.f32.mrf.mxu0 }
 0x2b3   : > { %1763 = vmin.xlane.f32.xlu2 %v1762_v12 }
 0x2b8   : > { %v1640_v54 = vpop.xlane.xlu1 %1639 }
 0x2b9   : > { %vm1697_vm9 = vcmp.le.f32.partialorder %v4474_v49, %v1640_v54 }
 0x2ba   : > { %v4572_v36 = vsel %vm1697_vm9, %v4419_v9, 128  ;;  %v4624_v63 = vpop.f32.mrf.mxu0 }
 0x2bb   : > { %v1840_v5 = vshra.s32 %v4572_v36, 16 }
 0x2bd   : > { %v4575_v15 = vcvt.s32.f32 %v1840_v5  ;;  %v2312_v5 = vld [vmem:[%s6007_s4 + $0x68] sm:$0xff] }
 0x2bf   : > { %1843 = vmin.xlane.f32.xlu0 %v4575_v15 }
 0x2dd   : > { %v4581_v33 = vpop.xlane.xlu1 %1773 }
 0x2de   : > { %vm1775_vm10 = vcmp.eq.f32.partialorder %v4499_v30, %v4581_v33  ;;  %v2314_v30 = vld [vmem:[%s6007_s4 + $0x78] sm:$0xff] }
 0x2df   : > { %v1776_v49 = vsel %vm1775_vm10, %v1771_v43, inf  ;;  %2315 = vmatpush.msra.mxu1 %v2314_v30  ;;  %3279 = vmatpush.msrb.mxu3 %v2314_v30  ;;  %v4618_v43 = vsel %vm1700_vm13, %v4419_v9, 128 }
 0x2e0   : > { %1777 = vmin.xlane.f32.xlu2 %v1776_v49  ;;  %v1882_v49 = vshra.s32 %v4618_v43, 16 }
 0x2e2   : > { %v4633_v30 = vcvt.s32.f32 %v1882_v49 }
 0x2e5   : > { %v1642_v11 = vpop.xlane.xlu1 %1641 }
 0x2e6   : > { %vm1698_vm11 = vcmp.le.f32.partialorder %v4504_v60, %v1642_v11  ;;  %v2313_v60 = vld [vmem:[%s6007_s4 + $0x70] sm:$0xff] }
 0x2e7   : > { %v4589_v61 = vsel %vm1698_vm11, %v4419_v9, 128  ;;  %2316 = vmatpush.msra.mxu1 %v2313_v60  ;;  %3280 = vmatpush.msrb.mxu3 %v2313_v60  ;;  %v2309_v11 = vld [vmem:[%s6007_s4 + $0x50] sm:$0xff]  ;;  %v2306_v60 = vld [vmem:[%s6007_s4 + $0x38] sm:$0xff] }
 0x2e8   : > { %v1854_v24 = vshra.s32 %v4589_v61, 16 }
 0x2e9   : > { %2317 = vmatpush.msra.mxu1 %v2312_v5  ;;  %3281 = vmatpush.msrb.mxu3 %v2312_v5  ;;  %v1783_v5 = vand.u32 65535, %v4525_v22  ;;  %v2303_v22 = vld [vmem:[%s6007_s4 + $0x20] sm:$0xff] }
 0x2ea   : > { %v4592_v55 = vcvt.s32.f32 %v1854_v24  ;;  %v2308_v24 = vld [vmem:[%s6007_s4 + $0x48] sm:$0xff] }
 0x2eb   : > { %2318 = vmatpush.msra.mxu1 %v2311_v16  ;;  %3282 = vmatpush.msrb.mxu3 %v2311_v16  ;;  %v2305_v16 = vld [vmem:[%s6007_s4 + $0x30] sm:$0xff]  ;;  %v1785_v49 = vcvt.s32.f32 %v1783_v5 }
 0x2ec   : > { %1857 = vmin.xlane.f32.xlu0 %v4592_v55 }
 0x2ed   : > { %v1644_v44 = vpop.xlane.xlu1 %1643  ;;  %2319 = vmatpush.msra.mxu1 %v2310_v23  ;;  %3283 = vmatpush.msrb.mxu3 %v2310_v23  ;;  %v2304_v23 = vld [vmem:[%s6007_s4 + $0x28] sm:$0xff] }
 0x2ee   : > { %vm1699_vm12 = vcmp.le.f32.partialorder %v4510_v3, %v1644_v44  ;;  %v2307_v44 = vld [vmem:[%s6007_s4 + $0x40] sm:$0xff] }
 0x2ef   : > { %v4605_v12 = vsel %vm1699_vm12, %v4419_v9, 128  ;;  %2320 = vmatpush.msra.mxu1 %v2309_v11  ;;  %3284 = vmatpush.msrb.mxu3 %v2309_v11 }
 0x2f0   : > { %v1868_v54 = vshra.s32 %v4605_v12, 16 }
 0x2f1   : > { %2321 = vmatpush.msra.mxu1 %v2308_v24  ;;  %3285 = vmatpush.msrb.mxu3 %v2308_v24 }
 0x2f2   : > { %v4612_v3 = vcvt.s32.f32 %v1868_v54  ;;  %v4642_v54 = vpop.f32.mrf.mxu0 }
 0x2f3   : > { %2322 = vmatpush.msra.mxu1 %v2307_v44  ;;  %3286 = vmatpush.msrb.mxu3 %v2307_v44 }
 0x2f4   : > { %1871 = vmin.xlane.f32.xlu0 %v4612_v3 }
 0x2f5   : > { %2323 = vmatpush.msra.mxu1 %v2306_v60  ;;  %3287 = vmatpush.msrb.mxu3 %v2306_v60  ;;  %v4651_v11 = vpop.xlane.xlu1 %1815  ;;  %v2302_v60 = vld [vmem:[%s6007_s4 + $0x18] sm:$0xff] }
 0x2f6   : > { %vm1817_vm1 = vcmp.eq.f32.partialorder %v4517_v56, %v4651_v11 }
 0x2f7   : > { %2324 = vmatpush.msra.mxu1 %v2305_v16  ;;  %3288 = vmatpush.msrb.mxu3 %v2305_v16  ;;  %v1797_v16 = vand.u32 65535, %v4533_v1  ;;  %v2299_v1 = vld [vmem:[%s6007_s4] sm:$0xff] }
 0x2f9   : > { %2325 = vmatpush.msra.mxu1 %v2304_v23  ;;  %3289 = vmatpush.msrb.mxu3 %v2304_v23  ;;  %v2300_v23 = vld [vmem:[%s6007_s4 + $0x8] sm:$0xff] }
 0x2fa   : > { %v4663_v5 = vpop.f32.mrf.mxu0 }
 0x2fb   : > { %2326 = vmatpush.msra.mxu1 %v2303_v22  ;;  %3290 = vmatpush.msrb.mxu3 %v2303_v22 }
 0x2fc   : > { %1885 = vmin.xlane.f32.xlu0 %v4633_v30 }
 0x2fd   : > { %2327 = vmatpush.msra.mxu1 %v2302_v60  ;;  %3291 = vmatpush.msrb.mxu3 %v2302_v60 }
 0x301   : > { %v4653_v24 = vpop.xlane.xlu2 %1787 }
 0x302   : > { %vm1789_vm14 = vcmp.eq.f32.partialorder %v4530_v38, %v4653_v24  ;;  %v2301_v38 = vld [vmem:[%s6007_s4 + $0x10] sm:$0xff] }
 0x303   : > { %v1790_v44 = vsel %vm1789_vm14, %v1785_v49, inf  ;;  %2328 = vmatpush.msra.mxu1 %v2301_v38  ;;  %3292 = vmatpush.msrb.mxu3 %v2301_v38  ;;  %v1799_v49 = vcvt.s32.f32 %v1797_v16  ;;  %v4679_v38 = vpop.f32.mrf.mxu0  ;;  %v1811_v16 = vand.u32 65535, %v4513_v7  ;;  %v1574_v7 = vmul.f32 2.0, %v4579_v34 }
 0x304   : > { %1791 = vmin.xlane.f32.xlu2 %v1790_v44  ;;  %v1650_v44 = vpop.xlane.xlu1 %1649 }
 0x305   : > { %2329 = vmatpush.msra.mxu1 %v2300_v23  ;;  %3293 = vmatpush.msrb.mxu3 %v2300_v23  ;;  %v1813_v8 = vcvt.s32.f32 %v1811_v16  ;;  %vm1702_vm3 = vcmp.le.f32.partialorder %v4521_v6, %v1650_v44 }
 0x306   : > { %v4696_v56 = vsel %vm1702_vm3, %v4419_v9, 128 }
 0x307   : > { %2330 = vmatpush.msra.mxu1 %v2299_v1  ;;  %3294 = vmatpush.msrb.mxu3 %v2299_v1 }
 0x309   : > { %v4672_v22 = vpop.xlane.xlu2 %1801 }
 0x30a   : > { %vm1803_vm15 = vcmp.eq.f32.partialorder %v4541_v20, %v4672_v22  ;;  %v1818_v20 = vsel %vm1817_vm1, %v1813_v8, inf  ;;  %v1910_v8 = vshra.s32 %v4696_v56, 16 }
 0x30b   : > { %v1804_v60 = vsel %vm1803_vm15, %v1799_v49, inf  ;;  %v4690_v1 = vpop.f32.mrf.mxu0 }
 0x30c   : > { %1805 = vmin.xlane.f32.xlu2 %v1804_v60  ;;  %v1652_v60 = vpop.xlane.xlu1 %1651  ;;  %v4708_v34 = vcvt.s32.f32 %v1910_v8 }
 0x30d   : > { %vm1703_vm4 = vcmp.le.f32.partialorder %v4537_v37, %v1652_v60  ;;  %v1766_v37 = vcvt.f32.s32 %v4566_v48  ;;  %v1576_v60 = vmul.f32 2.0, %v4598_v0  ;;  %v6027_v0 = vmov 1.0  }
 0x30e   : > { %v4711_v44 = vsel %vm1703_vm4, %v4419_v9, 128 }
 0x30f   : > { %v1767_v21 = vshll.u32 %v1766_v37, 16  ;;  %v1839_v37 = vand.u32 65535, %v4572_v36 }
 0x311   : > { %v1648_v58 = vpop.xlane.xlu2 %1647 }
 0x312   : > { %vm1701_vm2 = vcmp.le.f32.partialorder %v4549_v32, %v1648_v58  ;;  %v4700_v58 = vsub.f32 %v4267_v17, %v1574_v7  ;;  %v1575_v32 = vmul.f32 2.0, %v4585_v59 }
 0x313   : > { %v4686_v23 = vsel %vm1701_vm2, %v4419_v9, 128  ;;  %v4705_v6 = vpop.f32.mrf.mxu0 }
 0x314   : > { %1819 = vmin.xlane.f32.xlu2 %v1818_v20  ;;  %v1896_v49 = vshra.s32 %v4686_v23, 16  ;;  %v1654_v16 = vpop.xlane.xlu1 %1653  ;;  %v4715_v20 = vsub.f32 %v4267_v17, %v1575_v32 }
 0x315   : > { %vm1704_vm5 = vcmp.le.f32.partialorder %v4545_v57, %v1654_v16  ;;  %v4733_v57 = vsub.f32 %v4267_v17, %v1576_v60 }
 0x316   : > { %v4693_v2 = vcvt.s32.f32 %v1896_v49  ;;  %v1924_v49 = vshra.s32 %v4711_v44, 16  ;;  %v4727_v27 = vsel %vm1704_vm5, %v4419_v9, 128 }
 0x317   : > { %v1938_v16 = vshra.s32 %v4727_v27, 16 }
 0x318   : > { %1899 = vmin.xlane.f32.xlu0 %v4693_v2  ;;  %v4724_v8 = vcvt.s32.f32 %v1924_v49  ;;  %v1577_v49 = vmul.f32 2.0, %v4624_v63  ;;  %v1578_v63 = vmul.f32 2.0, %v4642_v54 }
 0x319   : > { %v4748_v60 = vcvt.s32.f32 %v1938_v16 }
 0x31b   : > { %v4721_v59 = vpop.f32.mrf.mxu0 }
 0x31c   : > { %1659 = vmin.xlane.f32.xlu2 %v4700_v58  ;;  %v1656_v62 = vpop.xlane.xlu1 %1655 }
 0x31d   : > { %vm1705_vm7 = vcmp.le.f32.partialorder %v4553_v39, %v1656_v62  ;;  %v4755_v62 = vsub.f32 %v4267_v17, %v1577_v49  ;;  %v1841_v39 = vcvt.s32.f32 %v1839_v37  ;;  %v4768_v49 = vsub.f32 %v4267_v17, %v1578_v63 }
 0x320   : > { %1913 = vmin.xlane.f32.xlu0 %v4708_v34 }
 0x324   : > { %1661 = vmin.xlane.f32.xlu2 %v4715_v20 }
 0x326   : > { %v1764_v7 = vpop.xlane.xlu2 %1763 }
 0x327   : > { %v1765_v32 = vcvt.f32.s32 %v1764_v7  ;;  %v4751_v7 = vsel %vm1705_vm7, %v4419_v9, 128 }
 0x328   : > { %1927 = vmin.xlane.f32.xlu0 %v4724_v8 }
 0x329   : > { %v4730_v48 = vadd.s32 %v1767_v21, %v1765_v32  ;;  %v4744_v21 = vpop.f32.mrf.mxu0 }
 0x32b   : > { %6080 = vst [vmem:[#allocation29_spill] sm:$0xff] %v4730_v48  ;;  %vm6045_vm6 = vcmp.eq.s32.totalorder %v4419_v9, %v4730_v48 }
 0x32c   : > { %3173 = vmatmul.msk.f32.vlgmr.msra.gmra.mxu1 %vm6045_vm6, %v6027_v0  ;;  %1663 = vmin.xlane.f32.xlu2 %v4733_v57  ;;  %v1952_v0 = vshra.s32 %v4751_v7, 16 }
 0x32e   : > { %v4764_v16 = vcvt.s32.f32 %v1952_v0  ;;  %v1780_v0 = vcvt.f32.s32 %v4581_v33 }
 0x330   : > { %1941 = vmin.xlane.f32.xlu0 %v4748_v60 }
 0x331   : > { %v1543_v19 = vpop.f32.mrf.mxu0 }
 0x332   : > { %v4757_v32 = vpop.xlane.xlu0 %1843  ;;  %v1585_v37 = vmul.f32 2.0, %v1543_v19 }
 0x333   : > { %vm1845_vm8 = vcmp.eq.f32.partialorder %v4575_v15, %v4757_v32  ;;  %v1579_v15 = vmul.f32 2.0, %v4663_v5 }
 0x334   : > { %1665 = vmin.xlane.f32.xlu2 %v4755_v62  ;;  %v1846_v36 = vsel %vm1845_vm8, %v1841_v39, inf  ;;  %v4772_v25 = vsub.f32 %v4267_v17, %v1585_v37  ;;  %v6082_v37 = vmov 1.0  }
 0x335   : > { %1847 = vmin.xlane.f32.xlu1 %v1846_v36  ;;  %v4777_v54 = vsub.f32 %v4267_v17, %v1579_v15  ;;  %v1781_v36 = vshll.u32 %v1780_v0, 16  ;;  %v1853_v17 = vand.u32 65535, %v4589_v61  ;;  %v1867_v0 = vand.u32 65535, %v4605_v12 }
 0x336   : > { %v1881_v61 = vand.u32 65535, %v4618_v43 }
 0x337   : > { %v1855_v5 = vcvt.s32.f32 %v1853_v17  ;;  %v1658_v17 = vpop.xlane.xlu1 %1657 }
 0x338   : > { %1955 = vmin.xlane.f32.xlu0 %v4764_v16  ;;  %vm1706_vm12 = vcmp.le.f32.partialorder %v4557_v40, %v1658_v17  ;;  %v1883_v42 = vcvt.s32.f32 %v1881_v61  ;;  %v1808_v61 = vcvt.f32.s32 %v4672_v22  ;;  %v1580_v22 = vmul.f32 2.0, %v4679_v38 }
 0x339   : > { %v1836_v38 = vcvt.f32.s32 %v4561_v51 }
 0x33c   : > { %1667 = vmin.xlane.f32.xlu2 %v4768_v49 }
 0x340   : > { %1681 = vmin.xlane.f32.xlu0 %v4772_v25 }
 0x348   : > { %1669 = vmin.xlane.f32.xlu0 %v4777_v54 }
 0x353   : > { %v1778_v39 = vpop.xlane.xlu2 %1777 }
 0x354   : > { %v1779_v63 = vcvt.f32.s32 %v1778_v39  ;;  %v1869_v39 = vcvt.s32.f32 %v1867_v0 }
 0x356   : > { %v4781_v19 = vadd.s32 %v1781_v36, %v1779_v63 }
 0x358   : > { %6081 = vst [vmem:[#allocation30_spill] sm:$0xff] %v4781_v19  ;;  %vm6046_vm9 = vcmp.eq.s32.totalorder %v4419_v9, %v4781_v19 }
 0x359   : > { %3174 = vmatmul.msk.f32.gmra.mxu1 %vm6046_vm9, %v6082_v37 }
 0x35f   : > { %v4790_v15 = vpop.xlane.xlu0 %1857 }
 0x360   : > { %vm1859_vm10 = vcmp.eq.f32.partialorder %v4592_v55, %v4790_v15  ;;  %v4806_v55 = vsel %vm1706_vm12, %v4419_v9, 128  ;;  %vm2460_vm12 = vcmask 519168  }
 0x361   : > { %v1860_v33 = vsel %vm1859_vm10, %v1855_v5, inf  ;;  %v1966_v5 = vshra.s32 %v4806_v55, 16 }
 0x362   : > { %1861 = vmin.xlane.f32.xlu1 %v1860_v33 }
 0x363   : > { %v4810_v0 = vcvt.s32.f32 %v1966_v5 }
 0x367   : > { %v4795_v36 = vpop.xlane.xlu0 %1871 }
 0x368   : > { %vm1873_vm11 = vcmp.eq.f32.partialorder %v4612_v3, %v4795_v36  ;;  %v1794_v3 = vcvt.f32.s32 %v4653_v24  ;;  %v4822_v24 = vld [vmem:[#allocation7] ss:$0 sm:$0xff] }
 0x369   : > { %v1874_v63 = vsel %vm1873_vm11, %v1869_v39, inf  ;;  %v1546_v39 = vpop.f32.mrf.mxu3 }
 0x36a   : > { %1875 = vmin.xlane.f32.xlu1 %v1874_v63  ;;  %v1795_v43 = vshll.u32 %v1794_v3, 16 }
 0x36f   : > { %v4801_v4 = vpop.xlane.xlu0 %1885 }
 0x370   : > { %vm1887_vm13 = vcmp.eq.f32.partialorder %v4633_v30, %v4801_v4  ;;  %v1586_v30 = vmul.f32 2.0, %v1546_v39  ;;  %v4840_v39 = vsub.f32 %v4822_v24, %v1580_v22  ;;  %v1909_v22 = vand.u32 65535, %v4696_v56 }
 0x371   : > { %v1888_v12 = vsel %vm1887_vm13, %v1883_v42, inf }
 0x372   : > { %1889 = vmin.xlane.f32.xlu1 %v1888_v12  ;;  %v4825_v17 = vsub.f32 %v4822_v24, %v1586_v30  ;;  %v1809_v12 = vshll.u32 %v1808_v61, 16 }
 0x377   : > { %v1792_v33 = vpop.xlane.xlu2 %1791 }
 0x378   : > { %v1793_v40 = vcvt.f32.s32 %v1792_v33  ;;  %v1822_v33 = vcvt.f32.s32 %v4651_v11 }
 0x37a   : > { %v4812_v63 = vadd.s32 %v1795_v43, %v1793_v40  ;;  %1969 = vmin.xlane.f32.xlu1 %v4810_v0  ;;  %v1895_v43 = vand.u32 65535, %v4686_v23  ;;  %v1823_v30 = vshll.u32 %v1822_v33, 16  ;;  %v1837_v23 = vshll.u32 %v1836_v38, 16 }
 0x37c   : > { %6083 = vst [vmem:[#allocation31_spill] sm:$0xff] %v4812_v63  ;;  %vm6049_vm14 = vcmp.eq.s32.totalorder %v4419_v9, %v4812_v63 }
 0x37d   : > { %3175 = vmatmul.msk.f32.gmra.mxu1 %vm6049_vm14, %v6082_v37 }
 0x37f   : > { %v1806_v42 = vpop.xlane.xlu2 %1805 }
 0x380   : > { %v1807_v3 = vcvt.f32.s32 %v1806_v42  ;;  %v1834_v42 = vpop.xlane.xlu1 %1833 }
 0x381   : > { %v1835_v48 = vcvt.f32.s32 %v1834_v42  ;;  %v1923_v42 = vand.u32 65535, %v4711_v44 }
 0x382   : > { %v4827_v5 = vadd.s32 %v1809_v12, %v1807_v3  ;;  %1683 = vmin.xlane.f32.xlu1 %v4825_v17  ;;  %v1897_v12 = vcvt.s32.f32 %v1895_v43 }
 0x383   : > { %v4857_v43 = vadd.s32 %v1837_v23, %v1835_v48  ;;  %v1549_v48 = vpop.f32.mrf.mxu3 }
 0x384   : > { %6084 = vst [vmem:[#allocation32_spill] sm:$0xff] %v4827_v5  ;;  %vm6056_vm15 = vcmp.eq.s32.totalorder %v4419_v9, %v4827_v5 }
 0x385   : > { %3176 = vmatmul.msk.f32.gmra.mxu1 %vm6056_vm15, %v6082_v37  ;;  %6086 = vst [vmem:[#allocation34_spill] sm:$0xff] %v4857_v43  ;;  %vm2208_vm5 = vcmp.eq.s32.totalorder %v4419_v9, %v4857_v43 }
 0x387   : > { %v1820_v40 = vpop.xlane.xlu2 %1819 }
 0x388   : > { %v1821_v61 = vcvt.f32.s32 %v1820_v40 }
 0x38a   : > { %v4843_v11 = vadd.s32 %v1823_v30, %v1821_v61  ;;  %1671 = vmin.xlane.f32.xlu1 %v4840_v39  ;;  %v1911_v30 = vcvt.s32.f32 %v1909_v22  ;;  %v1925_v22 = vcvt.s32.f32 %v1923_v42 }
 0x38b   : > { %v4846_v3 = vpop.xlane.xlu0 %1899 }
 0x38c   : > { %6085 = vst [vmem:[#allocation33_spill] sm:$0xff] %v4843_v11  ;;  %vm1901_vm1 = vcmp.eq.f32.partialorder %v4693_v2, %v4846_v3  ;;  %vm2207_vm2 = vcmp.eq.s32.totalorder %v4419_v9, %v4843_v11  ;;  %v1878_v11 = vcvt.f32.s32 %v4795_v36 }
 0x38d   : > { %3177 = vmatmul.msk.f32.gmra.mxu1 %vm2207_vm2, %v6082_v37  ;;  %v1902_v51 = vsel %vm1901_vm1, %v1897_v12, inf  ;;  %v1587_v12 = vmul.f32 2.0, %v1549_v48 }
 0x38e   : > { %1903 = vmin.xlane.f32.xlu2 %v1902_v51 }
 0x38f   : > { %v1660_v33 = vpop.xlane.xlu2 %1659 }
 0x390   : > { %vm1707_vm3 = vcmp.le.f32.partialorder %v4700_v58, %v1660_v33  ;;  %v4886_v33 = vsub.f32 %v4822_v24, %v1587_v12 }
 0x391   : > { %v4861_v2 = vsel %vm1707_vm3, %v4419_v9, 128 }
 0x392   : > { %v1980_v40 = vshra.s32 %v4861_v2, 16 }
 0x393   : > { %v4864_v61 = vpop.xlane.xlu0 %1913 }
 0x394   : > { %vm1915_vm4 = vcmp.eq.f32.partialorder %v4708_v34, %v4864_v61  ;;  %v4870_v56 = vcvt.s32.f32 %v1980_v40 }
 0x395   : > { %3178 = vmatmul.msk.f32.gmra.mxu1 %vm2208_vm5, %v6082_v37  ;;  %v1916_v58 = vsel %vm1915_vm4, %v1911_v30, inf  ;;  %v1552_v30 = vpop.f32.mrf.mxu3 }
 0x396   : > { %1983 = vmin.xlane.f32.xlu0 %v4870_v56  ;;  %1917 = vmin.xlane.f32.xlu2 %v1916_v58  ;;  %v1581_v58 = vmul.f32 2.0, %v4690_v1  ;;  %v1588_v42 = vmul.f32 2.0, %v1552_v30  ;;  %v1582_v30 = vmul.f32 2.0, %v4705_v6 }
 0x397   : > { %v1662_v38 = vpop.xlane.xlu2 %1661 }
 0x398   : > { %vm1708_vm7 = vcmp.le.f32.partialorder %v4715_v20, %v1662_v38  ;;  %v1937_v20 = vand.u32 65535, %v4727_v27 }
 0x399   : > { %v4880_v34 = vsel %vm1708_vm7, %v4419_v9, 128 }
 0x39a   : > { %v1994_v51 = vshra.s32 %v4880_v34, 16  ;;  %v1939_v38 = vcvt.s32.f32 %v1937_v20 }
 0x39b   : > { %v4883_v23 = vpop.xlane.xlu0 %1927 }
 0x39c   : > { %v4888_v40 = vcvt.s32.f32 %v1994_v51  ;;  %vm1929_vm8 = vcmp.eq.f32.partialorder %v4724_v8, %v4883_v23  ;;  %v4900_v8 = vsub.f32 %v4822_v24, %v1581_v58  ;;  %v1850_v51 = vcvt.f32.s32 %v4757_v32 }
 0x39d   : > { %v1930_v44 = vsel %vm1929_vm8, %v1925_v22, inf  ;;  %v4909_v22 = vsub.f32 %v4822_v24, %v1588_v42 }
 0x39e   : > { %1997 = vmin.xlane.f32.xlu1 %v4888_v40  ;;  %1685 = vmin.xlane.f32.xlu2 %v4886_v33 }
 0x39f   : > { %1931 = vmin.xlane.f32.xlu0 %v1930_v44  ;;  %v1664_v48 = vpop.xlane.xlu2 %1663 }
 0x3a0   : > { %vm1709_vm10 = vcmp.le.f32.partialorder %v4733_v57, %v1664_v48  ;;  %v1555_v57 = vpop.f32.mrf.mxu3  ;;  %v1851_v48 = vshll.u32 %v1850_v51, 16 }
 0x3a1   : > { %v4906_v27 = vsel %vm1709_vm10, %v4419_v9, 128  ;;  %v1589_v20 = vmul.f32 2.0, %v1555_v57  ;;  %v4935_v57 = vsub.f32 %v4822_v24, %v1582_v30  ;;  %v1583_v30 = vmul.f32 2.0, %v4721_v59 }
 0x3a3   : > { %v4897_v12 = vpop.xlane.xlu0 %1941  ;;  %v4938_v51 = vsub.f32 %v4822_v24, %v1589_v20 }
 0x3a4   : > { %vm1943_vm11 = vcmp.eq.f32.partialorder %v4748_v60, %v4897_v12  ;;  %v2008_v60 = vshra.s32 %v4906_v27, 16 }
 0x3a5   : > { %v1944_v1 = vsel %vm1943_vm11, %v1939_v38, inf }
 0x3a6   : > { %1673 = vmin.xlane.f32.xlu2 %v4900_v8  ;;  %1945 = vmin.xlane.f32.xlu1 %v1944_v1  ;;  %v4930_v19 = vcvt.s32.f32 %v2008_v60 }
 0x3a7   : > { %1687 = vmin.xlane.f32.xlu0 %v4909_v22  ;;  %v1666_v44 = vpop.xlane.xlu2 %1665 }
 0x3a8   : > { %v1848_v32 = vpop.xlane.xlu1 %1847  ;;  %vm1710_vm13 = vcmp.le.f32.partialorder %v4755_v62, %v1666_v44  ;;  %v1951_v62 = vand.u32 65535, %v4751_v7  ;;  %v4960_v7 = vsub.f32 %v4822_v24, %v1583_v30 }
 0x3a9   : > { %v1849_v58 = vcvt.f32.s32 %v1848_v32  ;;  %v4921_v42 = vpop.f32.mrf.mxu1  ;;  %v4943_v32 = vsel %vm1710_vm13, %v4419_v9, 128 }
 0x3aa   : > { %v2428_v38 = vpack.c.bf16 %v4921_v42, %v4921_v42  ;;  %v2022_v60 = vshra.s32 %v4943_v32, 16  ;;  %v1953_v20 = vcvt.s32.f32 %v1951_v62 }
 0x3ab   : > { %v4926_v6 = vadd.s32 %v1851_v48, %v1849_v58  ;;  %v4928_v1 = vpop.xlane.xlu0 %1955 }
 0x3ac   : > { %2461 = vst.msk [vmem:[%s4919_s28] sm:$0xf] %vm2460_vm12, %v2428_v38  ;;  %vm1957_vm3 = vcmp.eq.f32.partialorder %v4764_v16, %v4928_v1  ;;  %v4962_v58 = vcvt.s32.f32 %v2022_v60 }
 0x3ad   : > { %6087 = vst [vmem:[#allocation35_spill] sm:$0xff] %v4926_v6  ;;  %vm2209_vm1 = vcmp.eq.s32.totalorder %v4419_v9, %v4926_v6  ;;  %v1958_v38 = vsel %vm1957_vm3, %v1953_v20, inf }
 0x3ae   : > { %3179 = vmatmul.msk.f32.gmra.mxu1 %vm2209_vm1, %v6082_v37  ;;  %2011 = vmin.xlane.f32.xlu2 %v4930_v19 }
 0x3af   : > { %1675 = vmin.xlane.f32.xlu0 %v4935_v57  ;;  %1689 = vmin.xlane.f32.xlu1 %v4938_v51  ;;  %v1668_v44 = vpop.xlane.xlu2 %1667 }
 0x3b0   : > { %vm1711_vm4 = vcmp.le.f32.partialorder %v4768_v49, %v1668_v44 }
 0x3b1   : > { %v4965_v63 = vsel %vm1711_vm4, %v4419_v9, 128 }
 0x3b2   : > { %v2036_v16 = vshra.s32 %v4965_v63, 16 }
 0x3b3   : > { %v1682_v48 = vpop.xlane.xlu0 %1681 }
 0x3b4   : > { %vm1718_vm7 = vcmp.le.f32.partialorder %v4772_v25, %v1682_v48  ;;  %v4975_v62 = vcvt.s32.f32 %v2036_v16 }
 0x3b5   : > { %v4968_v59 = vsel %vm1718_vm7, %v4419_v9, 128 }
 0x3b6   : > { %1959 = vmin.xlane.f32.xlu2 %v1958_v38  ;;  %v2134_v25 = vshra.s32 %v4968_v59, 16 }
 0x3b7   : > { %2025 = vmin.xlane.f32.xlu0 %v4962_v58  ;;  %1677 = vmin.xlane.f32.xlu1 %v4960_v7 }
 0x3b8   : > { %v4977_v44 = vcvt.s32.f32 %v2134_v25 }
 0x3bb   : > { %v1670_v49 = vpop.xlane.xlu0 %1669 }
 0x3bc   : > { %vm1712_vm8 = vcmp.le.f32.partialorder %v4777_v54, %v1670_v49  ;;  %v1864_v54 = vcvt.f32.s32 %v4790_v15 }
 0x3bd   : > { %v4980_v30 = vsel %vm1712_vm8, %v4419_v9, 128 }
 0x3be   : > { %v2050_v60 = vshra.s32 %v4980_v30, 16  ;;  %v1865_v38 = vshll.u32 %v1864_v54, 16 }
 0x3bf   : > { %2039 = vmin.xlane.f32.xlu0 %v4975_v62  ;;  %2137 = vmin.xlane.f32.xlu1 %v4977_v44 }
 0x3c0   : > { %v4985_v20 = vcvt.s32.f32 %v2050_v60  ;;  %v1879_v60 = vshll.u32 %v1878_v11, 16  ;;  %v1965_v11 = vand.u32 65535, %v4806_v55 }
 0x3c7   : > { %2053 = vmin.xlane.f32.xlu0 %v4985_v20 }
 0x3d5   : > { %v1862_v48 = vpop.xlane.xlu1 %1861 }
 0x3d6   : > { %v1863_v16 = vcvt.f32.s32 %v1862_v48  ;;  %v4989_v25 = vpop.f32.mrf.mxu1 }
 0x3d7   : > { %v2429_v49 = vpack.c.bf16 %v4989_v25, %v4989_v25 }
 0x3d8   : > { %v4993_v5 = vadd.s32 %v1865_v38, %v1863_v16  ;;  %v1892_v38 = vcvt.f32.s32 %v4801_v4  ;;  %v1967_v4 = vcvt.s32.f32 %v1965_v11 }
 0x3d9   : > { %2462 = vst.msk [vmem:[%s4919_s28 + $0x4] sm:$0xf] %vm2460_vm12, %v2429_v49 }
 0x3da   : > { %6088 = vst [vmem:[#allocation36_spill] sm:$0xff] %v4993_v5  ;;  %vm2210_vm10 = vcmp.eq.s32.totalorder %v4419_v9, %v4993_v5  ;;  %v1893_v16 = vshll.u32 %v1892_v38, 16 }
 0x3db   : > { %3180 = vmatmul.msk.f32.gmra.mxu1 %vm2210_vm10, %v6082_v37 }
 0x3dd   : > { %v1876_v15 = vpop.xlane.xlu1 %1875 }
 0x3de   : > { %v1877_v54 = vcvt.f32.s32 %v1876_v15 }
 0x3e0   : > { %v5004_v48 = vadd.s32 %v1879_v60, %v1877_v54  ;;  %v1584_v54 = vmul.f32 2.0, %v4744_v21 }
 0x3e2   : > { %6089 = vst [vmem:[#allocation37_spill] sm:$0xff] %v5004_v48  ;;  %vm2211_vm11 = vcmp.eq.s32.totalorder %v4419_v9, %v5004_v48  ;;  %v5028_v38 = vsub.f32 %v4822_v24, %v1584_v54  ;;  %v1993_v48 = vand.u32 65535, %v4880_v34 }
 0x3e3   : > { %3181 = vmatmul.msk.f32.gmra.mxu1 %vm2211_vm11, %v6082_v37 }
 0x3e5   : > { %v1890_v36 = vpop.xlane.xlu1 %1889 }
 0x3e6   : > { %v1891_v49 = vcvt.f32.s32 %v1890_v36 }
 0x3e8   : > { %v5013_v43 = vadd.s32 %v1893_v16, %v1891_v49 }
 0x3ea   : > { %6090 = vst [vmem:[#allocation38_spill] sm:$0xff] %v5013_v43  ;;  %vm2212_vm13 = vcmp.eq.s32.totalorder %v4419_v9, %v5013_v43  ;;  %v2007_v43 = vand.u32 65535, %v4906_v27 }
 0x3eb   : > { %3182 = vmatmul.msk.f32.gmra.mxu1 %vm2212_vm13, %v6082_v37 }
 0x3ed   : > { %v5022_v15 = vpop.xlane.xlu1 %1969 }
 0x3ee   : > { %vm1971_vm3 = vcmp.eq.f32.partialorder %v4810_v0, %v5022_v15 }
 0x3ef   : > { %v1972_v60 = vsel %vm1971_vm3, %v1967_v4, inf }
 0x3f0   : > { %1973 = vmin.xlane.f32.xlu2 %v1972_v60 }
 0x3f5   : > { %v1684_v55 = vpop.xlane.xlu1 %1683 }
 0x3f6   : > { %vm1719_vm4 = vcmp.le.f32.partialorder %v4825_v17, %v1684_v55  ;;  %v1906_v17 = vcvt.f32.s32 %v4846_v3  ;;  %v1920_v3 = vcvt.f32.s32 %v4864_v61 }
 0x3f7   : > { %v5032_v36 = vsel %vm1719_vm4, %v4419_v9, 128 }
 0x3f8   : > { %v2148_v16 = vshra.s32 %v5032_v36, 16  ;;  %1679 = vmin.xlane.f32.xlu2 %v5028_v38  ;;  %v1907_v54 = vshll.u32 %v1906_v17, 16 }
 0x3fa   : > { %v5036_v49 = vcvt.s32.f32 %v2148_v16  ;;  %v5038_v0 = vpop.f32.mrf.mxu1 }
 0x3fb   : > { %v2430_v21 = vpack.c.bf16 %v5038_v0, %v5038_v0 }
 0x3fc   : > { %2151 = vmin.xlane.f32.xlu1 %v5036_v49 }
 0x3fd   : > { %2463 = vst.msk [vmem:[%s4919_s28 + $0x8] sm:$0xf] %vm2460_vm12, %v2430_v21  ;;  %v1672_v24 = vpop.xlane.xlu1 %1671 }
 0x3fe   : > { %vm1713_vm7 = vcmp.le.f32.partialorder %v4840_v39, %v1672_v24  ;;  %v1979_v39 = vand.u32 65535, %v4861_v2 }
 0x3ff   : > { %v5048_v11 = vsel %vm1713_vm7, %v4419_v9, 128 }
 0x400   : > { %v2064_v4 = vshra.s32 %v5048_v11, 16  ;;  %v1981_v24 = vcvt.s32.f32 %v1979_v39  ;;  %v1934_v39 = vcvt.f32.s32 %v4883_v23 }
 0x401   : > { %v1904_v60 = vpop.xlane.xlu2 %1903 }
 0x402   : > { %v5051_v55 = vcvt.s32.f32 %v2064_v4  ;;  %v1905_v16 = vcvt.f32.s32 %v1904_v60  ;;  %v5053_v6 = vpop.f32.mrf.mxu1  ;;  %v1921_v60 = vshll.u32 %v1920_v3, 16 }
 0x403   : > { %v2431_v21 = vpack.c.bf16 %v5053_v6, %v5053_v6 }
 0x404   : > { %v5057_v5 = vadd.s32 %v1907_v54, %v1905_v16  ;;  %2067 = vmin.xlane.f32.xlu0 %v5051_v55 }
 0x405   : > { %2464 = vst.msk [vmem:[%s4919_s28 + $0xc] sm:$0xf] %vm2460_vm12, %v2431_v21 }
 0x406   : > { %6091 = vst [vmem:[#allocation39_spill] sm:$0xff] %v5057_v5  ;;  %vm2213_vm8 = vcmp.eq.s32.totalorder %v4419_v9, %v5057_v5 }
 0x407   : > { %3183 = vmatmul.msk.f32.gmra.mxu1 %vm2213_vm8, %v6082_v37 }
 0x409   : > { %v1918_v17 = vpop.xlane.xlu2 %1917  ;;  %v5070_v4 = vpop.xlane.xlu0 %1983 }
 0x40a   : > { %v1919_v54 = vcvt.f32.s32 %v1918_v17  ;;  %vm1985_vm3 = vcmp.eq.f32.partialorder %v4870_v56, %v5070_v4  ;;  %v5074_v2 = vpop.f32.mrf.mxu1  ;;  %v1995_v56 = vcvt.s32.f32 %v1993_v48  ;;  %v1935_v17 = vshll.u32 %v1934_v39, 16 }
 0x40b   : > { %v2432_v61 = vpack.c.bf16 %v5074_v2, %v5074_v2  ;;  %v1986_v16 = vsel %vm1985_vm3, %v1981_v24, inf }
 0x40c   : > { %v5078_v21 = vadd.s32 %v1921_v60, %v1919_v54  ;;  %1987 = vmin.xlane.f32.xlu2 %v1986_v16 }
 0x40d   : > { %2465 = vst.msk [vmem:[%s4919_s28 + $0x10] sm:$0xf] %vm2460_vm12, %v2432_v61 }
 0x40e   : > { %6092 = vst [vmem:[#allocation40_spill] sm:$0xff] %v5078_v21  ;;  %vm2214_vm4 = vcmp.eq.s32.totalorder %v4419_v9, %v5078_v21 }
 0x40f   : > { %3184 = vmatmul.msk.f32.gmra.mxu1 %vm2214_vm4, %v6082_v37 }
 0x411   : > { %v5090_v3 = vpop.xlane.xlu1 %1997  ;;  %v1686_v24 = vpop.xlane.xlu2 %1685 }
 0x412   : > { %vm1999_vm7 = vcmp.eq.f32.partialorder %v4888_v40, %v5090_v3  ;;  %vm1720_vm3 = vcmp.le.f32.partialorder %v4886_v33, %v1686_v24  ;;  %v1932_v34 = vpop.xlane.xlu0 %1931  ;;  %v5095_v23 = vpop.f32.mrf.mxu1  ;;  %v1948_v33 = vcvt.f32.s32 %v4897_v12 }
 0x413   : > { %v5098_v60 = vsel %vm1720_vm3, %v4419_v9, 128  ;;  %v1933_v54 = vcvt.f32.s32 %v1932_v34  ;;  %v2433_v61 = vpack.c.bf16 %v5095_v23, %v5095_v23  ;;  %v2000_v48 = vsel %vm1999_vm7, %v1995_v56, inf }
 0x414   : > { %v2162_v16 = vshra.s32 %v5098_v60, 16  ;;  %2001 = vmin.xlane.f32.xlu2 %v2000_v48 }
 0x415   : > { %v5103_v39 = vadd.s32 %v1935_v17, %v1933_v54  ;;  %2466 = vst.msk [vmem:[%s4919_s28 + $0x14] sm:$0xf] %vm2460_vm12, %v2433_v61  ;;  %v1949_v17 = vshll.u32 %v1948_v33, 16 }
 0x416   : > { %v5108_v40 = vcvt.s32.f32 %v2162_v16 }
 0x417   : > { %6093 = vst [vmem:[#allocation41_spill] sm:$0xff] %v5103_v39  ;;  %vm2215_vm3 = vcmp.eq.s32.totalorder %v4419_v9, %v5103_v39 }
 0x418   : > { %3185 = vmatmul.msk.f32.gmra.mxu1 %vm2215_vm3, %v6082_v37  ;;  %2165 = vmin.xlane.f32.xlu1 %v5108_v40 }
 0x419   : > { %v1674_v56 = vpop.xlane.xlu2 %1673  ;;  %v1946_v24 = vpop.xlane.xlu1 %1945 }
 0x41a   : > { %vm1714_vm7 = vcmp.le.f32.partialorder %v4900_v8, %v1674_v56  ;;  %v1947_v34 = vcvt.f32.s32 %v1946_v24  ;;  %v1688_v54 = vpop.xlane.xlu0 %1687 }
 0x41b   : > { %v5119_v12 = vsel %vm1714_vm7, %v4419_v9, 128  ;;  %vm1721_vm0 = vcmp.le.f32.partialorder %v4909_v22, %v1688_v54  ;;  %v2009_v22 = vcvt.s32.f32 %v2007_v43 }
 0x41c   : > { %v2078_v61 = vshra.s32 %v5119_v12, 16  ;;  %v5123_v48 = vadd.s32 %v1949_v17, %v1947_v34  ;;  %v5126_v16 = vsel %vm1721_vm0, %v4419_v9, 128 }
 0x41d   : > { %v2176_v33 = vshra.s32 %v5126_v16, 16 }
 0x41e   : > { %6094 = vst [vmem:[#allocation42_spill] sm:$0xff] %v5123_v48  ;;  %v5130_v5 = vcvt.s32.f32 %v2078_v61  ;;  %vm2216_vm6 = vcmp.eq.s32.totalorder %v4419_v9, %v5123_v48 }
 0x41f   : > { %v5134_v8 = vcvt.s32.f32 %v2176_v33  ;;  %v1962_v33 = vcvt.f32.s32 %v4928_v1 }
 0x420   : > { %3186 = vmatmul.msk.f32.gmra.mxu1 %vm2216_vm6, %v6082_v37  ;;  %2081 = vmin.xlane.f32.xlu0 %v5130_v5 }
 0x421   : > { %2179 = vmin.xlane.f32.xlu1 %v5134_v8  ;;  %v5142_v27 = vpop.xlane.xlu2 %2011 }
 0x422   : > { %vm2013_vm0 = vcmp.eq.f32.partialorder %v4930_v19, %v5142_v27  ;;  %v1690_v56 = vpop.xlane.xlu1 %1689  ;;  %v1676_v24 = vpop.xlane.xlu0 %1675  ;;  %v2021_v19 = vand.u32 65535, %v4943_v32 }
 0x423   : > { %vm1722_vm7 = vcmp.le.f32.partialorder %v4938_v51, %v1690_v56  ;;  %vm1715_vm9 = vcmp.le.f32.partialorder %v4935_v57, %v1676_v24  ;;  %v2014_v17 = vsel %vm2013_vm0, %v2009_v22, inf  ;;  %v1963_v56 = vshll.u32 %v1962_v33, 16 }
 0x424   : > { %v5149_v34 = vsel %vm1722_vm7, %v4419_v9, 128  ;;  %v5152_v54 = vsel %vm1715_vm9, %v4419_v9, 128  ;;  %2015 = vmin.xlane.f32.xlu2 %v2014_v17  ;;  %v2023_v22 = vcvt.s32.f32 %v2021_v19 }
 0x425   : > { %v2190_v43 = vshra.s32 %v5149_v34, 16  ;;  %v2092_v61 = vshra.s32 %v5152_v54, 16 }
 0x427   : > { %v5158_v21 = vcvt.s32.f32 %v2190_v43  ;;  %v5160_v51 = vcvt.s32.f32 %v2092_v61 }
 0x429   : > { %2193 = vmin.xlane.f32.xlu1 %v5158_v21  ;;  %2095 = vmin.xlane.f32.xlu0 %v5160_v51  ;;  %v1960_v57 = vpop.xlane.xlu2 %1959 }
 0x42a   : > { %v1678_v24 = vpop.xlane.xlu1 %1677  ;;  %v1961_v17 = vcvt.f32.s32 %v1960_v57  ;;  %v5164_v39 = vpop.xlane.xlu0 %2025  ;;  %v2035_v57 = vand.u32 65535, %v4965_v63 }
 0x42b   : > { %vm1716_vm9 = vcmp.le.f32.partialorder %v4960_v7, %v1678_v24  ;;  %vm2027_vm0 = vcmp.eq.f32.partialorder %v4962_v58, %v5164_v39  ;;  %v5169_v1 = vpop.f32.mrf.mxu1  ;;  %v2133_v7 = vand.u32 65535, %v4968_v59 }
 0x42c   : > { %v5172_v32 = vsel %vm1716_vm9, %v4419_v9, 128  ;;  %v5174_v43 = vadd.s32 %v1963_v56, %v1961_v17  ;;  %v2434_v61 = vpack.c.bf16 %v5169_v1, %v5169_v1  ;;  %v2028_v19 = vsel %vm2027_vm0, %v2023_v22, inf }
 0x42d   : > { %v2106_v33 = vshra.s32 %v5172_v32, 16  ;;  %2029 = vmin.xlane.f32.xlu2 %v2028_v19  ;;  %v2037_v22 = vcvt.s32.f32 %v2035_v57  ;;  %v2135_v56 = vcvt.s32.f32 %v2133_v7 }
 0x42e   : > { %6095 = vst [vmem:[#allocation43_spill] sm:$0xff] %v5174_v43  ;;  %vm2217_vm7 = vcmp.eq.s32.totalorder %v4419_v9, %v5174_v43 }
 0x42f   : > { %2467 = vst.msk [vmem:[%s4919_s28 + $0x18] sm:$0xf] %vm2460_vm12, %v2434_v61  ;;  %v5185_v58 = vcvt.s32.f32 %v2106_v33  ;;  %3187 = vmatmul.msk.f32.gmra.mxu1 %vm2217_vm7, %v6082_v37  ;;  %v2049_v61 = vand.u32 65535, %v4980_v30 }
 0x431   : > { %2109 = vmin.xlane.f32.xlu0 %v5185_v58  ;;  %v2051_v19 = vcvt.s32.f32 %v2049_v61 }
 0x432   : > { %v5192_v24 = vpop.xlane.xlu1 %2137  ;;  %v5194_v63 = vpop.xlane.xlu0 %2039 }
 0x433   : > { %vm2139_vm9 = vcmp.eq.f32.partialorder %v4977_v44, %v5192_v24  ;;  %vm2041_vm0 = vcmp.eq.f32.partialorder %v4975_v62, %v5194_v63  ;;  %v1976_v44 = vcvt.f32.s32 %v5022_v15 }
 0x434   : > { %v2140_v59 = vsel %vm2139_vm9, %v2135_v56, inf  ;;  %v2042_v17 = vsel %vm2041_vm0, %v2037_v22, inf }
 0x435   : > { %2141 = vmin.xlane.f32.xlu2 %v2140_v59  ;;  %2043 = vmin.xlane.f32.xlu1 %v2042_v17  ;;  %v1977_v56 = vshll.u32 %v1976_v44, 16 }
 0x43a   : > { %v5201_v33 = vpop.xlane.xlu0 %2053 }
 0x43b   : > { %vm2055_vm14 = vcmp.eq.f32.partialorder %v4985_v20, %v5201_v33 }
 0x43c   : > { %v2056_v57 = vsel %vm2055_vm14, %v2051_v19, inf  ;;  %v2147_v19 = vand.u32 65535, %v5032_v36  ;;  %v2063_v36 = vand.u32 65535, %v5048_v11 }
 0x43d   : > { %2057 = vmin.xlane.f32.xlu1 %v2056_v57 }
 0x458   : > { %v5205_v7 = vpop.f32.mrf.mxu1 }
 0x459   : > { %v2435_v62 = vpack.c.bf16 %v5205_v7, %v5205_v7 }
 0x45b   : > { %2468 = vst.msk [vmem:[%s4919_s28 + $0x1c] sm:$0xf] %vm2460_vm12, %v2435_v62 }
 0x460   : > { %v5212_v22 = vpop.f32.mrf.mxu1 }
 0x461   : > { %v2436_v30 = vpack.c.bf16 %v5212_v22, %v5212_v22 }
 0x463   : > { %2469 = vst.msk [vmem:[%s4919_s28 + $0x20] sm:$0xf] %vm2460_vm12, %v2436_v30  ;;  %v1974_v20 = vpop.xlane.xlu2 %1973  ;;  %v2149_v30 = vcvt.s32.f32 %v2147_v19 }
 0x464   : > { %v1975_v59 = vcvt.f32.s32 %v1974_v20 }
 0x466   : > { %v5218_v17 = vadd.s32 %v1977_v56, %v1975_v59 }
 0x468   : > { %v5220_v61 = vpop.f32.mrf.mxu1  ;;  %vm2218_vm14 = vcmp.eq.s32.totalorder %v4419_v9, %v5218_v17  ;;  %v6115_v17 = vld [vmem:[#allocation29_spill] sm:$0xff] }
 0x469   : > { %v2437_v15 = vpack.c.bf16 %v5220_v61, %v5220_v61  ;;  %3188 = vmatmul.msk.f32.gmra.mxu1 %vm2218_vm14, %v6082_v37 }
 0x46b   : > { %2470 = vst.msk [vmem:[%s4919_s28 + $0x24] sm:$0xf] %vm2460_vm12, %v2437_v15  ;;  %v1680_v57 = vpop.xlane.xlu2 %1679 }
 0x46c   : > { %vm1717_vm9 = vcmp.le.f32.partialorder %v5028_v38, %v1680_v57  ;;  %v2065_v38 = vcvt.s32.f32 %v2063_v36  ;;  %v1990_v57 = vcvt.f32.s32 %v5070_v4 }
 0x46d   : > { %v5235_v62 = vsel %vm1717_vm9, %v4419_v9, 128 }
 0x46e   : > { %v2120_v44 = vshra.s32 %v5235_v62, 16  ;;  %v1991_v48 = vshll.u32 %v1990_v57, 16 }
 0x46f   : > { %v5238_v20 = vpop.xlane.xlu1 %2151 }
 0x470   : > { %v5240_v56 = vcvt.s32.f32 %v2120_v44  ;;  %vm2153_vm0 = vcmp.eq.f32.partialorder %v5036_v49, %v5238_v20 }
 0x471   : > { %v2154_v59 = vsel %vm2153_vm0, %v2149_v30, inf }
 0x472   : > { %2123 = vmin.xlane.f32.xlu0 %v5240_v56  ;;  %2155 = vmin.xlane.f32.xlu2 %v2154_v59  ;;  %v2004_v59 = vcvt.f32.s32 %v5090_v3 }
 0x474   : > { %v2005_v3 = vshll.u32 %v2004_v59, 16 }
 0x477   : > { %v5246_v15 = vpop.xlane.xlu0 %2067 }
 0x478   : > { %vm2069_vm9 = vcmp.eq.f32.partialorder %v5051_v55, %v5246_v15  ;;  %v2161_v55 = vand.u32 65535, %v5098_v60 }
 0x479   : > { %v2070_v19 = vsel %vm2069_vm9, %v2065_v38, inf }
 0x47a   : > { %2071 = vmin.xlane.f32.xlu0 %v2070_v19  ;;  %v2163_v38 = vcvt.s32.f32 %v2161_v55 }
 0x47f   : > { %v1988_v44 = vpop.xlane.xlu2 %1987 }
 0x480   : > { %v1989_v49 = vcvt.f32.s32 %v1988_v44 }
 0x482   : > { %v5251_v30 = vadd.s32 %v1991_v48, %v1989_v49  ;;  %v2077_v49 = vand.u32 65535, %v5119_v12 }
 0x484   : > { %6096 = vst [vmem:[#allocation44_spill] sm:$0xff] %v5251_v30  ;;  %v5254_v43 = vpop.f32.mrf.mxu1  ;;  %vm6052_vm0 = vcmp.eq.s32.totalorder %v4419_v9, %v5251_v30  ;;  %v2079_v59 = vcvt.s32.f32 %v2077_v49  ;;  %v2091_v49 = vand.u32 65535, %v5152_v54 }
 0x485   : > { %v2438_v11 = vpack.c.bf16 %v5254_v43, %v5254_v43  ;;  %3189 = vmatmul.msk.f32.gmra.mxu1 %vm6052_vm0, %v6082_v37 }
 0x487   : > { %2471 = vst.msk [vmem:[%s4919_s28 + $0x28] sm:$0xf] %vm2460_vm12, %v2438_v11  ;;  %v2002_v4 = vpop.xlane.xlu2 %2001 }
 0x488   : > { %v2003_v48 = vcvt.f32.s32 %v2002_v4  ;;  %v2018_v4 = vcvt.f32.s32 %v5142_v27  ;;  %v2189_v27 = vand.u32 65535, %v5149_v34 }
 0x48a   : > { %v5267_v36 = vadd.s32 %v2005_v3, %v2003_v48 }
 0x48b   : > { %v5269_v19 = vpop.xlane.xlu1 %2165 }
 0x48c   : > { %6097 = vst [vmem:[#allocation45_spill] sm:$0xff] %v5267_v36  ;;  %vm2167_vm9 = vcmp.eq.f32.partialorder %v5108_v40, %v5269_v19  ;;  %v5273_v57 = vpop.f32.mrf.mxu1  ;;  %vm6053_vm0 = vcmp.eq.s32.totalorder %v4419_v9, %v5267_v36  ;;  %v2175_v40 = vand.u32 65535, %v5126_v16 }
 0x48d   : > { %v2439_v60 = vpack.c.bf16 %v5273_v57, %v5273_v57  ;;  %3190 = vmatmul.msk.f32.gmra.mxu1 %vm6053_vm0, %v6082_v37  ;;  %v2168_v44 = vsel %vm2167_vm9, %v2163_v38, inf }
 0x48e   : > { %2169 = vmin.xlane.f32.xlu1 %v2168_v44  ;;  %v2177_v55 = vcvt.s32.f32 %v2175_v40  ;;  %v2019_v44 = vshll.u32 %v2018_v4, 16 }
 0x48f   : > { %2472 = vst.msk [vmem:[%s4919_s28 + $0x2c] sm:$0xf] %vm2460_vm12, %v2439_v60 }
 0x493   : > { %v5287_v11 = vpop.xlane.xlu0 %2081 }
 0x494   : > { %v5290_v3 = vpop.xlane.xlu1 %2179  ;;  %vm2083_vm0 = vcmp.eq.f32.partialorder %v5130_v5, %v5287_v11 }
 0x495   : > { %vm2181_vm9 = vcmp.eq.f32.partialorder %v5134_v8, %v5290_v3  ;;  %v5296_v12 = vpop.f32.mrf.mxu1  ;;  %v2084_v48 = vsel %vm2083_vm0, %v2079_v59, inf  ;;  %v2191_v8 = vcvt.s32.f32 %v2189_v27  ;;  %v2093_v59 = vcvt.s32.f32 %v2091_v49 }
 0x496   : > { %v2440_v16 = vpack.c.bf16 %v5296_v12, %v5296_v12  ;;  %v2182_v38 = vsel %vm2181_vm9, %v2177_v55, inf  ;;  %2085 = vmin.xlane.f32.xlu2 %v2084_v48  ;;  %v2032_v55 = vcvt.f32.s32 %v5164_v39  ;;  %v2105_v39 = vand.u32 65535, %v5172_v32 }
 0x497   : > { %2183 = vmin.xlane.f32.xlu0 %v2182_v38  ;;  %v2016_v60 = vpop.xlane.xlu2 %2015  ;;  %v2144_v27 = vcvt.f32.s32 %v5192_v24  ;;  %v2046_v49 = vcvt.f32.s32 %v5194_v63 }
 0x498   : > { %2473 = vst.msk [vmem:[%s4919_s28 + $0x30] sm:$0xf] %vm2460_vm12, %v2440_v16  ;;  %v2017_v5 = vcvt.f32.s32 %v2016_v60  ;;  %v2107_v60 = vcvt.s32.f32 %v2105_v39 }
 0x499   : > { %v2047_v24 = vshll.u32 %v2046_v49, 16 }
 0x49a   : > { %v5304_v40 = vadd.s32 %v2019_v44, %v2017_v5 }
 0x49c   : > { %v5306_v30 = vpop.xlane.xlu1 %2193  ;;  %v5308_v36 = vpop.xlane.xlu0 %2095  ;;  %vm6057_vm0 = vcmp.eq.s32.totalorder %v4419_v9, %v5304_v40 }
 0x49d   : > { %vm2195_vm9 = vcmp.eq.f32.partialorder %v5158_v21, %v5306_v30  ;;  %vm2097_vm15 = vcmp.eq.f32.partialorder %v5160_v51, %v5308_v36  ;;  %v5317_v34 = vpop.f32.mrf.mxu1  ;;  %3191 = vmatmul.msk.f32.gmra.mxu1 %vm6057_vm0, %v6082_v37  ;;  %v2033_v51 = vshll.u32 %v2032_v55, 16 }
 0x49e   : > { %v2441_v54 = vpack.c.bf16 %v5317_v34, %v5317_v34  ;;  %v2196_v4 = vsel %vm2195_vm9, %v2191_v8, inf  ;;  %v2098_v48 = vsel %vm2097_vm15, %v2093_v59, inf  ;;  %v2145_v59 = vshll.u32 %v2144_v27, 16 }
 0x49f   : > { %2197 = vmin.xlane.f32.xlu2 %v2196_v4  ;;  %2099 = vmin.xlane.f32.xlu1 %v2098_v48  ;;  %v2060_v48 = vcvt.f32.s32 %v5201_v33  ;;  %v2158_v27 = vcvt.f32.s32 %v5238_v20 }
 0x4a0   : > { %2474 = vst.msk [vmem:[%s4919_s28 + $0x34] sm:$0xf] %vm2460_vm12, %v2441_v54  ;;  %v2030_v21 = vpop.xlane.xlu2 %2029 }
 0x4a1   : > { %v2031_v16 = vcvt.f32.s32 %v2030_v21  ;;  %v2061_v21 = vshll.u32 %v2060_v48, 16 }
 0x4a3   : > { %v5328_v38 = vadd.s32 %v2033_v51, %v2031_v16 }
 0x4a4   : > { %v5330_v44 = vpop.xlane.xlu0 %2109 }
 0x4a5   : > { %vm2111_vm15 = vcmp.eq.f32.partialorder %v5185_v58, %v5330_v44  ;;  %vm6058_vm9 = vcmp.eq.s32.totalorder %v4419_v9, %v5328_v38 }
 0x4a6   : > { %3192 = vmatmul.msk.f32.gmra.mxu1 %vm6058_vm9, %v6082_v37  ;;  %v2112_v32 = vsel %vm2111_vm15, %v2107_v60, inf  ;;  %v2119_v60 = vand.u32 65535, %v5235_v62 }
 0x4a7   : > { %2113 = vmin.xlane.f32.xlu0 %v2112_v32 }
 0x4a8   : > { %v2142_v5 = vpop.xlane.xlu2 %2141  ;;  %v2044_v8 = vpop.xlane.xlu1 %2043  ;;  %v2121_v49 = vcvt.s32.f32 %v2119_v60 }
 0x4a9   : > { %v2143_v55 = vcvt.f32.s32 %v2142_v5  ;;  %v2045_v63 = vcvt.f32.s32 %v2044_v8  ;;  %v2159_v8 = vshll.u32 %v2158_v27, 16 }
 0x4ab   : > { %v5342_v54 = vadd.s32 %v2145_v59, %v2143_v55  ;;  %v5344_v58 = vadd.s32 %v2047_v24, %v2045_v63 }
 0x4ac   : > { %v5346_v4 = vpop.f32.mrf.mxu1 }
 0x4ad   : > { %v2442_v39 = vpack.c.bf16 %v5346_v4, %v5346_v4  ;;  %vm6059_vm15 = vcmp.eq.s32.totalorder %v4419_v9, %v5344_v58  ;;  %vm2230_vm0 = vcmp.eq.s32.totalorder %v4419_v9, %v5342_v54  ;;  %v2507_v20 = vsub.f32 %v5346_v4, %v4200_v50 }
 0x4ae   : > { %3193 = vmatmul.msk.f32.gmra.mxu1 %vm6059_vm15, %v6082_v37  ;;  %3200 = vmatmul.msk.f32.vlgmr.msrb.gmra.mxu3 %vm2230_vm0, %v6082_v37 }
 0x4af   : > { %2475 = vst.msk [vmem:[%s4919_s28 + $0x38] sm:$0xf] %vm2460_vm12, %v2442_v39  ;;  %v2539_v50 = vmul.f32 %v2507_v20, %v2507_v20  ;;  %v2498_v20 = vsub.f32 %v5095_v23, %v4037_v10 }
 0x4b0   : > { %v2058_v33 = vpop.xlane.xlu1 %2057 }
 0x4b1   : > { %v2059_v51 = vcvt.f32.s32 %v2058_v33  ;;  %v2074_v33 = vcvt.f32.s32 %v5246_v15 }
 0x4b3   : > { %v5365_v16 = vadd.s32 %v2061_v21, %v2059_v51  ;;  %v2075_v15 = vshll.u32 %v2074_v33, 16  ;;  %v2172_v33 = vcvt.f32.s32 %v5269_v19 }
 0x4b5   : > { %vm6060_vm9 = vcmp.eq.s32.totalorder %v4419_v9, %v5365_v16 }
 0x4b6   : > { %3194 = vmatmul.msk.f32.gmra.mxu1 %vm6060_vm9, %v6082_v37 }
 0x4e5   : > { %v2156_v32 = vpop.xlane.xlu2 %2155  ;;  %v5375_v5 = vpop.xlane.xlu0 %2123 }
 0x4e6   : > { %v2157_v59 = vcvt.f32.s32 %v2156_v32  ;;  %vm2125_vm15 = vcmp.eq.f32.partialorder %v5240_v56, %v5375_v5  ;;  %v5379_v24 = vpop.f32.mrf.mxu1  ;;  %v2506_v56 = vsub.f32 %v5317_v34, %v4177_v26  ;;  %v2504_v26 = vsub.f32 %v5273_v57, %v4149_v13 }
 0x4e7   : > { %v2443_v55 = vpack.c.bf16 %v5379_v24, %v5379_v24  ;;  %v2126_v63 = vsel %vm2125_vm15, %v2121_v49, inf  ;;  %v2508_v62 = vsub.f32 %v5379_v24, %v4215_v29  ;;  %v2505_v29 = vsub.f32 %v5296_v12, %v4163_v14 }
 0x4e8   : > { %v5387_v48 = vadd.s32 %v2159_v8, %v2157_v59  ;;  %2127 = vmin.xlane.f32.xlu1 %v2126_v63  ;;  %v2538_v51 = vmul.f32 %v2506_v56, %v2506_v56  ;;  %v2503_v49 = vsub.f32 %v5254_v43, %v4128_v47  ;;  %v2536_v8 = vmul.f32 %v2504_v26, %v2504_v26 }
 0x4e9   : > { %2476 = vst.msk [vmem:[%s4919_s28 + $0x3c] sm:$0xf] %vm2460_vm12, %v2443_v55  ;;  %v2540_v39 = vmul.f32 %v2508_v62, %v2508_v62  ;;  %v2537_v27 = vmul.f32 %v2505_v29, %v2505_v29  ;;  %v2502_v14 = vsub.f32 %v5220_v61, %v4117_v52  ;;  %v2501_v47 = vsub.f32 %v5212_v22, %v4093_v35 }
 0x4ea   : > { %vm2231_vm15 = vcmp.eq.s32.totalorder %v4419_v9, %v5387_v48  ;;  %v2535_v13 = vmul.f32 %v2503_v49, %v2503_v49  ;;  %v2500_v55 = vsub.f32 %v5205_v7, %v4070_v18  ;;  %v2499_v63 = vsub.f32 %v5169_v1, %v4055_v46 }
 0x4eb   : > { %3201 = vmatmul.msk.f32.gmra.mxu3 %vm2231_vm15, %v6082_v37  ;;  %2557 = vmatpush.msra.mxu2 %v2540_v39  ;;  %v2534_v59 = vmul.f32 %v2502_v14, %v2502_v14  ;;  %v2533_v52 = vmul.f32 %v2501_v47, %v2501_v47  ;;  %v2497_v35 = vsub.f32 %v5074_v2, %v4021_v28  ;;  %v2173_v28 = vshll.u32 %v2172_v33, 16 }
 0x4ec   : > { %v2532_v62 = vmul.f32 %v2500_v55, %v2500_v55  ;;  %v2531_v39 = vmul.f32 %v2499_v63, %v2499_v63  ;;  %v2530_v56 = vmul.f32 %v2498_v20, %v2498_v20  ;;  %v2496_v18 = vsub.f32 %v5053_v6, %v4008_v45 }
 0x4ed   : > { %2558 = vmatpush.msra.mxu2 %v2539_v50  ;;  %v2072_v21 = vpop.xlane.xlu0 %2071  ;;  %v2529_v46 = vmul.f32 %v2497_v35, %v2497_v35  ;;  %v2495_v50 = vsub.f32 %v5038_v0, %v3993_v31  ;;  %v2102_v20 = vcvt.f32.s32 %v5308_v36  ;;  %v5610_v35 = vld [vmem:[%s6009_s6 + $0x18] sm:$0xff] }
 0x4ee   : > { %v2073_v60 = vcvt.f32.s32 %v2072_v21  ;;  %v2528_v10 = vmul.f32 %v2496_v18, %v2496_v18  ;;  %v2494_v21 = vsub.f32 %v4989_v25, %v3974_v53  ;;  %v2088_v53 = vcvt.f32.s32 %v5287_v11 }
 0x4ef   : > { %2559 = vmatpush.msra.mxu2 %v2538_v51  ;;  %v2527_v19 = vmul.f32 %v2495_v50, %v2495_v50  ;;  %v2103_v18 = vshll.u32 %v2102_v20, 16  ;;  %v5628_v50 = vld [vmem:[%s6009_s6 + $0x8] sm:$0xff] }
 0x4f0   : > { %v5406_v32 = vadd.s32 %v2075_v15, %v2073_v60  ;;  %v2493_v15 = vsub.f32 %v4921_v42, %v3961_v41  ;;  %v2526_v31 = vmul.f32 %v2494_v21, %v2494_v21 }
 0x4f1   : > { %2560 = vmatpush.msra.mxu2 %v2537_v27  ;;  %v2186_v27 = vcvt.f32.s32 %v5290_v3 }
 0x4f2   : > { %vm6061_vm9 = vcmp.eq.s32.totalorder %v4419_v9, %v5406_v32  ;;  %v2525_v41 = vmul.f32 %v2493_v15, %v2493_v15 }
 0x4f3   : > { %3195 = vmatmul.msk.f32.gmra.mxu1 %vm6061_vm9, %v6082_v37  ;;  %2561 = vmatpush.msra.mxu2 %v2536_v8  ;;  %v2089_v8 = vshll.u32 %v2088_v53, 16  ;;  %v2187_v11 = vshll.u32 %v2186_v27, 16 }
 0x4f5   : > { %2562 = vmatpush.msra.mxu2 %v2535_v13 }
 0x4f7   : > { %2563 = vmatpush.msra.mxu2 %v2534_v59 }
 0x4f9   : > { %2564 = vmatpush.msra.mxu2 %v2533_v52  ;;  %v5576_v52 = vld [vmem:[%s6009_s6 + $0x38] sm:$0xff] }
 0x4fb   : > { %2565 = vmatpush.msra.mxu2 %v2532_v62  ;;  %v2200_v62 = vcvt.f32.s32 %v5306_v30 }
 0x4fd   : > { %2566 = vmatpush.msra.mxu2 %v2531_v39  ;;  %v5593_v39 = vld [vmem:[%s6009_s6 + $0x28] sm:$0xff] }
 0x4ff   : > { %2567 = vmatpush.msra.mxu2 %v2530_v56  ;;  %v2201_v56 = vshll.u32 %v2200_v62, 16  ;;  %v5585_v62 = vld [vmem:[%s6009_s6 + $0x30] sm:$0xff] }
 0x501   : > { %v2170_v29 = vpop.xlane.xlu1 %2169  ;;  %2568 = vmatpush.msra.mxu2 %v2529_v46 }
 0x502   : > { %v2171_v51 = vcvt.f32.s32 %v2170_v29  ;;  %v5433_v26 = vpop.f32.mrf.mxu1 }
 0x503   : > { %v2444_v45 = vpack.c.bf16 %v5433_v26, %v5433_v26  ;;  %2569 = vmatpush.msra.mxu2 %v2528_v10 }
 0x504   : > { %v5439_v60 = vadd.s32 %v2173_v28, %v2171_v51  ;;  %v2116_v28 = vcvt.f32.s32 %v5330_v44  ;;  %v2130_v51 = vcvt.f32.s32 %v5375_v5 }
 0x505   : > { %2477 = vst.msk [vmem:[%s4919_s28 + $0x40] sm:$0xf] %vm2460_vm12, %v2444_v45  ;;  %2570 = vmatpush.msra.mxu2 %v2527_v19 }
 0x506   : > { %vm2232_vm9 = vcmp.eq.s32.totalorder %v4419_v9, %v5439_v60  ;;  %v2117_v19 = vshll.u32 %v2116_v28, 16  ;;  %v5638_v28 = vld [vmem:[%s6009_s6] sm:$0xff] }
 0x507   : > { %3202 = vmatmul.msk.f32.gmra.mxu3 %vm2232_vm9, %v6082_v37  ;;  %2571 = vmatpush.msra.mxu2 %v2526_v31 }
 0x509   : > { %v2086_v49 = vpop.xlane.xlu2 %2085  ;;  %2572 = vmatpush.msra.mxu2 %v2525_v41 }
 0x50a   : > { %v2087_v14 = vcvt.f32.s32 %v2086_v49  ;;  %v2184_v13 = vpop.xlane.xlu0 %2183  ;;  %v5451_v47 = vpop.f32.mrf.mxu1  ;;  %2573 = vmatmul.f32.vlgmr.msra.gmra.mxu2 %v6082_v37 }
 0x50b   : > { %3205 = vmatpush.msk.msrb.mxu2 %vm2218_vm14, %v6082_v37  ;;  %v2185_v3 = vcvt.f32.s32 %v2184_v13  ;;  %v2445_v59 = vpack.c.bf16 %v5451_v47, %v5451_v47  ;;  %v6109_v13 = vld [vmem:[#allocation32_spill] sm:$0xff] }
 0x50c   : > { %v5460_v55 = vadd.s32 %v2089_v8, %v2087_v14  ;;  %v6130_v8 = vld [vmem:[#allocation28_spill] sm:$0xff] }
 0x50d   : > { %3206 = vmatpush.msk.msrb.mxu2 %vm2217_vm7, %v6082_v37  ;;  %v5466_v63 = vadd.s32 %v2187_v11, %v2185_v3  ;;  %2478 = vst.msk [vmem:[%s4919_s28 + $0x44] sm:$0xf] %vm2460_vm12, %v2445_v59  ;;  %v6111_v3 = vld [vmem:[#allocation31_spill] sm:$0xff]  ;;  %v6113_v59 = vld [vmem:[#allocation30_spill] sm:$0xff] }
 0x50e   : > { %vm2226_vm14 = vcmp.eq.s32.totalorder %v4419_v9, %v5460_v55  ;;  %v6156_v55 = vld [vmem:[#allocation45_spill] sm:$0xff] }
 0x50f   : > { %3207 = vmatpush.msk.msrb.mxu2 %vm2216_vm6, %v6082_v37  ;;  %3196 = vmatmul.msk.f32.gmra.mxu1 %vm2226_vm14, %v6082_v37  ;;  %vm2233_vm7 = vcmp.eq.s32.totalorder %v4419_v9, %v5466_v63 }
 0x510   : > { %3203 = vmatmul.msk.f32.gmra.mxu3 %vm2233_vm7, %v6082_v37 }
 0x511   : > { %3208 = vmatpush.msk.msrb.mxu2 %vm2215_vm3, %v6082_v37 }
 0x512   : > { %v2198_v30 = vpop.xlane.xlu2 %2197  ;;  %v2100_v36 = vpop.xlane.xlu1 %2099 }
 0x513   : > { %3209 = vmatpush.msk.msrb.mxu2 %vm2214_vm4, %v6082_v37  ;;  %v2199_v33 = vcvt.f32.s32 %v2198_v30  ;;  %v2101_v46 = vcvt.f32.s32 %v2100_v36  ;;  %v5602_v36 = vld [vmem:[%s6009_s6 + $0x20] sm:$0xff] }
 0x515   : > { %3210 = vmatpush.msk.msrb.mxu2 %vm2213_vm8, %v6082_v37  ;;  %v5500_v29 = vadd.s32 %v2201_v56, %v2199_v33  ;;  %v5502_v10 = vadd.s32 %v2103_v18, %v2101_v46  ;;  %v5618_v18 = vld [vmem:[%s6009_s6 + $0x10] sm:$0xff] }
 0x517   : > { %3211 = vmatpush.msk.msrb.mxu2 %vm2212_vm13, %v6082_v37  ;;  %vm2227_vm6 = vcmp.eq.s32.totalorder %v4419_v9, %v5502_v10  ;;  %vm2234_vm4 = vcmp.eq.s32.totalorder %v4419_v9, %v5500_v29  ;;  %vm6117_vm13 = vcmask 523264  }
 0x518   : > { %3197 = vmatmul.msk.f32.gmra.mxu1 %vm2227_vm6, %v6082_v37  ;;  %3204 = vmatmul.msk.f32.gmra.mxu3 %vm2234_vm4, %v6082_v37  ;;  %vm6118_vm8 = vmmov %vm6117_vm13 }
 0x519   : > { %3212 = vmatpush.msk.msrb.mxu2 %vm2211_vm11, %v6082_v37  ;;  %vm6119_vm3 = vmmov %vm6118_vm8 }
 0x51a   : > { %v2114_v44 = vpop.xlane.xlu0 %2113  ;;  %v5525_v45 = vpop.f32.mrf.mxu1 }
 0x51b   : > { %v2115_v15 = vcvt.f32.s32 %v2114_v44  ;;  %v2446_v31 = vpack.c.bf16 %v5525_v45, %v5525_v45  ;;  %3213 = vmatpush.msk.msrb.mxu2 %vm2210_vm10, %v6082_v37  ;;  %vm6116_vm10 = vcmp.eq.s32.totalorder %v4419_v9, %v6115_v17 }
 0x51d   : > { %v5533_v27 = vadd.s32 %v2117_v19, %v2115_v15  ;;  %2479 = vst.msk [vmem:[%s4919_s28 + $0x48] sm:$0xf] %vm2460_vm12, %v2446_v31  ;;  %3214 = vmatpush.msk.msrb.mxu2 %vm2209_vm1, %v6082_v37  ;;  %vm6110_vm1 = vcmp.eq.s32.totalorder %v4419_v9, %v6109_v13  ;;  %v2131_v19 = vshll.u32 %v2130_v51, 16  ;;  %v6134_v51 = vld [vmem:[#allocation27_spill] sm:$0xff] }
 0x51f   : > { %vm2228_vm11 = vcmp.eq.s32.totalorder %v4419_v9, %v5533_v27  ;;  %3215 = vmatpush.msk.msrb.mxu2 %vm2208_vm5, %v6082_v37  ;;  %vm6112_vm5 = vcmp.eq.s32.totalorder %v4419_v9, %v6111_v3  ;;  %v6131_v3 = vld [vmem:[#allocation24_spill] sm:$0xff] }
 0x520   : > { %3198 = vmatmul.msk.f32.gmra.mxu1 %vm2228_vm11, %v6082_v37 }
 0x521   : > { %3216 = vmatpush.msk.msrb.mxu2 %vm2207_vm2, %v6082_v37  ;;  %vm6114_vm2 = vcmp.eq.s32.totalorder %v4419_v9, %v6113_v59 }
 0x523   : > { %v5555_v14 = vpop.f32.mrf.mxu1  ;;  %3217 = vmatpush.msk.msrb.mxu2 %vm6110_vm1, %v6082_v37  ;;  %vm6120_vm1 = vmmov %vm6119_vm3 }
 0x524   : > { %v2447_v11 = vpack.c.bf16 %v5555_v14, %v5555_v14 }
 0x525   : > { %3218 = vmatpush.msk.msrb.mxu2 %vm6112_vm5, %v6082_v37  ;;  %vm6121_vm5 = vmmov %vm6120_vm1 }
 0x526   : > { %2480 = vst.msk [vmem:[%s4919_s28 + $0x4c] sm:$0xf] %vm2460_vm12, %v2447_v11 }
 0x527   : > { %3219 = vmatpush.msk.msrb.mxu2 %vm6114_vm2, %v6082_v37 }
 0x529   : > { %3220 = vmatpush.msk.msrb.mxu2 %vm6116_vm10, %v6082_v37  ;;  %vm6122_vm10 = vmmov %vm6120_vm1 }
 0x52a   : > { %2619 = vmatmul.f32.vlgmr.msrb.gmra.mxu2 %v6082_v37 }
 0x52b   : > { %2760 = vmatpush.msra.mxu2 %v5576_v52  ;;  %v5588_v20 = vpop.f32.mrf.mxu1 }
 0x52c   : > { %v2448_v30 = vpack.c.bf16 %v5588_v20, %v5588_v20 }
 0x52d   : > { %2761 = vmatpush.msra.mxu2 %v5585_v62 }
 0x52e   : > { %2481 = vst.msk [vmem:[%s4919_s28 + $0x50] sm:$0xf] %vm2460_vm12, %v2448_v30  ;;  %v6132_v30 = vld [vmem:[#allocation23_spill] sm:$0xff] }
 0x52f   : > { %2762 = vmatpush.msra.mxu2 %v5593_v39 }
 0x531   : > { %2763 = vmatpush.msra.mxu2 %v5602_v36  ;;  %v5613_v56 = vpop.f32.mrf.mxu3 }
 0x532   : > { %v2455_v33 = vpack.c.bf16 %v5613_v56, %v5613_v56 }
 0x533   : > { %2764 = vmatpush.msra.mxu2 %v5610_v35  ;;  %v5623_v46 = vpop.f32.mrf.mxu1 }
 0x534   : > { %2488 = vst.msk [vmem:[%s4919_s28 + $0x6c] sm:$0xf] %vm2460_vm12, %v2455_v33  ;;  %v2449_v21 = vpack.c.bf16 %v5623_v46, %v5623_v46 }
 0x535   : > { %2765 = vmatpush.msra.mxu2 %v5618_v18 }
 0x536   : > { %2482 = vst.msk [vmem:[%s4919_s28 + $0x54] sm:$0xf] %vm2460_vm12, %v2449_v21 }
 0x537   : > { %2766 = vmatpush.msra.mxu2 %v5628_v50 }
 0x539   : > { %2767 = vmatpush.msra.mxu2 %v5638_v28 }
 0x53a   : > { %3237 = vmatmul.msk.f32.vlgmr.msra.gmra.mxu2 %vm6117_vm13, %v4921_v42  ;;  %vm6123_vm13 = vmmov %vm6120_vm1 }
 0x542   : > { %3238 = vmatmul.msk.f32.gmra.mxu2 %vm6118_vm8, %v4989_v25  ;;  %vm6124_vm8 = vmmov %vm6120_vm1 }
 0x54a   : > { %3239 = vmatmul.msk.f32.gmra.mxu2 %vm6119_vm3, %v5038_v0  ;;  %vm6125_vm3 = vmmov %vm6120_vm1 }
 0x552   : > { %3240 = vmatmul.msk.f32.gmra.mxu2 %vm6120_vm1, %v5053_v6 }
 0x55a   : > { %3241 = vmatmul.msk.f32.gmra.mxu2 %vm6121_vm5, %v5074_v2  ;;  %vm6126_vm5 = vmmov %vm6120_vm1 }
 0x55b   : > { %v2128_v44 = vpop.xlane.xlu1 %2127 }
 0x55c   : > { %v2129_v15 = vcvt.f32.s32 %v2128_v44  ;;  %v2520_v44 = vsub.f32 %v5613_v56, %v6134_v51 }
 0x55e   : > { %v5655_v42 = vadd.s32 %v2131_v19, %v2129_v15 }
 0x560   : > { %vm2229_vm2 = vcmp.eq.s32.totalorder %v4419_v9, %v5655_v42 }
 0x561   : > { %3199 = vmatmul.msk.f32.gmra.mxu1 %vm2229_vm2, %v6082_v37 }
 0x562   : > { %3242 = vmatmul.msk.f32.gmra.mxu2 %vm6122_vm10, %v5095_v23  ;;  %vm6127_vm10 = vmmov %vm6120_vm1 }
 0x56a   : > { %3243 = vmatmul.msk.f32.gmra.mxu2 %vm6123_vm13, %v5169_v1  ;;  %vm6128_vm13 = vmmov %vm6120_vm1 }
 0x56e   : > { %v5667_v6 = vpop.f32.mrf.mxu3 }
 0x56f   : > { %v2456_v25 = vpack.c.bf16 %v5667_v6, %v5667_v6  ;;  %v2521_v33 = vsub.f32 %v5667_v6, %v6132_v30  ;;  %v6141_v30 = vld [vmem:[#allocation26_spill] sm:$0xff] }
 0x570   : > { %v5671_v0 = vpop.f32.mrf.mxu1 }
 0x571   : > { %2489 = vst.msk [vmem:[%s4919_s28 + $0x70] sm:$0xf] %vm2460_vm12, %v2456_v25  ;;  %v2450_v2 = vpack.c.bf16 %v5671_v0, %v5671_v0  ;;  %v2553_v15 = vmul.f32 %v2521_v33, %v2521_v33  ;;  %v2552_v25 = vmul.f32 %v2520_v44, %v2520_v44 }
 0x572   : > { %3244 = vmatmul.msk.f32.gmra.mxu2 %vm6124_vm8, %v5205_v7  ;;  %vm6133_vm8 = vmmov %vm6120_vm1 }
 0x573   : > { %2483 = vst.msk [vmem:[%s4919_s28 + $0x58] sm:$0xf] %vm2460_vm12, %v2450_v2 }
 0x57a   : > { %3245 = vmatmul.msk.f32.gmra.mxu2 %vm6125_vm3, %v5212_v22  ;;  %vm6135_vm3 = vmmov %vm6120_vm1 }
 0x582   : > { %3246 = vmatmul.msk.f32.gmra.mxu2 %vm6120_vm1, %v5220_v61 }
 0x58a   : > { %3247 = vmatmul.msk.f32.gmra.mxu2 %vm6126_vm5, %v5254_v43  ;;  %v5687_v23 = vpop.f32.mrf.mxu3  ;;  %vm6136_vm5 = vmmov %vm6120_vm1 }
 0x58b   : > { %v2457_v1 = vpack.c.bf16 %v5687_v23, %v5687_v23  ;;  %v2522_v59 = vsub.f32 %v5687_v23, %v6131_v3 }
 0x58c   : > { %v5691_v5 = vpop.f32.mrf.mxu1 }
 0x58d   : > { %2490 = vst.msk [vmem:[%s4919_s28 + $0x74] sm:$0xf] %vm2460_vm12, %v2457_v1  ;;  %v2451_v7 = vpack.c.bf16 %v5691_v5, %v5691_v5  ;;  %v2554_v19 = vmul.f32 %v2522_v59, %v2522_v59  ;;  %v5739_v2 = vpop.f32.mrf.mxu2  ;;  %v6140_v59 = vld [vmem:[#allocation22_spill] sm:$0xff] }
 0x58f   : > { %2484 = vst.msk [vmem:[%s4919_s28 + $0x5c] sm:$0xf] %vm2460_vm12, %v2451_v7 }
 0x592   : > { %3248 = vmatmul.msk.f32.gmra.mxu2 %vm6127_vm10, %v5273_v57  ;;  %v6129_v57 = vld [vmem:[#allocation25_spill] sm:$0xff]  ;;  %vm2865_vm10 = vcmask 31744  }
 0x593   : > { %v5701_v22 = vpop.f32.mrf.mxu3 }
 0x594   : > { %v2458_v43 = vpack.c.bf16 %v5701_v22, %v5701_v22  ;;  %v2523_v41 = vsub.f32 %v5701_v22, %v6129_v57 }
 0x595   : > { %v5705_v61 = vpop.f32.mrf.mxu1 }
 0x596   : > { %2491 = vst.msk [vmem:[%s4919_s28 + $0x78] sm:$0xf] %vm2460_vm12, %v2458_v43  ;;  %v2452_v31 = vpack.c.bf16 %v5705_v61, %v5705_v61  ;;  %v2555_v21 = vmul.f32 %v2523_v41, %v2523_v41 }
 0x598   : > { %2485 = vst.msk [vmem:[%s4919_s28 + $0x60] sm:$0xf] %vm2460_vm12, %v2452_v31 }
 0x59a   : > { %3249 = vmatmul.msk.f32.gmra.mxu2 %vm6128_vm13, %v5296_v12  ;;  %vm6137_vm13 = vmmov %vm6120_vm1 }
 0x59b   : > { %v5715_v53 = vpop.f32.mrf.mxu3 }
 0x59c   : > { %v2459_v49 = vpack.c.bf16 %v5715_v53, %v5715_v53  ;;  %v2524_v13 = vsub.f32 %v5715_v53, %v6130_v8 }
 0x59d   : > { %v5723_v11 = vpop.f32.mrf.mxu1 }
 0x59e   : > { %2492 = vst.msk [vmem:[%s4919_s28 + $0x7c] sm:$0xf] %vm2460_vm12, %v2459_v49  ;;  %v2556_v17 = vmul.f32 %v2524_v13, %v2524_v13  ;;  %v2453_v12 = vpack.c.bf16 %v5723_v11, %v5723_v11 }
 0x5a0   : > { %2486 = vst.msk [vmem:[%s4919_s28 + $0x64] sm:$0xf] %vm2460_vm12, %v2453_v12  ;;  %2577 = vmatpush.msra.mxu3 %v2556_v17  ;;  %v2518_v17 = vsub.f32 %v5723_v11, %v6140_v59 }
 0x5a2   : > { %3250 = vmatmul.msk.f32.gmra.mxu2 %vm6133_vm8, %v5317_v34  ;;  %2578 = vmatpush.msra.mxu3 %v2555_v21  ;;  %v5749_v34 = vld [vmem:[#allocation9] ss:$0 sm:$0xff]  ;;  %vm6138_vm8 = vmmov %vm6120_vm1  ;;  %v6142_v21 = vld [vmem:[#allocation21_spill] sm:$0xff] }
 0x5a3   : > { %v2517_v51 = vsub.f32 %v5705_v61, %v6142_v21  ;;  %v6148_v21 = vld [vmem:[#allocation15_spill] sm:$0xff] }
 0x5a4   : > { %2579 = vmatpush.msra.mxu3 %v2554_v19  ;;  %v6143_v19 = vld [vmem:[#allocation20_spill] sm:$0xff] }
 0x5a6   : > { %2580 = vmatpush.msra.mxu3 %v2553_v15  ;;  %v2516_v15 = vsub.f32 %v5691_v5, %v6143_v19 }
 0x5a8   : > { %2581 = vmatpush.msra.mxu3 %v2552_v25  ;;  %v2550_v25 = vmul.f32 %v2518_v17, %v2518_v17  ;;  %v6147_v17 = vld [vmem:[#allocation16_spill] sm:$0xff] }
 0x5aa   : > { %3251 = vmatmul.msk.f32.gmra.mxu2 %vm6135_vm3, %v5346_v4  ;;  %vm6139_vm3 = vmmov %vm6120_vm1 }
 0x5ad   : > { %v5745_v1 = vpop.f32.mrf.mxu2 }
 0x5b2   : > { %3252 = vmatmul.msk.f32.gmra.mxu2 %vm6120_vm1, %v5379_v24 }
 0x5ba   : > { %3253 = vmatmul.msk.f32.gmra.mxu2 %vm6136_vm5, %v5433_v26  ;;  %vm6163_vm5 = vmmov %vm6120_vm1 }
 0x5bd   : > { %v2769_v4 = vpop.f32.mrf.mxu2 }
 0x5be   : > { %v2770_v24 = vadd.f32 %v5749_v34, %v2769_v4 }
 0x5c0   : > { %2866 = vst.msk [vmem:[%s5756_s13] sm:$0xff] %vm2865_vm10, %v2770_v24  ;;  %v6144_v24 = vld [vmem:[#allocation19_spill] sm:$0xff] }
 0x5c2   : > { %3254 = vmatmul.msk.f32.gmra.mxu2 %vm6137_vm13, %v5451_v47  ;;  %vm6164_vm13 = vmmov %vm6120_vm1 }
 0x5c5   : > { %v2772_v7 = vpop.f32.mrf.mxu2 }
 0x5c6   : > { %v2773_v43 = vadd.f32 %v5749_v34, %v2772_v7  ;;  %v2515_v7 = vsub.f32 %v5671_v0, %v6144_v24 }
 0x5c8   : > { %2867 = vst.msk [vmem:[%s5756_s13 + $0x8] sm:$0xff] %vm2865_vm10, %v2773_v43  ;;  %v2547_v59 = vmul.f32 %v2515_v7, %v2515_v7 }
 0x5ca   : > { %3255 = vmatmul.msk.f32.gmra.mxu2 %vm6138_vm8, %v5525_v45  ;;  %vm6165_vm8 = vmmov %vm6120_vm1 }
 0x5cd   : > { %v2775_v31 = vpop.f32.mrf.mxu2 }
 0x5ce   : > { %v2776_v57 = vadd.f32 %v5749_v34, %v2775_v31  ;;  %v2549_v31 = vmul.f32 %v2517_v51, %v2517_v51  ;;  %v2511_v51 = vsub.f32 %v5525_v45, %v6148_v21 }
 0x5d0   : > { %2868 = vst.msk [vmem:[%s5756_s13 + $0x10] sm:$0xff] %vm2865_vm10, %v2776_v57  ;;  %v6145_v57 = vld [vmem:[#allocation18_spill] sm:$0xff]  ;;  %v2543_v24 = vmul.f32 %v2511_v51, %v2511_v51 }
 0x5d2   : > { %3256 = vmatmul.msk.f32.gmra.mxu2 %vm6139_vm3, %v5555_v14  ;;  %vm6166_vm3 = vmmov %vm6120_vm1 }
 0x5d5   : > { %v2778_v41 = vpop.f32.mrf.mxu2 }
 0x5d6   : > { %v2779_v49 = vadd.f32 %v5749_v34, %v2778_v41  ;;  %v2514_v41 = vsub.f32 %v5623_v46, %v6145_v57 }
 0x5d8   : > { %2869 = vst.msk [vmem:[%s5756_s13 + $0x18] sm:$0xff] %vm2865_vm10, %v2779_v49  ;;  %v2548_v49 = vmul.f32 %v2516_v15, %v2516_v15  ;;  %v6149_v15 = vld [vmem:[#allocation14_spill] sm:$0xff] }
 0x5da   : > { %3257 = vmatmul.msk.f32.gmra.mxu2 %vm6120_vm1, %v5588_v20 }
 0x5dd   : > { %v2781_v8 = vpop.f32.mrf.mxu2 }
 0x5de   : > { %v2782_v13 = vadd.f32 %v5749_v34, %v2781_v8  ;;  %v5779_v3 = vpop.f32.mrf.mxu1  ;;  %v6146_v8 = vld [vmem:[#allocation17_spill] sm:$0xff] }
 0x5df   : > { %v2454_v12 = vpack.c.bf16 %v5779_v3, %v5779_v3  ;;  %v2519_v33 = vsub.f32 %v5779_v3, %v6141_v30  ;;  %v2546_v30 = vmul.f32 %v2514_v41, %v2514_v41 }
 0x5e0   : > { %2870 = vst.msk [vmem:[%s5756_s13 + $0x20] sm:$0xff] %vm2865_vm10, %v2782_v13  ;;  %v2513_v13 = vsub.f32 %v5588_v20, %v6146_v8 }
 0x5e1   : > { %2487 = vst.msk [vmem:[%s4919_s28 + $0x68] sm:$0xf] %vm2460_vm12, %v2454_v12  ;;  %v2551_v44 = vmul.f32 %v2519_v33, %v2519_v33  ;;  %v2512_v12 = vsub.f32 %v5555_v14, %v6147_v17  ;;  %vm6151_vm12 = vcmp.eq.s32.totalorder %v4419_v9, %v5406_v32  ;;  %s494_s28 = scalar_lea.vmem %s6014_s11, %s6173_s21 }
 0x5e2   : > { %v2545_v19 = vmul.f32 %v2513_v13, %v2513_v13 }
 0x5e3   : > { %2582 = vmatpush.msra.mxu3 %v2551_v44  ;;  %v2544_v20 = vmul.f32 %v2512_v12, %v2512_v12 }
 0x5e5   : > { %v2784_v4 = vpop.f32.mrf.mxu2  ;;  %2583 = vmatpush.msra.mxu3 %v2550_v25  ;;  %v2510_v25 = vsub.f32 %v5451_v47, %v6149_v15 }
 0x5e6   : > { %v2785_v43 = vadd.f32 %v5749_v34, %v2784_v4  ;;  %v6150_v4 = vld [vmem:[#allocation13_spill] sm:$0xff] }
 0x5e7   : > { %2584 = vmatpush.msra.mxu3 %v2549_v31  ;;  %v2509_v14 = vsub.f32 %v5433_v26, %v6150_v4  ;;  %v2542_v45 = vmul.f32 %v2510_v25, %v2510_v25 }
 0x5e8   : > { %2871 = vst.msk [vmem:[%s5756_s13 + $0x28] sm:$0xff] %vm2865_vm10, %v2785_v43 }
 0x5e9   : > { %2585 = vmatpush.msra.mxu3 %v2548_v49  ;;  %v2541_v31 = vmul.f32 %v2509_v14, %v2509_v14 }
 0x5eb   : > { %2586 = vmatpush.msra.mxu3 %v2547_v59 }
 0x5ed   : > { %v2787_v33 = vpop.f32.mrf.mxu2  ;;  %2587 = vmatpush.msra.mxu3 %v2546_v30 }
 0x5ee   : > { %v2788_v44 = vadd.f32 %v5749_v34, %v2787_v33 }
 0x5ef   : > { %2588 = vmatpush.msra.mxu3 %v2545_v19 }
 0x5f0   : > { %2872 = vst.msk [vmem:[%s5756_s13 + $0x30] sm:$0xff] %vm2865_vm10, %v2788_v44 }
 0x5f1   : > { %2589 = vmatpush.msra.mxu3 %v2544_v20 }
 0x5f3   : > { %2590 = vmatpush.msra.mxu3 %v2543_v24 }
 0x5f5   : > { %v2790_v7 = vpop.f32.mrf.mxu2  ;;  %2591 = vmatpush.msra.mxu3 %v2542_v45 }
 0x5f6   : > { %v2791_v43 = vadd.f32 %v5749_v34, %v2790_v7 }
 0x5f7   : > { %2592 = vmatpush.msra.mxu3 %v2541_v31 }
 0x5f8   : > { %2873 = vst.msk [vmem:[%s5756_s13 + $0x38] sm:$0xff] %vm2865_vm10, %v2791_v43  ;;  %2593 = vmatmul.f32.vlgmr.msra.gmra.mxu3 %v6082_v37 }
 0x5f9   : > { %3221 = vmatpush.msk.msrb.mxu3 %vm2234_vm4, %v6082_v37  ;;  %vm6160_vm4 = vmmov %vm6120_vm1 }
 0x5fb   : > { %3222 = vmatpush.msk.msrb.mxu3 %vm2233_vm7, %v6082_v37  ;;  %vm6157_vm7 = vcmp.eq.s32.totalorder %v4419_v9, %v6156_v55 }
 0x5fd   : > { %v2793_v26 = vpop.f32.mrf.mxu2  ;;  %3223 = vmatpush.msk.msrb.mxu3 %vm2232_vm9, %v6082_v37  ;;  %vm6153_vm9 = vcmp.eq.s32.totalorder %v4419_v9, %v5344_v58 }
 0x5fe   : > { %v2794_v47 = vadd.f32 %v5749_v34, %v2793_v26 }
 0x5ff   : > { %3224 = vmatpush.msk.msrb.mxu3 %vm2231_vm15, %v6082_v37  ;;  %vm6154_vm15 = vcmp.eq.s32.totalorder %v4419_v9, %v5328_v38  ;;  %v6158_v38 = vld [vmem:[#allocation44_spill] sm:$0xff] }
 0x600   : > { %2874 = vst.msk [vmem:[%s5756_s13 + $0x40] sm:$0xff] %vm2865_vm10, %v2794_v47 }
 0x601   : > { %3225 = vmatpush.msk.msrb.mxu3 %vm2230_vm0, %v6082_v37  ;;  %vm6152_vm0 = vcmp.eq.s32.totalorder %v4419_v9, %v5365_v16 }
 0x603   : > { %3226 = vmatpush.msk.msrb.mxu3 %vm2229_vm2, %v6082_v37  ;;  %vm6162_vm2 = vmmov %vm6120_vm1 }
 0x605   : > { %v2796_v60 = vpop.f32.mrf.mxu2  ;;  %3227 = vmatpush.msk.msrb.mxu3 %vm2228_vm11, %v6082_v37  ;;  %vm6161_vm11 = vmmov %vm6120_vm1 }
 0x606   : > { %v2797_v63 = vadd.f32 %v5749_v34, %v2796_v60 }
 0x607   : > { %3228 = vmatpush.msk.msrb.mxu3 %vm2227_vm6, %v6082_v37  ;;  %vm6159_vm6 = vcmp.eq.s32.totalorder %v4419_v9, %v6158_v38 }
 0x608   : > { %2875 = vst.msk [vmem:[%s5756_s13 + $0x48] sm:$0xff] %vm2865_vm10, %v2797_v63 }
 0x609   : > { %3229 = vmatpush.msk.msrb.mxu3 %vm2226_vm14, %v6082_v37  ;;  %vm6155_vm14 = vcmp.eq.s32.totalorder %v4419_v9, %v5304_v40 }
 0x60b   : > { %3230 = vmatpush.msk.msrb.mxu3 %vm6151_vm12, %v6082_v37  ;;  %vm6167_vm12 = vmmov %vm6120_vm1 }
 0x60d   : > { %v2799_v54 = vpop.f32.mrf.mxu2  ;;  %3231 = vmatpush.msk.msrb.mxu3 %vm6152_vm0, %v6082_v37  ;;  %vm6168_vm0 = vmmov %vm6120_vm1 }
 0x60e   : > { %v2800_v48 = vadd.f32 %v5749_v34, %v2799_v54 }
 0x60f   : > { %3232 = vmatpush.msk.msrb.mxu3 %vm6153_vm9, %v6082_v37  ;;  %vm6169_vm9 = vmmov %vm6168_vm0 }
 0x610   : > { %2876 = vst.msk [vmem:[%s5756_s13 + $0x50] sm:$0xff] %vm2865_vm10, %v2800_v48 }
 0x611   : > { %3233 = vmatpush.msk.msrb.mxu3 %vm6154_vm15, %v6082_v37  ;;  %vm2597_vm15 = vcmask 516096  }
 0x613   : > { %3234 = vmatpush.msk.msrb.mxu3 %vm6155_vm14, %v6082_v37  ;;  %vm2601_vm14 = vcmask 0  }
 0x615   : > { %v2802_v16 = vpop.f32.mrf.mxu2  ;;  %3235 = vmatpush.msk.msrb.mxu3 %vm6157_vm7, %v6082_v37 }
 0x616   : > { %v2803_v32 = vadd.f32 %v5749_v34, %v2802_v16 }
 0x617   : > { %3236 = vmatpush.msk.msrb.mxu3 %vm6159_vm6, %v6082_v37 }
 0x618   : > { %2877 = vst.msk [vmem:[%s5756_s13 + $0x58] sm:$0xff] %vm2865_vm10, %v2803_v32  ;;  %2639 = vmatmul.f32.vlgmr.msrb.gmra.mxu3 %v6082_v37 }
 0x619   : > { %3295 = vmatpush.msra.mxu3 %v5576_v52 }
 0x61b   : > { %3296 = vmatpush.msra.mxu3 %v5585_v62 }
 0x61d   : > { %v2805_v40 = vpop.f32.mrf.mxu2  ;;  %3297 = vmatpush.msra.mxu3 %v5593_v39 }
 0x61e   : > { %v2806_v58 = vadd.f32 %v5749_v34, %v2805_v40 }
 0x61f   : > { %3298 = vmatpush.msra.mxu3 %v5602_v36 }
 0x620   : > { %2878 = vst.msk [vmem:[%s5756_s13 + $0x60] sm:$0xff] %vm2865_vm10, %v2806_v58 }
 0x621   : > { %3299 = vmatpush.msra.mxu3 %v5610_v35 }
 0x623   : > { %3300 = vmatpush.msra.mxu3 %v5618_v18 }
 0x625   : > { %v2808_v9 = vpop.f32.mrf.mxu2  ;;  %3301 = vmatpush.msra.mxu3 %v5628_v50 }
 0x626   : > { %v2809_v37 = vadd.f32 %v5749_v34, %v2808_v9 }
 0x627   : > { %3302 = vmatpush.msra.mxu3 %v5638_v28 }
 0x628   : > { %2879 = vst.msk [vmem:[%s5756_s13 + $0x68] sm:$0xff] %vm2865_vm10, %v2809_v37  ;;  %3258 = vmatmul.msk.f32.vlgmr.msra.gmra.mxu3 %vm6160_vm4, %v5623_v46 }
 0x62d   : > { %v2811_v29 = vpop.f32.mrf.mxu2 }
 0x62e   : > { %v2812_v10 = vadd.f32 %v5749_v34, %v2811_v29 }
 0x630   : > { %2880 = vst.msk [vmem:[%s5756_s13 + $0x70] sm:$0xff] %vm2865_vm10, %v2812_v10  ;;  %3259 = vmatmul.msk.f32.gmra.mxu3 %vm6161_vm11, %v5671_v0 }
 0x635   : > { %v2814_v27 = vpop.f32.mrf.mxu2 }
 0x636   : > { %v2815_v52 = vadd.f32 %v5749_v34, %v2814_v27 }
 0x638   : > { %2881 = vst.msk [vmem:[%s5756_s13 + $0x78] sm:$0xff] %vm2865_vm10, %v2815_v52  ;;  %3260 = vmatmul.msk.f32.gmra.mxu3 %vm6162_vm2, %v5691_v5 }
 0x63d   : > { %v2817_v62 = vpop.f32.mrf.mxu2 }
 0x63e   : > { %v2818_v39 = vadd.f32 %v5749_v34, %v2817_v62 }
 0x640   : > { %2882 = vst.msk [vmem:[%s5756_s13 + $0x80] sm:$0xff] %vm2865_vm10, %v2818_v39  ;;  %3261 = vmatmul.msk.f32.gmra.mxu3 %vm6163_vm5, %v5705_v61 }
 0x645   : > { %v2820_v36 = vpop.f32.mrf.mxu2 }
 0x646   : > { %v2821_v35 = vadd.f32 %v5749_v34, %v2820_v36 }
 0x648   : > { %2883 = vst.msk [vmem:[%s5756_s13 + $0x88] sm:$0xff] %vm2865_vm10, %v2821_v35  ;;  %3262 = vmatmul.msk.f32.gmra.mxu3 %vm6164_vm13, %v5723_v11 }
 0x64d   : > { %v2823_v18 = vpop.f32.mrf.mxu2 }
 0x64e   : > { %v2824_v46 = vadd.f32 %v5749_v34, %v2823_v18 }
 0x650   : > { %2884 = vst.msk [vmem:[%s5756_s13 + $0x90] sm:$0xff] %vm2865_vm10, %v2824_v46  ;;  %3263 = vmatmul.msk.f32.gmra.mxu3 %vm6165_vm8, %v5779_v3 }
 0x655   : > { %v2826_v50 = vpop.f32.mrf.mxu2 }
 0x656   : > { %v2827_v28 = vadd.f32 %v5749_v34, %v2826_v50 }
 0x658   : > { %2885 = vst.msk [vmem:[%s5756_s13 + $0x98] sm:$0xff] %vm2865_vm10, %v2827_v28  ;;  %3264 = vmatmul.msk.f32.gmra.mxu3 %vm6166_vm3, %v5613_v56 }
 0x65d   : > { %v2829_v42 = vpop.f32.mrf.mxu2 }
 0x65e   : > { %v2830_v0 = vadd.f32 %v5749_v34, %v2829_v42 }
 0x660   : > { %2886 = vst.msk [vmem:[%s5756_s13 + $0xa0] sm:$0xff] %vm2865_vm10, %v2830_v0  ;;  %3265 = vmatmul.msk.f32.gmra.mxu3 %vm6120_vm1, %v5667_v6 }
 0x668   : > { %3266 = vmatmul.msk.f32.gmra.mxu3 %vm6167_vm12, %v5687_v23 }
 0x670   : > { %3267 = vmatmul.msk.f32.gmra.mxu3 %vm6168_vm0, %v5701_v22 }
 0x678   : > { %3268 = vmatmul.msk.f32.gmra.mxu3 %vm6169_vm9, %v5715_v53 }
 0x67b   : > { %v2594_v5 = vpop.f32.mrf.mxu3 }
 0x67c   : > { %v2595_v56 = vadd.f32 %v2594_v5, %v5739_v2 }
 0x67e   : > { %v2598_v61 = vsel %vm2597_vm15, %v2595_v56, 0.0 }
 0x67f   : > { %2599 = vadd.xlane.f32.xlu2 %v2598_v61 }
 0x69b   : > { %v2640_v6 = vpop.f32.mrf.mxu3 }
 0x69c   : > { %v2641_v23 = vadd.f32 %v2640_v6, %v5745_v1 }
 0x69e   : > { %2643 = vst [vmem:[%s494_s28] sm:$0x1] %v2641_v23 }
 0x6ab   : > { %v2832_v22 = vpop.f32.mrf.mxu3 }
 0x6ac   : > { %v2833_v53 = vadd.f32 %v5749_v34, %v2832_v22 }
 0x6ae   : > { %2887 = vst.msk [vmem:[%s5756_s13 + $0xa8] sm:$0xff] %vm2865_vm10, %v2833_v53 }
 0x6b3   : > { %v2835_v11 = vpop.f32.mrf.mxu3 }
 0x6b4   : > { %v2836_v2 = vadd.f32 %v5749_v34, %v2835_v11 }
 0x6b6   : > { %2888 = vst.msk [vmem:[%s5756_s13 + $0xb0] sm:$0xff] %vm2865_vm10, %v2836_v2 }
 0x6bb   : > { %v2838_v3 = vpop.f32.mrf.mxu3 }
 0x6bc   : > { %v2839_v57 = vadd.f32 %v5749_v34, %v2838_v3 }
 0x6be   : > { %2889 = vst.msk [vmem:[%s5756_s13 + $0xb8] sm:$0xff] %vm2865_vm10, %v2839_v57 }
 0x6c3   : > { %v2841_v1 = vpop.f32.mrf.mxu3 }
 0x6c4   : > { %v2842_v41 = vadd.f32 %v5749_v34, %v2841_v1 }
 0x6c6   : > { %2890 = vst.msk [vmem:[%s5756_s13 + $0xc0] sm:$0xff] %vm2865_vm10, %v2842_v41 }
 0x6cb   : > { %v2844_v49 = vpop.f32.mrf.mxu3 }
 0x6cc   : > { %v2845_v8 = vadd.f32 %v5749_v34, %v2844_v49 }
 0x6ce   : > { %2891 = vst.msk [vmem:[%s5756_s13 + $0xc8] sm:$0xff] %vm2865_vm10, %v2845_v8 }
 0x6d3   : > { %v2847_v13 = vpop.f32.mrf.mxu3 }
 0x6d4   : > { %v2848_v59 = vadd.f32 %v5749_v34, %v2847_v13 }
 0x6d6   : > { %2892 = vst.msk [vmem:[%s5756_s13 + $0xd0] sm:$0xff] %vm2865_vm10, %v2848_v59 }
 0x6db   : > { %v2850_v17 = vpop.f32.mrf.mxu3 }
 0x6dc   : > { %v2851_v12 = vadd.f32 %v5749_v34, %v2850_v17 }
 0x6de   : > { %2893 = vst.msk [vmem:[%s5756_s13 + $0xd8] sm:$0xff] %vm2865_vm10, %v2851_v12 }
 0x6e3   : > { %v2853_v30 = vpop.f32.mrf.mxu3 }
 0x6e4   : > { %v2854_v33 = vadd.f32 %v5749_v34, %v2853_v30 }
 0x6e6   : > { %2894 = vst.msk [vmem:[%s5756_s13 + $0xe0] sm:$0xff] %vm2865_vm10, %v2854_v33 }
 0x6eb   : > { %v2856_v21 = vpop.f32.mrf.mxu3 }
 0x6ec   : > { %v2857_v51 = vadd.f32 %v5749_v34, %v2856_v21 }
 0x6ee   : > { %2895 = vst.msk [vmem:[%s5756_s13 + $0xe8] sm:$0xff] %vm2865_vm10, %v2857_v51 }
 0x6f2   : > { %v2600_v44 = vpop.xlane.xlu2 %2599 }
 0x6f3   : > { %v2859_v19 = vpop.f32.mrf.mxu3  ;;  %2602 = vst.msk [vmem:[%s491_s15] sm:$0x1] %vm2601_vm14, %v2600_v44 }
 0x6f4   : > { %v2860_v15 = vadd.f32 %v5749_v34, %v2859_v19 }
 0x6f6   : > { %2896 = vst.msk [vmem:[%s5756_s13 + $0xf0] sm:$0xff] %vm2865_vm10, %v2860_v15 }
 0x6fb   : > { %v2862_v25 = vpop.f32.mrf.mxu3 }
 0x6fc   : > { %v2863_v20 = vadd.f32 %v5749_v34, %v2862_v25 }
 0x6fe   : > { %2897 = vst.msk [vmem:[%s5756_s13 + $0xf8] sm:$0xff] %vm2865_vm10, %v2863_v20 }
 0x6ff PF: > { %s25_s17 = sadd.s32 1, %s3621_s17  }
 0x700   : > { %p22_p8 = scmp.ge.s32.totalorder %s25_s17, 4  }
 0x702   :  { %24 = sbr.rel (!%p22_p8) target bundleno = 3 (0x3), region = 139 }
 0x707   :  { %2961 = vsyncpa [#allocation3], 1 }
 0x708   :  { %2963 = vsyncpa [#allocation3 + $0x1], 1 }
 0x709   :  { %2964 = vsyncpa [#allocation5], 1 }
 0x70a   :  { %2965 = vsyncpa [#allocation8], 1 }

// kernel: extended_model_forward.3
= control target key start
LH: loop header
LB: loop body
LE: loop exit
PB: predicated region body
PF: predicated region fallthrough
CT: control target
= control target key end

     0   :  { %s15851_s0 = inlined_call_operand.vmem [shape: bf16[2,16384], index: 0, kind: input, shape index: {}]   ;;  %s15852_s1 = inlined_call_operand.hbm [shape: bf16[16384,128], index: 1, kind: input, shape index: {}]   ;;  %s15853_s2 = inlined_call_operand.hbm [shape: f32[1,128], index: 2, kind: input, shape index: {}]   ;;  %s15854_s3 = inlined_call_operand.vmem [shape: bf16[128,64], index: 3, kind: input, shape index: {}]   ;;  %s15855_s4 = inlined_call_operand.hbm [shape: f32[1,64], index: 4, kind: input, shape index: {}]   ;;  %s15856_s5 = inlined_call_operand.vmem [shape: bf16[64,1], index: 5, kind: input, shape index: {}]   ;;  %s15857_s6 = inlined_call_operand.<no memory space> [shape: f32[1,1], index: 6, kind: input, shape index: {}]   ;;  %s15858_s7 = inlined_call_operand.vmem [shape: f32[2,1], index: 7, kind: output, shape index: {}]  }
   0x1   :  { %v12_v0 = vstv %s15857_s6 }
   0x2   :  { %13 = vst [vmem:[#allocation3] sm:$0x1] %v12_v0 }
   0x3   :  { %14 = vsyncpa [#allocation5], 0 }
   0x4   :  { %15 = vsyncpa [#allocation7], 0  ;;  %s36_s28 = sshll.u32 %s15853_s2, 4  ;;  %s15667_s29 = smov [#allocation6]   ;;  %s37_s28 = int_to_ptr.hbm [resolvable:$true] %s36_s28 }
   0x5   :  { %s38_s30 = sshll.u32 %s15667_s29, 4  ;;  %s22_s10 = sshll.u32 %s15852_s1, 4  ;;  %s39_s30 = int_to_ptr.vmem [resolvable:$true] %s38_s30  ;;  %s23_s10 = int_to_ptr.hbm [resolvable:$true] %s22_s10 }
   0x6   :  { %41 = dma.hbm_to_vmem [thread:$0]  %s37_s28, 16, %s39_s30, [#allocation7]  }
   0x7   :  { %s15668_s11 = smov [#allocation4]   ;;  %s15669_s6 = smov 64  }
   0x8   :  { %s24_s12 = sshll.u32 %s15668_s11, 4  ;;  %s15670_s13 = smov 4   ;;  %s25_s12 = int_to_ptr.vmem [resolvable:$true] %s24_s12 }
   0x9   :  { %30 = dma.hbm_to_vmem [thread:$0]  %s23_s10, 131072, %s25_s12, [#allocation5], %s15669_s6, %s15669_s6, %s15670_s13  }
   0xa   :  { %s49_s2 = sshll.u32 %s15855_s4, 4  ;;  %s15671_s16 = smov [#allocation8]   ;;  %s50_s2 = int_to_ptr.hbm [resolvable:$true] %s49_s2 }
   0xb   :  { %s51_s17 = sshll.u32 %s15671_s16, 4  ;;  %s52_s17 = int_to_ptr.vmem [resolvable:$true] %s51_s17 }
   0xc   :  { %54 = dma.hbm_to_vmem [thread:$0]  %s50_s2, 16, %s52_s17, [#allocation7]  }
   0xd   :  { %15663 = dma.done.wait [#allocation5], 131072  }
   0xe   :  { %15664 = vsyncadd [#allocation5], 4294836224 }
   0xf   :  { %15665 = dma.done.wait [#allocation7], 32  }
  0x10   :  { %15666 = vsyncadd [#allocation7], 4294967264  ;;  %v14551_v1 = vld [vmem:[#allocation4 + $0x38] sm:$0xff]  ;;  %v14550_v5 = vld [vmem:[#allocation4 + $0x30] sm:$0xff]  ;;  %vm10370_vm0 = vcmask 523264   ;;  %vm10391_vm1 = vcmask 1024  }
  0x11   :  { %v14559_v2 = vld [vmem:[#allocation4 + $0x78] sm:$0xff]  ;;  %8574 = vmatpush.bf16.msra.mxu0 %v14551_v1  ;;  %v14558_v6 = vld [vmem:[#allocation4 + $0x70] sm:$0xff]  ;;  %v14549_v9 = vld [vmem:[#allocation4 + $0x28] sm:$0xff] }
  0x12   :  { %v14567_v3 = vld [vmem:[#allocation4 + $0xb8] sm:$0xff]  ;;  %8587 = vmatpush.bf16.msra.mxu1 %v14559_v2  ;;  %v14566_v7 = vld [vmem:[#allocation4 + $0xb0] sm:$0xff]  ;;  %v14557_v10 = vld [vmem:[#allocation4 + $0x68] sm:$0xff] }
  0x13   :  { %v14575_v4 = vld [vmem:[#allocation4 + $0xf8] sm:$0xff]  ;;  %8600 = vmatpush.bf16.msra.mxu2 %v14567_v3  ;;  %v14574_v8 = vld [vmem:[#allocation4 + $0xf0] sm:$0xff]  ;;  %v14565_v11 = vld [vmem:[#allocation4 + $0xa8] sm:$0xff] }
  0x14   :  { %8613 = vmatpush.bf16.msra.mxu3 %v14575_v4  ;;  %v14573_v12 = vld [vmem:[#allocation4 + $0xe8] sm:$0xff]  ;;  %v14548_v13 = vld [vmem:[#allocation4 + $0x20] sm:$0xff]  ;;  %v14547_v17 = vld [vmem:[#allocation4 + $0x18] sm:$0xff] }
  0x15   :  { %8575 = vmatpush.bf16.msra.mxu0 %v14550_v5  ;;  %v14556_v14 = vld [vmem:[#allocation4 + $0x60] sm:$0xff]  ;;  %v14555_v18 = vld [vmem:[#allocation4 + $0x58] sm:$0xff]  ;;  %v14546_v21 = vld [vmem:[#allocation4 + $0x10] sm:$0xff] }
  0x16   :  { %8588 = vmatpush.bf16.msra.mxu1 %v14558_v6  ;;  %v14564_v15 = vld [vmem:[#allocation4 + $0xa0] sm:$0xff]  ;;  %v14563_v19 = vld [vmem:[#allocation4 + $0x98] sm:$0xff]  ;;  %v14554_v22 = vld [vmem:[#allocation4 + $0x50] sm:$0xff] }
  0x17   :  { %8601 = vmatpush.bf16.msra.mxu2 %v14566_v7  ;;  %v14572_v16 = vld [vmem:[#allocation4 + $0xe0] sm:$0xff]  ;;  %v14571_v20 = vld [vmem:[#allocation4 + $0xd8] sm:$0xff]  ;;  %v14562_v24 = vld [vmem:[#allocation4 + $0x90] sm:$0xff] }
  0x18   :  { %8614 = vmatpush.bf16.msra.mxu3 %v14574_v8  ;;  %v78_v23 = vld [vmem:[%s15851_s0] sm:$0xff]  ;;  %v14545_v26 = vld [vmem:[#allocation4 + $0x8] sm:$0xff]  ;;  %v14544_v30 = vld [vmem:[#allocation4] sm:$0xff] }
  0x19   :  { %8576 = vmatpush.bf16.msra.mxu0 %v14549_v9  ;;  %2143 = vst [vmem:[#allocation1] ss:$9 sm:$0xff] %v78_v23  ;;  %v14570_v25 = vld [vmem:[#allocation4 + $0xd0] sm:$0xff]  ;;  %v14553_v27 = vld [vmem:[#allocation4 + $0x48] sm:$0xff]  ;;  %v14552_v31 = vld [vmem:[#allocation4 + $0x40] sm:$0xff] }
  0x1a   :  { %8589 = vmatpush.bf16.msra.mxu1 %v14557_v10  ;;  %v14561_v28 = vld [vmem:[#allocation4 + $0x88] sm:$0xff]  ;;  %v14560_v32 = vld [vmem:[#allocation4 + $0x80] sm:$0xff]  ;;  %v14583_v34 = vld [vmem:[#allocation4 + $0x138] sm:$0xff] }
  0x1b   :  { %8602 = vmatpush.bf16.msra.mxu2 %v14565_v11  ;;  %v14569_v29 = vld [vmem:[#allocation4 + $0xc8] sm:$0xff]  ;;  %v14568_v33 = vld [vmem:[#allocation4 + $0xc0] sm:$0xff]  ;;  %v14591_v35 = vld [vmem:[#allocation4 + $0x178] sm:$0xff] }
  0x1c   :  { %8615 = vmatpush.bf16.msra.mxu3 %v14573_v12  ;;  %v14599_v36 = vld [vmem:[#allocation4 + $0x1b8] sm:$0xff]  ;;  %v14582_v38 = vld [vmem:[#allocation4 + $0x130] sm:$0xff]  ;;  %v14581_v46 = vld [vmem:[#allocation4 + $0x128] sm:$0xff] }
  0x1d   :  { %8577 = vmatpush.bf16.msra.mxu0 %v14548_v13  ;;  %v14607_v37 = vld [vmem:[#allocation4 + $0x1f8] sm:$0xff]  ;;  %v14590_v41 = vld [vmem:[#allocation4 + $0x170] sm:$0xff]  ;;  %v14589_v47 = vld [vmem:[#allocation4 + $0x168] sm:$0xff] }
  0x1e   :  { %8590 = vmatpush.bf16.msra.mxu1 %v14556_v14  ;;  %v14598_v44 = vld [vmem:[#allocation4 + $0x1b0] sm:$0xff]  ;;  %v14597_v48 = vld [vmem:[#allocation4 + $0x1a8] sm:$0xff]  ;;  %v14580_v50 = vld [vmem:[#allocation4 + $0x120] sm:$0xff] }
  0x1f   :  { %8603 = vmatpush.bf16.msra.mxu2 %v14564_v15  ;;  %v14606_v45 = vld [vmem:[#allocation4 + $0x1f0] sm:$0xff]  ;;  %v14605_v49 = vld [vmem:[#allocation4 + $0x1e8] sm:$0xff]  ;;  %v14588_v51 = vld [vmem:[#allocation4 + $0x160] sm:$0xff] }
  0x20   :  { %8616 = vmatpush.bf16.msra.mxu3 %v14572_v16  ;;  %v2146_v39 = vld [vmem:[#allocation1 + $0x12] sm:$0xff]  ;;  %v2144_v40 = vld [vmem:[#allocation1] sm:$0xff]  ;;  %v2145_v43 = vld [vmem:[#allocation1 + $0x9] sm:$0xff] }
  0x21   :  { %8578 = vmatpush.bf16.msra.mxu0 %v14547_v17  ;;  %v2147_v42 = vld [vmem:[#allocation1 + $0x1b] sm:$0xff]  ;;  %v14596_v52 = vld [vmem:[#allocation4 + $0x1a0] sm:$0xff]  ;;  %v14579_v54 = vld [vmem:[#allocation4 + $0x118] sm:$0xff] }
  0x22   :  { %8591 = vmatpush.bf16.msra.mxu1 %v14555_v18  ;;  %v14604_v53 = vld [vmem:[#allocation4 + $0x1e0] sm:$0xff]  ;;  %v14587_v55 = vld [vmem:[#allocation4 + $0x158] sm:$0xff]  ;;  %v14578_v58 = vld [vmem:[#allocation4 + $0x110] sm:$0xff] }
  0x23   :  { %8604 = vmatpush.bf16.msra.mxu2 %v14563_v19  ;;  %v14595_v56 = vld [vmem:[#allocation4 + $0x198] sm:$0xff]  ;;  %v14586_v59 = vld [vmem:[#allocation4 + $0x150] sm:$0xff]  ;;  %v14577_v62 = vld [vmem:[#allocation4 + $0x108] sm:$0xff] }
  0x24   :  { %8617 = vmatpush.bf16.msra.mxu3 %v14571_v20  ;;  %v14603_v57 = vld [vmem:[#allocation4 + $0x1d8] sm:$0xff]  ;;  %v14594_v60 = vld [vmem:[#allocation4 + $0x190] sm:$0xff]  ;;  %v14585_v63 = vld [vmem:[#allocation4 + $0x148] sm:$0xff] }
  0x25   :  { %8579 = vmatpush.bf16.msra.mxu0 %v14546_v21  ;;  %v14602_v61 = vld [vmem:[#allocation4 + $0x1d0] sm:$0xff]  ;;  %v14593_v0 = vld [vmem:[#allocation4 + $0x188] sm:$0xff]  ;;  %v2148_v3 = vld [vmem:[#allocation1 + $0x24] sm:$0xff] }
  0x26   :  { %8592 = vmatpush.bf16.msra.mxu1 %v14554_v22  ;;  %v14601_v1 = vld [vmem:[#allocation4 + $0x1c8] sm:$0xff]  ;;  %v2151_v4 = vld [vmem:[#allocation1 + $0x3f] sm:$0xff]  ;;  %v79_v6 = vld [vmem:[%s15851_s0 + $0x8] sm:$0xff] }
  0x27   :  { %8605 = vmatpush.bf16.msra.mxu2 %v14562_v24  ;;  %v2150_v2 = vld [vmem:[#allocation1 + $0x36] sm:$0xff]  ;;  %v2149_v5 = vld [vmem:[#allocation1 + $0x2d] sm:$0xff]  ;;  %v14615_v11 = vld [vmem:[#allocation4 + $0x238] sm:$0xff] }
  0x28   :  { %8618 = vmatpush.bf16.msra.mxu3 %v14570_v25  ;;  %2153 = vst [vmem:[#allocation1] ss:$9 sm:$0xff] %v79_v6  ;;  %v14576_v7 = vld [vmem:[#allocation4 + $0x100] sm:$0xff]  ;;  %v14623_v12 = vld [vmem:[#allocation4 + $0x278] sm:$0xff]  ;;  %v14614_v15 = vld [vmem:[#allocation4 + $0x230] sm:$0xff] }
  0x29   :  { %8580 = vmatpush.bf16.msra.mxu0 %v14545_v26  ;;  %v14584_v8 = vld [vmem:[#allocation4 + $0x140] sm:$0xff]  ;;  %v14631_v13 = vld [vmem:[#allocation4 + $0x2b8] sm:$0xff]  ;;  %v14622_v16 = vld [vmem:[#allocation4 + $0x270] sm:$0xff] }
  0x2a   :  { %8593 = vmatpush.bf16.msra.mxu1 %v14553_v27  ;;  %v14592_v9 = vld [vmem:[#allocation4 + $0x180] sm:$0xff]  ;;  %v14639_v14 = vld [vmem:[#allocation4 + $0x2f8] sm:$0xff]  ;;  %v14630_v17 = vld [vmem:[#allocation4 + $0x2b0] sm:$0xff] }
  0x2b   :  { %8606 = vmatpush.bf16.msra.mxu2 %v14561_v28  ;;  %v14600_v10 = vld [vmem:[#allocation4 + $0x1c0] sm:$0xff]  ;;  %v14638_v18 = vld [vmem:[#allocation4 + $0x2f0] sm:$0xff]  ;;  %v14613_v19 = vld [vmem:[#allocation4 + $0x228] sm:$0xff] }
  0x2c   :  { %8619 = vmatpush.bf16.msra.mxu3 %v14569_v29  ;;  %v14621_v20 = vld [vmem:[#allocation4 + $0x268] sm:$0xff]  ;;  %v14612_v23 = vld [vmem:[#allocation4 + $0x220] sm:$0xff]  ;;  %v14611_v27 = vld [vmem:[#allocation4 + $0x218] sm:$0xff] }
  0x2d   :  { %8581 = vmatpush.bf16.msra.mxu0 %v14544_v30  ;;  %v14629_v21 = vld [vmem:[#allocation4 + $0x2a8] sm:$0xff]  ;;  %v14620_v24 = vld [vmem:[#allocation4 + $0x260] sm:$0xff]  ;;  %v14619_v28 = vld [vmem:[#allocation4 + $0x258] sm:$0xff] }
  0x2e   :  { %8594 = vmatpush.bf16.msra.mxu1 %v14552_v31  ;;  %v14637_v22 = vld [vmem:[#allocation4 + $0x2e8] sm:$0xff]  ;;  %v14628_v25 = vld [vmem:[#allocation4 + $0x2a0] sm:$0xff]  ;;  %v14627_v29 = vld [vmem:[#allocation4 + $0x298] sm:$0xff] }
  0x2f   :  { %8607 = vmatpush.bf16.msra.mxu2 %v14560_v32  ;;  %v14636_v26 = vld [vmem:[#allocation4 + $0x2e0] sm:$0xff]  ;;  %v14635_v30 = vld [vmem:[#allocation4 + $0x2d8] sm:$0xff]  ;;  %v14610_v31 = vld [vmem:[#allocation4 + $0x210] sm:$0xff] }
  0x30   :  { %8620 = vmatpush.bf16.msra.mxu3 %v14568_v33  ;;  %8582 = vmatmul.bf16.vlgmr.msra.gmra.mxu0 %v2144_v40  ;;  %v14618_v32 = vld [vmem:[#allocation4 + $0x250] sm:$0xff]  ;;  %v14616_v40 = vld [vmem:[#allocation4 + $0x240] sm:$0xff] }
  0x31   :  { %8626 = vmatpush.bf16.msrb.mxu0 %v14583_v34  ;;  %8595 = vmatmul.bf16.vlgmr.msra.gmra.mxu1 %v2145_v43  ;;  %v14626_v33 = vld [vmem:[#allocation4 + $0x290] sm:$0xff]  ;;  %v14647_v43 = vld [vmem:[#allocation4 + $0x338] sm:$0xff] }
  0x32   :  { %8639 = vmatpush.bf16.msrb.mxu1 %v14591_v35  ;;  %8608 = vmatmul.bf16.vlgmr.msra.gmra.mxu2 %v2146_v39  ;;  %v14634_v34 = vld [vmem:[#allocation4 + $0x2d0] sm:$0xff]  ;;  %v14609_v35 = vld [vmem:[#allocation4 + $0x208] sm:$0xff]  ;;  %v14608_v39 = vld [vmem:[#allocation4 + $0x200] sm:$0xff] }
  0x33   :  { %8652 = vmatpush.bf16.msrb.mxu2 %v14599_v36  ;;  %8621 = vmatmul.bf16.vlgmr.msra.gmra.mxu3 %v2147_v42  ;;  %v14617_v36 = vld [vmem:[#allocation4 + $0x248] sm:$0xff]  ;;  %v14632_v42 = vld [vmem:[#allocation4 + $0x2c0] sm:$0xff]  ;;  %v14666_v6 = vld [vmem:[#allocation4 + $0x3d0] sm:$0xff] }
  0x34   :  { %8665 = vmatpush.bf16.msrb.mxu3 %v14607_v37  ;;  %v14625_v37 = vld [vmem:[#allocation4 + $0x288] sm:$0xff] }
  0x35   :  { %8627 = vmatpush.bf16.msrb.mxu0 %v14582_v38  ;;  %v14633_v38 = vld [vmem:[#allocation4 + $0x2c8] sm:$0xff] }
  0x36   :  { %8640 = vmatpush.bf16.msrb.mxu1 %v14590_v41  ;;  %v14624_v41 = vld [vmem:[#allocation4 + $0x280] sm:$0xff] }
  0x37   :  { %8653 = vmatpush.bf16.msrb.mxu2 %v14598_v44  ;;  %v14655_v44 = vld [vmem:[#allocation4 + $0x378] sm:$0xff] }
  0x38   :  { %8666 = vmatpush.bf16.msrb.mxu3 %v14606_v45  ;;  %v14663_v45 = vld [vmem:[#allocation4 + $0x3b8] sm:$0xff] }
  0x39   :  { %8628 = vmatpush.bf16.msrb.mxu0 %v14581_v46  ;;  %v14671_v46 = vld [vmem:[#allocation4 + $0x3f8] sm:$0xff] }
  0x3a   :  { %8641 = vmatpush.bf16.msrb.mxu1 %v14589_v47  ;;  %v2154_v47 = vld [vmem:[#allocation1] sm:$0xff] }
  0x3b   :  { %8654 = vmatpush.bf16.msrb.mxu2 %v14597_v48  ;;  %v2156_v48 = vld [vmem:[#allocation1 + $0x12] sm:$0xff] }
  0x3c   :  { %8667 = vmatpush.bf16.msrb.mxu3 %v14605_v49  ;;  %v2155_v49 = vld [vmem:[#allocation1 + $0x9] sm:$0xff] }
  0x3d   :  { %8629 = vmatpush.bf16.msrb.mxu0 %v14580_v50  ;;  %v2157_v50 = vld [vmem:[#allocation1 + $0x1b] sm:$0xff] }
  0x3e   :  { %8642 = vmatpush.bf16.msrb.mxu1 %v14588_v51  ;;  %v14646_v51 = vld [vmem:[#allocation4 + $0x330] sm:$0xff] }
  0x3f   :  { %8655 = vmatpush.bf16.msrb.mxu2 %v14596_v52  ;;  %v14654_v52 = vld [vmem:[#allocation4 + $0x370] sm:$0xff] }
  0x40   :  { %8668 = vmatpush.bf16.msrb.mxu3 %v14604_v53  ;;  %v14662_v53 = vld [vmem:[#allocation4 + $0x3b0] sm:$0xff] }
  0x41   :  { %8630 = vmatpush.bf16.msrb.mxu0 %v14579_v54  ;;  %v14670_v54 = vld [vmem:[#allocation4 + $0x3f0] sm:$0xff] }
  0x42   :  { %8643 = vmatpush.bf16.msrb.mxu1 %v14587_v55  ;;  %v14645_v55 = vld [vmem:[#allocation4 + $0x328] sm:$0xff] }
  0x43   :  { %8656 = vmatpush.bf16.msrb.mxu2 %v14595_v56  ;;  %v14653_v56 = vld [vmem:[#allocation4 + $0x368] sm:$0xff] }
  0x44   :  { %8669 = vmatpush.bf16.msrb.mxu3 %v14603_v57  ;;  %v14661_v57 = vld [vmem:[#allocation4 + $0x3a8] sm:$0xff] }
  0x45   :  { %8631 = vmatpush.bf16.msrb.mxu0 %v14578_v58  ;;  %v14669_v58 = vld [vmem:[#allocation4 + $0x3e8] sm:$0xff] }
  0x46   :  { %8644 = vmatpush.bf16.msrb.mxu1 %v14586_v59  ;;  %v14644_v59 = vld [vmem:[#allocation4 + $0x320] sm:$0xff] }
  0x47   :  { %8657 = vmatpush.bf16.msrb.mxu2 %v14594_v60  ;;  %v14652_v60 = vld [vmem:[#allocation4 + $0x360] sm:$0xff] }
  0x48   :  { %8670 = vmatpush.bf16.msrb.mxu3 %v14602_v61  ;;  %v14660_v61 = vld [vmem:[#allocation4 + $0x3a0] sm:$0xff] }
  0x49   :  { %8632 = vmatpush.bf16.msrb.mxu0 %v14577_v62  ;;  %v14668_v62 = vld [vmem:[#allocation4 + $0x3e0] sm:$0xff] }
  0x4a   :  { %8645 = vmatpush.bf16.msrb.mxu1 %v14585_v63  ;;  %v14643_v63 = vld [vmem:[#allocation4 + $0x318] sm:$0xff] }
  0x4b   :  { %8658 = vmatpush.bf16.msrb.mxu2 %v14593_v0  ;;  %v14651_v0 = vld [vmem:[#allocation4 + $0x358] sm:$0xff] }
  0x4c   :  { %8671 = vmatpush.bf16.msrb.mxu3 %v14601_v1  ;;  %v14659_v1 = vld [vmem:[#allocation4 + $0x398] sm:$0xff] }
  0x4d   :  { %8633 = vmatpush.bf16.msrb.mxu0 %v14576_v7  ;;  %v14641_v7 = vld [vmem:[#allocation4 + $0x308] sm:$0xff] }
  0x4e   :  { %8646 = vmatpush.bf16.msrb.mxu1 %v14584_v8  ;;  %v14649_v8 = vld [vmem:[#allocation4 + $0x348] sm:$0xff] }
  0x4f   :  { %8659 = vmatpush.bf16.msrb.mxu2 %v14592_v9  ;;  %v14657_v9 = vld [vmem:[#allocation4 + $0x388] sm:$0xff] }
  0x50   :  { %8672 = vmatpush.bf16.msrb.mxu3 %v14600_v10  ;;  %8634 = vmatmul.bf16.vlgmr.msrb.gmra.mxu0 %v2148_v3  ;;  %v14642_v3 = vld [vmem:[#allocation4 + $0x310] sm:$0xff]  ;;  %v14665_v10 = vld [vmem:[#allocation4 + $0x3c8] sm:$0xff] }
  0x51   :  { %8678 = vmatpush.bf16.msra.mxu0 %v14615_v11  ;;  %8647 = vmatmul.bf16.vlgmr.msrb.gmra.mxu1 %v2149_v5  ;;  %v14658_v5 = vld [vmem:[#allocation4 + $0x390] sm:$0xff]  ;;  %v2158_v11 = vld [vmem:[#allocation1 + $0x24] sm:$0xff] }
  0x52   :  { %8691 = vmatpush.bf16.msra.mxu1 %v14623_v12  ;;  %8660 = vmatmul.bf16.vlgmr.msrb.gmra.mxu2 %v2150_v2  ;;  %v14667_v2 = vld [vmem:[#allocation4 + $0x3d8] sm:$0xff]  ;;  %v2160_v12 = vld [vmem:[#allocation1 + $0x36] sm:$0xff] }
  0x53   :  { %8704 = vmatpush.bf16.msra.mxu2 %v14631_v13  ;;  %8673 = vmatmul.bf16.vlgmr.msrb.gmra.mxu3 %v2151_v4  ;;  %v14650_v4 = vld [vmem:[#allocation4 + $0x350] sm:$0xff]  ;;  %v2159_v13 = vld [vmem:[#allocation1 + $0x2d] sm:$0xff] }
  0x54   :  { %8717 = vmatpush.bf16.msra.mxu3 %v14639_v14  ;;  %v2161_v14 = vld [vmem:[#allocation1 + $0x3f] sm:$0xff] }
  0x55   :  { %8679 = vmatpush.bf16.msra.mxu0 %v14614_v15  ;;  %v80_v15 = vld [vmem:[%s15851_s0 + $0x10] sm:$0xff] }
  0x56   :  { %8692 = vmatpush.bf16.msra.mxu1 %v14622_v16  ;;  %2163 = vst [vmem:[#allocation1] ss:$9 sm:$0xff] %v80_v15  ;;  %v14640_v16 = vld [vmem:[#allocation4 + $0x300] sm:$0xff] }
  0x57   :  { %8705 = vmatpush.bf16.msra.mxu2 %v14630_v17  ;;  %v14648_v17 = vld [vmem:[#allocation4 + $0x340] sm:$0xff] }
  0x58   :  { %8718 = vmatpush.bf16.msra.mxu3 %v14638_v18  ;;  %v14656_v18 = vld [vmem:[#allocation4 + $0x380] sm:$0xff] }
  0x59   :  { %8680 = vmatpush.bf16.msra.mxu0 %v14613_v19  ;;  %v14664_v19 = vld [vmem:[#allocation4 + $0x3c0] sm:$0xff] }
  0x5a   :  { %8693 = vmatpush.bf16.msra.mxu1 %v14621_v20  ;;  %v14679_v20 = vld [vmem:[#allocation4 + $0x438] sm:$0xff] }
  0x5b   :  { %8706 = vmatpush.bf16.msra.mxu2 %v14629_v21  ;;  %v14687_v21 = vld [vmem:[#allocation4 + $0x478] sm:$0xff] }
  0x5c   :  { %8719 = vmatpush.bf16.msra.mxu3 %v14637_v22  ;;  %v14695_v22 = vld [vmem:[#allocation4 + $0x4b8] sm:$0xff] }
  0x5d   :  { %8681 = vmatpush.bf16.msra.mxu0 %v14612_v23  ;;  %v14703_v23 = vld [vmem:[#allocation4 + $0x4f8] sm:$0xff] }
  0x5e   :  { %8694 = vmatpush.bf16.msra.mxu1 %v14620_v24  ;;  %v14678_v24 = vld [vmem:[#allocation4 + $0x430] sm:$0xff] }
  0x5f   :  { %8707 = vmatpush.bf16.msra.mxu2 %v14628_v25  ;;  %v14686_v25 = vld [vmem:[#allocation4 + $0x470] sm:$0xff] }
  0x60   :  { %8720 = vmatpush.bf16.msra.mxu3 %v14636_v26  ;;  %v14694_v26 = vld [vmem:[#allocation4 + $0x4b0] sm:$0xff] }
  0x61   :  { %8682 = vmatpush.bf16.msra.mxu0 %v14611_v27  ;;  %v14702_v27 = vld [vmem:[#allocation4 + $0x4f0] sm:$0xff] }
  0x62   :  { %8695 = vmatpush.bf16.msra.mxu1 %v14619_v28  ;;  %v14677_v28 = vld [vmem:[#allocation4 + $0x428] sm:$0xff] }
  0x63   :  { %8708 = vmatpush.bf16.msra.mxu2 %v14627_v29  ;;  %v14685_v29 = vld [vmem:[#allocation4 + $0x468] sm:$0xff] }
  0x64   :  { %8721 = vmatpush.bf16.msra.mxu3 %v14635_v30  ;;  %v14693_v30 = vld [vmem:[#allocation4 + $0x4a8] sm:$0xff] }
  0x65   :  { %8683 = vmatpush.bf16.msra.mxu0 %v14610_v31  ;;  %v14701_v31 = vld [vmem:[#allocation4 + $0x4e8] sm:$0xff] }
  0x66   :  { %8696 = vmatpush.bf16.msra.mxu1 %v14618_v32  ;;  %v14676_v32 = vld [vmem:[#allocation4 + $0x420] sm:$0xff] }
  0x67   :  { %8709 = vmatpush.bf16.msra.mxu2 %v14626_v33  ;;  %v14684_v33 = vld [vmem:[#allocation4 + $0x460] sm:$0xff] }
  0x68   :  { %8722 = vmatpush.bf16.msra.mxu3 %v14634_v34  ;;  %v14692_v34 = vld [vmem:[#allocation4 + $0x4a0] sm:$0xff] }
  0x69   :  { %8684 = vmatpush.bf16.msra.mxu0 %v14609_v35  ;;  %v14700_v35 = vld [vmem:[#allocation4 + $0x4e0] sm:$0xff] }
  0x6a   :  { %8697 = vmatpush.bf16.msra.mxu1 %v14617_v36  ;;  %v14675_v36 = vld [vmem:[#allocation4 + $0x418] sm:$0xff] }
  0x6b   :  { %8710 = vmatpush.bf16.msra.mxu2 %v14625_v37  ;;  %v14683_v37 = vld [vmem:[#allocation4 + $0x458] sm:$0xff] }
  0x6c   :  { %8723 = vmatpush.bf16.msra.mxu3 %v14633_v38  ;;  %v14691_v38 = vld [vmem:[#allocation4 + $0x498] sm:$0xff] }
  0x6d   :  { %8685 = vmatpush.bf16.msra.mxu0 %v14608_v39  ;;  %v14699_v39 = vld [vmem:[#allocation4 + $0x4d8] sm:$0xff] }
  0x6e   :  { %8698 = vmatpush.bf16.msra.mxu1 %v14616_v40  ;;  %v14674_v40 = vld [vmem:[#allocation4 + $0x410] sm:$0xff] }
  0x6f   :  { %8711 = vmatpush.bf16.msra.mxu2 %v14624_v41  ;;  %v14682_v41 = vld [vmem:[#allocation4 + $0x450] sm:$0xff] }
  0x70   :  { %8724 = vmatpush.bf16.msra.mxu3 %v14632_v42  ;;  %8686 = vmatmul.bf16.vlgmr.msra.gmra.mxu0 %v2154_v47  ;;  %v14690_v42 = vld [vmem:[#allocation4 + $0x490] sm:$0xff]  ;;  %v14697_v47 = vld [vmem:[#allocation4 + $0x4c8] sm:$0xff] }
  0x71   :  { %8730 = vmatpush.bf16.msrb.mxu0 %v14647_v43  ;;  %8699 = vmatmul.bf16.vlgmr.msra.gmra.mxu1 %v2155_v49  ;;  %v14698_v43 = vld [vmem:[#allocation4 + $0x4d0] sm:$0xff]  ;;  %v14680_v49 = vld [vmem:[#allocation4 + $0x440] sm:$0xff] }
  0x72   :  { %8743 = vmatpush.bf16.msrb.mxu1 %v14655_v44  ;;  %8712 = vmatmul.bf16.vlgmr.msra.gmra.mxu2 %v2156_v48  ;;  %v14673_v44 = vld [vmem:[#allocation4 + $0x408] sm:$0xff]  ;;  %v14672_v48 = vld [vmem:[#allocation4 + $0x400] sm:$0xff] }
  0x73   :  { %8756 = vmatpush.bf16.msrb.mxu2 %v14663_v45  ;;  %8725 = vmatmul.bf16.vlgmr.msra.gmra.mxu3 %v2157_v50  ;;  %v14681_v45 = vld [vmem:[#allocation4 + $0x448] sm:$0xff]  ;;  %v14688_v50 = vld [vmem:[#allocation4 + $0x480] sm:$0xff] }
  0x74   :  { %8769 = vmatpush.bf16.msrb.mxu3 %v14671_v46  ;;  %v14689_v46 = vld [vmem:[#allocation4 + $0x488] sm:$0xff] }
  0x75   :  { %8731 = vmatpush.bf16.msrb.mxu0 %v14646_v51  ;;  %v14696_v51 = vld [vmem:[#allocation4 + $0x4c0] sm:$0xff] }
  0x76   :  { %8744 = vmatpush.bf16.msrb.mxu1 %v14654_v52  ;;  %v14711_v52 = vld [vmem:[#allocation4 + $0x538] sm:$0xff] }
  0x77   :  { %8757 = vmatpush.bf16.msrb.mxu2 %v14662_v53  ;;  %v14719_v53 = vld [vmem:[#allocation4 + $0x578] sm:$0xff] }
  0x78   :  { %8770 = vmatpush.bf16.msrb.mxu3 %v14670_v54  ;;  %v14727_v54 = vld [vmem:[#allocation4 + $0x5b8] sm:$0xff] }
  0x79   :  { %8732 = vmatpush.bf16.msrb.mxu0 %v14645_v55  ;;  %v14735_v55 = vld [vmem:[#allocation4 + $0x5f8] sm:$0xff] }
  0x7a   :  { %8745 = vmatpush.bf16.msrb.mxu1 %v14653_v56  ;;  %v2164_v56 = vld [vmem:[#allocation1] sm:$0xff] }
  0x7b   :  { %8758 = vmatpush.bf16.msrb.mxu2 %v14661_v57  ;;  %v2166_v57 = vld [vmem:[#allocation1 + $0x12] sm:$0xff] }
  0x7c   :  { %8771 = vmatpush.bf16.msrb.mxu3 %v14669_v58  ;;  %v2165_v58 = vld [vmem:[#allocation1 + $0x9] sm:$0xff] }
  0x7d   :  { %8733 = vmatpush.bf16.msrb.mxu0 %v14644_v59  ;;  %v2167_v59 = vld [vmem:[#allocation1 + $0x1b] sm:$0xff] }
  0x7e   :  { %8746 = vmatpush.bf16.msrb.mxu1 %v14652_v60  ;;  %v14710_v60 = vld [vmem:[#allocation4 + $0x530] sm:$0xff] }
  0x7f   :  { %8759 = vmatpush.bf16.msrb.mxu2 %v14660_v61  ;;  %v14718_v61 = vld [vmem:[#allocation4 + $0x570] sm:$0xff] }
  0x80   :  { %8772 = vmatpush.bf16.msrb.mxu3 %v14668_v62  ;;  %v14726_v62 = vld [vmem:[#allocation4 + $0x5b0] sm:$0xff] }
  0x81   :  { %8734 = vmatpush.bf16.msrb.mxu0 %v14643_v63  ;;  %v14734_v63 = vld [vmem:[#allocation4 + $0x5f0] sm:$0xff] }
  0x82   :  { %8747 = vmatpush.bf16.msrb.mxu1 %v14651_v0  ;;  %v14709_v0 = vld [vmem:[#allocation4 + $0x528] sm:$0xff] }
  0x83   :  { %8760 = vmatpush.bf16.msrb.mxu2 %v14659_v1  ;;  %v14717_v1 = vld [vmem:[#allocation4 + $0x568] sm:$0xff] }
  0x84   :  { %8773 = vmatpush.bf16.msrb.mxu3 %v14667_v2  ;;  %v14725_v2 = vld [vmem:[#allocation4 + $0x5a8] sm:$0xff] }
  0x85   :  { %8735 = vmatpush.bf16.msrb.mxu0 %v14642_v3  ;;  %v14733_v3 = vld [vmem:[#allocation4 + $0x5e8] sm:$0xff] }
  0x86   :  { %8748 = vmatpush.bf16.msrb.mxu1 %v14650_v4 }
  0x87   :  { %8761 = vmatpush.bf16.msrb.mxu2 %v14658_v5  ;;  %v14708_v5 = vld [vmem:[#allocation4 + $0x520] sm:$0xff] }
  0x88   :  { %8774 = vmatpush.bf16.msrb.mxu3 %v14666_v6  ;;  %v14716_v6 = vld [vmem:[#allocation4 + $0x560] sm:$0xff] }
  0x89   :  { %8736 = vmatpush.bf16.msrb.mxu0 %v14641_v7 }
  0x8a   :  { %8749 = vmatpush.bf16.msrb.mxu1 %v14649_v8  ;;  %v14724_v8 = vld [vmem:[#allocation4 + $0x5a0] sm:$0xff] }
  0x8b   :  { %8762 = vmatpush.bf16.msrb.mxu2 %v14657_v9  ;;  %v14732_v9 = vld [vmem:[#allocation4 + $0x5e0] sm:$0xff] }
  0x8c   :  { %8775 = vmatpush.bf16.msrb.mxu3 %v14665_v10 }
  0x8d   :  { %8737 = vmatpush.bf16.msrb.mxu0 %v14640_v16 }
  0x8e   :  { %8750 = vmatpush.bf16.msrb.mxu1 %v14648_v17 }
  0x8f   :  { %8763 = vmatpush.bf16.msrb.mxu2 %v14656_v18 }
  0x90   :  { %8776 = vmatpush.bf16.msrb.mxu3 %v14664_v19  ;;  %8738 = vmatmul.bf16.vlgmr.msrb.gmra.mxu0 %v2158_v11  ;;  %v14707_v11 = vld [vmem:[#allocation4 + $0x518] sm:$0xff]  ;;  %v14706_v19 = vld [vmem:[#allocation4 + $0x510] sm:$0xff] }
  0x91   :  { %8782 = vmatpush.bf16.msra.mxu0 %v14679_v20  ;;  %8751 = vmatmul.bf16.vlgmr.msrb.gmra.mxu1 %v2159_v13  ;;  %v14723_v13 = vld [vmem:[#allocation4 + $0x598] sm:$0xff]  ;;  %v14714_v20 = vld [vmem:[#allocation4 + $0x550] sm:$0xff] }
  0x92   :  { %8795 = vmatpush.bf16.msra.mxu1 %v14687_v21  ;;  %8764 = vmatmul.bf16.vlgmr.msrb.gmra.mxu2 %v2160_v12  ;;  %v14715_v12 = vld [vmem:[#allocation4 + $0x558] sm:$0xff] }
  0x93   :  { %8808 = vmatpush.bf16.msra.mxu2 %v14695_v22  ;;  %8777 = vmatmul.bf16.vlgmr.msrb.gmra.mxu3 %v2161_v14  ;;  %v14731_v14 = vld [vmem:[#allocation4 + $0x5d8] sm:$0xff] }
  0x94   :  { %8821 = vmatpush.bf16.msra.mxu3 %v14703_v23  ;;  %v14722_v23 = vld [vmem:[#allocation4 + $0x590] sm:$0xff] }
  0x95   :  { %8783 = vmatpush.bf16.msra.mxu0 %v14678_v24  ;;  %v14730_v24 = vld [vmem:[#allocation4 + $0x5d0] sm:$0xff] }
  0x96   :  { %8796 = vmatpush.bf16.msra.mxu1 %v14686_v25  ;;  %v14705_v25 = vld [vmem:[#allocation4 + $0x508] sm:$0xff] }
  0x97   :  { %8809 = vmatpush.bf16.msra.mxu2 %v14694_v26  ;;  %v14713_v26 = vld [vmem:[#allocation4 + $0x548] sm:$0xff] }
  0x98   :  { %8822 = vmatpush.bf16.msra.mxu3 %v14702_v27  ;;  %v14721_v27 = vld [vmem:[#allocation4 + $0x588] sm:$0xff] }
  0x99   :  { %8784 = vmatpush.bf16.msra.mxu0 %v14677_v28  ;;  %v14729_v28 = vld [vmem:[#allocation4 + $0x5c8] sm:$0xff] }
  0x9a   :  { %8797 = vmatpush.bf16.msra.mxu1 %v14685_v29  ;;  %v2168_v29 = vld [vmem:[#allocation1 + $0x24] sm:$0xff] }
  0x9b   :  { %8810 = vmatpush.bf16.msra.mxu2 %v14693_v30  ;;  %v2170_v30 = vld [vmem:[#allocation1 + $0x36] sm:$0xff] }
  0x9c   :  { %8823 = vmatpush.bf16.msra.mxu3 %v14701_v31 }
  0x9d   :  { %8785 = vmatpush.bf16.msra.mxu0 %v14676_v32  ;;  %v2169_v32 = vld [vmem:[#allocation1 + $0x2d] sm:$0xff] }
  0x9e   :  { %8798 = vmatpush.bf16.msra.mxu1 %v14684_v33  ;;  %v2171_v33 = vld [vmem:[#allocation1 + $0x3f] sm:$0xff] }
  0x9f   :  { %8811 = vmatpush.bf16.msra.mxu2 %v14692_v34 }
  0xa0   :  { %8824 = vmatpush.bf16.msra.mxu3 %v14700_v35  ;;  %v81_v35 = vld [vmem:[%s15851_s0 + $0x18] sm:$0xff] }
  0xa1   :  { %8786 = vmatpush.bf16.msra.mxu0 %v14675_v36  ;;  %2173 = vst [vmem:[#allocation1] ss:$9 sm:$0xff] %v81_v35  ;;  %v14704_v36 = vld [vmem:[#allocation4 + $0x500] sm:$0xff]  ;;  %v14797_v35 = vld [vmem:[#allocation4 + $0x7e8] sm:$0xff] }
  0xa2   :  { %8799 = vmatpush.bf16.msra.mxu1 %v14683_v37  ;;  %v14712_v37 = vld [vmem:[#allocation4 + $0x540] sm:$0xff] }
  0xa3   :  { %8812 = vmatpush.bf16.msra.mxu2 %v14691_v38  ;;  %v14720_v38 = vld [vmem:[#allocation4 + $0x580] sm:$0xff] }
  0xa4   :  { %8825 = vmatpush.bf16.msra.mxu3 %v14699_v39  ;;  %v14728_v39 = vld [vmem:[#allocation4 + $0x5c0] sm:$0xff] }
  0xa5   :  { %8787 = vmatpush.bf16.msra.mxu0 %v14674_v40  ;;  %v14743_v40 = vld [vmem:[#allocation4 + $0x638] sm:$0xff] }
  0xa6   :  { %8800 = vmatpush.bf16.msra.mxu1 %v14682_v41  ;;  %v14751_v41 = vld [vmem:[#allocation4 + $0x678] sm:$0xff] }
  0xa7   :  { %8813 = vmatpush.bf16.msra.mxu2 %v14690_v42  ;;  %v14759_v42 = vld [vmem:[#allocation4 + $0x6b8] sm:$0xff] }
  0xa8   :  { %8826 = vmatpush.bf16.msra.mxu3 %v14698_v43  ;;  %v14767_v43 = vld [vmem:[#allocation4 + $0x6f8] sm:$0xff] }
  0xa9   :  { %8788 = vmatpush.bf16.msra.mxu0 %v14673_v44  ;;  %v14742_v44 = vld [vmem:[#allocation4 + $0x630] sm:$0xff] }
  0xaa   :  { %8801 = vmatpush.bf16.msra.mxu1 %v14681_v45  ;;  %v14750_v45 = vld [vmem:[#allocation4 + $0x670] sm:$0xff] }
  0xab   :  { %8814 = vmatpush.bf16.msra.mxu2 %v14689_v46  ;;  %v14758_v46 = vld [vmem:[#allocation4 + $0x6b0] sm:$0xff] }
  0xac   :  { %8827 = vmatpush.bf16.msra.mxu3 %v14697_v47  ;;  %v14766_v47 = vld [vmem:[#allocation4 + $0x6f0] sm:$0xff] }
  0xad   :  { %8789 = vmatpush.bf16.msra.mxu0 %v14672_v48  ;;  %v8583_v4 = vpop.f32.mrf.mxu0  ;;  %v14741_v48 = vld [vmem:[#allocation4 + $0x628] sm:$0xff] }
  0xae   :  { %8802 = vmatpush.bf16.msra.mxu1 %v14680_v49  ;;  %v8596_v7 = vpop.f32.mrf.mxu1  ;;  %v14749_v49 = vld [vmem:[#allocation4 + $0x668] sm:$0xff] }
  0xaf   :  { %8815 = vmatpush.bf16.msra.mxu2 %v14688_v50  ;;  %v8597_v10 = vadd.f32 %v8596_v7, %v8583_v4  ;;  %v14757_v50 = vld [vmem:[#allocation4 + $0x6a8] sm:$0xff]  ;;  %v14738_v4 = vld [vmem:[#allocation4 + $0x610] sm:$0xff] }
  0xb0   :  { %8828 = vmatpush.bf16.msra.mxu3 %v14696_v51  ;;  %8790 = vmatmul.bf16.vlgmr.msra.gmra.mxu0 %v2164_v56  ;;  %v14765_v51 = vld [vmem:[#allocation4 + $0x6e8] sm:$0xff] }
  0xb1   :  { %8834 = vmatpush.bf16.msrb.mxu0 %v14711_v52  ;;  %8803 = vmatmul.bf16.vlgmr.msra.gmra.mxu1 %v2165_v58  ;;  %v14764_v58 = vld [vmem:[#allocation4 + $0x6e0] sm:$0xff] }
  0xb2   :  { %8847 = vmatpush.bf16.msrb.mxu1 %v14719_v53  ;;  %8816 = vmatmul.bf16.vlgmr.msra.gmra.mxu2 %v2166_v57  ;;  %v14740_v53 = vld [vmem:[#allocation4 + $0x620] sm:$0xff] }
  0xb3   :  { %8860 = vmatpush.bf16.msrb.mxu2 %v14727_v54  ;;  %8829 = vmatmul.bf16.vlgmr.msra.gmra.mxu3 %v2167_v59  ;;  %v14748_v54 = vld [vmem:[#allocation4 + $0x660] sm:$0xff] }
  0xb4   :  { %8873 = vmatpush.bf16.msrb.mxu3 %v14735_v55  ;;  %v14756_v57 = vld [vmem:[#allocation4 + $0x6a0] sm:$0xff] }
  0xb5   :  { %8835 = vmatpush.bf16.msrb.mxu0 %v14710_v60  ;;  %v8609_v15 = vpop.f32.mrf.mxu2  ;;  %v8585_v18 = vpop.f32.mrf.mxu0  ;;  %v14739_v60 = vld [vmem:[#allocation4 + $0x618] sm:$0xff] }
  0xb6   :  { %8848 = vmatpush.bf16.msrb.mxu1 %v14718_v61  ;;  %v8610_v16 = vadd.f32 %v8609_v15, %v8597_v10  ;;  %v8622_v17 = vpop.f32.mrf.mxu3  ;;  %v8598_v22 = vpop.f32.mrf.mxu1  ;;  %v14747_v61 = vld [vmem:[#allocation4 + $0x658] sm:$0xff]  ;;  %v14737_v10 = vld [vmem:[#allocation4 + $0x608] sm:$0xff]  ;;  %v14752_v18 = vld [vmem:[#allocation4 + $0x680] sm:$0xff] }
  0xb7   :  { %8861 = vmatpush.bf16.msrb.mxu2 %v14726_v62  ;;  %v14755_v62 = vld [vmem:[#allocation4 + $0x698] sm:$0xff] }
  0xb8   :  { %8874 = vmatpush.bf16.msrb.mxu3 %v14734_v63  ;;  %v15734_v21 = vadd.f32 %v8622_v17, %v8610_v16  ;;  %v14763_v63 = vld [vmem:[#allocation4 + $0x6d8] sm:$0xff]  ;;  %v14736_v16 = vld [vmem:[#allocation4 + $0x600] sm:$0xff] }
  0xb9   :  { %8836 = vmatpush.bf16.msrb.mxu0 %v14709_v0  ;;  %v14744_v17 = vld [vmem:[#allocation4 + $0x640] sm:$0xff]  ;;  %v14791_v22 = vld [vmem:[#allocation4 + $0x7b8] sm:$0xff] }
  0xba   :  { %8849 = vmatpush.bf16.msrb.mxu1 %v14717_v1 }
  0xbb   :  { %8862 = vmatpush.bf16.msrb.mxu2 %v14725_v2 }
  0xbc   :  { %8875 = vmatpush.bf16.msrb.mxu3 %v14733_v3 }
  0xbd   :  { %8837 = vmatpush.bf16.msrb.mxu0 %v14708_v5  ;;  %v8611_v31 = vpop.f32.mrf.mxu2  ;;  %v14746_v5 = vld [vmem:[#allocation4 + $0x650] sm:$0xff] }
  0xbe   :  { %8850 = vmatpush.bf16.msrb.mxu1 %v14716_v6  ;;  %v8624_v34 = vpop.f32.mrf.mxu3  ;;  %v14798_v31 = vld [vmem:[#allocation4 + $0x7f0] sm:$0xff] }
  0xbf   :  { %8863 = vmatpush.bf16.msrb.mxu2 %v14724_v8  ;;  %v14754_v8 = vld [vmem:[#allocation4 + $0x690] sm:$0xff]  ;;  %v14789_v34 = vld [vmem:[#allocation4 + $0x7a8] sm:$0xff] }
  0xc0   :  { %8876 = vmatpush.bf16.msrb.mxu3 %v14732_v9  ;;  %v14762_v9 = vld [vmem:[#allocation4 + $0x6d0] sm:$0xff] }
  0xc1   :  { %8838 = vmatpush.bf16.msrb.mxu0 %v14707_v11  ;;  %v14745_v11 = vld [vmem:[#allocation4 + $0x648] sm:$0xff] }
  0xc2   :  { %8851 = vmatpush.bf16.msrb.mxu1 %v14715_v12  ;;  %v14753_v12 = vld [vmem:[#allocation4 + $0x688] sm:$0xff] }
  0xc3   :  { %8864 = vmatpush.bf16.msrb.mxu2 %v14723_v13  ;;  %v14761_v13 = vld [vmem:[#allocation4 + $0x6c8] sm:$0xff] }
  0xc4   :  { %8877 = vmatpush.bf16.msrb.mxu3 %v14731_v14 }
  0xc5   :  { %8839 = vmatpush.bf16.msrb.mxu0 %v14706_v19  ;;  %v14760_v19 = vld [vmem:[#allocation4 + $0x6c0] sm:$0xff] }
  0xc6   :  { %8852 = vmatpush.bf16.msrb.mxu1 %v14714_v20  ;;  %v14775_v20 = vld [vmem:[#allocation4 + $0x738] sm:$0xff] }
  0xc7   :  { %8865 = vmatpush.bf16.msrb.mxu2 %v14722_v23  ;;  %v14799_v23 = vld [vmem:[#allocation4 + $0x7f8] sm:$0xff] }
  0xc8   :  { %8878 = vmatpush.bf16.msrb.mxu3 %v14730_v24  ;;  %v2174_v24 = vld [vmem:[#allocation1] sm:$0xff] }
  0xc9   :  { %8840 = vmatpush.bf16.msrb.mxu0 %v14705_v25  ;;  %v2176_v25 = vld [vmem:[#allocation1 + $0x12] sm:$0xff] }
  0xca   :  { %8853 = vmatpush.bf16.msrb.mxu1 %v14713_v26  ;;  %v2175_v26 = vld [vmem:[#allocation1 + $0x9] sm:$0xff] }
  0xcb   :  { %8866 = vmatpush.bf16.msrb.mxu2 %v14721_v27  ;;  %v2177_v27 = vld [vmem:[#allocation1 + $0x1b] sm:$0xff] }
  0xcc   :  { %8879 = vmatpush.bf16.msrb.mxu3 %v14729_v28  ;;  %v14774_v28 = vld [vmem:[#allocation4 + $0x730] sm:$0xff] }
  0xcd   :  { %8841 = vmatpush.bf16.msrb.mxu0 %v14704_v36  ;;  %v8635_v52 = vpop.f32.mrf.mxu0 }
  0xce   :  { %8854 = vmatpush.bf16.msrb.mxu1 %v14712_v37  ;;  %v8636_v55 = vadd.f32 %v8635_v52, %v15734_v21  ;;  %v8648_v56 = vpop.f32.mrf.mxu1  ;;  %v14783_v21 = vld [vmem:[#allocation4 + $0x778] sm:$0xff] }
  0xcf   :  { %8867 = vmatpush.bf16.msrb.mxu2 %v14720_v38  ;;  %v14772_v38 = vld [vmem:[#allocation4 + $0x720] sm:$0xff] }
  0xd0   :  { %8880 = vmatpush.bf16.msrb.mxu3 %v14728_v39  ;;  %8842 = vmatmul.bf16.vlgmr.msrb.gmra.mxu0 %v2168_v29  ;;  %v8649_v59 = vadd.f32 %v8648_v56, %v8636_v55  ;;  %v14782_v29 = vld [vmem:[#allocation4 + $0x770] sm:$0xff]  ;;  %v14780_v39 = vld [vmem:[#allocation4 + $0x760] sm:$0xff] }
  0xd1   :  { %8886 = vmatpush.bf16.msra.mxu0 %v14743_v40  ;;  %8855 = vmatmul.bf16.vlgmr.msrb.gmra.mxu1 %v2169_v32  ;;  %v14773_v32 = vld [vmem:[#allocation4 + $0x728] sm:$0xff]  ;;  %v14786_v56 = vld [vmem:[#allocation4 + $0x790] sm:$0xff] }
  0xd2   :  { %8899 = vmatpush.bf16.msra.mxu1 %v14751_v41  ;;  %8868 = vmatmul.bf16.vlgmr.msrb.gmra.mxu2 %v2170_v30  ;;  %v14790_v30 = vld [vmem:[#allocation4 + $0x7b0] sm:$0xff]  ;;  %v14788_v41 = vld [vmem:[#allocation4 + $0x7a0] sm:$0xff] }
  0xd3   :  { %8912 = vmatpush.bf16.msra.mxu2 %v14759_v42  ;;  %8881 = vmatmul.bf16.vlgmr.msrb.gmra.mxu3 %v2171_v33  ;;  %v14781_v33 = vld [vmem:[#allocation4 + $0x768] sm:$0xff]  ;;  %v14796_v42 = vld [vmem:[#allocation4 + $0x7e0] sm:$0xff] }
  0xd4   :  { %8925 = vmatpush.bf16.msra.mxu3 %v14767_v43 }
  0xd5   :  { %8887 = vmatpush.bf16.msra.mxu0 %v14742_v44  ;;  %v8661_v0 = vpop.f32.mrf.mxu2  ;;  %v8637_v3 = vpop.f32.mrf.mxu0  ;;  %v14771_v44 = vld [vmem:[#allocation4 + $0x718] sm:$0xff] }
  0xd6   :  { %8900 = vmatpush.bf16.msra.mxu1 %v14750_v45  ;;  %v8662_v1 = vadd.f32 %v8661_v0, %v8649_v59  ;;  %v8674_v2 = vpop.f32.mrf.mxu3  ;;  %v8650_v7 = vpop.f32.mrf.mxu1  ;;  %v14779_v45 = vld [vmem:[#allocation4 + $0x758] sm:$0xff]  ;;  %v14777_v59 = vld [vmem:[#allocation4 + $0x748] sm:$0xff] }
  0xd7   :  { %8913 = vmatpush.bf16.msra.mxu2 %v14758_v46  ;;  %v14787_v46 = vld [vmem:[#allocation4 + $0x798] sm:$0xff]  ;;  %v14784_v7 = vld [vmem:[#allocation4 + $0x780] sm:$0xff] }
  0xd8   :  { %8926 = vmatpush.bf16.msra.mxu3 %v14766_v47  ;;  %v8675_v6 = vadd.f32 %v8674_v2, %v8662_v1  ;;  %v14795_v47 = vld [vmem:[#allocation4 + $0x7d8] sm:$0xff]  ;;  %v2179_v1 = vld [vmem:[#allocation1 + $0x2d] sm:$0xff] }
  0xd9   :  { %8888 = vmatpush.bf16.msra.mxu0 %v14741_v48  ;;  %v2181_v2 = vld [vmem:[#allocation1 + $0x3f] sm:$0xff] }
  0xda   :  { %8901 = vmatpush.bf16.msra.mxu1 %v14749_v49 }
  0xdb   :  { %8914 = vmatpush.bf16.msra.mxu2 %v14757_v50 }
  0xdc   :  { %8927 = vmatpush.bf16.msra.mxu3 %v14765_v51 }
  0xdd   :  { %8889 = vmatpush.bf16.msra.mxu0 %v14740_v53  ;;  %v8663_v14 = vpop.f32.mrf.mxu2  ;;  %v14770_v53 = vld [vmem:[#allocation4 + $0x710] sm:$0xff] }
  0xde   :  { %8902 = vmatpush.bf16.msra.mxu1 %v14748_v54  ;;  %v8676_v15 = vpop.f32.mrf.mxu3  ;;  %v14778_v54 = vld [vmem:[#allocation4 + $0x750] sm:$0xff] }
  0xdf   :  { %8915 = vmatpush.bf16.msra.mxu2 %v14756_v57  ;;  %v14794_v57 = vld [vmem:[#allocation4 + $0x7d0] sm:$0xff] }
  0xe0   :  { %8928 = vmatpush.bf16.msra.mxu3 %v14764_v58  ;;  %v14769_v58 = vld [vmem:[#allocation4 + $0x708] sm:$0xff]  ;;  %v14814_v14 = vld [vmem:[#allocation4 + $0x870] sm:$0xff] }
  0xe1   :  { %8890 = vmatpush.bf16.msra.mxu0 %v14739_v60  ;;  %v14785_v60 = vld [vmem:[#allocation4 + $0x788] sm:$0xff]  ;;  %v14822_v15 = vld [vmem:[#allocation4 + $0x8b0] sm:$0xff] }
  0xe2   :  { %8903 = vmatpush.bf16.msra.mxu1 %v14747_v61  ;;  %v14793_v61 = vld [vmem:[#allocation4 + $0x7c8] sm:$0xff] }
  0xe3   :  { %8916 = vmatpush.bf16.msra.mxu2 %v14755_v62  ;;  %v2178_v62 = vld [vmem:[#allocation1 + $0x24] sm:$0xff] }
  0xe4   :  { %8929 = vmatpush.bf16.msra.mxu3 %v14763_v63  ;;  %v2180_v63 = vld [vmem:[#allocation1 + $0x36] sm:$0xff] }
  0xe5   :  { %8891 = vmatpush.bf16.msra.mxu0 %v14738_v4  ;;  %v82_v4 = vld [vmem:[%s15851_s0 + $0x20] sm:$0xff] }
  0xe6   :  { %8904 = vmatpush.bf16.msra.mxu1 %v14746_v5  ;;  %2183 = vst [vmem:[#allocation1] ss:$9 sm:$0xff] %v82_v4  ;;  %v14768_v5 = vld [vmem:[#allocation4 + $0x700] sm:$0xff]  ;;  %v14861_v4 = vld [vmem:[#allocation4 + $0x9e8] sm:$0xff] }
  0xe7   :  { %8917 = vmatpush.bf16.msra.mxu2 %v14754_v8  ;;  %v14792_v8 = vld [vmem:[#allocation4 + $0x7c0] sm:$0xff] }
  0xe8   :  { %8930 = vmatpush.bf16.msra.mxu3 %v14762_v9  ;;  %v14807_v9 = vld [vmem:[#allocation4 + $0x838] sm:$0xff] }
  0xe9   :  { %8892 = vmatpush.bf16.msra.mxu0 %v14737_v10  ;;  %v14815_v10 = vld [vmem:[#allocation4 + $0x878] sm:$0xff] }
  0xea   :  { %8905 = vmatpush.bf16.msra.mxu1 %v14745_v11  ;;  %v14823_v11 = vld [vmem:[#allocation4 + $0x8b8] sm:$0xff] }
  0xeb   :  { %8918 = vmatpush.bf16.msra.mxu2 %v14753_v12  ;;  %v14831_v12 = vld [vmem:[#allocation4 + $0x8f8] sm:$0xff] }
  0xec   :  { %8931 = vmatpush.bf16.msra.mxu3 %v14761_v13  ;;  %v14806_v13 = vld [vmem:[#allocation4 + $0x830] sm:$0xff] }
  0xed   :  { %8893 = vmatpush.bf16.msra.mxu0 %v14736_v16  ;;  %v8687_v36 = vpop.f32.mrf.mxu0  ;;  %v14830_v16 = vld [vmem:[#allocation4 + $0x8f0] sm:$0xff] }
  0xee   :  { %8906 = vmatpush.bf16.msra.mxu1 %v14744_v17  ;;  %v8688_v37 = vadd.f32 %v8687_v36, %v8675_v6  ;;  %v8700_v40 = vpop.f32.mrf.mxu1  ;;  %v14776_v6 = vld [vmem:[#allocation4 + $0x740] sm:$0xff]  ;;  %v14805_v17 = vld [vmem:[#allocation4 + $0x828] sm:$0xff] }
  0xef   :  { %8919 = vmatpush.bf16.msra.mxu2 %v14752_v18  ;;  %v14813_v18 = vld [vmem:[#allocation4 + $0x868] sm:$0xff] }
  0xf0   :  { %8932 = vmatpush.bf16.msra.mxu3 %v14760_v19  ;;  %8894 = vmatmul.bf16.vlgmr.msra.gmra.mxu0 %v2174_v24  ;;  %v8701_v43 = vadd.f32 %v8700_v40, %v8688_v37  ;;  %v14821_v19 = vld [vmem:[#allocation4 + $0x8a8] sm:$0xff]  ;;  %v14812_v24 = vld [vmem:[#allocation4 + $0x860] sm:$0xff] }
  0xf1   :  { %8938 = vmatpush.bf16.msrb.mxu0 %v14775_v20  ;;  %8907 = vmatmul.bf16.vlgmr.msra.gmra.mxu1 %v2175_v26  ;;  %v14829_v20 = vld [vmem:[#allocation4 + $0x8e8] sm:$0xff]  ;;  %v14820_v26 = vld [vmem:[#allocation4 + $0x8a0] sm:$0xff] }
  0xf2   :  { %8951 = vmatpush.bf16.msrb.mxu1 %v14783_v21  ;;  %8920 = vmatmul.bf16.vlgmr.msra.gmra.mxu2 %v2176_v25 }
  0xf3   :  { %8964 = vmatpush.bf16.msrb.mxu2 %v14791_v22  ;;  %8933 = vmatmul.bf16.vlgmr.msra.gmra.mxu3 %v2177_v27  ;;  %v14828_v27 = vld [vmem:[#allocation4 + $0x8e0] sm:$0xff] }
  0xf4   :  { %8977 = vmatpush.bf16.msrb.mxu3 %v14799_v23  ;;  %v14804_v23 = vld [vmem:[#allocation4 + $0x820] sm:$0xff] }
  0xf5   :  { %8939 = vmatpush.bf16.msrb.mxu0 %v14774_v28  ;;  %v8713_v48 = vpop.f32.mrf.mxu2  ;;  %v8689_v51 = vpop.f32.mrf.mxu0 }
  0xf6   :  { %8952 = vmatpush.bf16.msrb.mxu1 %v14782_v29  ;;  %v8714_v49 = vadd.f32 %v8713_v48, %v8701_v43  ;;  %v8726_v50 = vpop.f32.mrf.mxu3  ;;  %v8702_v55 = vpop.f32.mrf.mxu1  ;;  %v14803_v29 = vld [vmem:[#allocation4 + $0x818] sm:$0xff]  ;;  %v14801_v43 = vld [vmem:[#allocation4 + $0x808] sm:$0xff]  ;;  %v14816_v51 = vld [vmem:[#allocation4 + $0x880] sm:$0xff] }
  0xf7   :  { %8965 = vmatpush.bf16.msrb.mxu2 %v14790_v30  ;;  %v14811_v30 = vld [vmem:[#allocation4 + $0x858] sm:$0xff] }
  0xf8   :  { %8978 = vmatpush.bf16.msrb.mxu3 %v14798_v31  ;;  %v15740_v52 = vadd.f32 %v8726_v50, %v8714_v49  ;;  %v14819_v31 = vld [vmem:[#allocation4 + $0x898] sm:$0xff]  ;;  %v14800_v49 = vld [vmem:[#allocation4 + $0x800] sm:$0xff] }
  0xf9   :  { %8940 = vmatpush.bf16.msrb.mxu0 %v14773_v32  ;;  %v14827_v32 = vld [vmem:[#allocation4 + $0x8d8] sm:$0xff]  ;;  %v14808_v50 = vld [vmem:[#allocation4 + $0x840] sm:$0xff] }
  0xfa   :  { %8953 = vmatpush.bf16.msrb.mxu1 %v14781_v33  ;;  %v14855_v55 = vld [vmem:[#allocation4 + $0x9b8] sm:$0xff] }
  0xfb   :  { %8966 = vmatpush.bf16.msrb.mxu2 %v14789_v34 }
  0xfc   :  { %8979 = vmatpush.bf16.msrb.mxu3 %v14797_v35 }
  0xfd   :  { %8941 = vmatpush.bf16.msrb.mxu0 %v14772_v38  ;;  %v8715_v0 = vpop.f32.mrf.mxu2  ;;  %v14802_v38 = vld [vmem:[#allocation4 + $0x810] sm:$0xff] }
  0xfe   :  { %8954 = vmatpush.bf16.msrb.mxu1 %v14780_v39  ;;  %v8728_v3 = vpop.f32.mrf.mxu3  ;;  %v14810_v39 = vld [vmem:[#allocation4 + $0x850] sm:$0xff] }
  0xff   :  { %8967 = vmatpush.bf16.msrb.mxu2 %v14788_v41  ;;  %v14818_v41 = vld [vmem:[#allocation4 + $0x890] sm:$0xff]  ;;  %v14853_v3 = vld [vmem:[#allocation4 + $0x9a8] sm:$0xff] }
 0x100   :  { %8980 = vmatpush.bf16.msrb.mxu3 %v14796_v42  ;;  %v14826_v42 = vld [vmem:[#allocation4 + $0x8d0] sm:$0xff] }
 0x101   :  { %8942 = vmatpush.bf16.msrb.mxu0 %v14771_v44  ;;  %v14809_v44 = vld [vmem:[#allocation4 + $0x848] sm:$0xff]  ;;  %v14862_v0 = vld [vmem:[#allocation4 + $0x9f0] sm:$0xff] }
 0x102   :  { %8955 = vmatpush.bf16.msrb.mxu1 %v14779_v45  ;;  %v14817_v45 = vld [vmem:[#allocation4 + $0x888] sm:$0xff] }
 0x103   :  { %8968 = vmatpush.bf16.msrb.mxu2 %v14787_v46  ;;  %v14825_v46 = vld [vmem:[#allocation4 + $0x8c8] sm:$0xff] }
 0x104   :  { %8981 = vmatpush.bf16.msrb.mxu3 %v14795_v47 }
 0x105   :  { %8943 = vmatpush.bf16.msrb.mxu0 %v14770_v53  ;;  %v14839_v53 = vld [vmem:[#allocation4 + $0x938] sm:$0xff] }
 0x106   :  { %8956 = vmatpush.bf16.msrb.mxu1 %v14778_v54  ;;  %v14847_v54 = vld [vmem:[#allocation4 + $0x978] sm:$0xff] }
 0x107   :  { %8969 = vmatpush.bf16.msrb.mxu2 %v14786_v56  ;;  %v14863_v56 = vld [vmem:[#allocation4 + $0x9f8] sm:$0xff] }
 0x108   :  { %8982 = vmatpush.bf16.msrb.mxu3 %v14794_v57  ;;  %v2184_v57 = vld [vmem:[#allocation1] sm:$0xff] }
 0x109   :  { %8944 = vmatpush.bf16.msrb.mxu0 %v14769_v58  ;;  %v2186_v58 = vld [vmem:[#allocation1 + $0x12] sm:$0xff] }
 0x10a   :  { %8957 = vmatpush.bf16.msrb.mxu1 %v14777_v59  ;;  %v2185_v59 = vld [vmem:[#allocation1 + $0x9] sm:$0xff] }
 0x10b   :  { %8970 = vmatpush.bf16.msrb.mxu2 %v14785_v60  ;;  %v2187_v60 = vld [vmem:[#allocation1 + $0x1b] sm:$0xff] }
 0x10c   :  { %8983 = vmatpush.bf16.msrb.mxu3 %v14793_v61  ;;  %v14838_v61 = vld [vmem:[#allocation4 + $0x930] sm:$0xff] }
 0x10d   :  { %8945 = vmatpush.bf16.msrb.mxu0 %v14768_v5  ;;  %v8739_v21 = vpop.f32.mrf.mxu0 }
 0x10e   :  { %8958 = vmatpush.bf16.msrb.mxu1 %v14776_v6  ;;  %v8740_v22 = vadd.f32 %v8739_v21, %v15740_v52  ;;  %v8752_v25 = vpop.f32.mrf.mxu1  ;;  %v14824_v52 = vld [vmem:[#allocation4 + $0x8c0] sm:$0xff] }
 0x10f   :  { %8971 = vmatpush.bf16.msrb.mxu2 %v14784_v7  ;;  %v14836_v7 = vld [vmem:[#allocation4 + $0x920] sm:$0xff] }
 0x110   :  { %8984 = vmatpush.bf16.msrb.mxu3 %v14792_v8  ;;  %8946 = vmatmul.bf16.vlgmr.msrb.gmra.mxu0 %v2178_v62  ;;  %v8753_v28 = vadd.f32 %v8752_v25, %v8740_v22  ;;  %v14846_v62 = vld [vmem:[#allocation4 + $0x970] sm:$0xff]  ;;  %v14844_v8 = vld [vmem:[#allocation4 + $0x960] sm:$0xff] }
 0x111   :  { %8990 = vmatpush.bf16.msra.mxu0 %v14807_v9  ;;  %8959 = vmatmul.bf16.vlgmr.msrb.gmra.mxu1 %v2179_v1  ;;  %v14837_v1 = vld [vmem:[#allocation4 + $0x928] sm:$0xff]  ;;  %v14834_v22 = vld [vmem:[#allocation4 + $0x910] sm:$0xff] }
 0x112   :  { %9003 = vmatpush.bf16.msra.mxu1 %v14815_v10  ;;  %8972 = vmatmul.bf16.vlgmr.msrb.gmra.mxu2 %v2180_v63  ;;  %v14854_v63 = vld [vmem:[#allocation4 + $0x9b0] sm:$0xff]  ;;  %v14852_v10 = vld [vmem:[#allocation4 + $0x9a0] sm:$0xff] }
 0x113   :  { %9016 = vmatpush.bf16.msra.mxu2 %v14823_v11  ;;  %8985 = vmatmul.bf16.vlgmr.msrb.gmra.mxu3 %v2181_v2  ;;  %v14845_v2 = vld [vmem:[#allocation4 + $0x968] sm:$0xff]  ;;  %v14860_v11 = vld [vmem:[#allocation4 + $0x9e0] sm:$0xff]  ;;  %v14850_v25 = vld [vmem:[#allocation4 + $0x990] sm:$0xff] }
 0x114   :  { %9029 = vmatpush.bf16.msra.mxu3 %v14831_v12 }
 0x115   :  { %8991 = vmatpush.bf16.msra.mxu0 %v14806_v13  ;;  %v8765_v33 = vpop.f32.mrf.mxu2  ;;  %v8741_v36 = vpop.f32.mrf.mxu0  ;;  %v14835_v13 = vld [vmem:[#allocation4 + $0x918] sm:$0xff] }
 0x116   :  { %9004 = vmatpush.bf16.msra.mxu1 %v14814_v14  ;;  %v8766_v34 = vadd.f32 %v8765_v33, %v8753_v28  ;;  %v8778_v35 = vpop.f32.mrf.mxu3  ;;  %v8754_v40 = vpop.f32.mrf.mxu1  ;;  %v14843_v14 = vld [vmem:[#allocation4 + $0x958] sm:$0xff]  ;;  %v14841_v28 = vld [vmem:[#allocation4 + $0x948] sm:$0xff] }
 0x117   :  { %9017 = vmatpush.bf16.msra.mxu2 %v14822_v15  ;;  %v14851_v15 = vld [vmem:[#allocation4 + $0x998] sm:$0xff]  ;;  %v14848_v40 = vld [vmem:[#allocation4 + $0x980] sm:$0xff] }
 0x118   :  { %9030 = vmatpush.bf16.msra.mxu3 %v14830_v16  ;;  %v8779_v37 = vadd.f32 %v8778_v35, %v8766_v34  ;;  %v14859_v16 = vld [vmem:[#allocation4 + $0x9d8] sm:$0xff]  ;;  %v2189_v34 = vld [vmem:[#allocation1 + $0x2d] sm:$0xff] }
 0x119   :  { %8992 = vmatpush.bf16.msra.mxu0 %v14805_v17  ;;  %v2191_v35 = vld [vmem:[#allocation1 + $0x3f] sm:$0xff] }
 0x11a   :  { %9005 = vmatpush.bf16.msra.mxu1 %v14813_v18 }
 0x11b   :  { %9018 = vmatpush.bf16.msra.mxu2 %v14821_v19 }
 0x11c   :  { %9031 = vmatpush.bf16.msra.mxu3 %v14829_v20 }
 0x11d   :  { %8993 = vmatpush.bf16.msra.mxu0 %v14804_v23  ;;  %v8767_v47 = vpop.f32.mrf.mxu2  ;;  %v14842_v23 = vld [vmem:[#allocation4 + $0x950] sm:$0xff] }
 0x11e   :  { %9006 = vmatpush.bf16.msra.mxu1 %v14812_v24  ;;  %v8780_v48 = vpop.f32.mrf.mxu3  ;;  %v14878_v47 = vld [vmem:[#allocation4 + $0xa70] sm:$0xff] }
 0x11f   :  { %9019 = vmatpush.bf16.msra.mxu2 %v14820_v26  ;;  %v14858_v26 = vld [vmem:[#allocation4 + $0x9d0] sm:$0xff] }
 0x120   :  { %9032 = vmatpush.bf16.msra.mxu3 %v14828_v27  ;;  %v14833_v27 = vld [vmem:[#allocation4 + $0x908] sm:$0xff]  ;;  %v14886_v48 = vld [vmem:[#allocation4 + $0xab0] sm:$0xff] }
 0x121   :  { %8994 = vmatpush.bf16.msra.mxu0 %v14803_v29  ;;  %v14849_v29 = vld [vmem:[#allocation4 + $0x988] sm:$0xff] }
 0x122   :  { %9007 = vmatpush.bf16.msra.mxu1 %v14811_v30  ;;  %v14857_v30 = vld [vmem:[#allocation4 + $0x9c8] sm:$0xff] }
 0x123   :  { %9020 = vmatpush.bf16.msra.mxu2 %v14819_v31  ;;  %v2188_v31 = vld [vmem:[#allocation1 + $0x24] sm:$0xff] }
 0x124   :  { %9033 = vmatpush.bf16.msra.mxu3 %v14827_v32  ;;  %v2190_v32 = vld [vmem:[#allocation1 + $0x36] sm:$0xff] }
 0x125   :  { %8995 = vmatpush.bf16.msra.mxu0 %v14802_v38  ;;  %v14832_v38 = vld [vmem:[#allocation4 + $0x900] sm:$0xff] }
 0x126   :  { %9008 = vmatpush.bf16.msra.mxu1 %v14810_v39  ;;  %v14840_v39 = vld [vmem:[#allocation4 + $0x940] sm:$0xff] }
 0x127   :  { %9021 = vmatpush.bf16.msra.mxu2 %v14818_v41  ;;  %v14856_v41 = vld [vmem:[#allocation4 + $0x9c0] sm:$0xff] }
 0x128   :  { %9034 = vmatpush.bf16.msra.mxu3 %v14826_v42  ;;  %v14871_v42 = vld [vmem:[#allocation4 + $0xa38] sm:$0xff] }
 0x129   :  { %8996 = vmatpush.bf16.msra.mxu0 %v14801_v43  ;;  %v14879_v43 = vld [vmem:[#allocation4 + $0xa78] sm:$0xff] }
 0x12a   :  { %9009 = vmatpush.bf16.msra.mxu1 %v14809_v44  ;;  %v14887_v44 = vld [vmem:[#allocation4 + $0xab8] sm:$0xff] }
 0x12b   :  { %9022 = vmatpush.bf16.msra.mxu2 %v14817_v45  ;;  %v14895_v45 = vld [vmem:[#allocation4 + $0xaf8] sm:$0xff] }
 0x12c   :  { %9035 = vmatpush.bf16.msra.mxu3 %v14825_v46  ;;  %v14870_v46 = vld [vmem:[#allocation4 + $0xa30] sm:$0xff] }
 0x12d   :  { %8997 = vmatpush.bf16.msra.mxu0 %v14800_v49  ;;  %v8791_v5 = vpop.f32.mrf.mxu0  ;;  %v14894_v49 = vld [vmem:[#allocation4 + $0xaf0] sm:$0xff] }
 0x12e   :  { %9010 = vmatpush.bf16.msra.mxu1 %v14808_v50  ;;  %v8792_v6 = vadd.f32 %v8791_v5, %v8779_v37  ;;  %v8804_v9 = vpop.f32.mrf.mxu1  ;;  %v83_v37 = vld [vmem:[%s15851_s0 + $0x28] sm:$0xff]  ;;  %v14869_v50 = vld [vmem:[#allocation4 + $0xa28] sm:$0xff] }
 0x12f   :  { %9023 = vmatpush.bf16.msra.mxu2 %v14816_v51  ;;  %2193 = vst [vmem:[#allocation1] ss:$9 sm:$0xff] %v83_v37  ;;  %v14877_v51 = vld [vmem:[#allocation4 + $0xa68] sm:$0xff] }
 0x130   :  { %9036 = vmatpush.bf16.msra.mxu3 %v14824_v52  ;;  %8998 = vmatmul.bf16.vlgmr.msra.gmra.mxu0 %v2184_v57  ;;  %v8805_v12 = vadd.f32 %v8804_v9, %v8792_v6  ;;  %v14885_v52 = vld [vmem:[#allocation4 + $0xaa8] sm:$0xff]  ;;  %v14876_v57 = vld [vmem:[#allocation4 + $0xa60] sm:$0xff] }
 0x131   :  { %9042 = vmatpush.bf16.msrb.mxu0 %v14839_v53  ;;  %9011 = vmatmul.bf16.vlgmr.msra.gmra.mxu1 %v2185_v59  ;;  %v14893_v53 = vld [vmem:[#allocation4 + $0xae8] sm:$0xff]  ;;  %v14884_v59 = vld [vmem:[#allocation4 + $0xaa0] sm:$0xff] }
 0x132   :  { %9055 = vmatpush.bf16.msrb.mxu1 %v14847_v54  ;;  %9024 = vmatmul.bf16.vlgmr.msra.gmra.mxu2 %v2186_v58  ;;  %v14925_v37 = vld [vmem:[#allocation4 + $0xbe8] sm:$0xff] }
 0x133   :  { %9068 = vmatpush.bf16.msrb.mxu2 %v14855_v55  ;;  %9037 = vmatmul.bf16.vlgmr.msra.gmra.mxu3 %v2187_v60  ;;  %v14892_v60 = vld [vmem:[#allocation4 + $0xae0] sm:$0xff] }
 0x134   :  { %9081 = vmatpush.bf16.msrb.mxu3 %v14863_v56  ;;  %v14868_v56 = vld [vmem:[#allocation4 + $0xa20] sm:$0xff] }
 0x135   :  { %9043 = vmatpush.bf16.msrb.mxu0 %v14838_v61  ;;  %v8817_v17 = vpop.f32.mrf.mxu2  ;;  %v8793_v20 = vpop.f32.mrf.mxu0 }
 0x136   :  { %9056 = vmatpush.bf16.msrb.mxu1 %v14846_v62  ;;  %v8818_v18 = vadd.f32 %v8817_v17, %v8805_v12  ;;  %v8830_v19 = vpop.f32.mrf.mxu3  ;;  %v8806_v24 = vpop.f32.mrf.mxu1  ;;  %v14867_v62 = vld [vmem:[#allocation4 + $0xa18] sm:$0xff]  ;;  %v14865_v12 = vld [vmem:[#allocation4 + $0xa08] sm:$0xff]  ;;  %v14880_v20 = vld [vmem:[#allocation4 + $0xa80] sm:$0xff] }
 0x137   :  { %9069 = vmatpush.bf16.msrb.mxu2 %v14854_v63  ;;  %v14875_v63 = vld [vmem:[#allocation4 + $0xa58] sm:$0xff] }
 0x138   :  { %9082 = vmatpush.bf16.msrb.mxu3 %v14862_v0  ;;  %v15746_v21 = vadd.f32 %v8830_v19, %v8818_v18  ;;  %v14883_v0 = vld [vmem:[#allocation4 + $0xa98] sm:$0xff]  ;;  %v14864_v18 = vld [vmem:[#allocation4 + $0xa00] sm:$0xff] }
 0x139   :  { %9044 = vmatpush.bf16.msrb.mxu0 %v14837_v1  ;;  %v14891_v1 = vld [vmem:[#allocation4 + $0xad8] sm:$0xff]  ;;  %v14872_v19 = vld [vmem:[#allocation4 + $0xa40] sm:$0xff] }
 0x13a   :  { %9057 = vmatpush.bf16.msrb.mxu1 %v14845_v2  ;;  %v14919_v24 = vld [vmem:[#allocation4 + $0xbb8] sm:$0xff] }
 0x13b   :  { %9070 = vmatpush.bf16.msrb.mxu2 %v14853_v3 }
 0x13c   :  { %9083 = vmatpush.bf16.msrb.mxu3 %v14861_v4 }
 0x13d   :  { %9045 = vmatpush.bf16.msrb.mxu0 %v14836_v7  ;;  %v8819_v33 = vpop.f32.mrf.mxu2  ;;  %v14866_v7 = vld [vmem:[#allocation4 + $0xa10] sm:$0xff] }
 0x13e   :  { %9058 = vmatpush.bf16.msrb.mxu1 %v14844_v8  ;;  %v8832_v36 = vpop.f32.mrf.mxu3  ;;  %v14874_v8 = vld [vmem:[#allocation4 + $0xa50] sm:$0xff] }
 0x13f   :  { %9071 = vmatpush.bf16.msrb.mxu2 %v14852_v10  ;;  %v14882_v10 = vld [vmem:[#allocation4 + $0xa90] sm:$0xff]  ;;  %v14917_v36 = vld [vmem:[#allocation4 + $0xba8] sm:$0xff] }
 0x140   :  { %9084 = vmatpush.bf16.msrb.mxu3 %v14860_v11  ;;  %v14890_v11 = vld [vmem:[#allocation4 + $0xad0] sm:$0xff] }
 0x141   :  { %9046 = vmatpush.bf16.msrb.mxu0 %v14835_v13  ;;  %v14873_v13 = vld [vmem:[#allocation4 + $0xa48] sm:$0xff]  ;;  %v14926_v33 = vld [vmem:[#allocation4 + $0xbf0] sm:$0xff] }
 0x142   :  { %9059 = vmatpush.bf16.msrb.mxu1 %v14843_v14  ;;  %v14881_v14 = vld [vmem:[#allocation4 + $0xa88] sm:$0xff] }
 0x143   :  { %9072 = vmatpush.bf16.msrb.mxu2 %v14851_v15  ;;  %v14889_v15 = vld [vmem:[#allocation4 + $0xac8] sm:$0xff] }
 0x144   :  { %9085 = vmatpush.bf16.msrb.mxu3 %v14859_v16 }
 0x145   :  { %9047 = vmatpush.bf16.msrb.mxu0 %v14834_v22  ;;  %v14903_v22 = vld [vmem:[#allocation4 + $0xb38] sm:$0xff] }
 0x146   :  { %9060 = vmatpush.bf16.msrb.mxu1 %v14842_v23  ;;  %v14911_v23 = vld [vmem:[#allocation4 + $0xb78] sm:$0xff] }
 0x147   :  { %9073 = vmatpush.bf16.msrb.mxu2 %v14850_v25  ;;  %v14927_v25 = vld [vmem:[#allocation4 + $0xbf8] sm:$0xff] }
 0x148   :  { %9086 = vmatpush.bf16.msrb.mxu3 %v14858_v26  ;;  %v2194_v26 = vld [vmem:[#allocation1] sm:$0xff] }
 0x149   :  { %9048 = vmatpush.bf16.msrb.mxu0 %v14833_v27  ;;  %v2196_v27 = vld [vmem:[#allocation1 + $0x12] sm:$0xff] }
 0x14a   :  { %9061 = vmatpush.bf16.msrb.mxu1 %v14841_v28  ;;  %v2195_v28 = vld [vmem:[#allocation1 + $0x9] sm:$0xff] }
 0x14b   :  { %9074 = vmatpush.bf16.msrb.mxu2 %v14849_v29  ;;  %v2197_v29 = vld [vmem:[#allocation1 + $0x1b] sm:$0xff] }
 0x14c   :  { %9087 = vmatpush.bf16.msrb.mxu3 %v14857_v30  ;;  %v14902_v30 = vld [vmem:[#allocation4 + $0xb30] sm:$0xff] }
 0x14d   :  { %9049 = vmatpush.bf16.msrb.mxu0 %v14832_v38  ;;  %v8843_v54 = vpop.f32.mrf.mxu0 }
 0x14e   :  { %9062 = vmatpush.bf16.msrb.mxu1 %v14840_v39  ;;  %v8844_v55 = vadd.f32 %v8843_v54, %v15746_v21  ;;  %v8856_v58 = vpop.f32.mrf.mxu1  ;;  %v14888_v21 = vld [vmem:[#allocation4 + $0xac0] sm:$0xff] }
 0x14f   :  { %9075 = vmatpush.bf16.msrb.mxu2 %v14848_v40  ;;  %v14900_v40 = vld [vmem:[#allocation4 + $0xb20] sm:$0xff] }
 0x150   :  { %9088 = vmatpush.bf16.msrb.mxu3 %v14856_v41  ;;  %9050 = vmatmul.bf16.vlgmr.msrb.gmra.mxu0 %v2188_v31  ;;  %v8857_v61 = vadd.f32 %v8856_v58, %v8844_v55  ;;  %v14910_v31 = vld [vmem:[#allocation4 + $0xb70] sm:$0xff]  ;;  %v14908_v41 = vld [vmem:[#allocation4 + $0xb60] sm:$0xff] }
 0x151   :  { %9094 = vmatpush.bf16.msra.mxu0 %v14871_v42  ;;  %9063 = vmatmul.bf16.vlgmr.msrb.gmra.mxu1 %v2189_v34  ;;  %v14901_v34 = vld [vmem:[#allocation4 + $0xb28] sm:$0xff]  ;;  %v14898_v55 = vld [vmem:[#allocation4 + $0xb10] sm:$0xff] }
 0x152   :  { %9107 = vmatpush.bf16.msra.mxu1 %v14879_v43  ;;  %9076 = vmatmul.bf16.vlgmr.msrb.gmra.mxu2 %v2190_v32  ;;  %v14918_v32 = vld [vmem:[#allocation4 + $0xbb0] sm:$0xff]  ;;  %v14916_v43 = vld [vmem:[#allocation4 + $0xba0] sm:$0xff] }
 0x153   :  { %9120 = vmatpush.bf16.msra.mxu2 %v14887_v44  ;;  %9089 = vmatmul.bf16.vlgmr.msrb.gmra.mxu3 %v2191_v35  ;;  %v14909_v35 = vld [vmem:[#allocation4 + $0xb68] sm:$0xff]  ;;  %v14924_v44 = vld [vmem:[#allocation4 + $0xbe0] sm:$0xff]  ;;  %v14914_v58 = vld [vmem:[#allocation4 + $0xb90] sm:$0xff] }
 0x154   :  { %9133 = vmatpush.bf16.msra.mxu3 %v14895_v45 }
 0x155   :  { %9095 = vmatpush.bf16.msra.mxu0 %v14870_v46  ;;  %v8869_v2 = vpop.f32.mrf.mxu2  ;;  %v8845_v5 = vpop.f32.mrf.mxu0  ;;  %v14899_v46 = vld [vmem:[#allocation4 + $0xb18] sm:$0xff] }
 0x156   :  { %9108 = vmatpush.bf16.msra.mxu1 %v14878_v47  ;;  %v8870_v3 = vadd.f32 %v8869_v2, %v8857_v61  ;;  %v8882_v4 = vpop.f32.mrf.mxu3  ;;  %v8858_v9 = vpop.f32.mrf.mxu1  ;;  %v14907_v47 = vld [vmem:[#allocation4 + $0xb58] sm:$0xff]  ;;  %v14905_v61 = vld [vmem:[#allocation4 + $0xb48] sm:$0xff] }
 0x157   :  { %9121 = vmatpush.bf16.msra.mxu2 %v14886_v48  ;;  %v14915_v48 = vld [vmem:[#allocation4 + $0xb98] sm:$0xff]  ;;  %v14912_v9 = vld [vmem:[#allocation4 + $0xb80] sm:$0xff] }
 0x158   :  { %9134 = vmatpush.bf16.msra.mxu3 %v14894_v49  ;;  %v8883_v6 = vadd.f32 %v8882_v4, %v8870_v3  ;;  %v14923_v49 = vld [vmem:[#allocation4 + $0xbd8] sm:$0xff]  ;;  %v2199_v3 = vld [vmem:[#allocation1 + $0x2d] sm:$0xff] }
 0x159   :  { %9096 = vmatpush.bf16.msra.mxu0 %v14869_v50  ;;  %v2201_v4 = vld [vmem:[#allocation1 + $0x3f] sm:$0xff] }
 0x15a   :  { %9109 = vmatpush.bf16.msra.mxu1 %v14877_v51 }
 0x15b   :  { %9122 = vmatpush.bf16.msra.mxu2 %v14885_v52 }
 0x15c   :  { %9135 = vmatpush.bf16.msra.mxu3 %v14893_v53 }
 0x15d   :  { %9097 = vmatpush.bf16.msra.mxu0 %v14868_v56  ;;  %v8871_v16 = vpop.f32.mrf.mxu2  ;;  %v14906_v56 = vld [vmem:[#allocation4 + $0xb50] sm:$0xff] }
 0x15e   :  { %9110 = vmatpush.bf16.msra.mxu1 %v14876_v57  ;;  %v8884_v17 = vpop.f32.mrf.mxu3  ;;  %v14942_v16 = vld [vmem:[#allocation4 + $0xc70] sm:$0xff] }
 0x15f   :  { %9123 = vmatpush.bf16.msra.mxu2 %v14884_v59  ;;  %v14922_v59 = vld [vmem:[#allocation4 + $0xbd0] sm:$0xff] }
 0x160   :  { %9136 = vmatpush.bf16.msra.mxu3 %v14892_v60  ;;  %v14897_v60 = vld [vmem:[#allocation4 + $0xb08] sm:$0xff]  ;;  %v14950_v17 = vld [vmem:[#allocation4 + $0xcb0] sm:$0xff] }
 0x161   :  { %9098 = vmatpush.bf16.msra.mxu0 %v14867_v62  ;;  %v14913_v62 = vld [vmem:[#allocation4 + $0xb88] sm:$0xff] }
 0x162   :  { %9111 = vmatpush.bf16.msra.mxu1 %v14875_v63  ;;  %v14921_v63 = vld [vmem:[#allocation4 + $0xbc8] sm:$0xff] }
 0x163   :  { %9124 = vmatpush.bf16.msra.mxu2 %v14883_v0  ;;  %v2198_v0 = vld [vmem:[#allocation1 + $0x24] sm:$0xff] }
 0x164   :  { %9137 = vmatpush.bf16.msra.mxu3 %v14891_v1  ;;  %v2200_v1 = vld [vmem:[#allocation1 + $0x36] sm:$0xff] }
 0x165   :  { %9099 = vmatpush.bf16.msra.mxu0 %v14866_v7  ;;  %v14896_v7 = vld [vmem:[#allocation4 + $0xb00] sm:$0xff] }
 0x166   :  { %9112 = vmatpush.bf16.msra.mxu1 %v14874_v8  ;;  %v14904_v8 = vld [vmem:[#allocation4 + $0xb40] sm:$0xff] }
 0x167   :  { %9125 = vmatpush.bf16.msra.mxu2 %v14882_v10  ;;  %v14920_v10 = vld [vmem:[#allocation4 + $0xbc0] sm:$0xff] }
 0x168   :  { %9138 = vmatpush.bf16.msra.mxu3 %v14890_v11  ;;  %v14935_v11 = vld [vmem:[#allocation4 + $0xc38] sm:$0xff] }
 0x169   :  { %9100 = vmatpush.bf16.msra.mxu0 %v14865_v12  ;;  %v14943_v12 = vld [vmem:[#allocation4 + $0xc78] sm:$0xff] }
 0x16a   :  { %9113 = vmatpush.bf16.msra.mxu1 %v14873_v13  ;;  %v14951_v13 = vld [vmem:[#allocation4 + $0xcb8] sm:$0xff] }
 0x16b   :  { %9126 = vmatpush.bf16.msra.mxu2 %v14881_v14  ;;  %v14959_v14 = vld [vmem:[#allocation4 + $0xcf8] sm:$0xff] }
 0x16c   :  { %9139 = vmatpush.bf16.msra.mxu3 %v14889_v15  ;;  %v14934_v15 = vld [vmem:[#allocation4 + $0xc30] sm:$0xff] }
 0x16d   :  { %9101 = vmatpush.bf16.msra.mxu0 %v14864_v18  ;;  %v8895_v38 = vpop.f32.mrf.mxu0  ;;  %v14958_v18 = vld [vmem:[#allocation4 + $0xcf0] sm:$0xff] }
 0x16e   :  { %9114 = vmatpush.bf16.msra.mxu1 %v14872_v19  ;;  %v8896_v39 = vadd.f32 %v8895_v38, %v8883_v6  ;;  %v8908_v42 = vpop.f32.mrf.mxu1  ;;  %v84_v6 = vld [vmem:[%s15851_s0 + $0x30] sm:$0xff] }
 0x16f   :  { %9127 = vmatpush.bf16.msra.mxu2 %v14880_v20  ;;  %2203 = vst [vmem:[#allocation1] ss:$9 sm:$0xff] %v84_v6  ;;  %v14933_v19 = vld [vmem:[#allocation4 + $0xc28] sm:$0xff] }
 0x170   :  { %9140 = vmatpush.bf16.msra.mxu3 %v14888_v21  ;;  %9102 = vmatmul.bf16.vlgmr.msra.gmra.mxu0 %v2194_v26  ;;  %v8909_v45 = vadd.f32 %v8908_v42, %v8896_v39  ;;  %v14941_v20 = vld [vmem:[#allocation4 + $0xc68] sm:$0xff]  ;;  %v14940_v26 = vld [vmem:[#allocation4 + $0xc60] sm:$0xff] }
 0x171   :  { %9146 = vmatpush.bf16.msrb.mxu0 %v14903_v22  ;;  %9115 = vmatmul.bf16.vlgmr.msra.gmra.mxu1 %v2195_v28  ;;  %v14949_v21 = vld [vmem:[#allocation4 + $0xca8] sm:$0xff]  ;;  %v14948_v28 = vld [vmem:[#allocation4 + $0xca0] sm:$0xff] }
 0x172   :  { %9159 = vmatpush.bf16.msrb.mxu1 %v14911_v23  ;;  %9128 = vmatmul.bf16.vlgmr.msra.gmra.mxu2 %v2196_v27  ;;  %v14957_v22 = vld [vmem:[#allocation4 + $0xce8] sm:$0xff] }
 0x173   :  { %9172 = vmatpush.bf16.msrb.mxu2 %v14919_v24  ;;  %9141 = vmatmul.bf16.vlgmr.msra.gmra.mxu3 %v2197_v29  ;;  %v14956_v29 = vld [vmem:[#allocation4 + $0xce0] sm:$0xff]  ;;  %v14989_v6 = vld [vmem:[#allocation4 + $0xde8] sm:$0xff] }
 0x174   :  { %9185 = vmatpush.bf16.msrb.mxu3 %v14927_v25  ;;  %v14932_v25 = vld [vmem:[#allocation4 + $0xc20] sm:$0xff] }
 0x175   :  { %9147 = vmatpush.bf16.msrb.mxu0 %v14902_v30  ;;  %v8921_v50 = vpop.f32.mrf.mxu2  ;;  %v8897_v53 = vpop.f32.mrf.mxu0 }
 0x176   :  { %9160 = vmatpush.bf16.msrb.mxu1 %v14910_v31  ;;  %v8922_v51 = vadd.f32 %v8921_v50, %v8909_v45  ;;  %v8934_v52 = vpop.f32.mrf.mxu3  ;;  %v8910_v57 = vpop.f32.mrf.mxu1  ;;  %v14931_v31 = vld [vmem:[#allocation4 + $0xc18] sm:$0xff]  ;;  %v14929_v45 = vld [vmem:[#allocation4 + $0xc08] sm:$0xff]  ;;  %v14944_v53 = vld [vmem:[#allocation4 + $0xc80] sm:$0xff] }
 0x177   :  { %9173 = vmatpush.bf16.msrb.mxu2 %v14918_v32  ;;  %v14939_v32 = vld [vmem:[#allocation4 + $0xc58] sm:$0xff] }
 0x178   :  { %9186 = vmatpush.bf16.msrb.mxu3 %v14926_v33  ;;  %v15752_v54 = vadd.f32 %v8934_v52, %v8922_v51  ;;  %v14947_v33 = vld [vmem:[#allocation4 + $0xc98] sm:$0xff]  ;;  %v14928_v51 = vld [vmem:[#allocation4 + $0xc00] sm:$0xff] }
 0x179   :  { %9148 = vmatpush.bf16.msrb.mxu0 %v14901_v34  ;;  %v14955_v34 = vld [vmem:[#allocation4 + $0xcd8] sm:$0xff]  ;;  %v14936_v52 = vld [vmem:[#allocation4 + $0xc40] sm:$0xff] }
 0x17a   :  { %9161 = vmatpush.bf16.msrb.mxu1 %v14909_v35  ;;  %v14983_v57 = vld [vmem:[#allocation4 + $0xdb8] sm:$0xff] }
 0x17b   :  { %9174 = vmatpush.bf16.msrb.mxu2 %v14917_v36 }
 0x17c   :  { %9187 = vmatpush.bf16.msrb.mxu3 %v14925_v37 }
 0x17d   :  { %9149 = vmatpush.bf16.msrb.mxu0 %v14900_v40  ;;  %v8923_v2 = vpop.f32.mrf.mxu2  ;;  %v14930_v40 = vld [vmem:[#allocation4 + $0xc10] sm:$0xff] }
 0x17e   :  { %9162 = vmatpush.bf16.msrb.mxu1 %v14908_v41  ;;  %v8936_v5 = vpop.f32.mrf.mxu3  ;;  %v14938_v41 = vld [vmem:[#allocation4 + $0xc50] sm:$0xff] }
 0x17f   :  { %9175 = vmatpush.bf16.msrb.mxu2 %v14916_v43  ;;  %v14946_v43 = vld [vmem:[#allocation4 + $0xc90] sm:$0xff]  ;;  %v14981_v5 = vld [vmem:[#allocation4 + $0xda8] sm:$0xff] }
 0x180   :  { %9188 = vmatpush.bf16.msrb.mxu3 %v14924_v44  ;;  %v14954_v44 = vld [vmem:[#allocation4 + $0xcd0] sm:$0xff] }
 0x181   :  { %9150 = vmatpush.bf16.msrb.mxu0 %v14899_v46  ;;  %v14937_v46 = vld [vmem:[#allocation4 + $0xc48] sm:$0xff]  ;;  %v14990_v2 = vld [vmem:[#allocation4 + $0xdf0] sm:$0xff] }
 0x182   :  { %9163 = vmatpush.bf16.msrb.mxu1 %v14907_v47  ;;  %v14945_v47 = vld [vmem:[#allocation4 + $0xc88] sm:$0xff] }
 0x183   :  { %9176 = vmatpush.bf16.msrb.mxu2 %v14915_v48  ;;  %v14953_v48 = vld [vmem:[#allocation4 + $0xcc8] sm:$0xff] }
 0x184   :  { %9189 = vmatpush.bf16.msrb.mxu3 %v14923_v49 }
 0x185   :  { %9151 = vmatpush.bf16.msrb.mxu0 %v14898_v55  ;;  %v14967_v55 = vld [vmem:[#allocation4 + $0xd38] sm:$0xff] }
 0x186   :  { %9164 = vmatpush.bf16.msrb.mxu1 %v14906_v56  ;;  %v14975_v56 = vld [vmem:[#allocation4 + $0xd78] sm:$0xff] }
 0x187   :  { %9177 = vmatpush.bf16.msrb.mxu2 %v14914_v58  ;;  %v14991_v58 = vld [vmem:[#allocation4 + $0xdf8] sm:$0xff] }
 0x188   :  { %9190 = vmatpush.bf16.msrb.mxu3 %v14922_v59  ;;  %v2204_v59 = vld [vmem:[#allocation1] sm:$0xff] }
 0x189   :  { %9152 = vmatpush.bf16.msrb.mxu0 %v14897_v60  ;;  %v2206_v60 = vld [vmem:[#allocation1 + $0x12] sm:$0xff] }
 0x18a   :  { %9165 = vmatpush.bf16.msrb.mxu1 %v14905_v61  ;;  %v2205_v61 = vld [vmem:[#allocation1 + $0x9] sm:$0xff] }
 0x18b   :  { %9178 = vmatpush.bf16.msrb.mxu2 %v14913_v62  ;;  %v2207_v62 = vld [vmem:[#allocation1 + $0x1b] sm:$0xff] }
 0x18c   :  { %9191 = vmatpush.bf16.msrb.mxu3 %v14921_v63  ;;  %v14966_v63 = vld [vmem:[#allocation4 + $0xd30] sm:$0xff] }
 0x18d   :  { %9153 = vmatpush.bf16.msrb.mxu0 %v14896_v7  ;;  %v8947_v23 = vpop.f32.mrf.mxu0 }
 0x18e   :  { %9166 = vmatpush.bf16.msrb.mxu1 %v14904_v8  ;;  %v8948_v24 = vadd.f32 %v8947_v23, %v15752_v54  ;;  %v8960_v27 = vpop.f32.mrf.mxu1  ;;  %v14952_v54 = vld [vmem:[#allocation4 + $0xcc0] sm:$0xff] }
 0x18f   :  { %9179 = vmatpush.bf16.msrb.mxu2 %v14912_v9  ;;  %v14964_v9 = vld [vmem:[#allocation4 + $0xd20] sm:$0xff] }
 0x190   :  { %9192 = vmatpush.bf16.msrb.mxu3 %v14920_v10  ;;  %9154 = vmatmul.bf16.vlgmr.msrb.gmra.mxu0 %v2198_v0  ;;  %v8961_v30 = vadd.f32 %v8960_v27, %v8948_v24  ;;  %v14974_v0 = vld [vmem:[#allocation4 + $0xd70] sm:$0xff]  ;;  %v14972_v10 = vld [vmem:[#allocation4 + $0xd60] sm:$0xff] }
 0x191   :  { %9198 = vmatpush.bf16.msra.mxu0 %v14935_v11  ;;  %9167 = vmatmul.bf16.vlgmr.msrb.gmra.mxu1 %v2199_v3  ;;  %v14965_v3 = vld [vmem:[#allocation4 + $0xd28] sm:$0xff]  ;;  %v14962_v24 = vld [vmem:[#allocation4 + $0xd10] sm:$0xff] }
 0x192   :  { %9211 = vmatpush.bf16.msra.mxu1 %v14943_v12  ;;  %9180 = vmatmul.bf16.vlgmr.msrb.gmra.mxu2 %v2200_v1  ;;  %v14982_v1 = vld [vmem:[#allocation4 + $0xdb0] sm:$0xff]  ;;  %v14980_v12 = vld [vmem:[#allocation4 + $0xda0] sm:$0xff] }
 0x193   :  { %9224 = vmatpush.bf16.msra.mxu2 %v14951_v13  ;;  %9193 = vmatmul.bf16.vlgmr.msrb.gmra.mxu3 %v2201_v4  ;;  %v14973_v4 = vld [vmem:[#allocation4 + $0xd68] sm:$0xff]  ;;  %v14988_v13 = vld [vmem:[#allocation4 + $0xde0] sm:$0xff]  ;;  %v14978_v27 = vld [vmem:[#allocation4 + $0xd90] sm:$0xff] }
 0x194   :  { %9237 = vmatpush.bf16.msra.mxu3 %v14959_v14 }
 0x195   :  { %9199 = vmatpush.bf16.msra.mxu0 %v14934_v15  ;;  %v8973_v35 = vpop.f32.mrf.mxu2  ;;  %v8949_v38 = vpop.f32.mrf.mxu0  ;;  %v14963_v15 = vld [vmem:[#allocation4 + $0xd18] sm:$0xff] }
 0x196   :  { %9212 = vmatpush.bf16.msra.mxu1 %v14942_v16  ;;  %v8974_v36 = vadd.f32 %v8973_v35, %v8961_v30  ;;  %v8986_v37 = vpop.f32.mrf.mxu3  ;;  %v8962_v42 = vpop.f32.mrf.mxu1  ;;  %v14971_v16 = vld [vmem:[#allocation4 + $0xd58] sm:$0xff]  ;;  %v14969_v30 = vld [vmem:[#allocation4 + $0xd48] sm:$0xff] }
 0x197   :  { %9225 = vmatpush.bf16.msra.mxu2 %v14950_v17  ;;  %v14979_v17 = vld [vmem:[#allocation4 + $0xd98] sm:$0xff]  ;;  %v14976_v42 = vld [vmem:[#allocation4 + $0xd80] sm:$0xff] }
 0x198   :  { %9238 = vmatpush.bf16.msra.mxu3 %v14958_v18  ;;  %v8987_v39 = vadd.f32 %v8986_v37, %v8974_v36  ;;  %v14987_v18 = vld [vmem:[#allocation4 + $0xdd8] sm:$0xff]  ;;  %v2209_v36 = vld [vmem:[#allocation1 + $0x2d] sm:$0xff] }
 0x199   :  { %9200 = vmatpush.bf16.msra.mxu0 %v14933_v19  ;;  %v2211_v37 = vld [vmem:[#allocation1 + $0x3f] sm:$0xff] }
 0x19a   :  { %9213 = vmatpush.bf16.msra.mxu1 %v14941_v20 }
 0x19b   :  { %9226 = vmatpush.bf16.msra.mxu2 %v14949_v21 }
 0x19c   :  { %9239 = vmatpush.bf16.msra.mxu3 %v14957_v22 }
 0x19d   :  { %9201 = vmatpush.bf16.msra.mxu0 %v14932_v25  ;;  %v8975_v49 = vpop.f32.mrf.mxu2  ;;  %v14970_v25 = vld [vmem:[#allocation4 + $0xd50] sm:$0xff] }
 0x19e   :  { %9214 = vmatpush.bf16.msra.mxu1 %v14940_v26  ;;  %v8988_v50 = vpop.f32.mrf.mxu3  ;;  %v15006_v49 = vld [vmem:[#allocation4 + $0xe70] sm:$0xff] }
 0x19f   :  { %9227 = vmatpush.bf16.msra.mxu2 %v14948_v28  ;;  %v14986_v28 = vld [vmem:[#allocation4 + $0xdd0] sm:$0xff] }
 0x1a0   :  { %9240 = vmatpush.bf16.msra.mxu3 %v14956_v29  ;;  %v14961_v29 = vld [vmem:[#allocation4 + $0xd08] sm:$0xff]  ;;  %v15014_v50 = vld [vmem:[#allocation4 + $0xeb0] sm:$0xff] }
 0x1a1   :  { %9202 = vmatpush.bf16.msra.mxu0 %v14931_v31  ;;  %v14977_v31 = vld [vmem:[#allocation4 + $0xd88] sm:$0xff] }
 0x1a2   :  { %9215 = vmatpush.bf16.msra.mxu1 %v14939_v32  ;;  %v14985_v32 = vld [vmem:[#allocation4 + $0xdc8] sm:$0xff] }
 0x1a3   :  { %9228 = vmatpush.bf16.msra.mxu2 %v14947_v33  ;;  %v2208_v33 = vld [vmem:[#allocation1 + $0x24] sm:$0xff] }
 0x1a4   :  { %9241 = vmatpush.bf16.msra.mxu3 %v14955_v34  ;;  %v2210_v34 = vld [vmem:[#allocation1 + $0x36] sm:$0xff] }
 0x1a5   :  { %9203 = vmatpush.bf16.msra.mxu0 %v14930_v40  ;;  %v14960_v40 = vld [vmem:[#allocation4 + $0xd00] sm:$0xff] }
 0x1a6   :  { %9216 = vmatpush.bf16.msra.mxu1 %v14938_v41  ;;  %v14968_v41 = vld [vmem:[#allocation4 + $0xd40] sm:$0xff] }
 0x1a7   :  { %9229 = vmatpush.bf16.msra.mxu2 %v14946_v43  ;;  %v14984_v43 = vld [vmem:[#allocation4 + $0xdc0] sm:$0xff] }
 0x1a8   :  { %9242 = vmatpush.bf16.msra.mxu3 %v14954_v44  ;;  %v14999_v44 = vld [vmem:[#allocation4 + $0xe38] sm:$0xff] }
 0x1a9   :  { %9204 = vmatpush.bf16.msra.mxu0 %v14929_v45  ;;  %v15007_v45 = vld [vmem:[#allocation4 + $0xe78] sm:$0xff] }
 0x1aa   :  { %9217 = vmatpush.bf16.msra.mxu1 %v14937_v46  ;;  %v15015_v46 = vld [vmem:[#allocation4 + $0xeb8] sm:$0xff] }
 0x1ab   :  { %9230 = vmatpush.bf16.msra.mxu2 %v14945_v47  ;;  %v15023_v47 = vld [vmem:[#allocation4 + $0xef8] sm:$0xff] }
 0x1ac   :  { %9243 = vmatpush.bf16.msra.mxu3 %v14953_v48  ;;  %v14998_v48 = vld [vmem:[#allocation4 + $0xe30] sm:$0xff] }
 0x1ad   :  { %9205 = vmatpush.bf16.msra.mxu0 %v14928_v51  ;;  %v8999_v7 = vpop.f32.mrf.mxu0  ;;  %v15022_v51 = vld [vmem:[#allocation4 + $0xef0] sm:$0xff] }
 0x1ae   :  { %9218 = vmatpush.bf16.msra.mxu1 %v14936_v52  ;;  %v9000_v8 = vadd.f32 %v8999_v7, %v8987_v39  ;;  %v9012_v11 = vpop.f32.mrf.mxu1  ;;  %v85_v39 = vld [vmem:[%s15851_s0 + $0x38] sm:$0xff] }
 0x1af   :  { %9231 = vmatpush.bf16.msra.mxu2 %v14944_v53  ;;  %2213 = vst [vmem:[#allocation1] ss:$9 sm:$0xff] %v85_v39  ;;  %v14997_v52 = vld [vmem:[#allocation4 + $0xe28] sm:$0xff] }
 0x1b0   :  { %9244 = vmatpush.bf16.msra.mxu3 %v14952_v54  ;;  %9206 = vmatmul.bf16.vlgmr.msra.gmra.mxu0 %v2204_v59  ;;  %v9013_v14 = vadd.f32 %v9012_v11, %v9000_v8  ;;  %v15005_v53 = vld [vmem:[#allocation4 + $0xe68] sm:$0xff]  ;;  %v15004_v59 = vld [vmem:[#allocation4 + $0xe60] sm:$0xff] }
 0x1b1   :  { %9250 = vmatpush.bf16.msrb.mxu0 %v14967_v55  ;;  %9219 = vmatmul.bf16.vlgmr.msra.gmra.mxu1 %v2205_v61  ;;  %v15013_v54 = vld [vmem:[#allocation4 + $0xea8] sm:$0xff]  ;;  %v15012_v61 = vld [vmem:[#allocation4 + $0xea0] sm:$0xff] }
 0x1b2   :  { %9263 = vmatpush.bf16.msrb.mxu1 %v14975_v56  ;;  %9232 = vmatmul.bf16.vlgmr.msra.gmra.mxu2 %v2206_v60  ;;  %v15021_v55 = vld [vmem:[#allocation4 + $0xee8] sm:$0xff] }
 0x1b3   :  { %9276 = vmatpush.bf16.msrb.mxu2 %v14983_v57  ;;  %9245 = vmatmul.bf16.vlgmr.msra.gmra.mxu3 %v2207_v62  ;;  %v15020_v62 = vld [vmem:[#allocation4 + $0xee0] sm:$0xff]  ;;  %v15053_v39 = vld [vmem:[#allocation4 + $0xfe8] sm:$0xff] }
 0x1b4   :  { %9289 = vmatpush.bf16.msrb.mxu3 %v14991_v58  ;;  %v14996_v58 = vld [vmem:[#allocation4 + $0xe20] sm:$0xff] }
 0x1b5   :  { %9251 = vmatpush.bf16.msrb.mxu0 %v14966_v63  ;;  %v9025_v19 = vpop.f32.mrf.mxu2  ;;  %v9001_v22 = vpop.f32.mrf.mxu0 }
 0x1b6   :  { %9264 = vmatpush.bf16.msrb.mxu1 %v14974_v0  ;;  %v9026_v20 = vadd.f32 %v9025_v19, %v9013_v14  ;;  %v9038_v21 = vpop.f32.mrf.mxu3  ;;  %v9014_v26 = vpop.f32.mrf.mxu1  ;;  %v14995_v0 = vld [vmem:[#allocation4 + $0xe18] sm:$0xff]  ;;  %v14993_v14 = vld [vmem:[#allocation4 + $0xe08] sm:$0xff]  ;;  %v15008_v22 = vld [vmem:[#allocation4 + $0xe80] sm:$0xff] }
 0x1b7   :  { %9277 = vmatpush.bf16.msrb.mxu2 %v14982_v1  ;;  %v15003_v1 = vld [vmem:[#allocation4 + $0xe58] sm:$0xff] }
 0x1b8   :  { %9290 = vmatpush.bf16.msrb.mxu3 %v14990_v2  ;;  %v15758_v23 = vadd.f32 %v9038_v21, %v9026_v20  ;;  %v15011_v2 = vld [vmem:[#allocation4 + $0xe98] sm:$0xff]  ;;  %v14992_v20 = vld [vmem:[#allocation4 + $0xe00] sm:$0xff] }
 0x1b9   :  { %9252 = vmatpush.bf16.msrb.mxu0 %v14965_v3  ;;  %v15019_v3 = vld [vmem:[#allocation4 + $0xed8] sm:$0xff]  ;;  %v15000_v21 = vld [vmem:[#allocation4 + $0xe40] sm:$0xff] }
 0x1ba   :  { %9265 = vmatpush.bf16.msrb.mxu1 %v14973_v4  ;;  %v15047_v26 = vld [vmem:[#allocation4 + $0xfb8] sm:$0xff] }
 0x1bb   :  { %9278 = vmatpush.bf16.msrb.mxu2 %v14981_v5 }
 0x1bc   :  { %9291 = vmatpush.bf16.msrb.mxu3 %v14989_v6 }
 0x1bd   :  { %9253 = vmatpush.bf16.msrb.mxu0 %v14964_v9  ;;  %v9027_v35 = vpop.f32.mrf.mxu2  ;;  %v14994_v9 = vld [vmem:[#allocation4 + $0xe10] sm:$0xff] }
 0x1be   :  { %9266 = vmatpush.bf16.msrb.mxu1 %v14972_v10  ;;  %v9040_v38 = vpop.f32.mrf.mxu3  ;;  %v15002_v10 = vld [vmem:[#allocation4 + $0xe50] sm:$0xff] }
 0x1bf   :  { %9279 = vmatpush.bf16.msrb.mxu2 %v14980_v12  ;;  %v15010_v12 = vld [vmem:[#allocation4 + $0xe90] sm:$0xff]  ;;  %v15045_v38 = vld [vmem:[#allocation4 + $0xfa8] sm:$0xff] }
 0x1c0   :  { %9292 = vmatpush.bf16.msrb.mxu3 %v14988_v13  ;;  %v15018_v13 = vld [vmem:[#allocation4 + $0xed0] sm:$0xff] }
 0x1c1   :  { %9254 = vmatpush.bf16.msrb.mxu0 %v14963_v15  ;;  %v15001_v15 = vld [vmem:[#allocation4 + $0xe48] sm:$0xff]  ;;  %v15054_v35 = vld [vmem:[#allocation4 + $0xff0] sm:$0xff] }
 0x1c2   :  { %9267 = vmatpush.bf16.msrb.mxu1 %v14971_v16  ;;  %v15009_v16 = vld [vmem:[#allocation4 + $0xe88] sm:$0xff] }
 0x1c3   :  { %9280 = vmatpush.bf16.msrb.mxu2 %v14979_v17  ;;  %v15017_v17 = vld [vmem:[#allocation4 + $0xec8] sm:$0xff] }
 0x1c4   :  { %9293 = vmatpush.bf16.msrb.mxu3 %v14987_v18 }
 0x1c5   :  { %9255 = vmatpush.bf16.msrb.mxu0 %v14962_v24  ;;  %v15031_v24 = vld [vmem:[#allocation4 + $0xf38] sm:$0xff] }
 0x1c6   :  { %9268 = vmatpush.bf16.msrb.mxu1 %v14970_v25  ;;  %v15039_v25 = vld [vmem:[#allocation4 + $0xf78] sm:$0xff] }
 0x1c7   :  { %9281 = vmatpush.bf16.msrb.mxu2 %v14978_v27  ;;  %v15055_v27 = vld [vmem:[#allocation4 + $0xff8] sm:$0xff] }
 0x1c8   :  { %9294 = vmatpush.bf16.msrb.mxu3 %v14986_v28  ;;  %v2214_v28 = vld [vmem:[#allocation1] sm:$0xff] }
 0x1c9   :  { %9256 = vmatpush.bf16.msrb.mxu0 %v14961_v29  ;;  %v2216_v29 = vld [vmem:[#allocation1 + $0x12] sm:$0xff] }
 0x1ca   :  { %9269 = vmatpush.bf16.msrb.mxu1 %v14969_v30  ;;  %v2215_v30 = vld [vmem:[#allocation1 + $0x9] sm:$0xff] }
 0x1cb   :  { %9282 = vmatpush.bf16.msrb.mxu2 %v14977_v31  ;;  %v2217_v31 = vld [vmem:[#allocation1 + $0x1b] sm:$0xff] }
 0x1cc   :  { %9295 = vmatpush.bf16.msrb.mxu3 %v14985_v32  ;;  %v15030_v32 = vld [vmem:[#allocation4 + $0xf30] sm:$0xff] }
 0x1cd   :  { %9257 = vmatpush.bf16.msrb.mxu0 %v14960_v40  ;;  %v9051_v56 = vpop.f32.mrf.mxu0 }
 0x1ce   :  { %9270 = vmatpush.bf16.msrb.mxu1 %v14968_v41  ;;  %v9052_v57 = vadd.f32 %v9051_v56, %v15758_v23  ;;  %v9064_v60 = vpop.f32.mrf.mxu1  ;;  %v15016_v23 = vld [vmem:[#allocation4 + $0xec0] sm:$0xff] }
 0x1cf   :  { %9283 = vmatpush.bf16.msrb.mxu2 %v14976_v42  ;;  %v15028_v42 = vld [vmem:[#allocation4 + $0xf20] sm:$0xff] }
 0x1d0   :  { %9296 = vmatpush.bf16.msrb.mxu3 %v14984_v43  ;;  %9258 = vmatmul.bf16.vlgmr.msrb.gmra.mxu0 %v2208_v33  ;;  %v9065_v63 = vadd.f32 %v9064_v60, %v9052_v57  ;;  %v15038_v33 = vld [vmem:[#allocation4 + $0xf70] sm:$0xff]  ;;  %v15036_v43 = vld [vmem:[#allocation4 + $0xf60] sm:$0xff] }
 0x1d1   :  { %9302 = vmatpush.bf16.msra.mxu0 %v14999_v44  ;;  %9271 = vmatmul.bf16.vlgmr.msrb.gmra.mxu1 %v2209_v36  ;;  %v15029_v36 = vld [vmem:[#allocation4 + $0xf28] sm:$0xff]  ;;  %v15026_v57 = vld [vmem:[#allocation4 + $0xf10] sm:$0xff] }
 0x1d2   :  { %9315 = vmatpush.bf16.msra.mxu1 %v15007_v45  ;;  %9284 = vmatmul.bf16.vlgmr.msrb.gmra.mxu2 %v2210_v34  ;;  %v15046_v34 = vld [vmem:[#allocation4 + $0xfb0] sm:$0xff]  ;;  %v15044_v45 = vld [vmem:[#allocation4 + $0xfa0] sm:$0xff] }
 0x1d3   :  { %9328 = vmatpush.bf16.msra.mxu2 %v15015_v46  ;;  %9297 = vmatmul.bf16.vlgmr.msrb.gmra.mxu3 %v2211_v37  ;;  %v15037_v37 = vld [vmem:[#allocation4 + $0xf68] sm:$0xff]  ;;  %v15052_v46 = vld [vmem:[#allocation4 + $0xfe0] sm:$0xff]  ;;  %v15042_v60 = vld [vmem:[#allocation4 + $0xf90] sm:$0xff] }
 0x1d4   :  { %9341 = vmatpush.bf16.msra.mxu3 %v15023_v47 }
 0x1d5   :  { %9303 = vmatpush.bf16.msra.mxu0 %v14998_v48  ;;  %v9077_v4 = vpop.f32.mrf.mxu2  ;;  %v9053_v7 = vpop.f32.mrf.mxu0  ;;  %v15027_v48 = vld [vmem:[#allocation4 + $0xf18] sm:$0xff] }
 0x1d6   :  { %9316 = vmatpush.bf16.msra.mxu1 %v15006_v49  ;;  %v9078_v5 = vadd.f32 %v9077_v4, %v9065_v63  ;;  %v9090_v6 = vpop.f32.mrf.mxu3  ;;  %v9066_v11 = vpop.f32.mrf.mxu1  ;;  %v15035_v49 = vld [vmem:[#allocation4 + $0xf58] sm:$0xff]  ;;  %v15033_v63 = vld [vmem:[#allocation4 + $0xf48] sm:$0xff] }
 0x1d7   :  { %9329 = vmatpush.bf16.msra.mxu2 %v15014_v50  ;;  %v15043_v50 = vld [vmem:[#allocation4 + $0xf98] sm:$0xff]  ;;  %v15040_v11 = vld [vmem:[#allocation4 + $0xf80] sm:$0xff] }
 0x1d8   :  { %9342 = vmatpush.bf16.msra.mxu3 %v15022_v51  ;;  %v9091_v8 = vadd.f32 %v9090_v6, %v9078_v5  ;;  %v15051_v51 = vld [vmem:[#allocation4 + $0xfd8] sm:$0xff]  ;;  %v2219_v5 = vld [vmem:[#allocation1 + $0x2d] sm:$0xff] }
 0x1d9   :  { %9304 = vmatpush.bf16.msra.mxu0 %v14997_v52  ;;  %v2221_v6 = vld [vmem:[#allocation1 + $0x3f] sm:$0xff] }
 0x1da   :  { %9317 = vmatpush.bf16.msra.mxu1 %v15005_v53 }
 0x1db   :  { %9330 = vmatpush.bf16.msra.mxu2 %v15013_v54 }
 0x1dc   :  { %9343 = vmatpush.bf16.msra.mxu3 %v15021_v55 }
 0x1dd   :  { %9305 = vmatpush.bf16.msra.mxu0 %v14996_v58  ;;  %v9079_v18 = vpop.f32.mrf.mxu2  ;;  %v15034_v58 = vld [vmem:[#allocation4 + $0xf50] sm:$0xff] }
 0x1de   :  { %9318 = vmatpush.bf16.msra.mxu1 %v15004_v59  ;;  %v9092_v19 = vpop.f32.mrf.mxu3  ;;  %v15070_v18 = vld [vmem:[#allocation4 + $0x1070] sm:$0xff] }
 0x1df   :  { %9331 = vmatpush.bf16.msra.mxu2 %v15012_v61  ;;  %v15050_v61 = vld [vmem:[#allocation4 + $0xfd0] sm:$0xff] }
 0x1e0   :  { %9344 = vmatpush.bf16.msra.mxu3 %v15020_v62  ;;  %v15025_v62 = vld [vmem:[#allocation4 + $0xf08] sm:$0xff]  ;;  %v15078_v19 = vld [vmem:[#allocation4 + $0x10b0] sm:$0xff] }
 0x1e1   :  { %9306 = vmatpush.bf16.msra.mxu0 %v14995_v0  ;;  %v15041_v0 = vld [vmem:[#allocation4 + $0xf88] sm:$0xff] }
 0x1e2   :  { %9319 = vmatpush.bf16.msra.mxu1 %v15003_v1  ;;  %v15049_v1 = vld [vmem:[#allocation4 + $0xfc8] sm:$0xff] }
 0x1e3   :  { %9332 = vmatpush.bf16.msra.mxu2 %v15011_v2  ;;  %v2218_v2 = vld [vmem:[#allocation1 + $0x24] sm:$0xff] }
 0x1e4   :  { %9345 = vmatpush.bf16.msra.mxu3 %v15019_v3  ;;  %v2220_v3 = vld [vmem:[#allocation1 + $0x36] sm:$0xff] }
 0x1e5   :  { %9307 = vmatpush.bf16.msra.mxu0 %v14994_v9  ;;  %v15024_v9 = vld [vmem:[#allocation4 + $0xf00] sm:$0xff] }
 0x1e6   :  { %9320 = vmatpush.bf16.msra.mxu1 %v15002_v10  ;;  %v15032_v10 = vld [vmem:[#allocation4 + $0xf40] sm:$0xff] }
 0x1e7   :  { %9333 = vmatpush.bf16.msra.mxu2 %v15010_v12  ;;  %v15048_v12 = vld [vmem:[#allocation4 + $0xfc0] sm:$0xff] }
 0x1e8   :  { %9346 = vmatpush.bf16.msra.mxu3 %v15018_v13  ;;  %v15063_v13 = vld [vmem:[#allocation4 + $0x1038] sm:$0xff] }
 0x1e9   :  { %9308 = vmatpush.bf16.msra.mxu0 %v14993_v14  ;;  %v15071_v14 = vld [vmem:[#allocation4 + $0x1078] sm:$0xff] }
 0x1ea   :  { %9321 = vmatpush.bf16.msra.mxu1 %v15001_v15  ;;  %v15079_v15 = vld [vmem:[#allocation4 + $0x10b8] sm:$0xff] }
 0x1eb   :  { %9334 = vmatpush.bf16.msra.mxu2 %v15009_v16  ;;  %v15087_v16 = vld [vmem:[#allocation4 + $0x10f8] sm:$0xff] }
 0x1ec   :  { %9347 = vmatpush.bf16.msra.mxu3 %v15017_v17  ;;  %v15062_v17 = vld [vmem:[#allocation4 + $0x1030] sm:$0xff] }
 0x1ed   :  { %9309 = vmatpush.bf16.msra.mxu0 %v14992_v20  ;;  %v9103_v40 = vpop.f32.mrf.mxu0  ;;  %v15086_v20 = vld [vmem:[#allocation4 + $0x10f0] sm:$0xff] }
 0x1ee   :  { %9322 = vmatpush.bf16.msra.mxu1 %v15000_v21  ;;  %v9104_v41 = vadd.f32 %v9103_v40, %v9091_v8  ;;  %v9116_v44 = vpop.f32.mrf.mxu1  ;;  %v86_v8 = vld [vmem:[%s15851_s0 + $0x40] sm:$0xff]  ;;  %v15061_v21 = vld [vmem:[#allocation4 + $0x1028] sm:$0xff] }
 0x1ef   :  { %9335 = vmatpush.bf16.msra.mxu2 %v15008_v22  ;;  %2223 = vst [vmem:[#allocation1] ss:$9 sm:$0xff] %v86_v8  ;;  %v15069_v22 = vld [vmem:[#allocation4 + $0x1068] sm:$0xff] }
 0x1f0   :  { %9348 = vmatpush.bf16.msra.mxu3 %v15016_v23  ;;  %9310 = vmatmul.bf16.vlgmr.msra.gmra.mxu0 %v2214_v28  ;;  %v9117_v47 = vadd.f32 %v9116_v44, %v9104_v41  ;;  %v15077_v23 = vld [vmem:[#allocation4 + $0x10a8] sm:$0xff]  ;;  %v15068_v28 = vld [vmem:[#allocation4 + $0x1060] sm:$0xff] }
 0x1f1   :  { %9354 = vmatpush.bf16.msrb.mxu0 %v15031_v24  ;;  %9323 = vmatmul.bf16.vlgmr.msra.gmra.mxu1 %v2215_v30  ;;  %v15085_v24 = vld [vmem:[#allocation4 + $0x10e8] sm:$0xff]  ;;  %v15076_v30 = vld [vmem:[#allocation4 + $0x10a0] sm:$0xff] }
 0x1f2   :  { %9367 = vmatpush.bf16.msrb.mxu1 %v15039_v25  ;;  %9336 = vmatmul.bf16.vlgmr.msra.gmra.mxu2 %v2216_v29  ;;  %v15117_v8 = vld [vmem:[#allocation4 + $0x11e8] sm:$0xff] }
 0x1f3   :  { %9380 = vmatpush.bf16.msrb.mxu2 %v15047_v26  ;;  %9349 = vmatmul.bf16.vlgmr.msra.gmra.mxu3 %v2217_v31  ;;  %v15084_v31 = vld [vmem:[#allocation4 + $0x10e0] sm:$0xff] }
 0x1f4   :  { %9393 = vmatpush.bf16.msrb.mxu3 %v15055_v27  ;;  %v15060_v27 = vld [vmem:[#allocation4 + $0x1020] sm:$0xff] }
 0x1f5   :  { %9355 = vmatpush.bf16.msrb.mxu0 %v15030_v32  ;;  %v9129_v52 = vpop.f32.mrf.mxu2  ;;  %v9105_v55 = vpop.f32.mrf.mxu0 }
 0x1f6   :  { %9368 = vmatpush.bf16.msrb.mxu1 %v15038_v33  ;;  %v9130_v53 = vadd.f32 %v9129_v52, %v9117_v47  ;;  %v9142_v54 = vpop.f32.mrf.mxu3  ;;  %v9118_v59 = vpop.f32.mrf.mxu1  ;;  %v15059_v33 = vld [vmem:[#allocation4 + $0x1018] sm:$0xff]  ;;  %v15057_v47 = vld [vmem:[#allocation4 + $0x1008] sm:$0xff]  ;;  %v15072_v55 = vld [vmem:[#allocation4 + $0x1080] sm:$0xff] }
 0x1f7   :  { %9381 = vmatpush.bf16.msrb.mxu2 %v15046_v34  ;;  %v15067_v34 = vld [vmem:[#allocation4 + $0x1058] sm:$0xff] }
 0x1f8   :  { %9394 = vmatpush.bf16.msrb.mxu3 %v15054_v35  ;;  %v15764_v56 = vadd.f32 %v9142_v54, %v9130_v53  ;;  %v15075_v35 = vld [vmem:[#allocation4 + $0x1098] sm:$0xff]  ;;  %v15056_v53 = vld [vmem:[#allocation4 + $0x1000] sm:$0xff] }
 0x1f9   :  { %9356 = vmatpush.bf16.msrb.mxu0 %v15029_v36  ;;  %v15083_v36 = vld [vmem:[#allocation4 + $0x10d8] sm:$0xff]  ;;  %v15064_v54 = vld [vmem:[#allocation4 + $0x1040] sm:$0xff] }
 0x1fa   :  { %9369 = vmatpush.bf16.msrb.mxu1 %v15037_v37  ;;  %v15111_v59 = vld [vmem:[#allocation4 + $0x11b8] sm:$0xff] }
 0x1fb   :  { %9382 = vmatpush.bf16.msrb.mxu2 %v15045_v38 }
 0x1fc   :  { %9395 = vmatpush.bf16.msrb.mxu3 %v15053_v39 }
 0x1fd   :  { %9357 = vmatpush.bf16.msrb.mxu0 %v15028_v42  ;;  %v9131_v4 = vpop.f32.mrf.mxu2  ;;  %v15058_v42 = vld [vmem:[#allocation4 + $0x1010] sm:$0xff] }
 0x1fe   :  { %9370 = vmatpush.bf16.msrb.mxu1 %v15036_v43  ;;  %v9144_v7 = vpop.f32.mrf.mxu3  ;;  %v15066_v43 = vld [vmem:[#allocation4 + $0x1050] sm:$0xff] }
 0x1ff   :  { %9383 = vmatpush.bf16.msrb.mxu2 %v15044_v45  ;;  %v15074_v45 = vld [vmem:[#allocation4 + $0x1090] sm:$0xff]  ;;  %v15109_v7 = vld [vmem:[#allocation4 + $0x11a8] sm:$0xff] }
 0x200   :  { %9396 = vmatpush.bf16.msrb.mxu3 %v15052_v46  ;;  %v15082_v46 = vld [vmem:[#allocation4 + $0x10d0] sm:$0xff] }
 0x201   :  { %9358 = vmatpush.bf16.msrb.mxu0 %v15027_v48  ;;  %v15065_v48 = vld [vmem:[#allocation4 + $0x1048] sm:$0xff]  ;;  %v15118_v4 = vld [vmem:[#allocation4 + $0x11f0] sm:$0xff] }
 0x202   :  { %9371 = vmatpush.bf16.msrb.mxu1 %v15035_v49  ;;  %v15073_v49 = vld [vmem:[#allocation4 + $0x1088] sm:$0xff] }
 0x203   :  { %9384 = vmatpush.bf16.msrb.mxu2 %v15043_v50  ;;  %v15081_v50 = vld [vmem:[#allocation4 + $0x10c8] sm:$0xff] }
 0x204   :  { %9397 = vmatpush.bf16.msrb.mxu3 %v15051_v51 }
 0x205   :  { %9359 = vmatpush.bf16.msrb.mxu0 %v15026_v57  ;;  %v15095_v57 = vld [vmem:[#allocation4 + $0x1138] sm:$0xff] }
 0x206   :  { %9372 = vmatpush.bf16.msrb.mxu1 %v15034_v58  ;;  %v15103_v58 = vld [vmem:[#allocation4 + $0x1178] sm:$0xff] }
 0x207   :  { %9385 = vmatpush.bf16.msrb.mxu2 %v15042_v60  ;;  %v15119_v60 = vld [vmem:[#allocation4 + $0x11f8] sm:$0xff] }
 0x208   :  { %9398 = vmatpush.bf16.msrb.mxu3 %v15050_v61  ;;  %v2224_v61 = vld [vmem:[#allocation1] sm:$0xff] }
 0x209   :  { %9360 = vmatpush.bf16.msrb.mxu0 %v15025_v62  ;;  %v2226_v62 = vld [vmem:[#allocation1 + $0x12] sm:$0xff] }
 0x20a   :  { %9373 = vmatpush.bf16.msrb.mxu1 %v15033_v63  ;;  %v2225_v63 = vld [vmem:[#allocation1 + $0x9] sm:$0xff] }
 0x20b   :  { %9386 = vmatpush.bf16.msrb.mxu2 %v15041_v0  ;;  %v2227_v0 = vld [vmem:[#allocation1 + $0x1b] sm:$0xff] }
 0x20c   :  { %9399 = vmatpush.bf16.msrb.mxu3 %v15049_v1  ;;  %v15094_v1 = vld [vmem:[#allocation4 + $0x1130] sm:$0xff] }
 0x20d   :  { %9361 = vmatpush.bf16.msrb.mxu0 %v15024_v9  ;;  %v9155_v25 = vpop.f32.mrf.mxu0 }
 0x20e   :  { %9374 = vmatpush.bf16.msrb.mxu1 %v15032_v10  ;;  %v9156_v26 = vadd.f32 %v9155_v25, %v15764_v56  ;;  %v9168_v29 = vpop.f32.mrf.mxu1  ;;  %v15080_v56 = vld [vmem:[#allocation4 + $0x10c0] sm:$0xff] }
 0x20f   :  { %9387 = vmatpush.bf16.msrb.mxu2 %v15040_v11  ;;  %v15092_v11 = vld [vmem:[#allocation4 + $0x1120] sm:$0xff] }
 0x210   :  { %9400 = vmatpush.bf16.msrb.mxu3 %v15048_v12  ;;  %9362 = vmatmul.bf16.vlgmr.msrb.gmra.mxu0 %v2218_v2  ;;  %v9169_v32 = vadd.f32 %v9168_v29, %v9156_v26  ;;  %v15102_v2 = vld [vmem:[#allocation4 + $0x1170] sm:$0xff]  ;;  %v15100_v12 = vld [vmem:[#allocation4 + $0x1160] sm:$0xff] }
 0x211   :  { %9406 = vmatpush.bf16.msra.mxu0 %v15063_v13  ;;  %9375 = vmatmul.bf16.vlgmr.msrb.gmra.mxu1 %v2219_v5  ;;  %v15093_v5 = vld [vmem:[#allocation4 + $0x1128] sm:$0xff]  ;;  %v15090_v26 = vld [vmem:[#allocation4 + $0x1110] sm:$0xff] }
 0x212   :  { %9419 = vmatpush.bf16.msra.mxu1 %v15071_v14  ;;  %9388 = vmatmul.bf16.vlgmr.msrb.gmra.mxu2 %v2220_v3  ;;  %v15110_v3 = vld [vmem:[#allocation4 + $0x11b0] sm:$0xff]  ;;  %v15108_v14 = vld [vmem:[#allocation4 + $0x11a0] sm:$0xff] }
 0x213   :  { %9432 = vmatpush.bf16.msra.mxu2 %v15079_v15  ;;  %9401 = vmatmul.bf16.vlgmr.msrb.gmra.mxu3 %v2221_v6  ;;  %v15101_v6 = vld [vmem:[#allocation4 + $0x1168] sm:$0xff]  ;;  %v15116_v15 = vld [vmem:[#allocation4 + $0x11e0] sm:$0xff]  ;;  %v15106_v29 = vld [vmem:[#allocation4 + $0x1190] sm:$0xff] }
 0x214   :  { %9445 = vmatpush.bf16.msra.mxu3 %v15087_v16 }
 0x215   :  { %9407 = vmatpush.bf16.msra.mxu0 %v15062_v17  ;;  %v9181_v37 = vpop.f32.mrf.mxu2  ;;  %v9157_v40 = vpop.f32.mrf.mxu0  ;;  %v15091_v17 = vld [vmem:[#allocation4 + $0x1118] sm:$0xff] }
 0x216   :  { %9420 = vmatpush.bf16.msra.mxu1 %v15070_v18  ;;  %v9182_v38 = vadd.f32 %v9181_v37, %v9169_v32  ;;  %v9194_v39 = vpop.f32.mrf.mxu3  ;;  %v9170_v44 = vpop.f32.mrf.mxu1  ;;  %v15099_v18 = vld [vmem:[#allocation4 + $0x1158] sm:$0xff]  ;;  %v15097_v32 = vld [vmem:[#allocation4 + $0x1148] sm:$0xff] }
 0x217   :  { %9433 = vmatpush.bf16.msra.mxu2 %v15078_v19  ;;  %v15107_v19 = vld [vmem:[#allocation4 + $0x1198] sm:$0xff]  ;;  %v15104_v44 = vld [vmem:[#allocation4 + $0x1180] sm:$0xff] }
 0x218   :  { %9446 = vmatpush.bf16.msra.mxu3 %v15086_v20  ;;  %v9195_v41 = vadd.f32 %v9194_v39, %v9182_v38  ;;  %v15115_v20 = vld [vmem:[#allocation4 + $0x11d8] sm:$0xff]  ;;  %v2229_v38 = vld [vmem:[#allocation1 + $0x2d] sm:$0xff] }
 0x219   :  { %9408 = vmatpush.bf16.msra.mxu0 %v15061_v21  ;;  %v2231_v39 = vld [vmem:[#allocation1 + $0x3f] sm:$0xff] }
 0x21a   :  { %9421 = vmatpush.bf16.msra.mxu1 %v15069_v22 }
 0x21b   :  { %9434 = vmatpush.bf16.msra.mxu2 %v15077_v23 }
 0x21c   :  { %9447 = vmatpush.bf16.msra.mxu3 %v15085_v24 }
 0x21d   :  { %9409 = vmatpush.bf16.msra.mxu0 %v15060_v27  ;;  %v9183_v51 = vpop.f32.mrf.mxu2  ;;  %v15098_v27 = vld [vmem:[#allocation4 + $0x1150] sm:$0xff] }
 0x21e   :  { %9422 = vmatpush.bf16.msra.mxu1 %v15068_v28  ;;  %v9196_v52 = vpop.f32.mrf.mxu3  ;;  %v15134_v51 = vld [vmem:[#allocation4 + $0x1270] sm:$0xff] }
 0x21f   :  { %9435 = vmatpush.bf16.msra.mxu2 %v15076_v30  ;;  %v15114_v30 = vld [vmem:[#allocation4 + $0x11d0] sm:$0xff] }
 0x220   :  { %9448 = vmatpush.bf16.msra.mxu3 %v15084_v31  ;;  %v15089_v31 = vld [vmem:[#allocation4 + $0x1108] sm:$0xff]  ;;  %v15142_v52 = vld [vmem:[#allocation4 + $0x12b0] sm:$0xff] }
 0x221   :  { %9410 = vmatpush.bf16.msra.mxu0 %v15059_v33  ;;  %v15105_v33 = vld [vmem:[#allocation4 + $0x1188] sm:$0xff] }
 0x222   :  { %9423 = vmatpush.bf16.msra.mxu1 %v15067_v34  ;;  %v15113_v34 = vld [vmem:[#allocation4 + $0x11c8] sm:$0xff] }
 0x223   :  { %9436 = vmatpush.bf16.msra.mxu2 %v15075_v35  ;;  %v2228_v35 = vld [vmem:[#allocation1 + $0x24] sm:$0xff] }
 0x224   :  { %9449 = vmatpush.bf16.msra.mxu3 %v15083_v36  ;;  %v2230_v36 = vld [vmem:[#allocation1 + $0x36] sm:$0xff] }
 0x225   :  { %9411 = vmatpush.bf16.msra.mxu0 %v15058_v42  ;;  %v15088_v42 = vld [vmem:[#allocation4 + $0x1100] sm:$0xff] }
 0x226   :  { %9424 = vmatpush.bf16.msra.mxu1 %v15066_v43  ;;  %v15096_v43 = vld [vmem:[#allocation4 + $0x1140] sm:$0xff] }
 0x227   :  { %9437 = vmatpush.bf16.msra.mxu2 %v15074_v45  ;;  %v15112_v45 = vld [vmem:[#allocation4 + $0x11c0] sm:$0xff] }
 0x228   :  { %9450 = vmatpush.bf16.msra.mxu3 %v15082_v46  ;;  %v15127_v46 = vld [vmem:[#allocation4 + $0x1238] sm:$0xff] }
 0x229   :  { %9412 = vmatpush.bf16.msra.mxu0 %v15057_v47  ;;  %v15135_v47 = vld [vmem:[#allocation4 + $0x1278] sm:$0xff] }
 0x22a   :  { %9425 = vmatpush.bf16.msra.mxu1 %v15065_v48  ;;  %v15143_v48 = vld [vmem:[#allocation4 + $0x12b8] sm:$0xff] }
 0x22b   :  { %9438 = vmatpush.bf16.msra.mxu2 %v15073_v49  ;;  %v15151_v49 = vld [vmem:[#allocation4 + $0x12f8] sm:$0xff] }
 0x22c   :  { %9451 = vmatpush.bf16.msra.mxu3 %v15081_v50  ;;  %v15126_v50 = vld [vmem:[#allocation4 + $0x1230] sm:$0xff] }
 0x22d   :  { %9413 = vmatpush.bf16.msra.mxu0 %v15056_v53  ;;  %v9207_v9 = vpop.f32.mrf.mxu0  ;;  %v15150_v53 = vld [vmem:[#allocation4 + $0x12f0] sm:$0xff] }
 0x22e   :  { %9426 = vmatpush.bf16.msra.mxu1 %v15064_v54  ;;  %v9208_v10 = vadd.f32 %v9207_v9, %v9195_v41  ;;  %v9220_v13 = vpop.f32.mrf.mxu1  ;;  %v87_v41 = vld [vmem:[%s15851_s0 + $0x48] sm:$0xff]  ;;  %v15125_v54 = vld [vmem:[#allocation4 + $0x1228] sm:$0xff] }
 0x22f   :  { %9439 = vmatpush.bf16.msra.mxu2 %v15072_v55  ;;  %2233 = vst [vmem:[#allocation1] ss:$9 sm:$0xff] %v87_v41  ;;  %v15133_v55 = vld [vmem:[#allocation4 + $0x1268] sm:$0xff] }
 0x230   :  { %9452 = vmatpush.bf16.msra.mxu3 %v15080_v56  ;;  %9414 = vmatmul.bf16.vlgmr.msra.gmra.mxu0 %v2224_v61  ;;  %v9221_v16 = vadd.f32 %v9220_v13, %v9208_v10  ;;  %v15141_v56 = vld [vmem:[#allocation4 + $0x12a8] sm:$0xff]  ;;  %v15132_v61 = vld [vmem:[#allocation4 + $0x1260] sm:$0xff] }
 0x231   :  { %9458 = vmatpush.bf16.msrb.mxu0 %v15095_v57  ;;  %9427 = vmatmul.bf16.vlgmr.msra.gmra.mxu1 %v2225_v63  ;;  %v15149_v57 = vld [vmem:[#allocation4 + $0x12e8] sm:$0xff]  ;;  %v15140_v63 = vld [vmem:[#allocation4 + $0x12a0] sm:$0xff] }
 0x232   :  { %9471 = vmatpush.bf16.msrb.mxu1 %v15103_v58  ;;  %9440 = vmatmul.bf16.vlgmr.msra.gmra.mxu2 %v2226_v62  ;;  %v15181_v41 = vld [vmem:[#allocation4 + $0x13e8] sm:$0xff] }
 0x233   :  { %9484 = vmatpush.bf16.msrb.mxu2 %v15111_v59  ;;  %9453 = vmatmul.bf16.vlgmr.msra.gmra.mxu3 %v2227_v0  ;;  %v15148_v0 = vld [vmem:[#allocation4 + $0x12e0] sm:$0xff] }
 0x234   :  { %9497 = vmatpush.bf16.msrb.mxu3 %v15119_v60  ;;  %v15124_v60 = vld [vmem:[#allocation4 + $0x1220] sm:$0xff] }
 0x235   :  { %9459 = vmatpush.bf16.msrb.mxu0 %v15094_v1  ;;  %v9233_v21 = vpop.f32.mrf.mxu2  ;;  %v9209_v24 = vpop.f32.mrf.mxu0 }
 0x236   :  { %9472 = vmatpush.bf16.msrb.mxu1 %v15102_v2  ;;  %v9234_v22 = vadd.f32 %v9233_v21, %v9221_v16  ;;  %v9246_v23 = vpop.f32.mrf.mxu3  ;;  %v9222_v28 = vpop.f32.mrf.mxu1  ;;  %v15123_v2 = vld [vmem:[#allocation4 + $0x1218] sm:$0xff]  ;;  %v15121_v16 = vld [vmem:[#allocation4 + $0x1208] sm:$0xff]  ;;  %v15136_v24 = vld [vmem:[#allocation4 + $0x1280] sm:$0xff] }
 0x237   :  { %9485 = vmatpush.bf16.msrb.mxu2 %v15110_v3  ;;  %v15131_v3 = vld [vmem:[#allocation4 + $0x1258] sm:$0xff] }
 0x238   :  { %9498 = vmatpush.bf16.msrb.mxu3 %v15118_v4  ;;  %v15770_v25 = vadd.f32 %v9246_v23, %v9234_v22  ;;  %v15139_v4 = vld [vmem:[#allocation4 + $0x1298] sm:$0xff]  ;;  %v15120_v22 = vld [vmem:[#allocation4 + $0x1200] sm:$0xff] }
 0x239   :  { %9460 = vmatpush.bf16.msrb.mxu0 %v15093_v5  ;;  %v15147_v5 = vld [vmem:[#allocation4 + $0x12d8] sm:$0xff]  ;;  %v15128_v23 = vld [vmem:[#allocation4 + $0x1240] sm:$0xff] }
 0x23a   :  { %9473 = vmatpush.bf16.msrb.mxu1 %v15101_v6  ;;  %v15175_v28 = vld [vmem:[#allocation4 + $0x13b8] sm:$0xff] }
 0x23b   :  { %9486 = vmatpush.bf16.msrb.mxu2 %v15109_v7 }
 0x23c   :  { %9499 = vmatpush.bf16.msrb.mxu3 %v15117_v8 }
 0x23d   :  { %9461 = vmatpush.bf16.msrb.mxu0 %v15092_v11  ;;  %v9235_v37 = vpop.f32.mrf.mxu2  ;;  %v15122_v11 = vld [vmem:[#allocation4 + $0x1210] sm:$0xff] }
 0x23e   :  { %9474 = vmatpush.bf16.msrb.mxu1 %v15100_v12  ;;  %v9248_v40 = vpop.f32.mrf.mxu3  ;;  %v15130_v12 = vld [vmem:[#allocation4 + $0x1250] sm:$0xff] }
 0x23f   :  { %9487 = vmatpush.bf16.msrb.mxu2 %v15108_v14  ;;  %v15138_v14 = vld [vmem:[#allocation4 + $0x1290] sm:$0xff]  ;;  %v15173_v40 = vld [vmem:[#allocation4 + $0x13a8] sm:$0xff] }
 0x240   :  { %9500 = vmatpush.bf16.msrb.mxu3 %v15116_v15  ;;  %v15146_v15 = vld [vmem:[#allocation4 + $0x12d0] sm:$0xff] }
 0x241   :  { %9462 = vmatpush.bf16.msrb.mxu0 %v15091_v17  ;;  %v15129_v17 = vld [vmem:[#allocation4 + $0x1248] sm:$0xff]  ;;  %v15182_v37 = vld [vmem:[#allocation4 + $0x13f0] sm:$0xff] }
 0x242   :  { %9475 = vmatpush.bf16.msrb.mxu1 %v15099_v18  ;;  %v15137_v18 = vld [vmem:[#allocation4 + $0x1288] sm:$0xff] }
 0x243   :  { %9488 = vmatpush.bf16.msrb.mxu2 %v15107_v19  ;;  %v15145_v19 = vld [vmem:[#allocation4 + $0x12c8] sm:$0xff] }
 0x244   :  { %9501 = vmatpush.bf16.msrb.mxu3 %v15115_v20 }
 0x245   :  { %9463 = vmatpush.bf16.msrb.mxu0 %v15090_v26  ;;  %v15159_v26 = vld [vmem:[#allocation4 + $0x1338] sm:$0xff] }
 0x246   :  { %9476 = vmatpush.bf16.msrb.mxu1 %v15098_v27  ;;  %v15167_v27 = vld [vmem:[#allocation4 + $0x1378] sm:$0xff] }
 0x247   :  { %9489 = vmatpush.bf16.msrb.mxu2 %v15106_v29  ;;  %v15183_v29 = vld [vmem:[#allocation4 + $0x13f8] sm:$0xff] }
 0x248   :  { %9502 = vmatpush.bf16.msrb.mxu3 %v15114_v30  ;;  %v2234_v30 = vld [vmem:[#allocation1] sm:$0xff] }
 0x249   :  { %9464 = vmatpush.bf16.msrb.mxu0 %v15089_v31  ;;  %v2236_v31 = vld [vmem:[#allocation1 + $0x12] sm:$0xff] }
 0x24a   :  { %9477 = vmatpush.bf16.msrb.mxu1 %v15097_v32  ;;  %v2235_v32 = vld [vmem:[#allocation1 + $0x9] sm:$0xff] }
 0x24b   :  { %9490 = vmatpush.bf16.msrb.mxu2 %v15105_v33  ;;  %v2237_v33 = vld [vmem:[#allocation1 + $0x1b] sm:$0xff] }
 0x24c   :  { %9503 = vmatpush.bf16.msrb.mxu3 %v15113_v34  ;;  %v15158_v34 = vld [vmem:[#allocation4 + $0x1330] sm:$0xff] }
 0x24d   :  { %9465 = vmatpush.bf16.msrb.mxu0 %v15088_v42  ;;  %v9259_v58 = vpop.f32.mrf.mxu0 }
 0x24e   :  { %9478 = vmatpush.bf16.msrb.mxu1 %v15096_v43  ;;  %v9260_v59 = vadd.f32 %v9259_v58, %v15770_v25  ;;  %v9272_v62 = vpop.f32.mrf.mxu1  ;;  %v15144_v25 = vld [vmem:[#allocation4 + $0x12c0] sm:$0xff] }
 0x24f   :  { %9491 = vmatpush.bf16.msrb.mxu2 %v15104_v44  ;;  %v15156_v44 = vld [vmem:[#allocation4 + $0x1320] sm:$0xff] }
 0x250   :  { %9504 = vmatpush.bf16.msrb.mxu3 %v15112_v45  ;;  %9466 = vmatmul.bf16.vlgmr.msrb.gmra.mxu0 %v2228_v35  ;;  %v9273_v1 = vadd.f32 %v9272_v62, %v9260_v59  ;;  %v15166_v35 = vld [vmem:[#allocation4 + $0x1370] sm:$0xff]  ;;  %v15164_v45 = vld [vmem:[#allocation4 + $0x1360] sm:$0xff] }
 0x251   :  { %9510 = vmatpush.bf16.msra.mxu0 %v15127_v46  ;;  %9479 = vmatmul.bf16.vlgmr.msrb.gmra.mxu1 %v2229_v38  ;;  %v15157_v38 = vld [vmem:[#allocation4 + $0x1328] sm:$0xff]  ;;  %v15154_v59 = vld [vmem:[#allocation4 + $0x1310] sm:$0xff] }
 0x252   :  { %9523 = vmatpush.bf16.msra.mxu1 %v15135_v47  ;;  %9492 = vmatmul.bf16.vlgmr.msrb.gmra.mxu2 %v2230_v36  ;;  %v15174_v36 = vld [vmem:[#allocation4 + $0x13b0] sm:$0xff]  ;;  %v15172_v47 = vld [vmem:[#allocation4 + $0x13a0] sm:$0xff] }
 0x253   :  { %9536 = vmatpush.bf16.msra.mxu2 %v15143_v48  ;;  %9505 = vmatmul.bf16.vlgmr.msrb.gmra.mxu3 %v2231_v39  ;;  %v15165_v39 = vld [vmem:[#allocation4 + $0x1368] sm:$0xff]  ;;  %v15180_v48 = vld [vmem:[#allocation4 + $0x13e0] sm:$0xff]  ;;  %v15170_v62 = vld [vmem:[#allocation4 + $0x1390] sm:$0xff] }
 0x254   :  { %9549 = vmatpush.bf16.msra.mxu3 %v15151_v49 }
 0x255   :  { %9511 = vmatpush.bf16.msra.mxu0 %v15126_v50  ;;  %v9285_v6 = vpop.f32.mrf.mxu2  ;;  %v9261_v9 = vpop.f32.mrf.mxu0  ;;  %v15155_v50 = vld [vmem:[#allocation4 + $0x1318] sm:$0xff] }
 0x256   :  { %9524 = vmatpush.bf16.msra.mxu1 %v15134_v51  ;;  %v9286_v7 = vadd.f32 %v9285_v6, %v9273_v1  ;;  %v9298_v8 = vpop.f32.mrf.mxu3  ;;  %v9274_v13 = vpop.f32.mrf.mxu1  ;;  %v15163_v51 = vld [vmem:[#allocation4 + $0x1358] sm:$0xff]  ;;  %v15161_v1 = vld [vmem:[#allocation4 + $0x1348] sm:$0xff] }
 0x257   :  { %9537 = vmatpush.bf16.msra.mxu2 %v15142_v52  ;;  %v15171_v52 = vld [vmem:[#allocation4 + $0x1398] sm:$0xff]  ;;  %v15168_v13 = vld [vmem:[#allocation4 + $0x1380] sm:$0xff] }
 0x258   :  { %9550 = vmatpush.bf16.msra.mxu3 %v15150_v53  ;;  %v9299_v10 = vadd.f32 %v9298_v8, %v9286_v7  ;;  %v15179_v53 = vld [vmem:[#allocation4 + $0x13d8] sm:$0xff]  ;;  %v2239_v7 = vld [vmem:[#allocation1 + $0x2d] sm:$0xff] }
 0x259   :  { %9512 = vmatpush.bf16.msra.mxu0 %v15125_v54  ;;  %v2241_v8 = vld [vmem:[#allocation1 + $0x3f] sm:$0xff] }
 0x25a   :  { %9525 = vmatpush.bf16.msra.mxu1 %v15133_v55 }
 0x25b   :  { %9538 = vmatpush.bf16.msra.mxu2 %v15141_v56 }
 0x25c   :  { %9551 = vmatpush.bf16.msra.mxu3 %v15149_v57 }
 0x25d   :  { %9513 = vmatpush.bf16.msra.mxu0 %v15124_v60  ;;  %v9287_v20 = vpop.f32.mrf.mxu2  ;;  %v15162_v60 = vld [vmem:[#allocation4 + $0x1350] sm:$0xff] }
 0x25e   :  { %9526 = vmatpush.bf16.msra.mxu1 %v15132_v61  ;;  %v9300_v21 = vpop.f32.mrf.mxu3  ;;  %v15198_v20 = vld [vmem:[#allocation4 + $0x1470] sm:$0xff] }
 0x25f   :  { %9539 = vmatpush.bf16.msra.mxu2 %v15140_v63  ;;  %v15178_v63 = vld [vmem:[#allocation4 + $0x13d0] sm:$0xff] }
 0x260   :  { %9552 = vmatpush.bf16.msra.mxu3 %v15148_v0  ;;  %v15153_v0 = vld [vmem:[#allocation4 + $0x1308] sm:$0xff]  ;;  %v15206_v21 = vld [vmem:[#allocation4 + $0x14b0] sm:$0xff] }
 0x261   :  { %9514 = vmatpush.bf16.msra.mxu0 %v15123_v2  ;;  %v15169_v2 = vld [vmem:[#allocation4 + $0x1388] sm:$0xff] }
 0x262   :  { %9527 = vmatpush.bf16.msra.mxu1 %v15131_v3  ;;  %v15177_v3 = vld [vmem:[#allocation4 + $0x13c8] sm:$0xff] }
 0x263   :  { %9540 = vmatpush.bf16.msra.mxu2 %v15139_v4  ;;  %v2238_v4 = vld [vmem:[#allocation1 + $0x24] sm:$0xff] }
 0x264   :  { %9553 = vmatpush.bf16.msra.mxu3 %v15147_v5  ;;  %v2240_v5 = vld [vmem:[#allocation1 + $0x36] sm:$0xff] }
 0x265   :  { %9515 = vmatpush.bf16.msra.mxu0 %v15122_v11  ;;  %v15152_v11 = vld [vmem:[#allocation4 + $0x1300] sm:$0xff] }
 0x266   :  { %9528 = vmatpush.bf16.msra.mxu1 %v15130_v12  ;;  %v15160_v12 = vld [vmem:[#allocation4 + $0x1340] sm:$0xff] }
 0x267   :  { %9541 = vmatpush.bf16.msra.mxu2 %v15138_v14  ;;  %v15176_v14 = vld [vmem:[#allocation4 + $0x13c0] sm:$0xff] }
 0x268   :  { %9554 = vmatpush.bf16.msra.mxu3 %v15146_v15  ;;  %v15191_v15 = vld [vmem:[#allocation4 + $0x1438] sm:$0xff] }
 0x269   :  { %9516 = vmatpush.bf16.msra.mxu0 %v15121_v16  ;;  %v15199_v16 = vld [vmem:[#allocation4 + $0x1478] sm:$0xff] }
 0x26a   :  { %9529 = vmatpush.bf16.msra.mxu1 %v15129_v17  ;;  %v15207_v17 = vld [vmem:[#allocation4 + $0x14b8] sm:$0xff] }
 0x26b   :  { %9542 = vmatpush.bf16.msra.mxu2 %v15137_v18  ;;  %v15215_v18 = vld [vmem:[#allocation4 + $0x14f8] sm:$0xff] }
 0x26c   :  { %9555 = vmatpush.bf16.msra.mxu3 %v15145_v19  ;;  %v15190_v19 = vld [vmem:[#allocation4 + $0x1430] sm:$0xff] }
 0x26d   :  { %9517 = vmatpush.bf16.msra.mxu0 %v15120_v22  ;;  %v9311_v42 = vpop.f32.mrf.mxu0  ;;  %v15214_v22 = vld [vmem:[#allocation4 + $0x14f0] sm:$0xff] }
 0x26e   :  { %9530 = vmatpush.bf16.msra.mxu1 %v15128_v23  ;;  %v9312_v43 = vadd.f32 %v9311_v42, %v9299_v10  ;;  %v9324_v46 = vpop.f32.mrf.mxu1  ;;  %v88_v10 = vld [vmem:[%s15851_s0 + $0x50] sm:$0xff] }
 0x26f   :  { %9543 = vmatpush.bf16.msra.mxu2 %v15136_v24  ;;  %2243 = vst [vmem:[#allocation1] ss:$9 sm:$0xff] %v88_v10  ;;  %v15189_v23 = vld [vmem:[#allocation4 + $0x1428] sm:$0xff] }
 0x270   :  { %9556 = vmatpush.bf16.msra.mxu3 %v15144_v25  ;;  %9518 = vmatmul.bf16.vlgmr.msra.gmra.mxu0 %v2234_v30  ;;  %v9325_v49 = vadd.f32 %v9324_v46, %v9312_v43  ;;  %v15197_v24 = vld [vmem:[#allocation4 + $0x1468] sm:$0xff]  ;;  %v15196_v30 = vld [vmem:[#allocation4 + $0x1460] sm:$0xff] }
 0x271   :  { %9562 = vmatpush.bf16.msrb.mxu0 %v15159_v26  ;;  %9531 = vmatmul.bf16.vlgmr.msra.gmra.mxu1 %v2235_v32  ;;  %v15205_v25 = vld [vmem:[#allocation4 + $0x14a8] sm:$0xff]  ;;  %v15204_v32 = vld [vmem:[#allocation4 + $0x14a0] sm:$0xff] }
 0x272   :  { %9575 = vmatpush.bf16.msrb.mxu1 %v15167_v27  ;;  %9544 = vmatmul.bf16.vlgmr.msra.gmra.mxu2 %v2236_v31  ;;  %v15213_v26 = vld [vmem:[#allocation4 + $0x14e8] sm:$0xff] }
 0x273   :  { %9588 = vmatpush.bf16.msrb.mxu2 %v15175_v28  ;;  %9557 = vmatmul.bf16.vlgmr.msra.gmra.mxu3 %v2237_v33  ;;  %v15212_v33 = vld [vmem:[#allocation4 + $0x14e0] sm:$0xff]  ;;  %v15245_v10 = vld [vmem:[#allocation4 + $0x15e8] sm:$0xff] }
 0x274   :  { %9601 = vmatpush.bf16.msrb.mxu3 %v15183_v29  ;;  %v15188_v29 = vld [vmem:[#allocation4 + $0x1420] sm:$0xff] }
 0x275   :  { %9563 = vmatpush.bf16.msrb.mxu0 %v15158_v34  ;;  %v9337_v54 = vpop.f32.mrf.mxu2  ;;  %v9313_v57 = vpop.f32.mrf.mxu0 }
 0x276   :  { %9576 = vmatpush.bf16.msrb.mxu1 %v15166_v35  ;;  %v9338_v55 = vadd.f32 %v9337_v54, %v9325_v49  ;;  %v9350_v56 = vpop.f32.mrf.mxu3  ;;  %v9326_v61 = vpop.f32.mrf.mxu1  ;;  %v15187_v35 = vld [vmem:[#allocation4 + $0x1418] sm:$0xff]  ;;  %v15185_v49 = vld [vmem:[#allocation4 + $0x1408] sm:$0xff]  ;;  %v15200_v57 = vld [vmem:[#allocation4 + $0x1480] sm:$0xff] }
 0x277   :  { %9589 = vmatpush.bf16.msrb.mxu2 %v15174_v36  ;;  %v15195_v36 = vld [vmem:[#allocation4 + $0x1458] sm:$0xff] }
 0x278   :  { %9602 = vmatpush.bf16.msrb.mxu3 %v15182_v37  ;;  %v15776_v58 = vadd.f32 %v9350_v56, %v9338_v55  ;;  %v15203_v37 = vld [vmem:[#allocation4 + $0x1498] sm:$0xff]  ;;  %v15184_v55 = vld [vmem:[#allocation4 + $0x1400] sm:$0xff] }
 0x279   :  { %9564 = vmatpush.bf16.msrb.mxu0 %v15157_v38  ;;  %v15211_v38 = vld [vmem:[#allocation4 + $0x14d8] sm:$0xff]  ;;  %v15192_v56 = vld [vmem:[#allocation4 + $0x1440] sm:$0xff] }
 0x27a   :  { %9577 = vmatpush.bf16.msrb.mxu1 %v15165_v39  ;;  %v15239_v61 = vld [vmem:[#allocation4 + $0x15b8] sm:$0xff] }
 0x27b   :  { %9590 = vmatpush.bf16.msrb.mxu2 %v15173_v40 }
 0x27c   :  { %9603 = vmatpush.bf16.msrb.mxu3 %v15181_v41 }
 0x27d   :  { %9565 = vmatpush.bf16.msrb.mxu0 %v15156_v44  ;;  %v9339_v6 = vpop.f32.mrf.mxu2  ;;  %v15186_v44 = vld [vmem:[#allocation4 + $0x1410] sm:$0xff] }
 0x27e   :  { %9578 = vmatpush.bf16.msrb.mxu1 %v15164_v45  ;;  %v9352_v9 = vpop.f32.mrf.mxu3  ;;  %v15194_v45 = vld [vmem:[#allocation4 + $0x1450] sm:$0xff] }
 0x27f   :  { %9591 = vmatpush.bf16.msrb.mxu2 %v15172_v47  ;;  %v15202_v47 = vld [vmem:[#allocation4 + $0x1490] sm:$0xff]  ;;  %v15237_v9 = vld [vmem:[#allocation4 + $0x15a8] sm:$0xff] }
 0x280   :  { %9604 = vmatpush.bf16.msrb.mxu3 %v15180_v48  ;;  %v15210_v48 = vld [vmem:[#allocation4 + $0x14d0] sm:$0xff] }
 0x281   :  { %9566 = vmatpush.bf16.msrb.mxu0 %v15155_v50  ;;  %v15193_v50 = vld [vmem:[#allocation4 + $0x1448] sm:$0xff]  ;;  %v15246_v6 = vld [vmem:[#allocation4 + $0x15f0] sm:$0xff] }
 0x282   :  { %9579 = vmatpush.bf16.msrb.mxu1 %v15163_v51  ;;  %v15201_v51 = vld [vmem:[#allocation4 + $0x1488] sm:$0xff] }
 0x283   :  { %9592 = vmatpush.bf16.msrb.mxu2 %v15171_v52  ;;  %v15209_v52 = vld [vmem:[#allocation4 + $0x14c8] sm:$0xff] }
 0x284   :  { %9605 = vmatpush.bf16.msrb.mxu3 %v15179_v53 }
 0x285   :  { %9567 = vmatpush.bf16.msrb.mxu0 %v15154_v59  ;;  %v15223_v59 = vld [vmem:[#allocation4 + $0x1538] sm:$0xff] }
 0x286   :  { %9580 = vmatpush.bf16.msrb.mxu1 %v15162_v60  ;;  %v15231_v60 = vld [vmem:[#allocation4 + $0x1578] sm:$0xff] }
 0x287   :  { %9593 = vmatpush.bf16.msrb.mxu2 %v15170_v62  ;;  %v15247_v62 = vld [vmem:[#allocation4 + $0x15f8] sm:$0xff] }
 0x288   :  { %9606 = vmatpush.bf16.msrb.mxu3 %v15178_v63  ;;  %v2244_v63 = vld [vmem:[#allocation1] sm:$0xff] }
 0x289   :  { %9568 = vmatpush.bf16.msrb.mxu0 %v15153_v0  ;;  %v2246_v0 = vld [vmem:[#allocation1 + $0x12] sm:$0xff] }
 0x28a   :  { %9581 = vmatpush.bf16.msrb.mxu1 %v15161_v1  ;;  %v2245_v1 = vld [vmem:[#allocation1 + $0x9] sm:$0xff] }
 0x28b   :  { %9594 = vmatpush.bf16.msrb.mxu2 %v15169_v2  ;;  %v2247_v2 = vld [vmem:[#allocation1 + $0x1b] sm:$0xff] }
 0x28c   :  { %9607 = vmatpush.bf16.msrb.mxu3 %v15177_v3  ;;  %v15222_v3 = vld [vmem:[#allocation4 + $0x1530] sm:$0xff] }
 0x28d   :  { %9569 = vmatpush.bf16.msrb.mxu0 %v15152_v11  ;;  %v9363_v27 = vpop.f32.mrf.mxu0 }
 0x28e   :  { %9582 = vmatpush.bf16.msrb.mxu1 %v15160_v12  ;;  %v9364_v28 = vadd.f32 %v9363_v27, %v15776_v58  ;;  %v9376_v31 = vpop.f32.mrf.mxu1  ;;  %v15208_v58 = vld [vmem:[#allocation4 + $0x14c0] sm:$0xff] }
 0x28f   :  { %9595 = vmatpush.bf16.msrb.mxu2 %v15168_v13  ;;  %v15220_v13 = vld [vmem:[#allocation4 + $0x1520] sm:$0xff] }
 0x290   :  { %9608 = vmatpush.bf16.msrb.mxu3 %v15176_v14  ;;  %9570 = vmatmul.bf16.vlgmr.msrb.gmra.mxu0 %v2238_v4  ;;  %v9377_v34 = vadd.f32 %v9376_v31, %v9364_v28  ;;  %v15230_v4 = vld [vmem:[#allocation4 + $0x1570] sm:$0xff]  ;;  %v15228_v14 = vld [vmem:[#allocation4 + $0x1560] sm:$0xff] }
 0x291   :  { %9614 = vmatpush.bf16.msra.mxu0 %v15191_v15  ;;  %9583 = vmatmul.bf16.vlgmr.msrb.gmra.mxu1 %v2239_v7  ;;  %v15221_v7 = vld [vmem:[#allocation4 + $0x1528] sm:$0xff]  ;;  %v15218_v28 = vld [vmem:[#allocation4 + $0x1510] sm:$0xff] }
 0x292   :  { %9627 = vmatpush.bf16.msra.mxu1 %v15199_v16  ;;  %9596 = vmatmul.bf16.vlgmr.msrb.gmra.mxu2 %v2240_v5  ;;  %v15238_v5 = vld [vmem:[#allocation4 + $0x15b0] sm:$0xff]  ;;  %v15236_v16 = vld [vmem:[#allocation4 + $0x15a0] sm:$0xff] }
 0x293   :  { %9640 = vmatpush.bf16.msra.mxu2 %v15207_v17  ;;  %9609 = vmatmul.bf16.vlgmr.msrb.gmra.mxu3 %v2241_v8  ;;  %v15229_v8 = vld [vmem:[#allocation4 + $0x1568] sm:$0xff]  ;;  %v15244_v17 = vld [vmem:[#allocation4 + $0x15e0] sm:$0xff]  ;;  %v15234_v31 = vld [vmem:[#allocation4 + $0x1590] sm:$0xff] }
 0x294   :  { %9653 = vmatpush.bf16.msra.mxu3 %v15215_v18 }
 0x295   :  { %9615 = vmatpush.bf16.msra.mxu0 %v15190_v19  ;;  %v9389_v39 = vpop.f32.mrf.mxu2  ;;  %v9365_v42 = vpop.f32.mrf.mxu0  ;;  %v15219_v19 = vld [vmem:[#allocation4 + $0x1518] sm:$0xff] }
 0x296   :  { %9628 = vmatpush.bf16.msra.mxu1 %v15198_v20  ;;  %v9390_v40 = vadd.f32 %v9389_v39, %v9377_v34  ;;  %v9402_v41 = vpop.f32.mrf.mxu3  ;;  %v9378_v46 = vpop.f32.mrf.mxu1  ;;  %v15227_v20 = vld [vmem:[#allocation4 + $0x1558] sm:$0xff]  ;;  %v15225_v34 = vld [vmem:[#allocation4 + $0x1548] sm:$0xff] }
 0x297   :  { %9641 = vmatpush.bf16.msra.mxu2 %v15206_v21  ;;  %v15235_v21 = vld [vmem:[#allocation4 + $0x1598] sm:$0xff]  ;;  %v15232_v46 = vld [vmem:[#allocation4 + $0x1580] sm:$0xff] }
 0x298   :  { %9654 = vmatpush.bf16.msra.mxu3 %v15214_v22  ;;  %v9403_v43 = vadd.f32 %v9402_v41, %v9390_v40  ;;  %v15243_v22 = vld [vmem:[#allocation4 + $0x15d8] sm:$0xff]  ;;  %v2249_v40 = vld [vmem:[#allocation1 + $0x2d] sm:$0xff] }
 0x299   :  { %9616 = vmatpush.bf16.msra.mxu0 %v15189_v23  ;;  %v2251_v41 = vld [vmem:[#allocation1 + $0x3f] sm:$0xff] }
 0x29a   :  { %9629 = vmatpush.bf16.msra.mxu1 %v15197_v24 }
 0x29b   :  { %9642 = vmatpush.bf16.msra.mxu2 %v15205_v25 }
 0x29c   :  { %9655 = vmatpush.bf16.msra.mxu3 %v15213_v26 }
 0x29d   :  { %9617 = vmatpush.bf16.msra.mxu0 %v15188_v29  ;;  %v9391_v53 = vpop.f32.mrf.mxu2  ;;  %v15226_v29 = vld [vmem:[#allocation4 + $0x1550] sm:$0xff] }
 0x29e   :  { %9630 = vmatpush.bf16.msra.mxu1 %v15196_v30  ;;  %v9404_v54 = vpop.f32.mrf.mxu3  ;;  %v15262_v53 = vld [vmem:[#allocation4 + $0x1670] sm:$0xff] }
 0x29f   :  { %9643 = vmatpush.bf16.msra.mxu2 %v15204_v32  ;;  %v15242_v32 = vld [vmem:[#allocation4 + $0x15d0] sm:$0xff] }
 0x2a0   :  { %9656 = vmatpush.bf16.msra.mxu3 %v15212_v33  ;;  %v15217_v33 = vld [vmem:[#allocation4 + $0x1508] sm:$0xff]  ;;  %v15270_v54 = vld [vmem:[#allocation4 + $0x16b0] sm:$0xff] }
 0x2a1   :  { %9618 = vmatpush.bf16.msra.mxu0 %v15187_v35  ;;  %v15233_v35 = vld [vmem:[#allocation4 + $0x1588] sm:$0xff] }
 0x2a2   :  { %9631 = vmatpush.bf16.msra.mxu1 %v15195_v36  ;;  %v15241_v36 = vld [vmem:[#allocation4 + $0x15c8] sm:$0xff] }
 0x2a3   :  { %9644 = vmatpush.bf16.msra.mxu2 %v15203_v37  ;;  %v2248_v37 = vld [vmem:[#allocation1 + $0x24] sm:$0xff] }
 0x2a4   :  { %9657 = vmatpush.bf16.msra.mxu3 %v15211_v38  ;;  %v2250_v38 = vld [vmem:[#allocation1 + $0x36] sm:$0xff] }
 0x2a5   :  { %9619 = vmatpush.bf16.msra.mxu0 %v15186_v44  ;;  %v15216_v44 = vld [vmem:[#allocation4 + $0x1500] sm:$0xff] }
 0x2a6   :  { %9632 = vmatpush.bf16.msra.mxu1 %v15194_v45  ;;  %v15224_v45 = vld [vmem:[#allocation4 + $0x1540] sm:$0xff] }
 0x2a7   :  { %9645 = vmatpush.bf16.msra.mxu2 %v15202_v47  ;;  %v15240_v47 = vld [vmem:[#allocation4 + $0x15c0] sm:$0xff] }
 0x2a8   :  { %9658 = vmatpush.bf16.msra.mxu3 %v15210_v48  ;;  %v15255_v48 = vld [vmem:[#allocation4 + $0x1638] sm:$0xff] }
 0x2a9   :  { %9620 = vmatpush.bf16.msra.mxu0 %v15185_v49  ;;  %v15263_v49 = vld [vmem:[#allocation4 + $0x1678] sm:$0xff] }
 0x2aa   :  { %9633 = vmatpush.bf16.msra.mxu1 %v15193_v50  ;;  %v15271_v50 = vld [vmem:[#allocation4 + $0x16b8] sm:$0xff] }
 0x2ab   :  { %9646 = vmatpush.bf16.msra.mxu2 %v15201_v51  ;;  %v15279_v51 = vld [vmem:[#allocation4 + $0x16f8] sm:$0xff] }
 0x2ac   :  { %9659 = vmatpush.bf16.msra.mxu3 %v15209_v52  ;;  %v15254_v52 = vld [vmem:[#allocation4 + $0x1630] sm:$0xff] }
 0x2ad   :  { %9621 = vmatpush.bf16.msra.mxu0 %v15184_v55  ;;  %v9415_v11 = vpop.f32.mrf.mxu0  ;;  %v15278_v55 = vld [vmem:[#allocation4 + $0x16f0] sm:$0xff] }
 0x2ae   :  { %9634 = vmatpush.bf16.msra.mxu1 %v15192_v56  ;;  %v9416_v12 = vadd.f32 %v9415_v11, %v9403_v43  ;;  %v9428_v15 = vpop.f32.mrf.mxu1  ;;  %v89_v43 = vld [vmem:[%s15851_s0 + $0x58] sm:$0xff] }
 0x2af   :  { %9647 = vmatpush.bf16.msra.mxu2 %v15200_v57  ;;  %2253 = vst [vmem:[#allocation1] ss:$9 sm:$0xff] %v89_v43  ;;  %v15253_v56 = vld [vmem:[#allocation4 + $0x1628] sm:$0xff] }
 0x2b0   :  { %9660 = vmatpush.bf16.msra.mxu3 %v15208_v58  ;;  %9622 = vmatmul.bf16.vlgmr.msra.gmra.mxu0 %v2244_v63  ;;  %v9429_v18 = vadd.f32 %v9428_v15, %v9416_v12  ;;  %v15261_v57 = vld [vmem:[#allocation4 + $0x1668] sm:$0xff]  ;;  %v15260_v63 = vld [vmem:[#allocation4 + $0x1660] sm:$0xff] }
 0x2b1   :  { %9666 = vmatpush.bf16.msrb.mxu0 %v15223_v59  ;;  %9635 = vmatmul.bf16.vlgmr.msra.gmra.mxu1 %v2245_v1  ;;  %v15269_v58 = vld [vmem:[#allocation4 + $0x16a8] sm:$0xff]  ;;  %v15268_v1 = vld [vmem:[#allocation4 + $0x16a0] sm:$0xff] }
 0x2b2   :  { %9679 = vmatpush.bf16.msrb.mxu1 %v15231_v60  ;;  %9648 = vmatmul.bf16.vlgmr.msra.gmra.mxu2 %v2246_v0  ;;  %v15277_v59 = vld [vmem:[#allocation4 + $0x16e8] sm:$0xff] }
 0x2b3   :  { %9692 = vmatpush.bf16.msrb.mxu2 %v15239_v61  ;;  %9661 = vmatmul.bf16.vlgmr.msra.gmra.mxu3 %v2247_v2  ;;  %v15276_v2 = vld [vmem:[#allocation4 + $0x16e0] sm:$0xff]  ;;  %v15309_v43 = vld [vmem:[#allocation4 + $0x17e8] sm:$0xff] }
 0x2b4   :  { %9705 = vmatpush.bf16.msrb.mxu3 %v15247_v62  ;;  %v15252_v62 = vld [vmem:[#allocation4 + $0x1620] sm:$0xff] }
 0x2b5   :  { %9667 = vmatpush.bf16.msrb.mxu0 %v15222_v3  ;;  %v9441_v23 = vpop.f32.mrf.mxu2  ;;  %v9417_v26 = vpop.f32.mrf.mxu0 }
 0x2b6   :  { %9680 = vmatpush.bf16.msrb.mxu1 %v15230_v4  ;;  %v9442_v24 = vadd.f32 %v9441_v23, %v9429_v18  ;;  %v9454_v25 = vpop.f32.mrf.mxu3  ;;  %v9430_v30 = vpop.f32.mrf.mxu1  ;;  %v15251_v4 = vld [vmem:[#allocation4 + $0x1618] sm:$0xff]  ;;  %v15249_v18 = vld [vmem:[#allocation4 + $0x1608] sm:$0xff]  ;;  %v15264_v26 = vld [vmem:[#allocation4 + $0x1680] sm:$0xff] }
 0x2b7   :  { %9693 = vmatpush.bf16.msrb.mxu2 %v15238_v5  ;;  %v15259_v5 = vld [vmem:[#allocation4 + $0x1658] sm:$0xff] }
 0x2b8   :  { %9706 = vmatpush.bf16.msrb.mxu3 %v15246_v6  ;;  %v15782_v27 = vadd.f32 %v9454_v25, %v9442_v24  ;;  %v15267_v6 = vld [vmem:[#allocation4 + $0x1698] sm:$0xff]  ;;  %v15248_v24 = vld [vmem:[#allocation4 + $0x1600] sm:$0xff] }
 0x2b9   :  { %9668 = vmatpush.bf16.msrb.mxu0 %v15221_v7  ;;  %v15275_v7 = vld [vmem:[#allocation4 + $0x16d8] sm:$0xff]  ;;  %v15256_v25 = vld [vmem:[#allocation4 + $0x1640] sm:$0xff] }
 0x2ba   :  { %9681 = vmatpush.bf16.msrb.mxu1 %v15229_v8  ;;  %v15303_v30 = vld [vmem:[#allocation4 + $0x17b8] sm:$0xff] }
 0x2bb   :  { %9694 = vmatpush.bf16.msrb.mxu2 %v15237_v9 }
 0x2bc   :  { %9707 = vmatpush.bf16.msrb.mxu3 %v15245_v10 }
 0x2bd   :  { %9669 = vmatpush.bf16.msrb.mxu0 %v15220_v13  ;;  %v9443_v39 = vpop.f32.mrf.mxu2  ;;  %v15250_v13 = vld [vmem:[#allocation4 + $0x1610] sm:$0xff] }
 0x2be   :  { %9682 = vmatpush.bf16.msrb.mxu1 %v15228_v14  ;;  %v9456_v42 = vpop.f32.mrf.mxu3  ;;  %v15258_v14 = vld [vmem:[#allocation4 + $0x1650] sm:$0xff] }
 0x2bf   :  { %9695 = vmatpush.bf16.msrb.mxu2 %v15236_v16  ;;  %v15266_v16 = vld [vmem:[#allocation4 + $0x1690] sm:$0xff]  ;;  %v15301_v42 = vld [vmem:[#allocation4 + $0x17a8] sm:$0xff] }
 0x2c0   :  { %9708 = vmatpush.bf16.msrb.mxu3 %v15244_v17  ;;  %v15274_v17 = vld [vmem:[#allocation4 + $0x16d0] sm:$0xff] }
 0x2c1   :  { %9670 = vmatpush.bf16.msrb.mxu0 %v15219_v19  ;;  %v15257_v19 = vld [vmem:[#allocation4 + $0x1648] sm:$0xff]  ;;  %v15310_v39 = vld [vmem:[#allocation4 + $0x17f0] sm:$0xff] }
 0x2c2   :  { %9683 = vmatpush.bf16.msrb.mxu1 %v15227_v20  ;;  %v15265_v20 = vld [vmem:[#allocation4 + $0x1688] sm:$0xff] }
 0x2c3   :  { %9696 = vmatpush.bf16.msrb.mxu2 %v15235_v21  ;;  %v15273_v21 = vld [vmem:[#allocation4 + $0x16c8] sm:$0xff] }
 0x2c4   :  { %9709 = vmatpush.bf16.msrb.mxu3 %v15243_v22 }
 0x2c5   :  { %9671 = vmatpush.bf16.msrb.mxu0 %v15218_v28  ;;  %v15287_v28 = vld [vmem:[#allocation4 + $0x1738] sm:$0xff] }
 0x2c6   :  { %9684 = vmatpush.bf16.msrb.mxu1 %v15226_v29  ;;  %v15295_v29 = vld [vmem:[#allocation4 + $0x1778] sm:$0xff] }
 0x2c7   :  { %9697 = vmatpush.bf16.msrb.mxu2 %v15234_v31  ;;  %v15311_v31 = vld [vmem:[#allocation4 + $0x17f8] sm:$0xff] }
 0x2c8   :  { %9710 = vmatpush.bf16.msrb.mxu3 %v15242_v32  ;;  %v2254_v32 = vld [vmem:[#allocation1] sm:$0xff] }
 0x2c9   :  { %9672 = vmatpush.bf16.msrb.mxu0 %v15217_v33  ;;  %v2256_v33 = vld [vmem:[#allocation1 + $0x12] sm:$0xff] }
 0x2ca   :  { %9685 = vmatpush.bf16.msrb.mxu1 %v15225_v34  ;;  %v2255_v34 = vld [vmem:[#allocation1 + $0x9] sm:$0xff] }
 0x2cb   :  { %9698 = vmatpush.bf16.msrb.mxu2 %v15233_v35  ;;  %v2257_v35 = vld [vmem:[#allocation1 + $0x1b] sm:$0xff] }
 0x2cc   :  { %9711 = vmatpush.bf16.msrb.mxu3 %v15241_v36  ;;  %v15286_v36 = vld [vmem:[#allocation4 + $0x1730] sm:$0xff] }
 0x2cd   :  { %9673 = vmatpush.bf16.msrb.mxu0 %v15216_v44  ;;  %v9467_v60 = vpop.f32.mrf.mxu0 }
 0x2ce   :  { %9686 = vmatpush.bf16.msrb.mxu1 %v15224_v45  ;;  %v9468_v61 = vadd.f32 %v9467_v60, %v15782_v27  ;;  %v9480_v0 = vpop.f32.mrf.mxu1  ;;  %v15272_v27 = vld [vmem:[#allocation4 + $0x16c0] sm:$0xff] }
 0x2cf   :  { %9699 = vmatpush.bf16.msrb.mxu2 %v15232_v46  ;;  %v15284_v46 = vld [vmem:[#allocation4 + $0x1720] sm:$0xff] }
 0x2d0   :  { %9712 = vmatpush.bf16.msrb.mxu3 %v15240_v47  ;;  %9674 = vmatmul.bf16.vlgmr.msrb.gmra.mxu0 %v2248_v37  ;;  %v9481_v3 = vadd.f32 %v9480_v0, %v9468_v61  ;;  %v15294_v37 = vld [vmem:[#allocation4 + $0x1770] sm:$0xff]  ;;  %v15292_v47 = vld [vmem:[#allocation4 + $0x1760] sm:$0xff] }
 0x2d1   :  { %9718 = vmatpush.bf16.msra.mxu0 %v15255_v48  ;;  %9687 = vmatmul.bf16.vlgmr.msrb.gmra.mxu1 %v2249_v40  ;;  %v15285_v40 = vld [vmem:[#allocation4 + $0x1728] sm:$0xff]  ;;  %v15282_v61 = vld [vmem:[#allocation4 + $0x1710] sm:$0xff] }
 0x2d2   :  { %9731 = vmatpush.bf16.msra.mxu1 %v15263_v49  ;;  %9700 = vmatmul.bf16.vlgmr.msrb.gmra.mxu2 %v2250_v38  ;;  %v15302_v38 = vld [vmem:[#allocation4 + $0x17b0] sm:$0xff]  ;;  %v15300_v49 = vld [vmem:[#allocation4 + $0x17a0] sm:$0xff] }
 0x2d3   :  { %9744 = vmatpush.bf16.msra.mxu2 %v15271_v50  ;;  %9713 = vmatmul.bf16.vlgmr.msrb.gmra.mxu3 %v2251_v41  ;;  %v15293_v41 = vld [vmem:[#allocation4 + $0x1768] sm:$0xff]  ;;  %v15308_v50 = vld [vmem:[#allocation4 + $0x17e0] sm:$0xff]  ;;  %v15298_v0 = vld [vmem:[#allocation4 + $0x1790] sm:$0xff] }
 0x2d4   :  { %9757 = vmatpush.bf16.msra.mxu3 %v15279_v51 }
 0x2d5   :  { %9719 = vmatpush.bf16.msra.mxu0 %v15254_v52  ;;  %v9493_v8 = vpop.f32.mrf.mxu2  ;;  %v9469_v11 = vpop.f32.mrf.mxu0  ;;  %v15283_v52 = vld [vmem:[#allocation4 + $0x1718] sm:$0xff] }
 0x2d6   :  { %9732 = vmatpush.bf16.msra.mxu1 %v15262_v53  ;;  %v9494_v9 = vadd.f32 %v9493_v8, %v9481_v3  ;;  %v9506_v10 = vpop.f32.mrf.mxu3  ;;  %v9482_v15 = vpop.f32.mrf.mxu1  ;;  %v15291_v53 = vld [vmem:[#allocation4 + $0x1758] sm:$0xff]  ;;  %v15289_v3 = vld [vmem:[#allocation4 + $0x1748] sm:$0xff] }
 0x2d7   :  { %9745 = vmatpush.bf16.msra.mxu2 %v15270_v54  ;;  %v15299_v54 = vld [vmem:[#allocation4 + $0x1798] sm:$0xff]  ;;  %v15296_v15 = vld [vmem:[#allocation4 + $0x1780] sm:$0xff] }
 0x2d8   :  { %9758 = vmatpush.bf16.msra.mxu3 %v15278_v55  ;;  %v9507_v12 = vadd.f32 %v9506_v10, %v9494_v9  ;;  %v15307_v55 = vld [vmem:[#allocation4 + $0x17d8] sm:$0xff]  ;;  %v2259_v9 = vld [vmem:[#allocation1 + $0x2d] sm:$0xff] }
 0x2d9   :  { %9720 = vmatpush.bf16.msra.mxu0 %v15253_v56  ;;  %v2261_v10 = vld [vmem:[#allocation1 + $0x3f] sm:$0xff] }
 0x2da   :  { %9733 = vmatpush.bf16.msra.mxu1 %v15261_v57 }
 0x2db   :  { %9746 = vmatpush.bf16.msra.mxu2 %v15269_v58 }
 0x2dc   :  { %9759 = vmatpush.bf16.msra.mxu3 %v15277_v59 }
 0x2dd   :  { %9721 = vmatpush.bf16.msra.mxu0 %v15252_v62  ;;  %v9495_v22 = vpop.f32.mrf.mxu2  ;;  %v15290_v62 = vld [vmem:[#allocation4 + $0x1750] sm:$0xff] }
 0x2de   :  { %9734 = vmatpush.bf16.msra.mxu1 %v15260_v63  ;;  %v9508_v23 = vpop.f32.mrf.mxu3  ;;  %v15326_v22 = vld [vmem:[#allocation4 + $0x1870] sm:$0xff] }
 0x2df   :  { %9747 = vmatpush.bf16.msra.mxu2 %v15268_v1  ;;  %v15306_v1 = vld [vmem:[#allocation4 + $0x17d0] sm:$0xff] }
 0x2e0   :  { %9760 = vmatpush.bf16.msra.mxu3 %v15276_v2  ;;  %v15281_v2 = vld [vmem:[#allocation4 + $0x1708] sm:$0xff]  ;;  %v15334_v23 = vld [vmem:[#allocation4 + $0x18b0] sm:$0xff] }
 0x2e1   :  { %9722 = vmatpush.bf16.msra.mxu0 %v15251_v4  ;;  %v15297_v4 = vld [vmem:[#allocation4 + $0x1788] sm:$0xff] }
 0x2e2   :  { %9735 = vmatpush.bf16.msra.mxu1 %v15259_v5  ;;  %v15305_v5 = vld [vmem:[#allocation4 + $0x17c8] sm:$0xff] }
 0x2e3   :  { %9748 = vmatpush.bf16.msra.mxu2 %v15267_v6  ;;  %v2258_v6 = vld [vmem:[#allocation1 + $0x24] sm:$0xff] }
 0x2e4   :  { %9761 = vmatpush.bf16.msra.mxu3 %v15275_v7  ;;  %v2260_v7 = vld [vmem:[#allocation1 + $0x36] sm:$0xff] }
 0x2e5   :  { %9723 = vmatpush.bf16.msra.mxu0 %v15250_v13  ;;  %v15280_v13 = vld [vmem:[#allocation4 + $0x1700] sm:$0xff] }
 0x2e6   :  { %9736 = vmatpush.bf16.msra.mxu1 %v15258_v14  ;;  %v15288_v14 = vld [vmem:[#allocation4 + $0x1740] sm:$0xff] }
 0x2e7   :  { %9749 = vmatpush.bf16.msra.mxu2 %v15266_v16  ;;  %v15304_v16 = vld [vmem:[#allocation4 + $0x17c0] sm:$0xff] }
 0x2e8   :  { %9762 = vmatpush.bf16.msra.mxu3 %v15274_v17  ;;  %v15319_v17 = vld [vmem:[#allocation4 + $0x1838] sm:$0xff] }
 0x2e9   :  { %9724 = vmatpush.bf16.msra.mxu0 %v15249_v18  ;;  %v15327_v18 = vld [vmem:[#allocation4 + $0x1878] sm:$0xff] }
 0x2ea   :  { %9737 = vmatpush.bf16.msra.mxu1 %v15257_v19  ;;  %v15335_v19 = vld [vmem:[#allocation4 + $0x18b8] sm:$0xff] }
 0x2eb   :  { %9750 = vmatpush.bf16.msra.mxu2 %v15265_v20  ;;  %v15343_v20 = vld [vmem:[#allocation4 + $0x18f8] sm:$0xff] }
 0x2ec   :  { %9763 = vmatpush.bf16.msra.mxu3 %v15273_v21  ;;  %v15318_v21 = vld [vmem:[#allocation4 + $0x1830] sm:$0xff] }
 0x2ed   :  { %9725 = vmatpush.bf16.msra.mxu0 %v15248_v24  ;;  %v9519_v44 = vpop.f32.mrf.mxu0  ;;  %v15342_v24 = vld [vmem:[#allocation4 + $0x18f0] sm:$0xff] }
 0x2ee   :  { %9738 = vmatpush.bf16.msra.mxu1 %v15256_v25  ;;  %v9520_v45 = vadd.f32 %v9519_v44, %v9507_v12  ;;  %v9532_v48 = vpop.f32.mrf.mxu1  ;;  %v90_v12 = vld [vmem:[%s15851_s0 + $0x60] sm:$0xff]  ;;  %v15317_v25 = vld [vmem:[#allocation4 + $0x1828] sm:$0xff] }
 0x2ef   :  { %9751 = vmatpush.bf16.msra.mxu2 %v15264_v26  ;;  %2263 = vst [vmem:[#allocation1] ss:$9 sm:$0xff] %v90_v12  ;;  %v15325_v26 = vld [vmem:[#allocation4 + $0x1868] sm:$0xff] }
 0x2f0   :  { %9764 = vmatpush.bf16.msra.mxu3 %v15272_v27  ;;  %9726 = vmatmul.bf16.vlgmr.msra.gmra.mxu0 %v2254_v32  ;;  %v9533_v51 = vadd.f32 %v9532_v48, %v9520_v45  ;;  %v15333_v27 = vld [vmem:[#allocation4 + $0x18a8] sm:$0xff]  ;;  %v15324_v32 = vld [vmem:[#allocation4 + $0x1860] sm:$0xff] }
 0x2f1   :  { %9770 = vmatpush.bf16.msrb.mxu0 %v15287_v28  ;;  %9739 = vmatmul.bf16.vlgmr.msra.gmra.mxu1 %v2255_v34  ;;  %v15341_v28 = vld [vmem:[#allocation4 + $0x18e8] sm:$0xff]  ;;  %v15332_v34 = vld [vmem:[#allocation4 + $0x18a0] sm:$0xff] }
 0x2f2   :  { %9783 = vmatpush.bf16.msrb.mxu1 %v15295_v29  ;;  %9752 = vmatmul.bf16.vlgmr.msra.gmra.mxu2 %v2256_v33  ;;  %v15373_v12 = vld [vmem:[#allocation4 + $0x19e8] sm:$0xff] }
 0x2f3   :  { %9796 = vmatpush.bf16.msrb.mxu2 %v15303_v30  ;;  %9765 = vmatmul.bf16.vlgmr.msra.gmra.mxu3 %v2257_v35  ;;  %v15340_v35 = vld [vmem:[#allocation4 + $0x18e0] sm:$0xff] }
 0x2f4   :  { %9809 = vmatpush.bf16.msrb.mxu3 %v15311_v31  ;;  %v15316_v31 = vld [vmem:[#allocation4 + $0x1820] sm:$0xff] }
 0x2f5   :  { %9771 = vmatpush.bf16.msrb.mxu0 %v15286_v36  ;;  %v9545_v56 = vpop.f32.mrf.mxu2  ;;  %v9521_v59 = vpop.f32.mrf.mxu0 }
 0x2f6   :  { %9784 = vmatpush.bf16.msrb.mxu1 %v15294_v37  ;;  %v9546_v57 = vadd.f32 %v9545_v56, %v9533_v51  ;;  %v9558_v58 = vpop.f32.mrf.mxu3  ;;  %v9534_v63 = vpop.f32.mrf.mxu1  ;;  %v15315_v37 = vld [vmem:[#allocation4 + $0x1818] sm:$0xff]  ;;  %v15313_v51 = vld [vmem:[#allocation4 + $0x1808] sm:$0xff]  ;;  %v15328_v59 = vld [vmem:[#allocation4 + $0x1880] sm:$0xff] }
 0x2f7   :  { %9797 = vmatpush.bf16.msrb.mxu2 %v15302_v38  ;;  %v15323_v38 = vld [vmem:[#allocation4 + $0x1858] sm:$0xff] }
 0x2f8   :  { %9810 = vmatpush.bf16.msrb.mxu3 %v15310_v39  ;;  %v15788_v60 = vadd.f32 %v9558_v58, %v9546_v57  ;;  %v15331_v39 = vld [vmem:[#allocation4 + $0x1898] sm:$0xff]  ;;  %v15312_v57 = vld [vmem:[#allocation4 + $0x1800] sm:$0xff] }
 0x2f9   :  { %9772 = vmatpush.bf16.msrb.mxu0 %v15285_v40  ;;  %v15339_v40 = vld [vmem:[#allocation4 + $0x18d8] sm:$0xff]  ;;  %v15320_v58 = vld [vmem:[#allocation4 + $0x1840] sm:$0xff] }
 0x2fa   :  { %9785 = vmatpush.bf16.msrb.mxu1 %v15293_v41  ;;  %v15367_v63 = vld [vmem:[#allocation4 + $0x19b8] sm:$0xff] }
 0x2fb   :  { %9798 = vmatpush.bf16.msrb.mxu2 %v15301_v42 }
 0x2fc   :  { %9811 = vmatpush.bf16.msrb.mxu3 %v15309_v43 }
 0x2fd   :  { %9773 = vmatpush.bf16.msrb.mxu0 %v15284_v46  ;;  %v9547_v8 = vpop.f32.mrf.mxu2  ;;  %v15314_v46 = vld [vmem:[#allocation4 + $0x1810] sm:$0xff] }
 0x2fe   :  { %9786 = vmatpush.bf16.msrb.mxu1 %v15292_v47  ;;  %v9560_v11 = vpop.f32.mrf.mxu3  ;;  %v15322_v47 = vld [vmem:[#allocation4 + $0x1850] sm:$0xff] }
 0x2ff   :  { %9799 = vmatpush.bf16.msrb.mxu2 %v15300_v49  ;;  %v15330_v49 = vld [vmem:[#allocation4 + $0x1890] sm:$0xff]  ;;  %v15365_v11 = vld [vmem:[#allocation4 + $0x19a8] sm:$0xff] }
 0x300   :  { %9812 = vmatpush.bf16.msrb.mxu3 %v15308_v50  ;;  %v15338_v50 = vld [vmem:[#allocation4 + $0x18d0] sm:$0xff] }
 0x301   :  { %9774 = vmatpush.bf16.msrb.mxu0 %v15283_v52  ;;  %v15321_v52 = vld [vmem:[#allocation4 + $0x1848] sm:$0xff]  ;;  %v15374_v8 = vld [vmem:[#allocation4 + $0x19f0] sm:$0xff] }
 0x302   :  { %9787 = vmatpush.bf16.msrb.mxu1 %v15291_v53  ;;  %v15329_v53 = vld [vmem:[#allocation4 + $0x1888] sm:$0xff] }
 0x303   :  { %9800 = vmatpush.bf16.msrb.mxu2 %v15299_v54  ;;  %v15337_v54 = vld [vmem:[#allocation4 + $0x18c8] sm:$0xff] }
 0x304   :  { %9813 = vmatpush.bf16.msrb.mxu3 %v15307_v55 }
 0x305   :  { %9775 = vmatpush.bf16.msrb.mxu0 %v15282_v61  ;;  %v15351_v61 = vld [vmem:[#allocation4 + $0x1938] sm:$0xff] }
 0x306   :  { %9788 = vmatpush.bf16.msrb.mxu1 %v15290_v62  ;;  %v15359_v62 = vld [vmem:[#allocation4 + $0x1978] sm:$0xff] }
 0x307   :  { %9801 = vmatpush.bf16.msrb.mxu2 %v15298_v0  ;;  %v15375_v0 = vld [vmem:[#allocation4 + $0x19f8] sm:$0xff] }
 0x308   :  { %9814 = vmatpush.bf16.msrb.mxu3 %v15306_v1  ;;  %v2264_v1 = vld [vmem:[#allocation1] sm:$0xff] }
 0x309   :  { %9776 = vmatpush.bf16.msrb.mxu0 %v15281_v2  ;;  %v2266_v2 = vld [vmem:[#allocation1 + $0x12] sm:$0xff] }
 0x30a   :  { %9789 = vmatpush.bf16.msrb.mxu1 %v15289_v3  ;;  %v2265_v3 = vld [vmem:[#allocation1 + $0x9] sm:$0xff] }
 0x30b   :  { %9802 = vmatpush.bf16.msrb.mxu2 %v15297_v4  ;;  %v2267_v4 = vld [vmem:[#allocation1 + $0x1b] sm:$0xff] }
 0x30c   :  { %9815 = vmatpush.bf16.msrb.mxu3 %v15305_v5  ;;  %v15350_v5 = vld [vmem:[#allocation4 + $0x1930] sm:$0xff] }
 0x30d   :  { %9777 = vmatpush.bf16.msrb.mxu0 %v15280_v13  ;;  %v9571_v29 = vpop.f32.mrf.mxu0 }
 0x30e   :  { %9790 = vmatpush.bf16.msrb.mxu1 %v15288_v14  ;;  %v9572_v30 = vadd.f32 %v9571_v29, %v15788_v60  ;;  %v9584_v33 = vpop.f32.mrf.mxu1  ;;  %v15336_v60 = vld [vmem:[#allocation4 + $0x18c0] sm:$0xff] }
 0x30f   :  { %9803 = vmatpush.bf16.msrb.mxu2 %v15296_v15  ;;  %v15348_v15 = vld [vmem:[#allocation4 + $0x1920] sm:$0xff] }
 0x310   :  { %9816 = vmatpush.bf16.msrb.mxu3 %v15304_v16  ;;  %9778 = vmatmul.bf16.vlgmr.msrb.gmra.mxu0 %v2258_v6  ;;  %v9585_v36 = vadd.f32 %v9584_v33, %v9572_v30  ;;  %v15358_v6 = vld [vmem:[#allocation4 + $0x1970] sm:$0xff]  ;;  %v15356_v16 = vld [vmem:[#allocation4 + $0x1960] sm:$0xff] }
 0x311   :  { %9822 = vmatpush.bf16.msra.mxu0 %v15319_v17  ;;  %9791 = vmatmul.bf16.vlgmr.msrb.gmra.mxu1 %v2259_v9  ;;  %v15349_v9 = vld [vmem:[#allocation4 + $0x1928] sm:$0xff]  ;;  %v15346_v30 = vld [vmem:[#allocation4 + $0x1910] sm:$0xff] }
 0x312   :  { %9835 = vmatpush.bf16.msra.mxu1 %v15327_v18  ;;  %9804 = vmatmul.bf16.vlgmr.msrb.gmra.mxu2 %v2260_v7  ;;  %v15366_v7 = vld [vmem:[#allocation4 + $0x19b0] sm:$0xff]  ;;  %v15364_v18 = vld [vmem:[#allocation4 + $0x19a0] sm:$0xff] }
 0x313   :  { %9848 = vmatpush.bf16.msra.mxu2 %v15335_v19  ;;  %9817 = vmatmul.bf16.vlgmr.msrb.gmra.mxu3 %v2261_v10  ;;  %v15357_v10 = vld [vmem:[#allocation4 + $0x1968] sm:$0xff]  ;;  %v15372_v19 = vld [vmem:[#allocation4 + $0x19e0] sm:$0xff]  ;;  %v15362_v33 = vld [vmem:[#allocation4 + $0x1990] sm:$0xff] }
 0x314   :  { %9861 = vmatpush.bf16.msra.mxu3 %v15343_v20 }
 0x315   :  { %9823 = vmatpush.bf16.msra.mxu0 %v15318_v21  ;;  %v9597_v41 = vpop.f32.mrf.mxu2  ;;  %v9573_v44 = vpop.f32.mrf.mxu0  ;;  %v15347_v21 = vld [vmem:[#allocation4 + $0x1918] sm:$0xff] }
 0x316   :  { %9836 = vmatpush.bf16.msra.mxu1 %v15326_v22  ;;  %v9598_v42 = vadd.f32 %v9597_v41, %v9585_v36  ;;  %v9610_v43 = vpop.f32.mrf.mxu3  ;;  %v9586_v48 = vpop.f32.mrf.mxu1  ;;  %v15355_v22 = vld [vmem:[#allocation4 + $0x1958] sm:$0xff]  ;;  %v15353_v36 = vld [vmem:[#allocation4 + $0x1948] sm:$0xff] }
 0x317   :  { %9849 = vmatpush.bf16.msra.mxu2 %v15334_v23  ;;  %v15363_v23 = vld [vmem:[#allocation4 + $0x1998] sm:$0xff]  ;;  %v15360_v48 = vld [vmem:[#allocation4 + $0x1980] sm:$0xff] }
 0x318   :  { %9862 = vmatpush.bf16.msra.mxu3 %v15342_v24  ;;  %v9611_v45 = vadd.f32 %v9610_v43, %v9598_v42  ;;  %v15371_v24 = vld [vmem:[#allocation4 + $0x19d8] sm:$0xff]  ;;  %v2269_v42 = vld [vmem:[#allocation1 + $0x2d] sm:$0xff] }
 0x319   :  { %9824 = vmatpush.bf16.msra.mxu0 %v15317_v25  ;;  %v2271_v43 = vld [vmem:[#allocation1 + $0x3f] sm:$0xff] }
 0x31a   :  { %9837 = vmatpush.bf16.msra.mxu1 %v15325_v26 }
 0x31b   :  { %9850 = vmatpush.bf16.msra.mxu2 %v15333_v27 }
 0x31c   :  { %9863 = vmatpush.bf16.msra.mxu3 %v15341_v28 }
 0x31d   :  { %9825 = vmatpush.bf16.msra.mxu0 %v15316_v31  ;;  %v9599_v55 = vpop.f32.mrf.mxu2  ;;  %v15354_v31 = vld [vmem:[#allocation4 + $0x1950] sm:$0xff] }
 0x31e   :  { %9838 = vmatpush.bf16.msra.mxu1 %v15324_v32  ;;  %v9612_v56 = vpop.f32.mrf.mxu3  ;;  %v15390_v55 = vld [vmem:[#allocation4 + $0x1a70] sm:$0xff] }
 0x31f   :  { %9851 = vmatpush.bf16.msra.mxu2 %v15332_v34  ;;  %v15370_v34 = vld [vmem:[#allocation4 + $0x19d0] sm:$0xff] }
 0x320   :  { %9864 = vmatpush.bf16.msra.mxu3 %v15340_v35  ;;  %v15345_v35 = vld [vmem:[#allocation4 + $0x1908] sm:$0xff]  ;;  %v15398_v56 = vld [vmem:[#allocation4 + $0x1ab0] sm:$0xff] }
 0x321   :  { %9826 = vmatpush.bf16.msra.mxu0 %v15315_v37  ;;  %v15361_v37 = vld [vmem:[#allocation4 + $0x1988] sm:$0xff] }
 0x322   :  { %9839 = vmatpush.bf16.msra.mxu1 %v15323_v38  ;;  %v15369_v38 = vld [vmem:[#allocation4 + $0x19c8] sm:$0xff] }
 0x323   :  { %9852 = vmatpush.bf16.msra.mxu2 %v15331_v39  ;;  %v2268_v39 = vld [vmem:[#allocation1 + $0x24] sm:$0xff] }
 0x324   :  { %9865 = vmatpush.bf16.msra.mxu3 %v15339_v40  ;;  %v2270_v40 = vld [vmem:[#allocation1 + $0x36] sm:$0xff] }
 0x325   :  { %9827 = vmatpush.bf16.msra.mxu0 %v15314_v46  ;;  %v15344_v46 = vld [vmem:[#allocation4 + $0x1900] sm:$0xff] }
 0x326   :  { %9840 = vmatpush.bf16.msra.mxu1 %v15322_v47  ;;  %v15352_v47 = vld [vmem:[#allocation4 + $0x1940] sm:$0xff] }
 0x327   :  { %9853 = vmatpush.bf16.msra.mxu2 %v15330_v49  ;;  %v15368_v49 = vld [vmem:[#allocation4 + $0x19c0] sm:$0xff] }
 0x328   :  { %9866 = vmatpush.bf16.msra.mxu3 %v15338_v50  ;;  %v15383_v50 = vld [vmem:[#allocation4 + $0x1a38] sm:$0xff] }
 0x329   :  { %9828 = vmatpush.bf16.msra.mxu0 %v15313_v51  ;;  %v15391_v51 = vld [vmem:[#allocation4 + $0x1a78] sm:$0xff] }
 0x32a   :  { %9841 = vmatpush.bf16.msra.mxu1 %v15321_v52  ;;  %v15399_v52 = vld [vmem:[#allocation4 + $0x1ab8] sm:$0xff] }
 0x32b   :  { %9854 = vmatpush.bf16.msra.mxu2 %v15329_v53  ;;  %v15407_v53 = vld [vmem:[#allocation4 + $0x1af8] sm:$0xff] }
 0x32c   :  { %9867 = vmatpush.bf16.msra.mxu3 %v15337_v54  ;;  %v15382_v54 = vld [vmem:[#allocation4 + $0x1a30] sm:$0xff] }
 0x32d   :  { %9829 = vmatpush.bf16.msra.mxu0 %v15312_v57  ;;  %v9623_v13 = vpop.f32.mrf.mxu0  ;;  %v15406_v57 = vld [vmem:[#allocation4 + $0x1af0] sm:$0xff] }
 0x32e   :  { %9842 = vmatpush.bf16.msra.mxu1 %v15320_v58  ;;  %v9624_v14 = vadd.f32 %v9623_v13, %v9611_v45  ;;  %v9636_v17 = vpop.f32.mrf.mxu1  ;;  %v91_v45 = vld [vmem:[%s15851_s0 + $0x68] sm:$0xff]  ;;  %v15381_v58 = vld [vmem:[#allocation4 + $0x1a28] sm:$0xff] }
 0x32f   :  { %9855 = vmatpush.bf16.msra.mxu2 %v15328_v59  ;;  %2273 = vst [vmem:[#allocation1] ss:$9 sm:$0xff] %v91_v45  ;;  %v15389_v59 = vld [vmem:[#allocation4 + $0x1a68] sm:$0xff] }
 0x330   :  { %9868 = vmatpush.bf16.msra.mxu3 %v15336_v60  ;;  %9830 = vmatmul.bf16.vlgmr.msra.gmra.mxu0 %v2264_v1  ;;  %v9637_v20 = vadd.f32 %v9636_v17, %v9624_v14  ;;  %v15397_v60 = vld [vmem:[#allocation4 + $0x1aa8] sm:$0xff]  ;;  %v15388_v1 = vld [vmem:[#allocation4 + $0x1a60] sm:$0xff] }
 0x331   :  { %9874 = vmatpush.bf16.msrb.mxu0 %v15351_v61  ;;  %9843 = vmatmul.bf16.vlgmr.msra.gmra.mxu1 %v2265_v3  ;;  %v15405_v61 = vld [vmem:[#allocation4 + $0x1ae8] sm:$0xff]  ;;  %v15396_v3 = vld [vmem:[#allocation4 + $0x1aa0] sm:$0xff] }
 0x332   :  { %9887 = vmatpush.bf16.msrb.mxu1 %v15359_v62  ;;  %9856 = vmatmul.bf16.vlgmr.msra.gmra.mxu2 %v2266_v2  ;;  %v15437_v45 = vld [vmem:[#allocation4 + $0x1be8] sm:$0xff] }
 0x333   :  { %9900 = vmatpush.bf16.msrb.mxu2 %v15367_v63  ;;  %9869 = vmatmul.bf16.vlgmr.msra.gmra.mxu3 %v2267_v4  ;;  %v15404_v4 = vld [vmem:[#allocation4 + $0x1ae0] sm:$0xff] }
 0x334   :  { %9913 = vmatpush.bf16.msrb.mxu3 %v15375_v0  ;;  %v15380_v0 = vld [vmem:[#allocation4 + $0x1a20] sm:$0xff] }
 0x335   :  { %9875 = vmatpush.bf16.msrb.mxu0 %v15350_v5  ;;  %v9649_v25 = vpop.f32.mrf.mxu2  ;;  %v9625_v28 = vpop.f32.mrf.mxu0 }
 0x336   :  { %9888 = vmatpush.bf16.msrb.mxu1 %v15358_v6  ;;  %v9650_v26 = vadd.f32 %v9649_v25, %v9637_v20  ;;  %v9662_v27 = vpop.f32.mrf.mxu3  ;;  %v9638_v32 = vpop.f32.mrf.mxu1  ;;  %v15379_v6 = vld [vmem:[#allocation4 + $0x1a18] sm:$0xff]  ;;  %v15377_v20 = vld [vmem:[#allocation4 + $0x1a08] sm:$0xff]  ;;  %v15392_v28 = vld [vmem:[#allocation4 + $0x1a80] sm:$0xff] }
 0x337   :  { %9901 = vmatpush.bf16.msrb.mxu2 %v15366_v7  ;;  %v15387_v7 = vld [vmem:[#allocation4 + $0x1a58] sm:$0xff] }
 0x338   :  { %9914 = vmatpush.bf16.msrb.mxu3 %v15374_v8  ;;  %v15794_v29 = vadd.f32 %v9662_v27, %v9650_v26  ;;  %v15395_v8 = vld [vmem:[#allocation4 + $0x1a98] sm:$0xff]  ;;  %v15376_v26 = vld [vmem:[#allocation4 + $0x1a00] sm:$0xff] }
 0x339   :  { %9876 = vmatpush.bf16.msrb.mxu0 %v15349_v9  ;;  %v15403_v9 = vld [vmem:[#allocation4 + $0x1ad8] sm:$0xff]  ;;  %v15384_v27 = vld [vmem:[#allocation4 + $0x1a40] sm:$0xff] }
 0x33a   :  { %9889 = vmatpush.bf16.msrb.mxu1 %v15357_v10  ;;  %v15431_v32 = vld [vmem:[#allocation4 + $0x1bb8] sm:$0xff] }
 0x33b   :  { %9902 = vmatpush.bf16.msrb.mxu2 %v15365_v11 }
 0x33c   :  { %9915 = vmatpush.bf16.msrb.mxu3 %v15373_v12 }
 0x33d   :  { %9877 = vmatpush.bf16.msrb.mxu0 %v15348_v15  ;;  %v9651_v41 = vpop.f32.mrf.mxu2  ;;  %v15378_v15 = vld [vmem:[#allocation4 + $0x1a10] sm:$0xff] }
 0x33e   :  { %9890 = vmatpush.bf16.msrb.mxu1 %v15356_v16  ;;  %v9664_v44 = vpop.f32.mrf.mxu3  ;;  %v15386_v16 = vld [vmem:[#allocation4 + $0x1a50] sm:$0xff] }
 0x33f   :  { %9903 = vmatpush.bf16.msrb.mxu2 %v15364_v18  ;;  %v15394_v18 = vld [vmem:[#allocation4 + $0x1a90] sm:$0xff]  ;;  %v15429_v44 = vld [vmem:[#allocation4 + $0x1ba8] sm:$0xff] }
 0x340   :  { %9916 = vmatpush.bf16.msrb.mxu3 %v15372_v19  ;;  %v15402_v19 = vld [vmem:[#allocation4 + $0x1ad0] sm:$0xff] }
 0x341   :  { %9878 = vmatpush.bf16.msrb.mxu0 %v15347_v21  ;;  %v15385_v21 = vld [vmem:[#allocation4 + $0x1a48] sm:$0xff]  ;;  %v15438_v41 = vld [vmem:[#allocation4 + $0x1bf0] sm:$0xff] }
 0x342   :  { %9891 = vmatpush.bf16.msrb.mxu1 %v15355_v22  ;;  %v15393_v22 = vld [vmem:[#allocation4 + $0x1a88] sm:$0xff] }
 0x343   :  { %9904 = vmatpush.bf16.msrb.mxu2 %v15363_v23  ;;  %v15401_v23 = vld [vmem:[#allocation4 + $0x1ac8] sm:$0xff] }
 0x344   :  { %9917 = vmatpush.bf16.msrb.mxu3 %v15371_v24 }
 0x345   :  { %9879 = vmatpush.bf16.msrb.mxu0 %v15346_v30  ;;  %v15415_v30 = vld [vmem:[#allocation4 + $0x1b38] sm:$0xff] }
 0x346   :  { %9892 = vmatpush.bf16.msrb.mxu1 %v15354_v31  ;;  %v15423_v31 = vld [vmem:[#allocation4 + $0x1b78] sm:$0xff] }
 0x347   :  { %9905 = vmatpush.bf16.msrb.mxu2 %v15362_v33  ;;  %v15439_v33 = vld [vmem:[#allocation4 + $0x1bf8] sm:$0xff] }
 0x348   :  { %9918 = vmatpush.bf16.msrb.mxu3 %v15370_v34  ;;  %v2274_v34 = vld [vmem:[#allocation1] sm:$0xff] }
 0x349   :  { %9880 = vmatpush.bf16.msrb.mxu0 %v15345_v35  ;;  %v2276_v35 = vld [vmem:[#allocation1 + $0x12] sm:$0xff] }
 0x34a   :  { %9893 = vmatpush.bf16.msrb.mxu1 %v15353_v36  ;;  %v2275_v36 = vld [vmem:[#allocation1 + $0x9] sm:$0xff] }
 0x34b   :  { %9906 = vmatpush.bf16.msrb.mxu2 %v15361_v37  ;;  %v2277_v37 = vld [vmem:[#allocation1 + $0x1b] sm:$0xff] }
 0x34c   :  { %9919 = vmatpush.bf16.msrb.mxu3 %v15369_v38  ;;  %v15414_v38 = vld [vmem:[#allocation4 + $0x1b30] sm:$0xff] }
 0x34d   :  { %9881 = vmatpush.bf16.msrb.mxu0 %v15344_v46  ;;  %v9675_v62 = vpop.f32.mrf.mxu0 }
 0x34e   :  { %9894 = vmatpush.bf16.msrb.mxu1 %v15352_v47  ;;  %v9676_v63 = vadd.f32 %v9675_v62, %v15794_v29  ;;  %v9688_v2 = vpop.f32.mrf.mxu1  ;;  %v15400_v29 = vld [vmem:[#allocation4 + $0x1ac0] sm:$0xff] }
 0x34f   :  { %9907 = vmatpush.bf16.msrb.mxu2 %v15360_v48  ;;  %v15412_v48 = vld [vmem:[#allocation4 + $0x1b20] sm:$0xff] }
 0x350   :  { %9920 = vmatpush.bf16.msrb.mxu3 %v15368_v49  ;;  %9882 = vmatmul.bf16.vlgmr.msrb.gmra.mxu0 %v2268_v39  ;;  %v9689_v5 = vadd.f32 %v9688_v2, %v9676_v63  ;;  %v15422_v39 = vld [vmem:[#allocation4 + $0x1b70] sm:$0xff]  ;;  %v15420_v49 = vld [vmem:[#allocation4 + $0x1b60] sm:$0xff] }
 0x351   :  { %9926 = vmatpush.bf16.msra.mxu0 %v15383_v50  ;;  %9895 = vmatmul.bf16.vlgmr.msrb.gmra.mxu1 %v2269_v42  ;;  %v15413_v42 = vld [vmem:[#allocation4 + $0x1b28] sm:$0xff]  ;;  %v15410_v63 = vld [vmem:[#allocation4 + $0x1b10] sm:$0xff] }
 0x352   :  { %9939 = vmatpush.bf16.msra.mxu1 %v15391_v51  ;;  %9908 = vmatmul.bf16.vlgmr.msrb.gmra.mxu2 %v2270_v40  ;;  %v15430_v40 = vld [vmem:[#allocation4 + $0x1bb0] sm:$0xff]  ;;  %v15428_v51 = vld [vmem:[#allocation4 + $0x1ba0] sm:$0xff] }
 0x353   :  { %9952 = vmatpush.bf16.msra.mxu2 %v15399_v52  ;;  %9921 = vmatmul.bf16.vlgmr.msrb.gmra.mxu3 %v2271_v43  ;;  %v15421_v43 = vld [vmem:[#allocation4 + $0x1b68] sm:$0xff]  ;;  %v15436_v52 = vld [vmem:[#allocation4 + $0x1be0] sm:$0xff]  ;;  %v15426_v2 = vld [vmem:[#allocation4 + $0x1b90] sm:$0xff] }
 0x354   :  { %9965 = vmatpush.bf16.msra.mxu3 %v15407_v53 }
 0x355   :  { %9927 = vmatpush.bf16.msra.mxu0 %v15382_v54  ;;  %v9701_v10 = vpop.f32.mrf.mxu2  ;;  %v9677_v13 = vpop.f32.mrf.mxu0  ;;  %v15411_v54 = vld [vmem:[#allocation4 + $0x1b18] sm:$0xff] }
 0x356   :  { %9940 = vmatpush.bf16.msra.mxu1 %v15390_v55  ;;  %v9702_v11 = vadd.f32 %v9701_v10, %v9689_v5  ;;  %v9714_v12 = vpop.f32.mrf.mxu3  ;;  %v9690_v17 = vpop.f32.mrf.mxu1  ;;  %v15419_v55 = vld [vmem:[#allocation4 + $0x1b58] sm:$0xff]  ;;  %v15417_v5 = vld [vmem:[#allocation4 + $0x1b48] sm:$0xff] }
 0x357   :  { %9953 = vmatpush.bf16.msra.mxu2 %v15398_v56  ;;  %v15427_v56 = vld [vmem:[#allocation4 + $0x1b98] sm:$0xff]  ;;  %v15424_v17 = vld [vmem:[#allocation4 + $0x1b80] sm:$0xff] }
 0x358   :  { %9966 = vmatpush.bf16.msra.mxu3 %v15406_v57  ;;  %v9715_v14 = vadd.f32 %v9714_v12, %v9702_v11  ;;  %v15435_v57 = vld [vmem:[#allocation4 + $0x1bd8] sm:$0xff]  ;;  %v2279_v11 = vld [vmem:[#allocation1 + $0x2d] sm:$0xff] }
 0x359   :  { %9928 = vmatpush.bf16.msra.mxu0 %v15381_v58  ;;  %v2281_v12 = vld [vmem:[#allocation1 + $0x3f] sm:$0xff] }
 0x35a   :  { %9941 = vmatpush.bf16.msra.mxu1 %v15389_v59 }
 0x35b   :  { %9954 = vmatpush.bf16.msra.mxu2 %v15397_v60 }
 0x35c   :  { %9967 = vmatpush.bf16.msra.mxu3 %v15405_v61 }
 0x35d   :  { %9929 = vmatpush.bf16.msra.mxu0 %v15380_v0  ;;  %v9703_v24 = vpop.f32.mrf.mxu2  ;;  %v15418_v0 = vld [vmem:[#allocation4 + $0x1b50] sm:$0xff] }
 0x35e   :  { %9942 = vmatpush.bf16.msra.mxu1 %v15388_v1  ;;  %v9716_v25 = vpop.f32.mrf.mxu3  ;;  %v15454_v24 = vld [vmem:[#allocation4 + $0x1c70] sm:$0xff] }
 0x35f   :  { %9955 = vmatpush.bf16.msra.mxu2 %v15396_v3  ;;  %v15434_v3 = vld [vmem:[#allocation4 + $0x1bd0] sm:$0xff] }
 0x360   :  { %9968 = vmatpush.bf16.msra.mxu3 %v15404_v4  ;;  %v15409_v4 = vld [vmem:[#allocation4 + $0x1b08] sm:$0xff]  ;;  %v15462_v25 = vld [vmem:[#allocation4 + $0x1cb0] sm:$0xff] }
 0x361   :  { %9930 = vmatpush.bf16.msra.mxu0 %v15379_v6  ;;  %v15425_v6 = vld [vmem:[#allocation4 + $0x1b88] sm:$0xff] }
 0x362   :  { %9943 = vmatpush.bf16.msra.mxu1 %v15387_v7  ;;  %v15433_v7 = vld [vmem:[#allocation4 + $0x1bc8] sm:$0xff] }
 0x363   :  { %9956 = vmatpush.bf16.msra.mxu2 %v15395_v8  ;;  %v2278_v8 = vld [vmem:[#allocation1 + $0x24] sm:$0xff] }
 0x364   :  { %9969 = vmatpush.bf16.msra.mxu3 %v15403_v9  ;;  %v2280_v9 = vld [vmem:[#allocation1 + $0x36] sm:$0xff] }
 0x365   :  { %9931 = vmatpush.bf16.msra.mxu0 %v15378_v15  ;;  %v15408_v15 = vld [vmem:[#allocation4 + $0x1b00] sm:$0xff] }
 0x366   :  { %9944 = vmatpush.bf16.msra.mxu1 %v15386_v16  ;;  %v15416_v16 = vld [vmem:[#allocation4 + $0x1b40] sm:$0xff] }
 0x367   :  { %9957 = vmatpush.bf16.msra.mxu2 %v15394_v18  ;;  %v15432_v18 = vld [vmem:[#allocation4 + $0x1bc0] sm:$0xff] }
 0x368   :  { %9970 = vmatpush.bf16.msra.mxu3 %v15402_v19  ;;  %v15447_v19 = vld [vmem:[#allocation4 + $0x1c38] sm:$0xff] }
 0x369   :  { %9932 = vmatpush.bf16.msra.mxu0 %v15377_v20  ;;  %v15455_v20 = vld [vmem:[#allocation4 + $0x1c78] sm:$0xff] }
 0x36a   :  { %9945 = vmatpush.bf16.msra.mxu1 %v15385_v21  ;;  %v15463_v21 = vld [vmem:[#allocation4 + $0x1cb8] sm:$0xff] }
 0x36b   :  { %9958 = vmatpush.bf16.msra.mxu2 %v15393_v22  ;;  %v15471_v22 = vld [vmem:[#allocation4 + $0x1cf8] sm:$0xff] }
 0x36c   :  { %9971 = vmatpush.bf16.msra.mxu3 %v15401_v23  ;;  %v15446_v23 = vld [vmem:[#allocation4 + $0x1c30] sm:$0xff] }
 0x36d   :  { %9933 = vmatpush.bf16.msra.mxu0 %v15376_v26  ;;  %v9727_v46 = vpop.f32.mrf.mxu0  ;;  %v15470_v26 = vld [vmem:[#allocation4 + $0x1cf0] sm:$0xff] }
 0x36e   :  { %9946 = vmatpush.bf16.msra.mxu1 %v15384_v27  ;;  %v9728_v47 = vadd.f32 %v9727_v46, %v9715_v14  ;;  %v9740_v50 = vpop.f32.mrf.mxu1  ;;  %v92_v14 = vld [vmem:[%s15851_s0 + $0x70] sm:$0xff] }
 0x36f   :  { %9959 = vmatpush.bf16.msra.mxu2 %v15392_v28  ;;  %2283 = vst [vmem:[#allocation1] ss:$9 sm:$0xff] %v92_v14  ;;  %v15445_v27 = vld [vmem:[#allocation4 + $0x1c28] sm:$0xff] }
 0x370   :  { %9972 = vmatpush.bf16.msra.mxu3 %v15400_v29  ;;  %9934 = vmatmul.bf16.vlgmr.msra.gmra.mxu0 %v2274_v34  ;;  %v9741_v53 = vadd.f32 %v9740_v50, %v9728_v47  ;;  %v15453_v28 = vld [vmem:[#allocation4 + $0x1c68] sm:$0xff]  ;;  %v15452_v34 = vld [vmem:[#allocation4 + $0x1c60] sm:$0xff] }
 0x371   :  { %9978 = vmatpush.bf16.msrb.mxu0 %v15415_v30  ;;  %9947 = vmatmul.bf16.vlgmr.msra.gmra.mxu1 %v2275_v36  ;;  %v15461_v29 = vld [vmem:[#allocation4 + $0x1ca8] sm:$0xff]  ;;  %v15460_v36 = vld [vmem:[#allocation4 + $0x1ca0] sm:$0xff] }
 0x372   :  { %9991 = vmatpush.bf16.msrb.mxu1 %v15423_v31  ;;  %9960 = vmatmul.bf16.vlgmr.msra.gmra.mxu2 %v2276_v35  ;;  %v15469_v30 = vld [vmem:[#allocation4 + $0x1ce8] sm:$0xff] }
 0x373   :  { %10004 = vmatpush.bf16.msrb.mxu2 %v15431_v32  ;;  %9973 = vmatmul.bf16.vlgmr.msra.gmra.mxu3 %v2277_v37  ;;  %v15468_v37 = vld [vmem:[#allocation4 + $0x1ce0] sm:$0xff]  ;;  %v15501_v14 = vld [vmem:[#allocation4 + $0x1de8] sm:$0xff] }
 0x374   :  { %10017 = vmatpush.bf16.msrb.mxu3 %v15439_v33  ;;  %v15444_v33 = vld [vmem:[#allocation4 + $0x1c20] sm:$0xff] }
 0x375   :  { %9979 = vmatpush.bf16.msrb.mxu0 %v15414_v38  ;;  %v9753_v58 = vpop.f32.mrf.mxu2  ;;  %v9729_v61 = vpop.f32.mrf.mxu0 }
 0x376   :  { %9992 = vmatpush.bf16.msrb.mxu1 %v15422_v39  ;;  %v9754_v59 = vadd.f32 %v9753_v58, %v9741_v53  ;;  %v9766_v60 = vpop.f32.mrf.mxu3  ;;  %v9742_v1 = vpop.f32.mrf.mxu1  ;;  %v15443_v39 = vld [vmem:[#allocation4 + $0x1c18] sm:$0xff]  ;;  %v15441_v53 = vld [vmem:[#allocation4 + $0x1c08] sm:$0xff]  ;;  %v15456_v61 = vld [vmem:[#allocation4 + $0x1c80] sm:$0xff] }
 0x377   :  { %10005 = vmatpush.bf16.msrb.mxu2 %v15430_v40  ;;  %v15451_v40 = vld [vmem:[#allocation4 + $0x1c58] sm:$0xff] }
 0x378   :  { %10018 = vmatpush.bf16.msrb.mxu3 %v15438_v41  ;;  %v15800_v62 = vadd.f32 %v9766_v60, %v9754_v59  ;;  %v15459_v41 = vld [vmem:[#allocation4 + $0x1c98] sm:$0xff]  ;;  %v15440_v59 = vld [vmem:[#allocation4 + $0x1c00] sm:$0xff] }
 0x379   :  { %9980 = vmatpush.bf16.msrb.mxu0 %v15413_v42  ;;  %v15467_v42 = vld [vmem:[#allocation4 + $0x1cd8] sm:$0xff]  ;;  %v15448_v60 = vld [vmem:[#allocation4 + $0x1c40] sm:$0xff] }
 0x37a   :  { %9993 = vmatpush.bf16.msrb.mxu1 %v15421_v43  ;;  %v15495_v1 = vld [vmem:[#allocation4 + $0x1db8] sm:$0xff] }
 0x37b   :  { %10006 = vmatpush.bf16.msrb.mxu2 %v15429_v44 }
 0x37c   :  { %10019 = vmatpush.bf16.msrb.mxu3 %v15437_v45 }
 0x37d   :  { %9981 = vmatpush.bf16.msrb.mxu0 %v15412_v48  ;;  %v9755_v10 = vpop.f32.mrf.mxu2  ;;  %v15442_v48 = vld [vmem:[#allocation4 + $0x1c10] sm:$0xff] }
 0x37e   :  { %9994 = vmatpush.bf16.msrb.mxu1 %v15420_v49  ;;  %v9768_v13 = vpop.f32.mrf.mxu3  ;;  %v15450_v49 = vld [vmem:[#allocation4 + $0x1c50] sm:$0xff] }
 0x37f   :  { %10007 = vmatpush.bf16.msrb.mxu2 %v15428_v51  ;;  %v15458_v51 = vld [vmem:[#allocation4 + $0x1c90] sm:$0xff]  ;;  %v15493_v13 = vld [vmem:[#allocation4 + $0x1da8] sm:$0xff] }
 0x380   :  { %10020 = vmatpush.bf16.msrb.mxu3 %v15436_v52  ;;  %v15466_v52 = vld [vmem:[#allocation4 + $0x1cd0] sm:$0xff] }
 0x381   :  { %9982 = vmatpush.bf16.msrb.mxu0 %v15411_v54  ;;  %v15449_v54 = vld [vmem:[#allocation4 + $0x1c48] sm:$0xff]  ;;  %v15502_v10 = vld [vmem:[#allocation4 + $0x1df0] sm:$0xff] }
 0x382   :  { %9995 = vmatpush.bf16.msrb.mxu1 %v15419_v55  ;;  %v15457_v55 = vld [vmem:[#allocation4 + $0x1c88] sm:$0xff] }
 0x383   :  { %10008 = vmatpush.bf16.msrb.mxu2 %v15427_v56  ;;  %v15465_v56 = vld [vmem:[#allocation4 + $0x1cc8] sm:$0xff] }
 0x384   :  { %10021 = vmatpush.bf16.msrb.mxu3 %v15435_v57 }
 0x385   :  { %9983 = vmatpush.bf16.msrb.mxu0 %v15410_v63  ;;  %v15479_v63 = vld [vmem:[#allocation4 + $0x1d38] sm:$0xff] }
 0x386   :  { %9996 = vmatpush.bf16.msrb.mxu1 %v15418_v0  ;;  %v15487_v0 = vld [vmem:[#allocation4 + $0x1d78] sm:$0xff] }
 0x387   :  { %10009 = vmatpush.bf16.msrb.mxu2 %v15426_v2  ;;  %v15503_v2 = vld [vmem:[#allocation4 + $0x1df8] sm:$0xff] }
 0x388   :  { %10022 = vmatpush.bf16.msrb.mxu3 %v15434_v3  ;;  %v2284_v3 = vld [vmem:[#allocation1] sm:$0xff] }
 0x389   :  { %9984 = vmatpush.bf16.msrb.mxu0 %v15409_v4  ;;  %v2286_v4 = vld [vmem:[#allocation1 + $0x12] sm:$0xff] }
 0x38a   :  { %9997 = vmatpush.bf16.msrb.mxu1 %v15417_v5  ;;  %v2285_v5 = vld [vmem:[#allocation1 + $0x9] sm:$0xff] }
 0x38b   :  { %10010 = vmatpush.bf16.msrb.mxu2 %v15425_v6  ;;  %v2287_v6 = vld [vmem:[#allocation1 + $0x1b] sm:$0xff] }
 0x38c   :  { %10023 = vmatpush.bf16.msrb.mxu3 %v15433_v7  ;;  %v15478_v7 = vld [vmem:[#allocation4 + $0x1d30] sm:$0xff] }
 0x38d   :  { %9985 = vmatpush.bf16.msrb.mxu0 %v15408_v15  ;;  %v9779_v31 = vpop.f32.mrf.mxu0 }
 0x38e   :  { %9998 = vmatpush.bf16.msrb.mxu1 %v15416_v16  ;;  %v9780_v32 = vadd.f32 %v9779_v31, %v15800_v62  ;;  %v9792_v35 = vpop.f32.mrf.mxu1  ;;  %v15464_v62 = vld [vmem:[#allocation4 + $0x1cc0] sm:$0xff] }
 0x38f   :  { %10011 = vmatpush.bf16.msrb.mxu2 %v15424_v17  ;;  %v15476_v17 = vld [vmem:[#allocation4 + $0x1d20] sm:$0xff] }
 0x390   :  { %10024 = vmatpush.bf16.msrb.mxu3 %v15432_v18  ;;  %9986 = vmatmul.bf16.vlgmr.msrb.gmra.mxu0 %v2278_v8  ;;  %v9793_v38 = vadd.f32 %v9792_v35, %v9780_v32  ;;  %v15486_v8 = vld [vmem:[#allocation4 + $0x1d70] sm:$0xff]  ;;  %v15484_v18 = vld [vmem:[#allocation4 + $0x1d60] sm:$0xff] }
 0x391   :  { %10030 = vmatpush.bf16.msra.mxu0 %v15447_v19  ;;  %9999 = vmatmul.bf16.vlgmr.msrb.gmra.mxu1 %v2279_v11  ;;  %v15477_v11 = vld [vmem:[#allocation4 + $0x1d28] sm:$0xff]  ;;  %v15474_v32 = vld [vmem:[#allocation4 + $0x1d10] sm:$0xff] }
 0x392   :  { %10043 = vmatpush.bf16.msra.mxu1 %v15455_v20  ;;  %10012 = vmatmul.bf16.vlgmr.msrb.gmra.mxu2 %v2280_v9  ;;  %v15494_v9 = vld [vmem:[#allocation4 + $0x1db0] sm:$0xff]  ;;  %v15492_v20 = vld [vmem:[#allocation4 + $0x1da0] sm:$0xff] }
 0x393   :  { %10056 = vmatpush.bf16.msra.mxu2 %v15463_v21  ;;  %10025 = vmatmul.bf16.vlgmr.msrb.gmra.mxu3 %v2281_v12  ;;  %v15485_v12 = vld [vmem:[#allocation4 + $0x1d68] sm:$0xff]  ;;  %v15500_v21 = vld [vmem:[#allocation4 + $0x1de0] sm:$0xff]  ;;  %v15490_v35 = vld [vmem:[#allocation4 + $0x1d90] sm:$0xff] }
 0x394   :  { %10069 = vmatpush.bf16.msra.mxu3 %v15471_v22 }
 0x395   :  { %10031 = vmatpush.bf16.msra.mxu0 %v15446_v23  ;;  %v9805_v43 = vpop.f32.mrf.mxu2  ;;  %v9781_v46 = vpop.f32.mrf.mxu0  ;;  %v15475_v23 = vld [vmem:[#allocation4 + $0x1d18] sm:$0xff] }
 0x396   :  { %10044 = vmatpush.bf16.msra.mxu1 %v15454_v24  ;;  %v9806_v44 = vadd.f32 %v9805_v43, %v9793_v38  ;;  %v9818_v45 = vpop.f32.mrf.mxu3  ;;  %v9794_v50 = vpop.f32.mrf.mxu1  ;;  %v15483_v24 = vld [vmem:[#allocation4 + $0x1d58] sm:$0xff]  ;;  %v15481_v38 = vld [vmem:[#allocation4 + $0x1d48] sm:$0xff] }
 0x397   :  { %10057 = vmatpush.bf16.msra.mxu2 %v15462_v25  ;;  %v15491_v25 = vld [vmem:[#allocation4 + $0x1d98] sm:$0xff]  ;;  %v15488_v50 = vld [vmem:[#allocation4 + $0x1d80] sm:$0xff] }
 0x398   :  { %10070 = vmatpush.bf16.msra.mxu3 %v15470_v26  ;;  %v9819_v47 = vadd.f32 %v9818_v45, %v9806_v44  ;;  %v15499_v26 = vld [vmem:[#allocation4 + $0x1dd8] sm:$0xff]  ;;  %v2289_v44 = vld [vmem:[#allocation1 + $0x2d] sm:$0xff] }
 0x399   :  { %10032 = vmatpush.bf16.msra.mxu0 %v15445_v27  ;;  %v2291_v45 = vld [vmem:[#allocation1 + $0x3f] sm:$0xff] }
 0x39a   :  { %10045 = vmatpush.bf16.msra.mxu1 %v15453_v28 }
 0x39b   :  { %10058 = vmatpush.bf16.msra.mxu2 %v15461_v29 }
 0x39c   :  { %10071 = vmatpush.bf16.msra.mxu3 %v15469_v30 }
 0x39d   :  { %10033 = vmatpush.bf16.msra.mxu0 %v15444_v33  ;;  %v9807_v57 = vpop.f32.mrf.mxu2  ;;  %v15482_v33 = vld [vmem:[#allocation4 + $0x1d50] sm:$0xff] }
 0x39e   :  { %10046 = vmatpush.bf16.msra.mxu1 %v15452_v34  ;;  %v9820_v58 = vpop.f32.mrf.mxu3  ;;  %v15518_v57 = vld [vmem:[#allocation4 + $0x1e70] sm:$0xff] }
 0x39f   :  { %10059 = vmatpush.bf16.msra.mxu2 %v15460_v36  ;;  %v15498_v36 = vld [vmem:[#allocation4 + $0x1dd0] sm:$0xff] }
 0x3a0   :  { %10072 = vmatpush.bf16.msra.mxu3 %v15468_v37  ;;  %v15473_v37 = vld [vmem:[#allocation4 + $0x1d08] sm:$0xff]  ;;  %v15526_v58 = vld [vmem:[#allocation4 + $0x1eb0] sm:$0xff] }
 0x3a1   :  { %10034 = vmatpush.bf16.msra.mxu0 %v15443_v39  ;;  %v15489_v39 = vld [vmem:[#allocation4 + $0x1d88] sm:$0xff] }
 0x3a2   :  { %10047 = vmatpush.bf16.msra.mxu1 %v15451_v40  ;;  %v15497_v40 = vld [vmem:[#allocation4 + $0x1dc8] sm:$0xff] }
 0x3a3   :  { %10060 = vmatpush.bf16.msra.mxu2 %v15459_v41  ;;  %v2288_v41 = vld [vmem:[#allocation1 + $0x24] sm:$0xff] }
 0x3a4   :  { %10073 = vmatpush.bf16.msra.mxu3 %v15467_v42  ;;  %v2290_v42 = vld [vmem:[#allocation1 + $0x36] sm:$0xff] }
 0x3a5   :  { %10035 = vmatpush.bf16.msra.mxu0 %v15442_v48  ;;  %v15472_v48 = vld [vmem:[#allocation4 + $0x1d00] sm:$0xff] }
 0x3a6   :  { %10048 = vmatpush.bf16.msra.mxu1 %v15450_v49  ;;  %v15480_v49 = vld [vmem:[#allocation4 + $0x1d40] sm:$0xff] }
 0x3a7   :  { %10061 = vmatpush.bf16.msra.mxu2 %v15458_v51  ;;  %v15496_v51 = vld [vmem:[#allocation4 + $0x1dc0] sm:$0xff] }
 0x3a8   :  { %10074 = vmatpush.bf16.msra.mxu3 %v15466_v52  ;;  %v15511_v52 = vld [vmem:[#allocation4 + $0x1e38] sm:$0xff] }
 0x3a9   :  { %10036 = vmatpush.bf16.msra.mxu0 %v15441_v53  ;;  %v15519_v53 = vld [vmem:[#allocation4 + $0x1e78] sm:$0xff] }
 0x3aa   :  { %10049 = vmatpush.bf16.msra.mxu1 %v15449_v54  ;;  %v15527_v54 = vld [vmem:[#allocation4 + $0x1eb8] sm:$0xff] }
 0x3ab   :  { %10062 = vmatpush.bf16.msra.mxu2 %v15457_v55  ;;  %v15535_v55 = vld [vmem:[#allocation4 + $0x1ef8] sm:$0xff] }
 0x3ac   :  { %10075 = vmatpush.bf16.msra.mxu3 %v15465_v56  ;;  %v15510_v56 = vld [vmem:[#allocation4 + $0x1e30] sm:$0xff] }
 0x3ad   :  { %10037 = vmatpush.bf16.msra.mxu0 %v15440_v59  ;;  %v9831_v15 = vpop.f32.mrf.mxu0  ;;  %v15534_v59 = vld [vmem:[#allocation4 + $0x1ef0] sm:$0xff] }
 0x3ae   :  { %10050 = vmatpush.bf16.msra.mxu1 %v15448_v60  ;;  %v9832_v16 = vadd.f32 %v9831_v15, %v9819_v47  ;;  %v9844_v19 = vpop.f32.mrf.mxu1  ;;  %v93_v47 = vld [vmem:[%s15851_s0 + $0x78] sm:$0xff] }
 0x3af   :  { %10063 = vmatpush.bf16.msra.mxu2 %v15456_v61  ;;  %2293 = vst [vmem:[#allocation1] ss:$9 sm:$0xff] %v93_v47  ;;  %v15509_v60 = vld [vmem:[#allocation4 + $0x1e28] sm:$0xff] }
 0x3b0   :  { %10076 = vmatpush.bf16.msra.mxu3 %v15464_v62  ;;  %10038 = vmatmul.bf16.vlgmr.msra.gmra.mxu0 %v2284_v3  ;;  %v9845_v22 = vadd.f32 %v9844_v19, %v9832_v16  ;;  %v15517_v61 = vld [vmem:[#allocation4 + $0x1e68] sm:$0xff]  ;;  %v15516_v3 = vld [vmem:[#allocation4 + $0x1e60] sm:$0xff] }
 0x3b1   :  { %10082 = vmatpush.bf16.msrb.mxu0 %v15479_v63  ;;  %10051 = vmatmul.bf16.vlgmr.msra.gmra.mxu1 %v2285_v5  ;;  %v15525_v62 = vld [vmem:[#allocation4 + $0x1ea8] sm:$0xff]  ;;  %v15524_v5 = vld [vmem:[#allocation4 + $0x1ea0] sm:$0xff] }
 0x3b2   :  { %10095 = vmatpush.bf16.msrb.mxu1 %v15487_v0  ;;  %10064 = vmatmul.bf16.vlgmr.msra.gmra.mxu2 %v2286_v4  ;;  %v15533_v63 = vld [vmem:[#allocation4 + $0x1ee8] sm:$0xff] }
 0x3b3   :  { %10108 = vmatpush.bf16.msrb.mxu2 %v15495_v1  ;;  %10077 = vmatmul.bf16.vlgmr.msra.gmra.mxu3 %v2287_v6  ;;  %v15532_v6 = vld [vmem:[#allocation4 + $0x1ee0] sm:$0xff]  ;;  %v15565_v47 = vld [vmem:[#allocation4 + $0x1fe8] sm:$0xff] }
 0x3b4   :  { %10121 = vmatpush.bf16.msrb.mxu3 %v15503_v2  ;;  %v15508_v2 = vld [vmem:[#allocation4 + $0x1e20] sm:$0xff] }
 0x3b5   :  { %10083 = vmatpush.bf16.msrb.mxu0 %v15478_v7  ;;  %v9857_v27 = vpop.f32.mrf.mxu2  ;;  %v9833_v30 = vpop.f32.mrf.mxu0 }
 0x3b6   :  { %10096 = vmatpush.bf16.msrb.mxu1 %v15486_v8  ;;  %v9858_v28 = vadd.f32 %v9857_v27, %v9845_v22  ;;  %v9870_v29 = vpop.f32.mrf.mxu3  ;;  %v9846_v34 = vpop.f32.mrf.mxu1  ;;  %v15507_v8 = vld [vmem:[#allocation4 + $0x1e18] sm:$0xff]  ;;  %v15505_v22 = vld [vmem:[#allocation4 + $0x1e08] sm:$0xff]  ;;  %v15520_v30 = vld [vmem:[#allocation4 + $0x1e80] sm:$0xff] }
 0x3b7   :  { %10109 = vmatpush.bf16.msrb.mxu2 %v15494_v9  ;;  %v15515_v9 = vld [vmem:[#allocation4 + $0x1e58] sm:$0xff] }
 0x3b8   :  { %10122 = vmatpush.bf16.msrb.mxu3 %v15502_v10  ;;  %v15806_v31 = vadd.f32 %v9870_v29, %v9858_v28  ;;  %v15523_v10 = vld [vmem:[#allocation4 + $0x1e98] sm:$0xff]  ;;  %v15504_v28 = vld [vmem:[#allocation4 + $0x1e00] sm:$0xff] }
 0x3b9   :  { %10084 = vmatpush.bf16.msrb.mxu0 %v15477_v11  ;;  %v15531_v11 = vld [vmem:[#allocation4 + $0x1ed8] sm:$0xff]  ;;  %v15512_v29 = vld [vmem:[#allocation4 + $0x1e40] sm:$0xff] }
 0x3ba   :  { %10097 = vmatpush.bf16.msrb.mxu1 %v15485_v12  ;;  %v15559_v34 = vld [vmem:[#allocation4 + $0x1fb8] sm:$0xff] }
 0x3bb   :  { %10110 = vmatpush.bf16.msrb.mxu2 %v15493_v13 }
 0x3bc   :  { %10123 = vmatpush.bf16.msrb.mxu3 %v15501_v14 }
 0x3bd   :  { %10085 = vmatpush.bf16.msrb.mxu0 %v15476_v17  ;;  %v9859_v43 = vpop.f32.mrf.mxu2  ;;  %v15506_v17 = vld [vmem:[#allocation4 + $0x1e10] sm:$0xff] }
 0x3be   :  { %10098 = vmatpush.bf16.msrb.mxu1 %v15484_v18  ;;  %v9872_v46 = vpop.f32.mrf.mxu3  ;;  %v15514_v18 = vld [vmem:[#allocation4 + $0x1e50] sm:$0xff] }
 0x3bf   :  { %10111 = vmatpush.bf16.msrb.mxu2 %v15492_v20  ;;  %v15522_v20 = vld [vmem:[#allocation4 + $0x1e90] sm:$0xff]  ;;  %v15557_v46 = vld [vmem:[#allocation4 + $0x1fa8] sm:$0xff] }
 0x3c0   :  { %10124 = vmatpush.bf16.msrb.mxu3 %v15500_v21  ;;  %v15530_v21 = vld [vmem:[#allocation4 + $0x1ed0] sm:$0xff] }
 0x3c1   :  { %10086 = vmatpush.bf16.msrb.mxu0 %v15475_v23  ;;  %v15513_v23 = vld [vmem:[#allocation4 + $0x1e48] sm:$0xff]  ;;  %v15566_v43 = vld [vmem:[#allocation4 + $0x1ff0] sm:$0xff] }
 0x3c2   :  { %10099 = vmatpush.bf16.msrb.mxu1 %v15483_v24  ;;  %v15521_v24 = vld [vmem:[#allocation4 + $0x1e88] sm:$0xff] }
 0x3c3   :  { %10112 = vmatpush.bf16.msrb.mxu2 %v15491_v25  ;;  %v15529_v25 = vld [vmem:[#allocation4 + $0x1ec8] sm:$0xff] }
 0x3c4   :  { %10125 = vmatpush.bf16.msrb.mxu3 %v15499_v26 }
 0x3c5   :  { %10087 = vmatpush.bf16.msrb.mxu0 %v15474_v32  ;;  %v15543_v32 = vld [vmem:[#allocation4 + $0x1f38] sm:$0xff] }
 0x3c6   :  { %10100 = vmatpush.bf16.msrb.mxu1 %v15482_v33  ;;  %v15551_v33 = vld [vmem:[#allocation4 + $0x1f78] sm:$0xff] }
 0x3c7   :  { %10113 = vmatpush.bf16.msrb.mxu2 %v15490_v35  ;;  %v15567_v35 = vld [vmem:[#allocation4 + $0x1ff8] sm:$0xff] }
 0x3c8   :  { %10126 = vmatpush.bf16.msrb.mxu3 %v15498_v36  ;;  %v2294_v36 = vld [vmem:[#allocation1] sm:$0xff] }
 0x3c9   :  { %10088 = vmatpush.bf16.msrb.mxu0 %v15473_v37  ;;  %v2296_v37 = vld [vmem:[#allocation1 + $0x12] sm:$0xff] }
 0x3ca   :  { %10101 = vmatpush.bf16.msrb.mxu1 %v15481_v38  ;;  %v2295_v38 = vld [vmem:[#allocation1 + $0x9] sm:$0xff] }
 0x3cb   :  { %10114 = vmatpush.bf16.msrb.mxu2 %v15489_v39  ;;  %v2297_v39 = vld [vmem:[#allocation1 + $0x1b] sm:$0xff] }
 0x3cc   :  { %10127 = vmatpush.bf16.msrb.mxu3 %v15497_v40  ;;  %v15542_v40 = vld [vmem:[#allocation4 + $0x1f30] sm:$0xff] }
 0x3cd   :  { %10089 = vmatpush.bf16.msrb.mxu0 %v15472_v48  ;;  %v9883_v0 = vpop.f32.mrf.mxu0 }
 0x3ce   :  { %10102 = vmatpush.bf16.msrb.mxu1 %v15480_v49  ;;  %v9884_v1 = vadd.f32 %v9883_v0, %v15806_v31  ;;  %v9896_v4 = vpop.f32.mrf.mxu1  ;;  %v15528_v31 = vld [vmem:[#allocation4 + $0x1ec0] sm:$0xff] }
 0x3cf   :  { %10115 = vmatpush.bf16.msrb.mxu2 %v15488_v50  ;;  %v15540_v50 = vld [vmem:[#allocation4 + $0x1f20] sm:$0xff] }
 0x3d0   :  { %10128 = vmatpush.bf16.msrb.mxu3 %v15496_v51  ;;  %10090 = vmatmul.bf16.vlgmr.msrb.gmra.mxu0 %v2288_v41  ;;  %v9897_v7 = vadd.f32 %v9896_v4, %v9884_v1  ;;  %v15550_v41 = vld [vmem:[#allocation4 + $0x1f70] sm:$0xff]  ;;  %v15548_v51 = vld [vmem:[#allocation4 + $0x1f60] sm:$0xff] }
 0x3d1   :  { %10134 = vmatpush.bf16.msra.mxu0 %v15511_v52  ;;  %10103 = vmatmul.bf16.vlgmr.msrb.gmra.mxu1 %v2289_v44  ;;  %v15541_v44 = vld [vmem:[#allocation4 + $0x1f28] sm:$0xff]  ;;  %v15538_v1 = vld [vmem:[#allocation4 + $0x1f10] sm:$0xff] }
 0x3d2   :  { %10147 = vmatpush.bf16.msra.mxu1 %v15519_v53  ;;  %10116 = vmatmul.bf16.vlgmr.msrb.gmra.mxu2 %v2290_v42  ;;  %v15558_v42 = vld [vmem:[#allocation4 + $0x1fb0] sm:$0xff]  ;;  %v15556_v53 = vld [vmem:[#allocation4 + $0x1fa0] sm:$0xff] }
 0x3d3   :  { %10160 = vmatpush.bf16.msra.mxu2 %v15527_v54  ;;  %10129 = vmatmul.bf16.vlgmr.msrb.gmra.mxu3 %v2291_v45  ;;  %v15549_v45 = vld [vmem:[#allocation4 + $0x1f68] sm:$0xff]  ;;  %v15564_v54 = vld [vmem:[#allocation4 + $0x1fe0] sm:$0xff]  ;;  %v15554_v4 = vld [vmem:[#allocation4 + $0x1f90] sm:$0xff] }
 0x3d4   :  { %10173 = vmatpush.bf16.msra.mxu3 %v15535_v55 }
 0x3d5   :  { %10135 = vmatpush.bf16.msra.mxu0 %v15510_v56  ;;  %v9909_v12 = vpop.f32.mrf.mxu2  ;;  %v9885_v15 = vpop.f32.mrf.mxu0  ;;  %v15539_v56 = vld [vmem:[#allocation4 + $0x1f18] sm:$0xff] }
 0x3d6   :  { %10148 = vmatpush.bf16.msra.mxu1 %v15518_v57  ;;  %v9910_v13 = vadd.f32 %v9909_v12, %v9897_v7  ;;  %v9922_v14 = vpop.f32.mrf.mxu3  ;;  %v9898_v19 = vpop.f32.mrf.mxu1  ;;  %v15547_v57 = vld [vmem:[#allocation4 + $0x1f58] sm:$0xff]  ;;  %v15545_v7 = vld [vmem:[#allocation4 + $0x1f48] sm:$0xff]  ;;  %v15536_v12 = vld [vmem:[#allocation4 + $0x1f00] sm:$0xff] }
 0x3d7   :  { %10161 = vmatpush.bf16.msra.mxu2 %v15526_v58  ;;  %v15555_v58 = vld [vmem:[#allocation4 + $0x1f98] sm:$0xff]  ;;  %v15560_v15 = vld [vmem:[#allocation4 + $0x1fc0] sm:$0xff] }
 0x3d8   :  { %10174 = vmatpush.bf16.msra.mxu3 %v15534_v59  ;;  %v9923_v16 = vadd.f32 %v9922_v14, %v9910_v13  ;;  %v15563_v59 = vld [vmem:[#allocation4 + $0x1fd8] sm:$0xff]  ;;  %v15544_v13 = vld [vmem:[#allocation4 + $0x1f40] sm:$0xff] }
 0x3d9   :  { %10136 = vmatpush.bf16.msra.mxu0 %v15509_v60  ;;  %v15552_v14 = vld [vmem:[#allocation4 + $0x1f80] sm:$0xff]  ;;  %v2301_v19 = vld [vmem:[#allocation1 + $0x3f] sm:$0xff] }
 0x3da   :  { %10149 = vmatpush.bf16.msra.mxu1 %v15517_v61 }
 0x3db   :  { %10162 = vmatpush.bf16.msra.mxu2 %v15525_v62 }
 0x3dc   :  { %10175 = vmatpush.bf16.msra.mxu3 %v15533_v63 }
 0x3dd   :  { %10137 = vmatpush.bf16.msra.mxu0 %v15508_v2  ;;  %v9911_v26 = vpop.f32.mrf.mxu2  ;;  %v15546_v2 = vld [vmem:[#allocation4 + $0x1f50] sm:$0xff] }
 0x3de   :  { %10150 = vmatpush.bf16.msra.mxu1 %v15516_v3  ;;  %v9924_v27 = vpop.f32.mrf.mxu3 }
 0x3df   :  { %10163 = vmatpush.bf16.msra.mxu2 %v15524_v5  ;;  %v15562_v5 = vld [vmem:[#allocation4 + $0x1fd0] sm:$0xff] }
 0x3e0   :  { %10176 = vmatpush.bf16.msra.mxu3 %v15532_v6  ;;  %v15537_v6 = vld [vmem:[#allocation4 + $0x1f08] sm:$0xff] }
 0x3e1   :  { %10138 = vmatpush.bf16.msra.mxu0 %v15507_v8  ;;  %v15553_v8 = vld [vmem:[#allocation4 + $0x1f88] sm:$0xff] }
 0x3e2   :  { %10151 = vmatpush.bf16.msra.mxu1 %v15515_v9  ;;  %v15561_v9 = vld [vmem:[#allocation4 + $0x1fc8] sm:$0xff] }
 0x3e3   :  { %10164 = vmatpush.bf16.msra.mxu2 %v15523_v10 }
 0x3e4   :  { %10177 = vmatpush.bf16.msra.mxu3 %v15531_v11 }
 0x3e5   :  { %10139 = vmatpush.bf16.msra.mxu0 %v15506_v17  ;;  %v2299_v17 = vld [vmem:[#allocation1 + $0x2d] sm:$0xff] }
 0x3e6   :  { %10152 = vmatpush.bf16.msra.mxu1 %v15514_v18  ;;  %v2300_v18 = vld [vmem:[#allocation1 + $0x36] sm:$0xff] }
 0x3e7   :  { %10165 = vmatpush.bf16.msra.mxu2 %v15522_v20 }
 0x3e8   :  { %10178 = vmatpush.bf16.msra.mxu3 %v15530_v21 }
 0x3e9   :  { %10140 = vmatpush.bf16.msra.mxu0 %v15505_v22 }
 0x3ea   :  { %10153 = vmatpush.bf16.msra.mxu1 %v15513_v23 }
 0x3eb   :  { %10166 = vmatpush.bf16.msra.mxu2 %v15521_v24 }
 0x3ec   :  { %10179 = vmatpush.bf16.msra.mxu3 %v15529_v25 }
 0x3ed   :  { %10141 = vmatpush.bf16.msra.mxu0 %v15504_v28  ;;  %v9935_v48 = vpop.f32.mrf.mxu0 }
 0x3ee   :  { %10154 = vmatpush.bf16.msra.mxu1 %v15512_v29  ;;  %v9936_v49 = vadd.f32 %v9935_v48, %v9923_v16  ;;  %v9948_v52 = vpop.f32.mrf.mxu1  ;;  %v2298_v16 = vld [vmem:[#allocation1 + $0x24] sm:$0xff] }
 0x3ef   :  { %10167 = vmatpush.bf16.msra.mxu2 %v15520_v30 }
 0x3f0   :  { %10180 = vmatpush.bf16.msra.mxu3 %v15528_v31  ;;  %10142 = vmatmul.bf16.vlgmr.msra.gmra.mxu0 %v2294_v36  ;;  %v9949_v55 = vadd.f32 %v9948_v52, %v9936_v49 }
 0x3f1   :  { %10186 = vmatpush.bf16.msrb.mxu0 %v15543_v32  ;;  %10155 = vmatmul.bf16.vlgmr.msra.gmra.mxu1 %v2295_v38 }
 0x3f2   :  { %10199 = vmatpush.bf16.msrb.mxu1 %v15551_v33  ;;  %10168 = vmatmul.bf16.vlgmr.msra.gmra.mxu2 %v2296_v37 }
 0x3f3   :  { %10212 = vmatpush.bf16.msrb.mxu2 %v15559_v34  ;;  %10181 = vmatmul.bf16.vlgmr.msra.gmra.mxu3 %v2297_v39 }
 0x3f4   :  { %10225 = vmatpush.bf16.msrb.mxu3 %v15567_v35 }
 0x3f5   :  { %10187 = vmatpush.bf16.msrb.mxu0 %v15542_v40  ;;  %v9961_v60 = vpop.f32.mrf.mxu2  ;;  %v9937_v63 = vpop.f32.mrf.mxu0 }
 0x3f6   :  { %10200 = vmatpush.bf16.msrb.mxu1 %v15550_v41  ;;  %v9962_v61 = vadd.f32 %v9961_v60, %v9949_v55  ;;  %v9974_v62 = vpop.f32.mrf.mxu3  ;;  %v9950_v3 = vpop.f32.mrf.mxu1  ;;  %v15573_v55 = vld [vmem:[%s15854_s3 + $0x28] sm:$0xff]  ;;  %v15571_v63 = vld [vmem:[%s15854_s3 + $0x18] sm:$0xff] }
 0x3f7   :  { %10213 = vmatpush.bf16.msrb.mxu2 %v15558_v42 }
 0x3f8   :  { %10226 = vmatpush.bf16.msrb.mxu3 %v15566_v43  ;;  %v9975_v0 = vadd.f32 %v9974_v62, %v9962_v61 }
 0x3f9   :  { %10188 = vmatpush.bf16.msrb.mxu0 %v15541_v44 }
 0x3fa   :  { %10201 = vmatpush.bf16.msrb.mxu1 %v15549_v45 }
 0x3fb   :  { %10214 = vmatpush.bf16.msrb.mxu2 %v15557_v46 }
 0x3fc   :  { %10227 = vmatpush.bf16.msrb.mxu3 %v15565_v47 }
 0x3fd   :  { %10189 = vmatpush.bf16.msrb.mxu0 %v15540_v50  ;;  %v9963_v10 = vpop.f32.mrf.mxu2  ;;  %v15575_v50 = vld [vmem:[%s15854_s3 + $0x38] sm:$0xff] }
 0x3fe   :  { %10202 = vmatpush.bf16.msrb.mxu1 %v15548_v51  ;;  %v9976_v11 = vpop.f32.mrf.mxu3 }
 0x3ff   :  { %10215 = vmatpush.bf16.msrb.mxu2 %v15556_v53  ;;  %v15574_v53 = vld [vmem:[%s15854_s3 + $0x30] sm:$0xff] }
 0x400   :  { %10228 = vmatpush.bf16.msrb.mxu3 %v15564_v54 }
 0x401   :  { %10190 = vmatpush.bf16.msrb.mxu0 %v15539_v56 }
 0x402   :  { %10203 = vmatpush.bf16.msrb.mxu1 %v15547_v57  ;;  %v15672_v57 = vmov 0.0  }
 0x403   :  { %10216 = vmatpush.bf16.msrb.mxu2 %v15555_v58  ;;  %76 = vst [vmem:[#allocation2] sm:$0x3] %v15672_v57  ;;  %v15572_v58 = vld [vmem:[%s15854_s3 + $0x20] sm:$0xff] }
 0x404   :  { %10229 = vmatpush.bf16.msrb.mxu3 %v15563_v59 }
 0x405   :  { %10191 = vmatpush.bf16.msrb.mxu0 %v15538_v1 }
 0x406   :  { %10204 = vmatpush.bf16.msrb.mxu1 %v15546_v2  ;;  %v15570_v2 = vld [vmem:[%s15854_s3 + $0x10] sm:$0xff] }
 0x407   :  { %10217 = vmatpush.bf16.msrb.mxu2 %v15554_v4 }
 0x408   :  { %10230 = vmatpush.bf16.msrb.mxu3 %v15562_v5  ;;  %v15569_v5 = vld [vmem:[%s15854_s3 + $0x8] sm:$0xff] }
 0x409   :  { %10192 = vmatpush.bf16.msrb.mxu0 %v15537_v6 }
 0x40a   :  { %10205 = vmatpush.bf16.msrb.mxu1 %v15545_v7 }
 0x40b   :  { %10218 = vmatpush.bf16.msrb.mxu2 %v15553_v8  ;;  %v15568_v8 = vld [vmem:[%s15854_s3] sm:$0xff] }
 0x40c   :  { %10231 = vmatpush.bf16.msrb.mxu3 %v15561_v9 }
 0x40d   :  { %10193 = vmatpush.bf16.msrb.mxu0 %v15536_v12  ;;  %v9987_v20 = vpop.f32.mrf.mxu0  ;;  %v15579_v12 = vld [vmem:[%s15856_s5 + $0x18] sm:$0xff] }
 0x40e   :  { %10206 = vmatpush.bf16.msrb.mxu1 %v15544_v13  ;;  %v9988_v21 = vadd.f32 %v9987_v20, %v9975_v0  ;;  %v10000_v22 = vpop.f32.mrf.mxu1  ;;  %v15578_v13 = vld [vmem:[%s15856_s5 + $0x10] sm:$0xff] }
 0x40f   :  { %10219 = vmatpush.bf16.msrb.mxu2 %v15552_v14 }
 0x410   :  { %10232 = vmatpush.bf16.msrb.mxu3 %v15560_v15  ;;  %10194 = vmatmul.bf16.vlgmr.msrb.gmra.mxu0 %v2298_v16  ;;  %v10001_v23 = vadd.f32 %v10000_v22, %v9988_v21 }
 0x411   :  { %10207 = vmatmul.bf16.vlgmr.msrb.gmra.mxu1 %v2299_v17  ;;  %10319 = vmatpush.bf16.msra.mxu0 %v15575_v50 }
 0x412   :  { %10220 = vmatmul.bf16.vlgmr.msrb.gmra.mxu2 %v2300_v18  ;;  %10378 = vmatpush.bf16.msra.mxu1 %v15579_v12  ;;  %v15577_v18 = vld [vmem:[%s15856_s5 + $0x8] sm:$0xff] }
 0x413   :  { %10233 = vmatmul.bf16.vlgmr.msrb.gmra.mxu3 %v2301_v19 }
 0x415   :  { %v10013_v24 = vpop.f32.mrf.mxu2  ;;  %v9989_v27 = vpop.f32.mrf.mxu0  ;;  %10320 = vmatpush.bf16.msra.mxu0 %v15574_v53 }
 0x416   :  { %v10014_v25 = vadd.f32 %v10013_v24, %v10001_v23  ;;  %v10026_v26 = vpop.f32.mrf.mxu3  ;;  %v10002_v29 = vpop.f32.mrf.mxu1  ;;  %10379 = vmatpush.bf16.msra.mxu1 %v15578_v13 }
 0x418   :  { %v10027_v28 = vadd.f32 %v10026_v26, %v10014_v25  ;;  %v77_v25 = vld [vmem:[#allocation2] sm:$0x3] }
 0x419   :  { %10321 = vmatpush.bf16.msra.mxu0 %v15573_v55 }
 0x41a   :  { %10380 = vmatpush.bf16.msra.mxu1 %v15577_v18 }
 0x41d   :  { %v10015_v30 = vpop.f32.mrf.mxu2  ;;  %10322 = vmatpush.bf16.msra.mxu0 %v15572_v58 }
 0x41e   :  { %v10028_v31 = vpop.f32.mrf.mxu3  ;;  %v15586_v30 = vld [vmem:[#allocation6] ss:$0 sm:$0xff] }
 0x421   :  { %10323 = vmatpush.bf16.msra.mxu0 %v15571_v63 }
 0x425   :  { %10324 = vmatpush.bf16.msra.mxu0 %v15570_v2 }
 0x429   :  { %10325 = vmatpush.bf16.msra.mxu0 %v15569_v5 }
 0x42d   :  { %v10039_v32 = vpop.f32.mrf.mxu0  ;;  %10326 = vmatpush.bf16.msra.mxu0 %v15568_v8 }
 0x42e   :  { %v10040_v33 = vadd.f32 %v10039_v32, %v10027_v28  ;;  %v10052_v34 = vpop.f32.mrf.mxu1 }
 0x430   :  { %v10053_v35 = vadd.f32 %v10052_v34, %v10040_v33 }
 0x435   :  { %v10065_v36 = vpop.f32.mrf.mxu2  ;;  %v10041_v39 = vpop.f32.mrf.mxu0 }
 0x436   :  { %v10066_v37 = vadd.f32 %v10065_v36, %v10053_v35  ;;  %v10078_v38 = vpop.f32.mrf.mxu3  ;;  %v10054_v41 = vpop.f32.mrf.mxu1  ;;  %v15576_v35 = vld [vmem:[%s15856_s5] sm:$0xff]  ;;  %v15587_v36 = vld [vmem:[#allocation8] ss:$0 sm:$0xff] }
 0x437   :  { %10381 = vmatpush.bf16.msra.mxu1 %v15576_v35 }
 0x438   :  { %v10079_v40 = vadd.f32 %v10078_v38, %v10066_v37 }
 0x43d   :  { %v10067_v42 = vpop.f32.mrf.mxu2 }
 0x43e   :  { %v10080_v43 = vpop.f32.mrf.mxu3  ;;  %v15588_v42 = vld [vmem:[#allocation3] ss:$0 sm:$0xff] }
 0x44d   :  { %v10091_v44 = vpop.f32.mrf.mxu0 }
 0x44e   :  { %v10104_v45 = vpop.f32.mrf.mxu1  ;;  %v10092_v60 = vadd.f32 %v10091_v44, %v10079_v40 }
 0x450   :  { %v10105_v1 = vadd.f32 %v10104_v45, %v10092_v60 }
 0x455   :  { %v10117_v46 = vpop.f32.mrf.mxu2  ;;  %v10093_v48 = vpop.f32.mrf.mxu0 }
 0x456   :  { %v10130_v47 = vpop.f32.mrf.mxu3  ;;  %v10106_v49 = vpop.f32.mrf.mxu1  ;;  %v10118_v3 = vadd.f32 %v10117_v46, %v10105_v1 }
 0x458   :  { %v10131_v7 = vadd.f32 %v10130_v47, %v10118_v3 }
 0x45d   :  { %v10119_v51 = vpop.f32.mrf.mxu2 }
 0x45e   :  { %v10132_v52 = vpop.f32.mrf.mxu3 }
 0x46d   :  { %v10143_v54 = vpop.f32.mrf.mxu0 }
 0x46e   :  { %v10156_v56 = vpop.f32.mrf.mxu1  ;;  %v10144_v9 = vadd.f32 %v10143_v54, %v10131_v7 }
 0x470   :  { %v10157_v10 = vadd.f32 %v10156_v56, %v10144_v9 }
 0x475   :  { %v10169_v59 = vpop.f32.mrf.mxu2  ;;  %v10145_v62 = vpop.f32.mrf.mxu0 }
 0x476   :  { %v10182_v61 = vpop.f32.mrf.mxu3  ;;  %v10158_v0 = vpop.f32.mrf.mxu1  ;;  %v10170_v11 = vadd.f32 %v10169_v59, %v10157_v10 }
 0x478   :  { %v10183_v14 = vadd.f32 %v10182_v61, %v10170_v11 }
 0x47d   :  { %v10171_v4 = vpop.f32.mrf.mxu2 }
 0x47e   :  { %v10184_v6 = vpop.f32.mrf.mxu3 }
 0x48d   :  { %v10195_v15 = vpop.f32.mrf.mxu0 }
 0x48e   :  { %v10208_v16 = vpop.f32.mrf.mxu1  ;;  %v10196_v17 = vadd.f32 %v10195_v15, %v10183_v14 }
 0x490   :  { %v10209_v19 = vadd.f32 %v10208_v16, %v10196_v17 }
 0x495   :  { %v10221_v20 = vpop.f32.mrf.mxu2  ;;  %v10197_v23 = vpop.f32.mrf.mxu0 }
 0x496   :  { %v10234_v21 = vpop.f32.mrf.mxu3  ;;  %v10222_v22 = vadd.f32 %v10221_v20, %v10209_v19  ;;  %v10210_v24 = vpop.f32.mrf.mxu1 }
 0x498   :  { %v10235_v26 = vadd.f32 %v10234_v21, %v10222_v22 }
 0x49a   :  { %v10238_v27 = vadd.f32 %v10235_v26, %v77_v25 }
 0x49c   :  { %10239 = vst [vmem:[#allocation2] sm:$0x3] %v10238_v27 }
 0x49d   :  { %v10223_v28 = vpop.f32.mrf.mxu2 }
 0x49e   :  { %v10236_v29 = vpop.f32.mrf.mxu3 }
 0x4a3   :  { %v10243_v31 = vld [vmem:[#allocation2] sm:$0x3] }
 0x4a4   :  { %v10248_v32 = vadd.f32 %v15586_v30, %v10243_v31 }
 0x4a6   :  { %v10249_v33 = vmax.f32 %v10248_v32, 0.0 }
 0x4a8   :  { %v10250_v34 = vpack.c.bf16 %v10249_v33, %v10249_v33 }
 0x4aa   :  { %10327 = vmatmul.bf16.vlgmr.msra.gmra.mxu0 %v10250_v34 }
 0x527   :  { %v10328_v37 = vpop.f32.mrf.mxu0 }
 0x528   :  { %v10329_v38 = vadd.f32 %v15587_v36, %v10328_v37 }
 0x52a   :  { %v10332_v39 = vmax.f32 %v10329_v38, 0.0 }
 0x52c   :  { %v10333_v40 = vpack.c.bf16 %v10332_v39, %v10332_v39 }
 0x52e   :  { %14543 = vmatmul.msk.bf16.vlgmr.msra.gmra.mxu1 %vm10370_vm0, %v10333_v40 }
 0x52f   :  { %v10330_v41 = vpop.f32.mrf.mxu0 }
 0x5ab   :  { %v10383_v43 = vpop.f32.mrf.mxu1 }
 0x5ac   :  { %v10384_v44 = vadd.f32 %v15588_v42, %v10383_v43 }
 0x5ae   :  { %v10387_v45 = vmul.f32 0.5, %v10384_v44 }
 0x5b0   :  { %15589 = vtanh.f32 %v10387_v45 }
 0x5b3   :  { %v10385_v46 = vpop.f32.mrf.mxu1 }
 0x5b6   :  { %v15590_v47 = vpop.eup %15589 }
 0x5b7   :  { %v10389_v48 = vadd.f32 1.0, %v15590_v47 }
 0x5b9   :  { %v10390_v49 = vmul.f32 0.5, %v10389_v48 }
 0x5bb   :  { %10392 = vst.msk [vmem:[%s15858_s7] sm:$0x3] %vm10391_vm1, %v10390_v49 }
 0x5bc   :  { %10397 = vsyncpa [#allocation5], 1 }
 0x5bd   :  { %10398 = vsyncpa [#allocation7], 1 }

</bundles_post_ra>
